<compile_context>
chip_gen: v6e
topology: v6e:2x2x1
jax: 0.10.0
libtpu: 0.0.40
codegen_flags: <defaults>
</compile_context>

<pallas_src>
import jax
import jax.numpy as jnp
from jax.experimental import pallas as pl
from jax.experimental.pallas import tpu as pltpu

C_PAD = 128                  # lane width used for all in-VMEM channel dims
MM_DTYPE = jnp.bfloat16      # MXU input dtype (accumulation stays f32)


# ---------------------------------------------------------------------------
# Fused conv stack kernel: conv1/pool1 -> conv2/pool2 -> conv3, one image/step
# ---------------------------------------------------------------------------
def _fused_conv_kernel(x_ref, w1_ref, b1_ref, a1_ref,
                       w2_ref, b2_ref, a2_ref,
                       w3_ref, b3_ref, a3_ref,
                       o_ref, ybuf, rowbuf, act1, act2):

    def conv_into_ybuf(load_lhs, w_ref, b_ref, a_ref, W, k, M, chunk):
        """Whole-image conv: one matmul per (kh,kw) tap, chained f32 accumulate,
        fused bias + per-channel PReLU, result written to ybuf[0:M]."""
        bias = b_ref[...]
        alpha = a_ref[...]
        lo = 0
        while lo < M:                               # static Python unroll
            sz = min(chunk, M - lo)
            acc = None
            for kh in range(k):
                for kw in range(k):
                    off = kh * W + kw + lo
                    lhs = load_lhs(off, sz)          # (sz, Cin) bf16
                    d = jnp.dot(lhs, w_ref[kh * k + kw],
                                preferred_element_type=jnp.float32)
                    acc = d if acc is None else acc + d
            y = acc + bias
            ybuf[lo:lo + sz, :] = jnp.where(y > 0.0, y, y * alpha)
            lo += sz

    def pool_from_ybuf(W, Hc, Wc, Ho, Wp, S, store_row):
        """3x3 stride-2 ceil-mode max pool of the conv output living in ybuf
        (flat rows r*W + c, valid for c < Wc).  Phase 1: row max into rowbuf
        (row stride S, pad columns already hold -inf).  Phase 2: column max via
        stride-2 reads."""
        for p in range(Ho):
            r0 = 2 * p
            r1 = min(2 * p + 1, Hc - 1)
            r2 = min(2 * p + 2, Hc - 1)
            rm = jnp.maximum(ybuf[r0 * W:r0 * W + Wc, :],
                             ybuf[r1 * W:r1 * W + Wc, :])
            rm = jnp.maximum(rm, ybuf[r2 * W:r2 * W + Wc, :])
            rowbuf[p * S:p * S + Wc, :] = rm
        for p in range(Ho):
            c0 = rowbuf[pl.ds(p * S + 0, Wp, stride=2), :]
            c1 = rowbuf[pl.ds(p * S + 1, Wp, stride=2), :]
            c2 = rowbuf[pl.ds(p * S + 2, Wp, stride=2), :]
            store_row(p, jnp.maximum(jnp.maximum(c0, c1), c2))

    # -inf padding for ceil-mode pooling columns (pad entries never overwritten)
    rowbuf[...] = jnp.full(rowbuf.shape, -jnp.inf, jnp.float32)

    # ---- conv1 (3x3, 3->28) + PReLU + pool1: 24x24 -> 22x22 -> 11x11 ---------
    W1, K1 = 24, 3
    Hc1, Wc1 = 22, 22
    M1 = (Hc1 - 1) * W1 + Wc1                      # 526
    Ho1, Wp1, S1 = 11, 11, 24

    conv_into_ybuf(lambda off, sz: x_ref[0, off:off + sz, :].astype(MM_DTYPE),
                   w1_ref, b1_ref, a1_ref, W1, K1, M1, chunk=112)

    def store_act1(p, v):
        act1[p * Wp1:(p + 1) * Wp1, :] = v

    pool_from_ybuf(W1, Hc1, Wc1, Ho1, Wp1, S1, store_act1)

    # ---- conv2 (3x3, 28->48) + PReLU + pool2: 11x11 -> 9x9 -> 4x4 ------------
    W2, K2 = 11, 3
    Hc2, Wc2 = 9, 9
    M2 = (Hc2 - 1) * W2 + Wc2                      # 97
    Ho2, Wp2, S2 = 4, 4, 16

    conv_into_ybuf(lambda off, sz: act1[off:off + sz, :].astype(MM_DTYPE),
                   w2_ref, b2_ref, a2_ref, W2, K2, M2, chunk=M2)

    def store_act2(p, v):
        act2[p * Wp2:(p + 1) * Wp2, :] = v

    pool_from_ybuf(W2, Hc2, Wc2, Ho2, Wp2, S2, store_act2)

    # ---- conv3 (2x2, 48->64) + PReLU: 4x4 -> 3x3 -----------------------------
    W3, K3 = 4, 2
    Hc3, Wc3 = 3, 3
    M3 = (Hc3 - 1) * W3 + Wc3                      # 11
    conv_into_ybuf(lambda off, sz: act2[off:off + sz, :].astype(MM_DTYPE),
                   w3_ref, b3_ref, a3_ref, W3, K3, M3, chunk=M3)

    # Emit the (3, 3, 64) feature map (true channels only) in (h, w, c) order.
    for h in range(Hc3):
        o_ref[0, h * Wc3:(h + 1) * Wc3, :] = ybuf[h * W3:h * W3 + Wc3, 0:64]


def conv_feature_stack(x_flat, prep):
    """x_flat: (N, 576, 3) f32 NHWC-flattened 24x24 crops -> (N, 9, 64) f32."""
    N = x_flat.shape[0]
    return pl.pallas_call(
        _fused_conv_kernel,
        out_shape=jax.ShapeDtypeStruct((N, 9, 64), jnp.float32),
        grid_spec=pltpu.PrefetchScalarGridSpec(
            num_scalar_prefetch=0,
            grid=(N,),
            in_specs=[
                pl.BlockSpec((1, 576, 3), lambda n: (n, 0, 0)),
                pl.BlockSpec((9, 3, C_PAD), lambda n: (0, 0, 0)),
                pl.BlockSpec((1, C_PAD), lambda n: (0, 0)),
                pl.BlockSpec((1, C_PAD), lambda n: (0, 0)),
                pl.BlockSpec((9, C_PAD, C_PAD), lambda n: (0, 0, 0)),
                pl.BlockSpec((1, C_PAD), lambda n: (0, 0)),
                pl.BlockSpec((1, C_PAD), lambda n: (0, 0)),
                pl.BlockSpec((4, C_PAD, C_PAD), lambda n: (0, 0, 0)),
                pl.BlockSpec((1, C_PAD), lambda n: (0, 0)),
                pl.BlockSpec((1, C_PAD), lambda n: (0, 0)),
            ],
            out_specs=pl.BlockSpec((1, 9, 64), lambda n: (n, 0, 0)),
            scratch_shapes=[
                pltpu.VMEM((528, C_PAD), jnp.float32),   # ybuf: conv output
                pltpu.VMEM((264, C_PAD), jnp.float32),   # rowbuf: 11 * 24 rows
                pltpu.VMEM((128, C_PAD), jnp.float32),   # act1: pool1 out (121)
                pltpu.VMEM((16, C_PAD), jnp.float32),    # act2: pool2 out (16)
            ],
        ),
        compiler_params=pltpu.CompilerParams(
            dimension_semantics=("parallel",),
            vmem_limit_bytes=32 * 1024 * 1024,
        ),
        cost_estimate=pl.CostEstimate(
            flops=2 * N * (526 * 9 * 3 * C_PAD
                           + 97 * 9 * C_PAD * C_PAD
                           + 11 * 4 * C_PAD * C_PAD),
            transcendentals=0,
            bytes_accessed=4 * N * (576 * 3 + 9 * 64)
                           + 2 * (9 * 3 + 9 * C_PAD + 4 * C_PAD) * C_PAD,
        ),
    )(x_flat, prep["w1"], prep["b1"], prep["a1"],
      prep["w2"], prep["b2"], prep["a2"],
      prep["w3"], prep["b3"], prep["a3"])


# ---------------------------------------------------------------------------
# Fused fc(576->128) + PReLU + dual head (softmax probs, bbox offsets)
# ---------------------------------------------------------------------------
def _fc_head_kernel(x_ref, w4_ref, b4_ref, a4_ref, wh_ref, bh_ref, o_ref):
    x = x_ref[...].astype(MM_DTYPE)                                    # (bt, 576)
    h = jnp.dot(x, w4_ref[...], preferred_element_type=jnp.float32)
    h = h + b4_ref[...]
    h = jnp.where(h > 0.0, h, h * a4_ref[...])                         # PReLU4
    y = jnp.dot(h.astype(MM_DTYPE), wh_ref[...],
                preferred_element_type=jnp.float32) + bh_ref[...]      # (bt, 8)
    logits = y[:, 0:2]
    m = jnp.max(logits, axis=-1, keepdims=True)
    e = jnp.exp(logits - m)
    s = jnp.sum(e, axis=-1, keepdims=True)
    r = pl.reciprocal(s, approx=True)
    r = r * (2.0 - s * r)               # one Newton step -> near-exact divide
    o_ref[...] = y                       # lanes 2:6 = offsets, 6:8 = pad zeros
    o_ref[:, 0:2] = e * r                # lanes 0:2 = softmax probabilities


def fc_head(xf, prep):
    N, K = xf.shape                                    # K = 576
    Np = ((N + 7) // 8) * 8                            # multiple of 8 rows
    bt = min(Np, 512)
    Np = ((Np + bt - 1) // bt) * bt
    if Np != N:
        xf = jnp.pad(xf, ((0, Np - N), (0, 0)))

    out = pl.pallas_call(
        _fc_head_kernel,
        out_shape=jax.ShapeDtypeStruct((Np, 8), jnp.float32),
        grid_spec=pltpu.PrefetchScalarGridSpec(
            num_scalar_prefetch=0,
            grid=(Np // bt,),
            in_specs=[
                pl.BlockSpec((bt, K), lambda i: (i, 0)),
                pl.BlockSpec((K, 128), lambda i: (0, 0)),
                pl.BlockSpec((1, 128), lambda i: (0, 0)),
                pl.BlockSpec((1, 128), lambda i: (0, 0)),
                pl.BlockSpec((128, 8), lambda i: (0, 0)),
                pl.BlockSpec((1, 8), lambda i: (0, 0)),
            ],
            out_specs=pl.BlockSpec((bt, 8), lambda i: (i, 0)),
        ),
        compiler_params=pltpu.CompilerParams(
            dimension_semantics=("parallel",),
            vmem_limit_bytes=32 * 1024 * 1024,
        ),
        cost_estimate=pl.CostEstimate(
            flops=2 * Np * (K * 128 + 128 * 8),
            transcendentals=2 * Np,
            bytes_accessed=4 * Np * (K + 8) + 2 * (K * 128 + 128 * 8),
        ),
    )(xf, prep["w4"], prep["b4"], prep["a4"], prep["wh"], prep["bh"])

    probs = out[:N, 0:2]
    offsets = out[:N, 2:6]
    return offsets, probs


# ---------------------------------------------------------------------------
# Parameters: synthetic torch-layout weights + one-time TPU-friendly repack
# ---------------------------------------------------------------------------
def init_params(key):
    # TODO(synk): the original module loads pretrained .npy weights from disk;
    # replaced with deterministic synthetic weights (no file/network access).
    ks = jax.random.split(key, 12)
    kernels = [28, 48, 64, 128]

    def nrm(k, shape, scale=0.05):
        return (scale * jax.random.normal(k, shape)).astype(jnp.float32)

    return {
        "conv1_w": nrm(ks[0], (kernels[0], 3, 3, 3)),
        "conv1_b": nrm(ks[1], (kernels[0],), 0.01),
        "prelu1_a": jnp.full((kernels[0],), 0.25, jnp.float32),
        "conv2_w": nrm(ks[2], (kernels[1], kernels[0], 3, 3)),
        "conv2_b": nrm(ks[3], (kernels[1],), 0.01),
        "prelu2_a": jnp.full((kernels[1],), 0.25, jnp.float32),
        "conv3_w": nrm(ks[4], (kernels[2], kernels[1], 2, 2)),
        "conv3_b": nrm(ks[5], (kernels[2],), 0.01),
        "prelu3_a": jnp.full((kernels[2],), 0.25, jnp.float32),
        "conv4_w": nrm(ks[6], (kernels[3], 576)),    # Linear 576 -> 128
        "conv4_b": nrm(ks[7], (kernels[3],), 0.01),
        "prelu4_a": jnp.full((kernels[3],), 0.25, jnp.float32),
        "conv5_1_w": nrm(ks[8], (2, kernels[3])),    # Linear 128 -> 2 (probs)
        "conv5_1_b": nrm(ks[9], (2,), 0.01),
        "conv5_2_w": nrm(ks[10], (4, kernels[3])),   # Linear 128 -> 4 (offsets)
        "conv5_2_b": nrm(ks[11], (4,), 0.01),
    }


def prepare_params(p):
    """Repack torch-layout weights: conv weights as (kh*kw, Cin_pad, 128) bf16
    taps; fc weight permuted to the kernel's (h, w, c) flatten order."""

    def prep_conv(w, b, a, cin_pad):
        cout, cin, kh, kw = w.shape
        wt = jnp.transpose(w, (2, 3, 1, 0)).reshape(kh * kw, cin, cout)
        wt = jnp.pad(wt, ((0, 0), (0, cin_pad - cin), (0, C_PAD - cout)))
        bp = jnp.pad(b, (0, C_PAD - cout)).reshape(1, C_PAD)
        ap = jnp.pad(a, (0, C_PAD - cout)).reshape(1, C_PAD)
        return wt.astype(MM_DTYPE), bp.astype(jnp.float32), ap.astype(jnp.float32)

    w1, b1, a1 = prep_conv(p["conv1_w"], p["conv1_b"], p["prelu1_a"], 3)
    w2, b2, a2 = prep_conv(p["conv2_w"], p["conv2_b"], p["prelu2_a"], C_PAD)
    w3, b3, a3 = prep_conv(p["conv3_w"], p["conv3_b"], p["prelu3_a"], C_PAD)

    # Torch custom Flatten = transpose(3,2) then view -> column f = c*9 + w*3 + h.
    # Kernel feature map is flattened (h, w, c); permute the weight to match.
    w4 = p["conv4_w"].reshape(128, 64, 3, 3)           # (out, c, w, h)
    w4 = jnp.transpose(w4, (3, 2, 1, 0)).reshape(576, 128).astype(MM_DTYPE)
    b4 = p["conv4_b"].reshape(1, 128).astype(jnp.float32)
    a4 = p["prelu4_a"].reshape(1, 128).astype(jnp.float32)

    wh = jnp.concatenate([p["conv5_1_w"].T, p["conv5_2_w"].T,
                          jnp.zeros((128, 2), jnp.float32)],
                         axis=1).astype(MM_DTYPE)                       # (128, 8)
    bh = jnp.concatenate([p["conv5_1_b"], p["conv5_2_b"],
                          jnp.zeros((2,), jnp.float32)]).reshape(1, 8)
    bh = bh.astype(jnp.float32)

    return dict(w1=w1, b1=b1, a1=a1, w2=w2, b2=b2, a2=a2, w3=w3, b3=b3, a3=a3,
                w4=w4, b4=b4, a4=a4, wh=wh, bh=bh)


# ---------------------------------------------------------------------------
# Full RNet forward
# ---------------------------------------------------------------------------
def rnet_forward(prep, x_nchw):
    """x: (N, 3, 24, 24) NCHW f32 -> (offsets (N, 4), probs (N, 2))."""
    N = x_nchw.shape[0]
    assert x_nchw.shape[1:] == (3, 24, 24)
    x = jnp.transpose(x_nchw, (0, 2, 3, 1)).reshape(N, 24 * 24, 3)   # NHWC once
    feat = conv_feature_stack(x, prep)            # (N, 9, 64) f32, (h, w, c)
    xf = feat.reshape(N, 9 * 64)                  # free contiguous reshape
    return fc_head(xf, prep)


# ---------------------------------------------------------------------------
# Pure-JAX reference (same semantics as the PyTorch module)
# ---------------------------------------------------------------------------
def rnet_reference(params, x):
    def prelu(y, a):
        return jnp.where(y > 0, y, y * a[None, :, None, None])

    def conv(y, w, b):
        out = jax.lax.conv_general_dilated(
            y, w, (1, 1), "VALID",
            dimension_numbers=("NCHW", "OIHW", "NCHW"))
        return out + b[None, :, None, None]

    def pool_ceil(y):
        _, _, H, W = y.shape
        Ho = -(-(H - 3) // 2) + 1
        Wo = -(-(W - 3) // 2) + 1
        ph = (Ho - 1) * 2 + 3 - H
        pw = (Wo - 1) * 2 + 3 - W
        return jax.lax.reduce_window(
            y, -jnp.inf, jax.lax.max, (1, 1, 3, 3), (1, 1, 2, 2),
            ((0, 0), (0, 0), (0, ph), (0, pw)))

    y = prelu(conv(x, params["conv1_w"], params["conv1_b"]), params["prelu1_a"])
    y = pool_ceil(y)
    y = prelu(conv(y, params["conv2_w"], params["conv2_b"]), params["prelu2_a"])
    y = pool_ceil(y)
    y = prelu(conv(y, params["conv3_w"], params["conv3_b"]), params["prelu3_a"])
    yf = jnp.transpose(y, (0, 1, 3, 2)).reshape(y.shape[0], -1)   # custom Flatten
    h = yf @ params["conv4_w"].T + params["conv4_b"]
    h = jnp.where(h > 0, h, h * params["prelu4_a"][None, :])
    logits = h @ params["conv5_1_w"].T + params["conv5_1_b"]
    probs = jax.nn.softmax(logits, axis=1)
    offsets = h @ params["conv5_2_w"].T + params["conv5_2_b"]
    return offsets, probs


if __name__ == "__main__":
    key = jax.random.PRNGKey(0)
    pkey, xkey = jax.random.split(key)
    params = init_params(pkey)
    prep = prepare_params(params)
    # RNet canonical input: batch of 2 crops, 3 channels, 24x24 (fc_size = 576).
    x = jax.random.normal(xkey, (2, 3, 24, 24), dtype=jnp.float32)

    fwd = jax.jit(rnet_forward)
    offsets, probs = fwd(prep, x)
    offsets = jax.block_until_ready(offsets)
    probs = jax.block_until_ready(probs)

    assert offsets.shape == (2, 4) and probs.shape == (2, 2)
    assert bool(jnp.all(jnp.isfinite(offsets))) and bool(jnp.all(jnp.isfinite(probs)))
    assert bool(jnp.all(jnp.abs(jnp.sum(probs, axis=1) - 1.0) < 1e-3))

    ref_off, ref_probs = rnet_reference(params, x)
    assert bool(jnp.max(jnp.abs(offsets - ref_off)) < 5e-2)
    assert bool(jnp.max(jnp.abs(probs - ref_probs)) < 5e-2)

    print("KERNEL_OK")
</pallas_src>

<mosaic_0001>
module attributes {stable_mosaic.version = 11 : i64} {
  func.func @_fc_head_kernel(%arg0: i32, %arg1: memref<8x576xf32, #tpu.memory_space<vmem>>, %arg2: memref<576x128xbf16, #tpu.memory_space<vmem>>, %arg3: memref<1x128xf32, #tpu.memory_space<vmem>>, %arg4: memref<1x128xf32, #tpu.memory_space<vmem>>, %arg5: memref<128x8xbf16, #tpu.memory_space<vmem>>, %arg6: memref<1x8xf32, #tpu.memory_space<vmem>>, %arg7: memref<8x8xf32, #tpu.memory_space<vmem>>) attributes {dimension_semantics = [#tpu.dimension_semantics<parallel>], iteration_bounds = array<i64: 1>, scalar_prefetch = 0 : i64, scratch_operands = 0 : i64, tpu.core_type = #tpu.core_type<tc>, window_params = [{transform_indices = @transform_0, window_bounds = array<i64: 8, 576>}, {pipeline_mode = #tpu.pipeline_mode<synchronous>, transform_indices = @transform_1, window_bounds = array<i64: 576, 128>}, {pipeline_mode = #tpu.pipeline_mode<synchronous>, transform_indices = @transform_2, window_bounds = array<i64: 1, 128>}, {pipeline_mode = #tpu.pipeline_mode<synchronous>, transform_indices = @transform_3, window_bounds = array<i64: 1, 128>}, {pipeline_mode = #tpu.pipeline_mode<synchronous>, transform_indices = @transform_4, window_bounds = array<i64: 128, 8>}, {pipeline_mode = #tpu.pipeline_mode<synchronous>, transform_indices = @transform_5, window_bounds = array<i64: 1, 8>}, {transform_indices = @transform_6, window_bounds = array<i64: 8, 8>}]} {
    %c0 = arith.constant 0 : index
    %c0_0 = arith.constant 0 : index
    %0 = vector.load %arg1[%c0, %c0_0] : memref<8x576xf32, #tpu.memory_space<vmem>>, vector<8x576xf32>
    %1 = arith.truncf %0 : vector<8x576xf32> to vector<8x576xbf16>
    %c0_1 = arith.constant 0 : index
    %c0_2 = arith.constant 0 : index
    %2 = vector.load %arg2[%c0_1, %c0_2] : memref<576x128xbf16, #tpu.memory_space<vmem>>, vector<576x128xbf16>
    %cst = arith.constant dense<0.000000e+00> : vector<8x128xf32>
    %3 = tpu.matmul %1, %2, %cst {dimension_numbers = #tpu.dot_dimension_numbers<[1], [0], [0], [1], [0, 0, 1, 1], [], []>} : vector<8x576xbf16>, vector<576x128xbf16>, vector<8x128xf32> -> vector<8x128xf32>
    %c0_3 = arith.constant 0 : index
    %c0_4 = arith.constant 0 : index
    %4 = vector.load %arg3[%c0_3, %c0_4] : memref<1x128xf32, #tpu.memory_space<vmem>>, vector<1x128xf32>
    %5 = vector.broadcast %4 : vector<1x128xf32> to vector<8x128xf32>
    %6 = arith.addf %3, %5 : vector<8x128xf32>
    %cst_5 = arith.constant 0.000000e+00 : f32
    %7 = vector.broadcast %cst_5 : f32 to vector<8x128xf32>
    %8 = arith.cmpf ogt, %6, %7 : vector<8x128xf32>
    %c0_6 = arith.constant 0 : index
    %c0_7 = arith.constant 0 : index
    %9 = vector.load %arg4[%c0_6, %c0_7] : memref<1x128xf32, #tpu.memory_space<vmem>>, vector<1x128xf32>
    %10 = vector.broadcast %9 : vector<1x128xf32> to vector<8x128xf32>
    %11 = arith.mulf %6, %10 : vector<8x128xf32>
    %12 = arith.select %8, %6, %11 : vector<8x128xi1>, vector<8x128xf32>
    %13 = arith.truncf %12 : vector<8x128xf32> to vector<8x128xbf16>
    %c0_8 = arith.constant 0 : index
    %c0_9 = arith.constant 0 : index
    %14 = vector.load %arg5[%c0_8, %c0_9] : memref<128x8xbf16, #tpu.memory_space<vmem>>, vector<128x8xbf16>
    %cst_10 = arith.constant dense<0.000000e+00> : vector<8x8xf32>
    %15 = tpu.matmul %13, %14, %cst_10 {dimension_numbers = #tpu.dot_dimension_numbers<[1], [0], [0], [1], [0, 0, 1, 1], [], []>} : vector<8x128xbf16>, vector<128x8xbf16>, vector<8x8xf32> -> vector<8x8xf32>
    %c0_11 = arith.constant 0 : index
    %c0_12 = arith.constant 0 : index
    %16 = vector.load %arg6[%c0_11, %c0_12] : memref<1x8xf32, #tpu.memory_space<vmem>>, vector<1x8xf32>
    %17 = vector.broadcast %16 : vector<1x8xf32> to vector<8x8xf32>
    %18 = arith.addf %15, %17 : vector<8x8xf32>
    %19 = vector.extract_strided_slice %18 {offsets = [0, 0], sizes = [8, 2], strides = [1, 1]} : vector<8x8xf32> to vector<8x2xf32>
    %cst_13 = arith.constant dense<0xFF800000> : vector<8xf32>
    %20 = vector.multi_reduction <maximumf>, %19, %cst_13 [1] : vector<8x2xf32> to vector<8xf32>
    %21 = vector.shape_cast %20 : vector<8xf32> to vector<8x1xf32>
    %22 = vector.broadcast %21 : vector<8x1xf32> to vector<8x2xf32>
    %23 = arith.subf %19, %22 : vector<8x2xf32>
    %24 = math.exp %23 : vector<8x2xf32>
    %cst_14 = arith.constant dense<0.000000e+00> : vector<8xf32>
    %25 = vector.multi_reduction <add>, %24, %cst_14 [1] : vector<8x2xf32> to vector<8xf32>
    %26 = vector.shape_cast %25 : vector<8xf32> to vector<8x1xf32>
    %27 = tpu.reciprocal %26 {approx = true} : vector<8x1xf32> -> vector<8x1xf32>
    %28 = arith.mulf %26, %27 : vector<8x1xf32>
    %cst_15 = arith.constant 2.000000e+00 : f32
    %29 = vector.broadcast %cst_15 : f32 to vector<8x1xf32>
    %30 = arith.subf %29, %28 : vector<8x1xf32>
    %31 = arith.mulf %27, %30 : vector<8x1xf32>
    %c0_16 = arith.constant 0 : index
    %c0_17 = arith.constant 0 : index
    %32 = vector.load %arg7[%c0_16, %c0_17] : memref<8x8xf32, #tpu.memory_space<vmem>>, vector<8x8xf32>
    tpu.vector_store %arg7[%c0_16, %c0_17], %18 {strides = array<i32>} : memref<8x8xf32, #tpu.memory_space<vmem>>, vector<8x8xf32>,
    %33 = vector.broadcast %31 : vector<8x1xf32> to vector<8x2xf32>
    %34 = arith.mulf %24, %33 : vector<8x2xf32>
    %c0_18 = arith.constant 0 : index
    %c0_19 = arith.constant 0 : index
    %35 = vector.load %arg7[%c0_18, %c0_19] : memref<8x8xf32, #tpu.memory_space<vmem>>, vector<8x2xf32>
    tpu.vector_store %arg7[%c0_18, %c0_19], %34 {strides = array<i32>} : memref<8x8xf32, #tpu.memory_space<vmem>>, vector<8x2xf32>,
    return
  }
  func.func @transform_0(%arg0: i32) -> (i32, i32) {
    %c0_i32 = arith.constant 0 : i32
    %c0_i32_0 = arith.constant 0 : i32
    return %arg0, %c0_i32 : i32, i32
  }
  func.func @transform_1(%arg0: i32) -> (i32, i32) {
    %c0_i32 = arith.constant 0 : i32
    %c0_i32_0 = arith.constant 0 : i32
    %c0_i32_1 = arith.constant 0 : i32
    return %c0_i32, %c0_i32_0 : i32, i32
  }
  func.func @transform_2(%arg0: i32) -> (i32, i32) {
    %c0_i32 = arith.constant 0 : i32
    %c0_i32_0 = arith.constant 0 : i32
    %c0_i32_1 = arith.constant 0 : i32
    return %c0_i32, %c0_i32_0 : i32, i32
  }
  func.func @transform_3(%arg0: i32) -> (i32, i32) {
    %c0_i32 = arith.constant 0 : i32
    %c0_i32_0 = arith.constant 0 : i32
    %c0_i32_1 = arith.constant 0 : i32
    return %c0_i32, %c0_i32_0 : i32, i32
  }
  func.func @transform_4(%arg0: i32) -> (i32, i32) {
    %c0_i32 = arith.constant 0 : i32
    %c0_i32_0 = arith.constant 0 : i32
    %c0_i32_1 = arith.constant 0 : i32
    return %c0_i32, %c0_i32_0 : i32, i32
  }
  func.func @transform_5(%arg0: i32) -> (i32, i32) {
    %c0_i32 = arith.constant 0 : i32
    %c0_i32_0 = arith.constant 0 : i32
    %c0_i32_1 = arith.constant 0 : i32
    return %c0_i32, %c0_i32_0 : i32, i32
  }
  func.func @transform_6(%arg0: i32) -> (i32, i32) {
    %c0_i32 = arith.constant 0 : i32
    %c0_i32_0 = arith.constant 0 : i32
    return %arg0, %c0_i32 : i32, i32
  }
}

module attributes {stable_mosaic.version = 11 : i64} {
  func.func @_fused_conv_kernel(%arg0: i32, %arg1: memref<1x576x3xf32, #tpu.memory_space<vmem>>, %arg2: memref<9x3x128xbf16, #tpu.memory_space<vmem>>, %arg3: memref<1x128xf32, #tpu.memory_space<vmem>>, %arg4: memref<1x128xf32, #tpu.memory_space<vmem>>, %arg5: memref<9x128x128xbf16, #tpu.memory_space<vmem>>, %arg6: memref<1x128xf32, #tpu.memory_space<vmem>>, %arg7: memref<1x128xf32, #tpu.memory_space<vmem>>, %arg8: memref<4x128x128xbf16, #tpu.memory_space<vmem>>, %arg9: memref<1x128xf32, #tpu.memory_space<vmem>>, %arg10: memref<1x128xf32, #tpu.memory_space<vmem>>, %arg11: memref<1x9x64xf32, #tpu.memory_space<vmem>>, %arg12: memref<528x128xf32, #tpu.memory_space<vmem>>, %arg13: memref<264x128xf32, #tpu.memory_space<vmem>>, %arg14: memref<128x128xf32, #tpu.memory_space<vmem>>, %arg15: memref<16x128xf32, #tpu.memory_space<vmem>>) attributes {dimension_semantics = [#tpu.dimension_semantics<parallel>], iteration_bounds = array<i64: 2>, scalar_prefetch = 0 : i64, scratch_operands = 4 : i64, tpu.core_type = #tpu.core_type<tc>, window_params = [{transform_indices = @transform_0, window_bounds = array<i64: 1, 576, 3>}, {pipeline_mode = #tpu.pipeline_mode<synchronous>, transform_indices = @transform_1, window_bounds = array<i64: 9, 3, 128>}, {pipeline_mode = #tpu.pipeline_mode<synchronous>, transform_indices = @transform_2, window_bounds = array<i64: 1, 128>}, {pipeline_mode = #tpu.pipeline_mode<synchronous>, transform_indices = @transform_3, window_bounds = array<i64: 1, 128>}, {pipeline_mode = #tpu.pipeline_mode<synchronous>, transform_indices = @transform_4, window_bounds = array<i64: 9, 128, 128>}, {pipeline_mode = #tpu.pipeline_mode<synchronous>, transform_indices = @transform_5, window_bounds = array<i64: 1, 128>}, {pipeline_mode = #tpu.pipeline_mode<synchronous>, transform_indices = @transform_6, window_bounds = array<i64: 1, 128>}, {pipeline_mode = #tpu.pipeline_mode<synchronous>, transform_indices = @transform_7, window_bounds = array<i64: 4, 128, 128>}, {pipeline_mode = #tpu.pipeline_mode<synchronous>, transform_indices = @transform_8, window_bounds = array<i64: 1, 128>}, {pipeline_mode = #tpu.pipeline_mode<synchronous>, transform_indices = @transform_9, window_bounds = array<i64: 1, 128>}, {transform_indices = @transform_10, window_bounds = array<i64: 1, 9, 64>}]} {
    %cst = arith.constant 0xFF800000 : f32
    %0 = vector.broadcast %cst : f32 to vector<264x128xf32>
    %c0 = arith.constant 0 : index
    %c0_0 = arith.constant 0 : index
    %1 = vector.load %arg13[%c0, %c0_0] : memref<264x128xf32, #tpu.memory_space<vmem>>, vector<264x128xf32>
    tpu.vector_store %arg13[%c0, %c0_0], %0 {strides = array<i32>} : memref<264x128xf32, #tpu.memory_space<vmem>>, vector<264x128xf32>,
    %c0_1 = arith.constant 0 : index
    %c0_2 = arith.constant 0 : index
    %2 = vector.load %arg3[%c0_1, %c0_2] : memref<1x128xf32, #tpu.memory_space<vmem>>, vector<1x128xf32>
    %c0_3 = arith.constant 0 : index
    %c0_4 = arith.constant 0 : index
    %3 = vector.load %arg4[%c0_3, %c0_4] : memref<1x128xf32, #tpu.memory_space<vmem>>, vector<1x128xf32>
    %c0_5 = arith.constant 0 : index
    %c0_6 = arith.constant 0 : index
    %c0_7 = arith.constant 0 : index
    %4 = vector.load %arg1[%c0_5, %c0_6, %c0_7] : memref<1x576x3xf32, #tpu.memory_space<vmem>>, vector<1x112x3xf32>
    %5 = vector.shape_cast %4 : vector<1x112x3xf32> to vector<112x3xf32>
    %6 = arith.truncf %5 : vector<112x3xf32> to vector<112x3xbf16>
    %c0_8 = arith.constant 0 : index
    %c0_9 = arith.constant 0 : index
    %c0_10 = arith.constant 0 : index
    %7 = vector.load %arg2[%c0_8, %c0_9, %c0_10] : memref<9x3x128xbf16, #tpu.memory_space<vmem>>, vector<1x3x128xbf16>
    %8 = vector.shape_cast %7 : vector<1x3x128xbf16> to vector<3x128xbf16>
    %cst_11 = arith.constant dense<0.000000e+00> : vector<112x128xf32>
    %9 = tpu.matmul %6, %8, %cst_11 {dimension_numbers = #tpu.dot_dimension_numbers<[1], [0], [0], [1], [0, 0, 1, 1], [], []>} : vector<112x3xbf16>, vector<3x128xbf16>, vector<112x128xf32> -> vector<112x128xf32>
    %c0_12 = arith.constant 0 : index
    %c1 = arith.constant 1 : index
    %c0_13 = arith.constant 0 : index
    %10 = vector.load %arg1[%c0_12, %c1, %c0_13] : memref<1x576x3xf32, #tpu.memory_space<vmem>>, vector<1x112x3xf32>
    %11 = vector.shape_cast %10 : vector<1x112x3xf32> to vector<112x3xf32>
    %12 = arith.truncf %11 : vector<112x3xf32> to vector<112x3xbf16>
    %c1_14 = arith.constant 1 : index
    %c0_15 = arith.constant 0 : index
    %c0_16 = arith.constant 0 : index
    %13 = vector.load %arg2[%c1_14, %c0_15, %c0_16] : memref<9x3x128xbf16, #tpu.memory_space<vmem>>, vector<1x3x128xbf16>
    %14 = vector.shape_cast %13 : vector<1x3x128xbf16> to vector<3x128xbf16>
    %cst_17 = arith.constant dense<0.000000e+00> : vector<112x128xf32>
    %15 = tpu.matmul %12, %14, %cst_17 {dimension_numbers = #tpu.dot_dimension_numbers<[1], [0], [0], [1], [0, 0, 1, 1], [], []>} : vector<112x3xbf16>, vector<3x128xbf16>, vector<112x128xf32> -> vector<112x128xf32>
    %16 = arith.addf %9, %15 : vector<112x128xf32>
    %c0_18 = arith.constant 0 : index
    %c2 = arith.constant 2 : index
    %c0_19 = arith.constant 0 : index
    %17 = vector.load %arg1[%c0_18, %c2, %c0_19] : memref<1x576x3xf32, #tpu.memory_space<vmem>>, vector<1x112x3xf32>
    %18 = vector.shape_cast %17 : vector<1x112x3xf32> to vector<112x3xf32>
    %19 = arith.truncf %18 : vector<112x3xf32> to vector<112x3xbf16>
    %c2_20 = arith.constant 2 : index
    %c0_21 = arith.constant 0 : index
    %c0_22 = arith.constant 0 : index
    %20 = vector.load %arg2[%c2_20, %c0_21, %c0_22] : memref<9x3x128xbf16, #tpu.memory_space<vmem>>, vector<1x3x128xbf16>
    %21 = vector.shape_cast %20 : vector<1x3x128xbf16> to vector<3x128xbf16>
    %cst_23 = arith.constant dense<0.000000e+00> : vector<112x128xf32>
    %22 = tpu.matmul %19, %21, %cst_23 {dimension_numbers = #tpu.dot_dimension_numbers<[1], [0], [0], [1], [0, 0, 1, 1], [], []>} : vector<112x3xbf16>, vector<3x128xbf16>, vector<112x128xf32> -> vector<112x128xf32>
    %23 = arith.addf %16, %22 : vector<112x128xf32>
    %c0_24 = arith.constant 0 : index
    %c24 = arith.constant 24 : index
    %c0_25 = arith.constant 0 : index
    %24 = vector.load %arg1[%c0_24, %c24, %c0_25] : memref<1x576x3xf32, #tpu.memory_space<vmem>>, vector<1x112x3xf32>
    %25 = vector.shape_cast %24 : vector<1x112x3xf32> to vector<112x3xf32>
    %26 = arith.truncf %25 : vector<112x3xf32> to vector<112x3xbf16>
    %c3 = arith.constant 3 : index
    %c0_26 = arith.constant 0 : index
    %c0_27 = arith.constant 0 : index
    %27 = vector.load %arg2[%c3, %c0_26, %c0_27] : memref<9x3x128xbf16, #tpu.memory_space<vmem>>, vector<1x3x128xbf16>
    %28 = vector.shape_cast %27 : vector<1x3x128xbf16> to vector<3x128xbf16>
    %cst_28 = arith.constant dense<0.000000e+00> : vector<112x128xf32>
    %29 = tpu.matmul %26, %28, %cst_28 {dimension_numbers = #tpu.dot_dimension_numbers<[1], [0], [0], [1], [0, 0, 1, 1], [], []>} : vector<112x3xbf16>, vector<3x128xbf16>, vector<112x128xf32> -> vector<112x128xf32>
    %30 = arith.addf %23, %29 : vector<112x128xf32>
    %c0_29 = arith.constant 0 : index
    %c25 = arith.constant 25 : index
    %c0_30 = arith.constant 0 : index
    %31 = vector.load %arg1[%c0_29, %c25, %c0_30] : memref<1x576x3xf32, #tpu.memory_space<vmem>>, vector<1x112x3xf32>
    %32 = vector.shape_cast %31 : vector<1x112x3xf32> to vector<112x3xf32>
    %33 = arith.truncf %32 : vector<112x3xf32> to vector<112x3xbf16>
    %c4 = arith.constant 4 : index
    %c0_31 = arith.constant 0 : index
    %c0_32 = arith.constant 0 : index
    %34 = vector.load %arg2[%c4, %c0_31, %c0_32] : memref<9x3x128xbf16, #tpu.memory_space<vmem>>, vector<1x3x128xbf16>
    %35 = vector.shape_cast %34 : vector<1x3x128xbf16> to vector<3x128xbf16>
    %cst_33 = arith.constant dense<0.000000e+00> : vector<112x128xf32>
    %36 = tpu.matmul %33, %35, %cst_33 {dimension_numbers = #tpu.dot_dimension_numbers<[1], [0], [0], [1], [0, 0, 1, 1], [], []>} : vector<112x3xbf16>, vector<3x128xbf16>, vector<112x128xf32> -> vector<112x128xf32>
    %37 = arith.addf %30, %36 : vector<112x128xf32>
    %c0_34 = arith.constant 0 : index
    %c26 = arith.constant 26 : index
    %c0_35 = arith.constant 0 : index
    %38 = vector.load %arg1[%c0_34, %c26, %c0_35] : memref<1x576x3xf32, #tpu.memory_space<vmem>>, vector<1x112x3xf32>
    %39 = vector.shape_cast %38 : vector<1x112x3xf32> to vector<112x3xf32>
    %40 = arith.truncf %39 : vector<112x3xf32> to vector<112x3xbf16>
    %c5 = arith.constant 5 : index
    %c0_36 = arith.constant 0 : index
    %c0_37 = arith.constant 0 : index
    %41 = vector.load %arg2[%c5, %c0_36, %c0_37] : memref<9x3x128xbf16, #tpu.memory_space<vmem>>, vector<1x3x128xbf16>
    %42 = vector.shape_cast %41 : vector<1x3x128xbf16> to vector<3x128xbf16>
    %cst_38 = arith.constant dense<0.000000e+00> : vector<112x128xf32>
    %43 = tpu.matmul %40, %42, %cst_38 {dimension_numbers = #tpu.dot_dimension_numbers<[1], [0], [0], [1], [0, 0, 1, 1], [], []>} : vector<112x3xbf16>, vector<3x128xbf16>, vector<112x128xf32> -> vector<112x128xf32>
    %44 = arith.addf %37, %43 : vector<112x128xf32>
    %c0_39 = arith.constant 0 : index
    %c48 = arith.constant 48 : index
    %c0_40 = arith.constant 0 : index
    %45 = vector.load %arg1[%c0_39, %c48, %c0_40] : memref<1x576x3xf32, #tpu.memory_space<vmem>>, vector<1x112x3xf32>
    %46 = vector.shape_cast %45 : vector<1x112x3xf32> to vector<112x3xf32>
    %47 = arith.truncf %46 : vector<112x3xf32> to vector<112x3xbf16>
    %c6 = arith.constant 6 : index
    %c0_41 = arith.constant 0 : index
    %c0_42 = arith.constant 0 : index
    %48 = vector.load %arg2[%c6, %c0_41, %c0_42] : memref<9x3x128xbf16, #tpu.memory_space<vmem>>, vector<1x3x128xbf16>
    %49 = vector.shape_cast %48 : vector<1x3x128xbf16> to vector<3x128xbf16>
    %cst_43 = arith.constant dense<0.000000e+00> : vector<112x128xf32>
    %50 = tpu.matmul %47, %49, %cst_43 {dimension_numbers = #tpu.dot_dimension_numbers<[1], [0], [0], [1], [0, 0, 1, 1], [], []>} : vector<112x3xbf16>, vector<3x128xbf16>, vector<112x128xf32> -> vector<112x128xf32>
    %51 = arith.addf %44, %50 : vector<112x128xf32>
    %c0_44 = arith.constant 0 : index
    %c49 = arith.constant 49 : index
    %c0_45 = arith.constant 0 : index
    %52 = vector.load %arg1[%c0_44, %c49, %c0_45] : memref<1x576x3xf32, #tpu.memory_space<vmem>>, vector<1x112x3xf32>
    %53 = vector.shape_cast %52 : vector<1x112x3xf32> to vector<112x3xf32>
    %54 = arith.truncf %53 : vector<112x3xf32> to vector<112x3xbf16>
    %c7 = arith.constant 7 : index
    %c0_46 = arith.constant 0 : index
    %c0_47 = arith.constant 0 : index
    %55 = vector.load %arg2[%c7, %c0_46, %c0_47] : memref<9x3x128xbf16, #tpu.memory_space<vmem>>, vector<1x3x128xbf16>
    %56 = vector.shape_cast %55 : vector<1x3x128xbf16> to vector<3x128xbf16>
    %cst_48 = arith.constant dense<0.000000e+00> : vector<112x128xf32>
    %57 = tpu.matmul %54, %56, %cst_48 {dimension_numbers = #tpu.dot_dimension_numbers<[1], [0], [0], [1], [0, 0, 1, 1], [], []>} : vector<112x3xbf16>, vector<3x128xbf16>, vector<112x128xf32> -> vector<112x128xf32>
    %58 = arith.addf %51, %57 : vector<112x128xf32>
    %c0_49 = arith.constant 0 : index
    %c50 = arith.constant 50 : index
    %c0_50 = arith.constant 0 : index
    %59 = vector.load %arg1[%c0_49, %c50, %c0_50] : memref<1x576x3xf32, #tpu.memory_space<vmem>>, vector<1x112x3xf32>
    %60 = vector.shape_cast %59 : vector<1x112x3xf32> to vector<112x3xf32>
    %61 = arith.truncf %60 : vector<112x3xf32> to vector<112x3xbf16>
    %c8 = arith.constant 8 : index
    %c0_51 = arith.constant 0 : index
    %c0_52 = arith.constant 0 : index
    %62 = vector.load %arg2[%c8, %c0_51, %c0_52] : memref<9x3x128xbf16, #tpu.memory_space<vmem>>, vector<1x3x128xbf16>
    %63 = vector.shape_cast %62 : vector<1x3x128xbf16> to vector<3x128xbf16>
    %cst_53 = arith.constant dense<0.000000e+00> : vector<112x128xf32>
    %64 = tpu.matmul %61, %63, %cst_53 {dimension_numbers = #tpu.dot_dimension_numbers<[1], [0], [0], [1], [0, 0, 1, 1], [], []>} : vector<112x3xbf16>, vector<3x128xbf16>, vector<112x128xf32> -> vector<112x128xf32>
    %65 = arith.addf %58, %64 : vector<112x128xf32>
    %66 = vector.broadcast %2 : vector<1x128xf32> to vector<112x128xf32>
    %67 = arith.addf %65, %66 : vector<112x128xf32>
    %cst_54 = arith.constant 0.000000e+00 : f32
    %68 = vector.broadcast %cst_54 : f32 to vector<112x128xf32>
    %69 = arith.cmpf ogt, %67, %68 : vector<112x128xf32>
    %70 = vector.broadcast %3 : vector<1x128xf32> to vector<112x128xf32>
    %71 = arith.mulf %67, %70 : vector<112x128xf32>
    %72 = arith.select %69, %67, %71 : vector<112x128xi1>, vector<112x128xf32>
    %c0_55 = arith.constant 0 : index
    %c0_56 = arith.constant 0 : index
    %73 = vector.load %arg12[%c0_55, %c0_56] : memref<528x128xf32, #tpu.memory_space<vmem>>, vector<112x128xf32>
    tpu.vector_store %arg12[%c0_55, %c0_56], %72 {strides = array<i32>} : memref<528x128xf32, #tpu.memory_space<vmem>>, vector<112x128xf32>,
    %c0_57 = arith.constant 0 : index
    %c112 = arith.constant 112 : index
    %c0_58 = arith.constant 0 : index
    %74 = vector.load %arg1[%c0_57, %c112, %c0_58] : memref<1x576x3xf32, #tpu.memory_space<vmem>>, vector<1x112x3xf32>
    %75 = vector.shape_cast %74 : vector<1x112x3xf32> to vector<112x3xf32>
    %76 = arith.truncf %75 : vector<112x3xf32> to vector<112x3xbf16>
    %c0_59 = arith.constant 0 : index
    %c0_60 = arith.constant 0 : index
    %c0_61 = arith.constant 0 : index
    %77 = vector.load %arg2[%c0_59, %c0_60, %c0_61] : memref<9x3x128xbf16, #tpu.memory_space<vmem>>, vector<1x3x128xbf16>
    %78 = vector.shape_cast %77 : vector<1x3x128xbf16> to vector<3x128xbf16>
    %cst_62 = arith.constant dense<0.000000e+00> : vector<112x128xf32>
    %79 = tpu.matmul %76, %78, %cst_62 {dimension_numbers = #tpu.dot_dimension_numbers<[1], [0], [0], [1], [0, 0, 1, 1], [], []>} : vector<112x3xbf16>, vector<3x128xbf16>, vector<112x128xf32> -> vector<112x128xf32>
    %c0_63 = arith.constant 0 : index
    %c113 = arith.constant 113 : index
    %c0_64 = arith.constant 0 : index
    %80 = vector.load %arg1[%c0_63, %c113, %c0_64] : memref<1x576x3xf32, #tpu.memory_space<vmem>>, vector<1x112x3xf32>
    %81 = vector.shape_cast %80 : vector<1x112x3xf32> to vector<112x3xf32>
    %82 = arith.truncf %81 : vector<112x3xf32> to vector<112x3xbf16>
    %c1_65 = arith.constant 1 : index
    %c0_66 = arith.constant 0 : index
    %c0_67 = arith.constant 0 : index
    %83 = vector.load %arg2[%c1_65, %c0_66, %c0_67] : memref<9x3x128xbf16, #tpu.memory_space<vmem>>, vector<1x3x128xbf16>
    %84 = vector.shape_cast %83 : vector<1x3x128xbf16> to vector<3x128xbf16>
    %cst_68 = arith.constant dense<0.000000e+00> : vector<112x128xf32>
    %85 = tpu.matmul %82, %84, %cst_68 {dimension_numbers = #tpu.dot_dimension_numbers<[1], [0], [0], [1], [0, 0, 1, 1], [], []>} : vector<112x3xbf16>, vector<3x128xbf16>, vector<112x128xf32> -> vector<112x128xf32>
    %86 = arith.addf %79, %85 : vector<112x128xf32>
    %c0_69 = arith.constant 0 : index
    %c114 = arith.constant 114 : index
    %c0_70 = arith.constant 0 : index
    %87 = vector.load %arg1[%c0_69, %c114, %c0_70] : memref<1x576x3xf32, #tpu.memory_space<vmem>>, vector<1x112x3xf32>
    %88 = vector.shape_cast %87 : vector<1x112x3xf32> to vector<112x3xf32>
    %89 = arith.truncf %88 : vector<112x3xf32> to vector<112x3xbf16>
    %c2_71 = arith.constant 2 : index
    %c0_72 = arith.constant 0 : index
    %c0_73 = arith.constant 0 : index
    %90 = vector.load %arg2[%c2_71, %c0_72, %c0_73] : memref<9x3x128xbf16, #tpu.memory_space<vmem>>, vector<1x3x128xbf16>
    %91 = vector.shape_cast %90 : vector<1x3x128xbf16> to vector<3x128xbf16>
    %cst_74 = arith.constant dense<0.000000e+00> : vector<112x128xf32>
    %92 = tpu.matmul %89, %91, %cst_74 {dimension_numbers = #tpu.dot_dimension_numbers<[1], [0], [0], [1], [0, 0, 1, 1], [], []>} : vector<112x3xbf16>, vector<3x128xbf16>, vector<112x128xf32> -> vector<112x128xf32>
    %93 = arith.addf %86, %92 : vector<112x128xf32>
    %c0_75 = arith.constant 0 : index
    %c136 = arith.constant 136 : index
    %c0_76 = arith.constant 0 : index
    %94 = vector.load %arg1[%c0_75, %c136, %c0_76] : memref<1x576x3xf32, #tpu.memory_space<vmem>>, vector<1x112x3xf32>
    %95 = vector.shape_cast %94 : vector<1x112x3xf32> to vector<112x3xf32>
    %96 = arith.truncf %95 : vector<112x3xf32> to vector<112x3xbf16>
    %c3_77 = arith.constant 3 : index
    %c0_78 = arith.constant 0 : index
    %c0_79 = arith.constant 0 : index
    %97 = vector.load %arg2[%c3_77, %c0_78, %c0_79] : memref<9x3x128xbf16, #tpu.memory_space<vmem>>, vector<1x3x128xbf16>
    %98 = vector.shape_cast %97 : vector<1x3x128xbf16> to vector<3x128xbf16>
    %cst_80 = arith.constant dense<0.000000e+00> : vector<112x128xf32>
    %99 = tpu.matmul %96, %98, %cst_80 {dimension_numbers = #tpu.dot_dimension_numbers<[1], [0], [0], [1], [0, 0, 1, 1], [], []>} : vector<112x3xbf16>, vector<3x128xbf16>, vector<112x128xf32> -> vector<112x128xf32>
    %100 = arith.addf %93, %99 : vector<112x128xf32>
    %c0_81 = arith.constant 0 : index
    %c137 = arith.constant 137 : index
    %c0_82 = arith.constant 0 : index
    %101 = vector.load %arg1[%c0_81, %c137, %c0_82] : memref<1x576x3xf32, #tpu.memory_space<vmem>>, vector<1x112x3xf32>
    %102 = vector.shape_cast %101 : vector<1x112x3xf32> to vector<112x3xf32>
    %103 = arith.truncf %102 : vector<112x3xf32> to vector<112x3xbf16>
    %c4_83 = arith.constant 4 : index
    %c0_84 = arith.constant 0 : index
    %c0_85 = arith.constant 0 : index
    %104 = vector.load %arg2[%c4_83, %c0_84, %c0_85] : memref<9x3x128xbf16, #tpu.memory_space<vmem>>, vector<1x3x128xbf16>
    %105 = vector.shape_cast %104 : vector<1x3x128xbf16> to vector<3x128xbf16>
    %cst_86 = arith.constant dense<0.000000e+00> : vector<112x128xf32>
    %106 = tpu.matmul %103, %105, %cst_86 {dimension_numbers = #tpu.dot_dimension_numbers<[1], [0], [0], [1], [0, 0, 1, 1], [], []>} : vector<112x3xbf16>, vector<3x128xbf16>, vector<112x128xf32> -> vector<112x128xf32>
    %107 = arith.addf %100, %106 : vector<112x128xf32>
    %c0_87 = arith.constant 0 : index
    %c138 = arith.constant 138 : index
    %c0_88 = arith.constant 0 : index
    %108 = vector.load %arg1[%c0_87, %c138, %c0_88] : memref<1x576x3xf32, #tpu.memory_space<vmem>>, vector<1x112x3xf32>
    %109 = vector.shape_cast %108 : vector<1x112x3xf32> to vector<112x3xf32>
    %110 = arith.truncf %109 : vector<112x3xf32> to vector<112x3xbf16>
    %c5_89 = arith.constant 5 : index
    %c0_90 = arith.constant 0 : index
    %c0_91 = arith.constant 0 : index
    %111 = vector.load %arg2[%c5_89, %c0_90, %c0_91] : memref<9x3x128xbf16, #tpu.memory_space<vmem>>, vector<1x3x128xbf16>
    %112 = vector.shape_cast %111 : vector<1x3x128xbf16> to vector<3x128xbf16>
    %cst_92 = arith.constant dense<0.000000e+00> : vector<112x128xf32>
    %113 = tpu.matmul %110, %112, %cst_92 {dimension_numbers = #tpu.dot_dimension_numbers<[1], [0], [0], [1], [0, 0, 1, 1], [], []>} : vector<112x3xbf16>, vector<3x128xbf16>, vector<112x128xf32> -> vector<112x128xf32>
    %114 = arith.addf %107, %113 : vector<112x128xf32>
    %c0_93 = arith.constant 0 : index
    %c160 = arith.constant 160 : index
    %c0_94 = arith.constant 0 : index
    %115 = vector.load %arg1[%c0_93, %c160, %c0_94] : memref<1x576x3xf32, #tpu.memory_space<vmem>>, vector<1x112x3xf32>
    %116 = vector.shape_cast %115 : vector<1x112x3xf32> to vector<112x3xf32>
    %117 = arith.truncf %116 : vector<112x3xf32> to vector<112x3xbf16>
    %c6_95 = arith.constant 6 : index
    %c0_96 = arith.constant 0 : index
    %c0_97 = arith.constant 0 : index
    %118 = vector.load %arg2[%c6_95, %c0_96, %c0_97] : memref<9x3x128xbf16, #tpu.memory_space<vmem>>, vector<1x3x128xbf16>
    %119 = vector.shape_cast %118 : vector<1x3x128xbf16> to vector<3x128xbf16>
    %cst_98 = arith.constant dense<0.000000e+00> : vector<112x128xf32>
    %120 = tpu.matmul %117, %119, %cst_98 {dimension_numbers = #tpu.dot_dimension_numbers<[1], [0], [0], [1], [0, 0, 1, 1], [], []>} : vector<112x3xbf16>, vector<3x128xbf16>, vector<112x128xf32> -> vector<112x128xf32>
    %121 = arith.addf %114, %120 : vector<112x128xf32>
    %c0_99 = arith.constant 0 : index
    %c161 = arith.constant 161 : index
    %c0_100 = arith.constant 0 : index
    %122 = vector.load %arg1[%c0_99, %c161, %c0_100] : memref<1x576x3xf32, #tpu.memory_space<vmem>>, vector<1x112x3xf32>
    %123 = vector.shape_cast %122 : vector<1x112x3xf32> to vector<112x3xf32>
    %124 = arith.truncf %123 : vector<112x3xf32> to vector<112x3xbf16>
    %c7_101 = arith.constant 7 : index
    %c0_102 = arith.constant 0 : index
    %c0_103 = arith.constant 0 : index
    %125 = vector.load %arg2[%c7_101, %c0_102, %c0_103] : memref<9x3x128xbf16, #tpu.memory_space<vmem>>, vector<1x3x128xbf16>
    %126 = vector.shape_cast %125 : vector<1x3x128xbf16> to vector<3x128xbf16>
    %cst_104 = arith.constant dense<0.000000e+00> : vector<112x128xf32>
    %127 = tpu.matmul %124, %126, %cst_104 {dimension_numbers = #tpu.dot_dimension_numbers<[1], [0], [0], [1], [0, 0, 1, 1], [], []>} : vector<112x3xbf16>, vector<3x128xbf16>, vector<112x128xf32> -> vector<112x128xf32>
    %128 = arith.addf %121, %127 : vector<112x128xf32>
    %c0_105 = arith.constant 0 : index
    %c162 = arith.constant 162 : index
    %c0_106 = arith.constant 0 : index
    %129 = vector.load %arg1[%c0_105, %c162, %c0_106] : memref<1x576x3xf32, #tpu.memory_space<vmem>>, vector<1x112x3xf32>
    %130 = vector.shape_cast %129 : vector<1x112x3xf32> to vector<112x3xf32>
    %131 = arith.truncf %130 : vector<112x3xf32> to vector<112x3xbf16>
    %c8_107 = arith.constant 8 : index
    %c0_108 = arith.constant 0 : index
    %c0_109 = arith.constant 0 : index
    %132 = vector.load %arg2[%c8_107, %c0_108, %c0_109] : memref<9x3x128xbf16, #tpu.memory_space<vmem>>, vector<1x3x128xbf16>
    %133 = vector.shape_cast %132 : vector<1x3x128xbf16> to vector<3x128xbf16>
    %cst_110 = arith.constant dense<0.000000e+00> : vector<112x128xf32>
    %134 = tpu.matmul %131, %133, %cst_110 {dimension_numbers = #tpu.dot_dimension_numbers<[1], [0], [0], [1], [0, 0, 1, 1], [], []>} : vector<112x3xbf16>, vector<3x128xbf16>, vector<112x128xf32> -> vector<112x128xf32>
    %135 = arith.addf %128, %134 : vector<112x128xf32>
    %136 = vector.broadcast %2 : vector<1x128xf32> to vector<112x128xf32>
    %137 = arith.addf %135, %136 : vector<112x128xf32>
    %cst_111 = arith.constant 0.000000e+00 : f32
    %138 = vector.broadcast %cst_111 : f32 to vector<112x128xf32>
    %139 = arith.cmpf ogt, %137, %138 : vector<112x128xf32>
    %140 = vector.broadcast %3 : vector<1x128xf32> to vector<112x128xf32>
    %141 = arith.mulf %137, %140 : vector<112x128xf32>
    %142 = arith.select %139, %137, %141 : vector<112x128xi1>, vector<112x128xf32>
    %c112_112 = arith.constant 112 : index
    %c0_113 = arith.constant 0 : index
    %143 = vector.load %arg12[%c112_112, %c0_113] : memref<528x128xf32, #tpu.memory_space<vmem>>, vector<112x128xf32>
    tpu.vector_store %arg12[%c112_112, %c0_113], %142 {strides = array<i32>} : memref<528x128xf32, #tpu.memory_space<vmem>>, vector<112x128xf32>,
    %c0_114 = arith.constant 0 : index
    %c224 = arith.constant 224 : index
    %c0_115 = arith.constant 0 : index
    %144 = vector.load %arg1[%c0_114, %c224, %c0_115] : memref<1x576x3xf32, #tpu.memory_space<vmem>>, vector<1x112x3xf32>
    %145 = vector.shape_cast %144 : vector<1x112x3xf32> to vector<112x3xf32>
    %146 = arith.truncf %145 : vector<112x3xf32> to vector<112x3xbf16>
    %c0_116 = arith.constant 0 : index
    %c0_117 = arith.constant 0 : index
    %c0_118 = arith.constant 0 : index
    %147 = vector.load %arg2[%c0_116, %c0_117, %c0_118] : memref<9x3x128xbf16, #tpu.memory_space<vmem>>, vector<1x3x128xbf16>
    %148 = vector.shape_cast %147 : vector<1x3x128xbf16> to vector<3x128xbf16>
    %cst_119 = arith.constant dense<0.000000e+00> : vector<112x128xf32>
    %149 = tpu.matmul %146, %148, %cst_119 {dimension_numbers = #tpu.dot_dimension_numbers<[1], [0], [0], [1], [0, 0, 1, 1], [], []>} : vector<112x3xbf16>, vector<3x128xbf16>, vector<112x128xf32> -> vector<112x128xf32>
    %c0_120 = arith.constant 0 : index
    %c225 = arith.constant 225 : index
    %c0_121 = arith.constant 0 : index
    %150 = vector.load %arg1[%c0_120, %c225, %c0_121] : memref<1x576x3xf32, #tpu.memory_space<vmem>>, vector<1x112x3xf32>
    %151 = vector.shape_cast %150 : vector<1x112x3xf32> to vector<112x3xf32>
    %152 = arith.truncf %151 : vector<112x3xf32> to vector<112x3xbf16>
    %c1_122 = arith.constant 1 : index
    %c0_123 = arith.constant 0 : index
    %c0_124 = arith.constant 0 : index
    %153 = vector.load %arg2[%c1_122, %c0_123, %c0_124] : memref<9x3x128xbf16, #tpu.memory_space<vmem>>, vector<1x3x128xbf16>
    %154 = vector.shape_cast %153 : vector<1x3x128xbf16> to vector<3x128xbf16>
    %cst_125 = arith.constant dense<0.000000e+00> : vector<112x128xf32>
    %155 = tpu.matmul %152, %154, %cst_125 {dimension_numbers = #tpu.dot_dimension_numbers<[1], [0], [0], [1], [0, 0, 1, 1], [], []>} : vector<112x3xbf16>, vector<3x128xbf16>, vector<112x128xf32> -> vector<112x128xf32>
    %156 = arith.addf %149, %155 : vector<112x128xf32>
    %c0_126 = arith.constant 0 : index
    %c226 = arith.constant 226 : index
    %c0_127 = arith.constant 0 : index
    %157 = vector.load %arg1[%c0_126, %c226, %c0_127] : memref<1x576x3xf32, #tpu.memory_space<vmem>>, vector<1x112x3xf32>
    %158 = vector.shape_cast %157 : vector<1x112x3xf32> to vector<112x3xf32>
    %159 = arith.truncf %158 : vector<112x3xf32> to vector<112x3xbf16>
    %c2_128 = arith.constant 2 : index
    %c0_129 = arith.constant 0 : index
    %c0_130 = arith.constant 0 : index
    %160 = vector.load %arg2[%c2_128, %c0_129, %c0_130] : memref<9x3x128xbf16, #tpu.memory_space<vmem>>, vector<1x3x128xbf16>
    %161 = vector.shape_cast %160 : vector<1x3x128xbf16> to vector<3x128xbf16>
    %cst_131 = arith.constant dense<0.000000e+00> : vector<112x128xf32>
    %162 = tpu.matmul %159, %161, %cst_131 {dimension_numbers = #tpu.dot_dimension_numbers<[1], [0], [0], [1], [0, 0, 1, 1], [], []>} : vector<112x3xbf16>, vector<3x128xbf16>, vector<112x128xf32> -> vector<112x128xf32>
    %163 = arith.addf %156, %162 : vector<112x128xf32>
    %c0_132 = arith.constant 0 : index
    %c248 = arith.constant 248 : index
    %c0_133 = arith.constant 0 : index
    %164 = vector.load %arg1[%c0_132, %c248, %c0_133] : memref<1x576x3xf32, #tpu.memory_space<vmem>>, vector<1x112x3xf32>
    %165 = vector.shape_cast %164 : vector<1x112x3xf32> to vector<112x3xf32>
    %166 = arith.truncf %165 : vector<112x3xf32> to vector<112x3xbf16>
    %c3_134 = arith.constant 3 : index
    %c0_135 = arith.constant 0 : index
    %c0_136 = arith.constant 0 : index
    %167 = vector.load %arg2[%c3_134, %c0_135, %c0_136] : memref<9x3x128xbf16, #tpu.memory_space<vmem>>, vector<1x3x128xbf16>
    %168 = vector.shape_cast %167 : vector<1x3x128xbf16> to vector<3x128xbf16>
    %cst_137 = arith.constant dense<0.000000e+00> : vector<112x128xf32>
    %169 = tpu.matmul %166, %168, %cst_137 {dimension_numbers = #tpu.dot_dimension_numbers<[1], [0], [0], [1], [0, 0, 1, 1], [], []>} : vector<112x3xbf16>, vector<3x128xbf16>, vector<112x128xf32> -> vector<112x128xf32>
    %170 = arith.addf %163, %169 : vector<112x128xf32>
    %c0_138 = arith.constant 0 : index
    %c249 = arith.constant 249 : index
    %c0_139 = arith.constant 0 : index
    %171 = vector.load %arg1[%c0_138, %c249, %c0_139] : memref<1x576x3xf32, #tpu.memory_space<vmem>>, vector<1x112x3xf32>
    %172 = vector.shape_cast %171 : vector<1x112x3xf32> to vector<112x3xf32>
    %173 = arith.truncf %172 : vector<112x3xf32> to vector<112x3xbf16>
    %c4_140 = arith.constant 4 : index
    %c0_141 = arith.constant 0 : index
    %c0_142 = arith.constant 0 : index
    %174 = vector.load %arg2[%c4_140, %c0_141, %c0_142] : memref<9x3x128xbf16, #tpu.memory_space<vmem>>, vector<1x3x128xbf16>
    %175 = vector.shape_cast %174 : vector<1x3x128xbf16> to vector<3x128xbf16>
    %cst_143 = arith.constant dense<0.000000e+00> : vector<112x128xf32>
    %176 = tpu.matmul %173, %175, %cst_143 {dimension_numbers = #tpu.dot_dimension_numbers<[1], [0], [0], [1], [0, 0, 1, 1], [], []>} : vector<112x3xbf16>, vector<3x128xbf16>, vector<112x128xf32> -> vector<112x128xf32>
    %177 = arith.addf %170, %176 : vector<112x128xf32>
    %c0_144 = arith.constant 0 : index
    %c250 = arith.constant 250 : index
    %c0_145 = arith.constant 0 : index
    %178 = vector.load %arg1[%c0_144, %c250, %c0_145] : memref<1x576x3xf32, #tpu.memory_space<vmem>>, vector<1x112x3xf32>
    %179 = vector.shape_cast %178 : vector<1x112x3xf32> to vector<112x3xf32>
    %180 = arith.truncf %179 : vector<112x3xf32> to vector<112x3xbf16>
    %c5_146 = arith.constant 5 : index
    %c0_147 = arith.constant 0 : index
    %c0_148 = arith.constant 0 : index
    %181 = vector.load %arg2[%c5_146, %c0_147, %c0_148] : memref<9x3x128xbf16, #tpu.memory_space<vmem>>, vector<1x3x128xbf16>
    %182 = vector.shape_cast %181 : vector<1x3x128xbf16> to vector<3x128xbf16>
    %cst_149 = arith.constant dense<0.000000e+00> : vector<112x128xf32>
    %183 = tpu.matmul %180, %182, %cst_149 {dimension_numbers = #tpu.dot_dimension_numbers<[1], [0], [0], [1], [0, 0, 1, 1], [], []>} : vector<112x3xbf16>, vector<3x128xbf16>, vector<112x128xf32> -> vector<112x128xf32>
    %184 = arith.addf %177, %183 : vector<112x128xf32>
    %c0_150 = arith.constant 0 : index
    %c272 = arith.constant 272 : index
    %c0_151 = arith.constant 0 : index
    %185 = vector.load %arg1[%c0_150, %c272, %c0_151] : memref<1x576x3xf32, #tpu.memory_space<vmem>>, vector<1x112x3xf32>
    %186 = vector.shape_cast %185 : vector<1x112x3xf32> to vector<112x3xf32>
    %187 = arith.truncf %186 : vector<112x3xf32> to vector<112x3xbf16>
    %c6_152 = arith.constant 6 : index
    %c0_153 = arith.constant 0 : index
    %c0_154 = arith.constant 0 : index
    %188 = vector.load %arg2[%c6_152, %c0_153, %c0_154] : memref<9x3x128xbf16, #tpu.memory_space<vmem>>, vector<1x3x128xbf16>
    %189 = vector.shape_cast %188 : vector<1x3x128xbf16> to vector<3x128xbf16>
    %cst_155 = arith.constant dense<0.000000e+00> : vector<112x128xf32>
    %190 = tpu.matmul %187, %189, %cst_155 {dimension_numbers = #tpu.dot_dimension_numbers<[1], [0], [0], [1], [0, 0, 1, 1], [], []>} : vector<112x3xbf16>, vector<3x128xbf16>, vector<112x128xf32> -> vector<112x128xf32>
    %191 = arith.addf %184, %190 : vector<112x128xf32>
    %c0_156 = arith.constant 0 : index
    %c273 = arith.constant 273 : index
    %c0_157 = arith.constant 0 : index
    %192 = vector.load %arg1[%c0_156, %c273, %c0_157] : memref<1x576x3xf32, #tpu.memory_space<vmem>>, vector<1x112x3xf32>
    %193 = vector.shape_cast %192 : vector<1x112x3xf32> to vector<112x3xf32>
    %194 = arith.truncf %193 : vector<112x3xf32> to vector<112x3xbf16>
    %c7_158 = arith.constant 7 : index
    %c0_159 = arith.constant 0 : index
    %c0_160 = arith.constant 0 : index
    %195 = vector.load %arg2[%c7_158, %c0_159, %c0_160] : memref<9x3x128xbf16, #tpu.memory_space<vmem>>, vector<1x3x128xbf16>
    %196 = vector.shape_cast %195 : vector<1x3x128xbf16> to vector<3x128xbf16>
    %cst_161 = arith.constant dense<0.000000e+00> : vector<112x128xf32>
    %197 = tpu.matmul %194, %196, %cst_161 {dimension_numbers = #tpu.dot_dimension_numbers<[1], [0], [0], [1], [0, 0, 1, 1], [], []>} : vector<112x3xbf16>, vector<3x128xbf16>, vector<112x128xf32> -> vector<112x128xf32>
    %198 = arith.addf %191, %197 : vector<112x128xf32>
    %c0_162 = arith.constant 0 : index
    %c274 = arith.constant 274 : index
    %c0_163 = arith.constant 0 : index
    %199 = vector.load %arg1[%c0_162, %c274, %c0_163] : memref<1x576x3xf32, #tpu.memory_space<vmem>>, vector<1x112x3xf32>
    %200 = vector.shape_cast %199 : vector<1x112x3xf32> to vector<112x3xf32>
    %201 = arith.truncf %200 : vector<112x3xf32> to vector<112x3xbf16>
    %c8_164 = arith.constant 8 : index
    %c0_165 = arith.constant 0 : index
    %c0_166 = arith.constant 0 : index
    %202 = vector.load %arg2[%c8_164, %c0_165, %c0_166] : memref<9x3x128xbf16, #tpu.memory_space<vmem>>, vector<1x3x128xbf16>
    %203 = vector.shape_cast %202 : vector<1x3x128xbf16> to vector<3x128xbf16>
    %cst_167 = arith.constant dense<0.000000e+00> : vector<112x128xf32>
    %204 = tpu.matmul %201, %203, %cst_167 {dimension_numbers = #tpu.dot_dimension_numbers<[1], [0], [0], [1], [0, 0, 1, 1], [], []>} : vector<112x3xbf16>, vector<3x128xbf16>, vector<112x128xf32> -> vector<112x128xf32>
    %205 = arith.addf %198, %204 : vector<112x128xf32>
    %206 = vector.broadcast %2 : vector<1x128xf32> to vector<112x128xf32>
    %207 = arith.addf %205, %206 : vector<112x128xf32>
    %cst_168 = arith.constant 0.000000e+00 : f32
    %208 = vector.broadcast %cst_168 : f32 to vector<112x128xf32>
    %209 = arith.cmpf ogt, %207, %208 : vector<112x128xf32>
    %210 = vector.broadcast %3 : vector<1x128xf32> to vector<112x128xf32>
    %211 = arith.mulf %207, %210 : vector<112x128xf32>
    %212 = arith.select %209, %207, %211 : vector<112x128xi1>, vector<112x128xf32>
    %c224_169 = arith.constant 224 : index
    %c0_170 = arith.constant 0 : index
    %213 = vector.load %arg12[%c224_169, %c0_170] : memref<528x128xf32, #tpu.memory_space<vmem>>, vector<112x128xf32>
    tpu.vector_store %arg12[%c224_169, %c0_170], %212 {strides = array<i32>} : memref<528x128xf32, #tpu.memory_space<vmem>>, vector<112x128xf32>,
    %c0_171 = arith.constant 0 : index
    %c336 = arith.constant 336 : index
    %c0_172 = arith.constant 0 : index
    %214 = vector.load %arg1[%c0_171, %c336, %c0_172] : memref<1x576x3xf32, #tpu.memory_space<vmem>>, vector<1x112x3xf32>
    %215 = vector.shape_cast %214 : vector<1x112x3xf32> to vector<112x3xf32>
    %216 = arith.truncf %215 : vector<112x3xf32> to vector<112x3xbf16>
    %c0_173 = arith.constant 0 : index
    %c0_174 = arith.constant 0 : index
    %c0_175 = arith.constant 0 : index
    %217 = vector.load %arg2[%c0_173, %c0_174, %c0_175] : memref<9x3x128xbf16, #tpu.memory_space<vmem>>, vector<1x3x128xbf16>
    %218 = vector.shape_cast %217 : vector<1x3x128xbf16> to vector<3x128xbf16>
    %cst_176 = arith.constant dense<0.000000e+00> : vector<112x128xf32>
    %219 = tpu.matmul %216, %218, %cst_176 {dimension_numbers = #tpu.dot_dimension_numbers<[1], [0], [0], [1], [0, 0, 1, 1], [], []>} : vector<112x3xbf16>, vector<3x128xbf16>, vector<112x128xf32> -> vector<112x128xf32>
    %c0_177 = arith.constant 0 : index
    %c337 = arith.constant 337 : index
    %c0_178 = arith.constant 0 : index
    %220 = vector.load %arg1[%c0_177, %c337, %c0_178] : memref<1x576x3xf32, #tpu.memory_space<vmem>>, vector<1x112x3xf32>
    %221 = vector.shape_cast %220 : vector<1x112x3xf32> to vector<112x3xf32>
    %222 = arith.truncf %221 : vector<112x3xf32> to vector<112x3xbf16>
    %c1_179 = arith.constant 1 : index
    %c0_180 = arith.constant 0 : index
    %c0_181 = arith.constant 0 : index
    %223 = vector.load %arg2[%c1_179, %c0_180, %c0_181] : memref<9x3x128xbf16, #tpu.memory_space<vmem>>, vector<1x3x128xbf16>
    %224 = vector.shape_cast %223 : vector<1x3x128xbf16> to vector<3x128xbf16>
    %cst_182 = arith.constant dense<0.000000e+00> : vector<112x128xf32>
    %225 = tpu.matmul %222, %224, %cst_182 {dimension_numbers = #tpu.dot_dimension_numbers<[1], [0], [0], [1], [0, 0, 1, 1], [], []>} : vector<112x3xbf16>, vector<3x128xbf16>, vector<112x128xf32> -> vector<112x128xf32>
    %226 = arith.addf %219, %225 : vector<112x128xf32>
    %c0_183 = arith.constant 0 : index
    %c338 = arith.constant 338 : index
    %c0_184 = arith.constant 0 : index
    %227 = vector.load %arg1[%c0_183, %c338, %c0_184] : memref<1x576x3xf32, #tpu.memory_space<vmem>>, vector<1x112x3xf32>
    %228 = vector.shape_cast %227 : vector<1x112x3xf32> to vector<112x3xf32>
    %229 = arith.truncf %228 : vector<112x3xf32> to vector<112x3xbf16>
    %c2_185 = arith.constant 2 : index
    %c0_186 = arith.constant 0 : index
    %c0_187 = arith.constant 0 : index
    %230 = vector.load %arg2[%c2_185, %c0_186, %c0_187] : memref<9x3x128xbf16, #tpu.memory_space<vmem>>, vector<1x3x128xbf16>
    %231 = vector.shape_cast %230 : vector<1x3x128xbf16> to vector<3x128xbf16>
    %cst_188 = arith.constant dense<0.000000e+00> : vector<112x128xf32>
    %232 = tpu.matmul %229, %231, %cst_188 {dimension_numbers = #tpu.dot_dimension_numbers<[1], [0], [0], [1], [0, 0, 1, 1], [], []>} : vector<112x3xbf16>, vector<3x128xbf16>, vector<112x128xf32> -> vector<112x128xf32>
    %233 = arith.addf %226, %232 : vector<112x128xf32>
    %c0_189 = arith.constant 0 : index
    %c360 = arith.constant 360 : index
    %c0_190 = arith.constant 0 : index
    %234 = vector.load %arg1[%c0_189, %c360, %c0_190] : memref<1x576x3xf32, #tpu.memory_space<vmem>>, vector<1x112x3xf32>
    %235 = vector.shape_cast %234 : vector<1x112x3xf32> to vector<112x3xf32>
    %236 = arith.truncf %235 : vector<112x3xf32> to vector<112x3xbf16>
    %c3_191 = arith.constant 3 : index
    %c0_192 = arith.constant 0 : index
    %c0_193 = arith.constant 0 : index
    %237 = vector.load %arg2[%c3_191, %c0_192, %c0_193] : memref<9x3x128xbf16, #tpu.memory_space<vmem>>, vector<1x3x128xbf16>
    %238 = vector.shape_cast %237 : vector<1x3x128xbf16> to vector<3x128xbf16>
    %cst_194 = arith.constant dense<0.000000e+00> : vector<112x128xf32>
    %239 = tpu.matmul %236, %238, %cst_194 {dimension_numbers = #tpu.dot_dimension_numbers<[1], [0], [0], [1], [0, 0, 1, 1], [], []>} : vector<112x3xbf16>, vector<3x128xbf16>, vector<112x128xf32> -> vector<112x128xf32>
    %240 = arith.addf %233, %239 : vector<112x128xf32>
    %c0_195 = arith.constant 0 : index
    %c361 = arith.constant 361 : index
    %c0_196 = arith.constant 0 : index
    %241 = vector.load %arg1[%c0_195, %c361, %c0_196] : memref<1x576x3xf32, #tpu.memory_space<vmem>>, vector<1x112x3xf32>
    %242 = vector.shape_cast %241 : vector<1x112x3xf32> to vector<112x3xf32>
    %243 = arith.truncf %242 : vector<112x3xf32> to vector<112x3xbf16>
    %c4_197 = arith.constant 4 : index
    %c0_198 = arith.constant 0 : index
    %c0_199 = arith.constant 0 : index
    %244 = vector.load %arg2[%c4_197, %c0_198, %c0_199] : memref<9x3x128xbf16, #tpu.memory_space<vmem>>, vector<1x3x128xbf16>
    %245 = vector.shape_cast %244 : vector<1x3x128xbf16> to vector<3x128xbf16>
    %cst_200 = arith.constant dense<0.000000e+00> : vector<112x128xf32>
    %246 = tpu.matmul %243, %245, %cst_200 {dimension_numbers = #tpu.dot_dimension_numbers<[1], [0], [0], [1], [0, 0, 1, 1], [], []>} : vector<112x3xbf16>, vector<3x128xbf16>, vector<112x128xf32> -> vector<112x128xf32>
    %247 = arith.addf %240, %246 : vector<112x128xf32>
    %c0_201 = arith.constant 0 : index
    %c362 = arith.constant 362 : index
    %c0_202 = arith.constant 0 : index
    %248 = vector.load %arg1[%c0_201, %c362, %c0_202] : memref<1x576x3xf32, #tpu.memory_space<vmem>>, vector<1x112x3xf32>
    %249 = vector.shape_cast %248 : vector<1x112x3xf32> to vector<112x3xf32>
    %250 = arith.truncf %249 : vector<112x3xf32> to vector<112x3xbf16>
    %c5_203 = arith.constant 5 : index
    %c0_204 = arith.constant 0 : index
    %c0_205 = arith.constant 0 : index
    %251 = vector.load %arg2[%c5_203, %c0_204, %c0_205] : memref<9x3x128xbf16, #tpu.memory_space<vmem>>, vector<1x3x128xbf16>
    %252 = vector.shape_cast %251 : vector<1x3x128xbf16> to vector<3x128xbf16>
    %cst_206 = arith.constant dense<0.000000e+00> : vector<112x128xf32>
    %253 = tpu.matmul %250, %252, %cst_206 {dimension_numbers = #tpu.dot_dimension_numbers<[1], [0], [0], [1], [0, 0, 1, 1], [], []>} : vector<112x3xbf16>, vector<3x128xbf16>, vector<112x128xf32> -> vector<112x128xf32>
    %254 = arith.addf %247, %253 : vector<112x128xf32>
    %c0_207 = arith.constant 0 : index
    %c384 = arith.constant 384 : index
    %c0_208 = arith.constant 0 : index
    %255 = vector.load %arg1[%c0_207, %c384, %c0_208] : memref<1x576x3xf32, #tpu.memory_space<vmem>>, vector<1x112x3xf32>
    %256 = vector.shape_cast %255 : vector<1x112x3xf32> to vector<112x3xf32>
    %257 = arith.truncf %256 : vector<112x3xf32> to vector<112x3xbf16>
    %c6_209 = arith.constant 6 : index
    %c0_210 = arith.constant 0 : index
    %c0_211 = arith.constant 0 : index
    %258 = vector.load %arg2[%c6_209, %c0_210, %c0_211] : memref<9x3x128xbf16, #tpu.memory_space<vmem>>, vector<1x3x128xbf16>
    %259 = vector.shape_cast %258 : vector<1x3x128xbf16> to vector<3x128xbf16>
    %cst_212 = arith.constant dense<0.000000e+00> : vector<112x128xf32>
    %260 = tpu.matmul %257, %259, %cst_212 {dimension_numbers = #tpu.dot_dimension_numbers<[1], [0], [0], [1], [0, 0, 1, 1], [], []>} : vector<112x3xbf16>, vector<3x128xbf16>, vector<112x128xf32> -> vector<112x128xf32>
    %261 = arith.addf %254, %260 : vector<112x128xf32>
    %c0_213 = arith.constant 0 : index
    %c385 = arith.constant 385 : index
    %c0_214 = arith.constant 0 : index
    %262 = vector.load %arg1[%c0_213, %c385, %c0_214] : memref<1x576x3xf32, #tpu.memory_space<vmem>>, vector<1x112x3xf32>
    %263 = vector.shape_cast %262 : vector<1x112x3xf32> to vector<112x3xf32>
    %264 = arith.truncf %263 : vector<112x3xf32> to vector<112x3xbf16>
    %c7_215 = arith.constant 7 : index
    %c0_216 = arith.constant 0 : index
    %c0_217 = arith.constant 0 : index
    %265 = vector.load %arg2[%c7_215, %c0_216, %c0_217] : memref<9x3x128xbf16, #tpu.memory_space<vmem>>, vector<1x3x128xbf16>
    %266 = vector.shape_cast %265 : vector<1x3x128xbf16> to vector<3x128xbf16>
    %cst_218 = arith.constant dense<0.000000e+00> : vector<112x128xf32>
    %267 = tpu.matmul %264, %266, %cst_218 {dimension_numbers = #tpu.dot_dimension_numbers<[1], [0], [0], [1], [0, 0, 1, 1], [], []>} : vector<112x3xbf16>, vector<3x128xbf16>, vector<112x128xf32> -> vector<112x128xf32>
    %268 = arith.addf %261, %267 : vector<112x128xf32>
    %c0_219 = arith.constant 0 : index
    %c386 = arith.constant 386 : index
    %c0_220 = arith.constant 0 : index
    %269 = vector.load %arg1[%c0_219, %c386, %c0_220] : memref<1x576x3xf32, #tpu.memory_space<vmem>>, vector<1x112x3xf32>
    %270 = vector.shape_cast %269 : vector<1x112x3xf32> to vector<112x3xf32>
    %271 = arith.truncf %270 : vector<112x3xf32> to vector<112x3xbf16>
    %c8_221 = arith.constant 8 : index
    %c0_222 = arith.constant 0 : index
    %c0_223 = arith.constant 0 : index
    %272 = vector.load %arg2[%c8_221, %c0_222, %c0_223] : memref<9x3x128xbf16, #tpu.memory_space<vmem>>, vector<1x3x128xbf16>
    %273 = vector.shape_cast %272 : vector<1x3x128xbf16> to vector<3x128xbf16>
    %cst_224 = arith.constant dense<0.000000e+00> : vector<112x128xf32>
    %274 = tpu.matmul %271, %273, %cst_224 {dimension_numbers = #tpu.dot_dimension_numbers<[1], [0], [0], [1], [0, 0, 1, 1], [], []>} : vector<112x3xbf16>, vector<3x128xbf16>, vector<112x128xf32> -> vector<112x128xf32>
    %275 = arith.addf %268, %274 : vector<112x128xf32>
    %276 = vector.broadcast %2 : vector<1x128xf32> to vector<112x128xf32>
    %277 = arith.addf %275, %276 : vector<112x128xf32>
    %cst_225 = arith.constant 0.000000e+00 : f32
    %278 = vector.broadcast %cst_225 : f32 to vector<112x128xf32>
    %279 = arith.cmpf ogt, %277, %278 : vector<112x128xf32>
    %280 = vector.broadcast %3 : vector<1x128xf32> to vector<112x128xf32>
    %281 = arith.mulf %277, %280 : vector<112x128xf32>
    %282 = arith.select %279, %277, %281 : vector<112x128xi1>, vector<112x128xf32>
    %c336_226 = arith.constant 336 : index
    %c0_227 = arith.constant 0 : index
    %283 = vector.load %arg12[%c336_226, %c0_227] : memref<528x128xf32, #tpu.memory_space<vmem>>, vector<112x128xf32>
    tpu.vector_store %arg12[%c336_226, %c0_227], %282 {strides = array<i32>} : memref<528x128xf32, #tpu.memory_space<vmem>>, vector<112x128xf32>,
    %c0_228 = arith.constant 0 : index
    %c448 = arith.constant 448 : index
    %c0_229 = arith.constant 0 : index
    %284 = vector.load %arg1[%c0_228, %c448, %c0_229] : memref<1x576x3xf32, #tpu.memory_space<vmem>>, vector<1x78x3xf32>
    %285 = vector.shape_cast %284 : vector<1x78x3xf32> to vector<78x3xf32>
    %286 = arith.truncf %285 : vector<78x3xf32> to vector<78x3xbf16>
    %c0_230 = arith.constant 0 : index
    %c0_231 = arith.constant 0 : index
    %c0_232 = arith.constant 0 : index
    %287 = vector.load %arg2[%c0_230, %c0_231, %c0_232] : memref<9x3x128xbf16, #tpu.memory_space<vmem>>, vector<1x3x128xbf16>
    %288 = vector.shape_cast %287 : vector<1x3x128xbf16> to vector<3x128xbf16>
    %cst_233 = arith.constant dense<0.000000e+00> : vector<78x128xf32>
    %289 = tpu.matmul %286, %288, %cst_233 {dimension_numbers = #tpu.dot_dimension_numbers<[1], [0], [0], [1], [0, 0, 1, 1], [], []>} : vector<78x3xbf16>, vector<3x128xbf16>, vector<78x128xf32> -> vector<78x128xf32>
    %c0_234 = arith.constant 0 : index
    %c449 = arith.constant 449 : index
    %c0_235 = arith.constant 0 : index
    %290 = vector.load %arg1[%c0_234, %c449, %c0_235] : memref<1x576x3xf32, #tpu.memory_space<vmem>>, vector<1x78x3xf32>
    %291 = vector.shape_cast %290 : vector<1x78x3xf32> to vector<78x3xf32>
    %292 = arith.truncf %291 : vector<78x3xf32> to vector<78x3xbf16>
    %c1_236 = arith.constant 1 : index
    %c0_237 = arith.constant 0 : index
    %c0_238 = arith.constant 0 : index
    %293 = vector.load %arg2[%c1_236, %c0_237, %c0_238] : memref<9x3x128xbf16, #tpu.memory_space<vmem>>, vector<1x3x128xbf16>
    %294 = vector.shape_cast %293 : vector<1x3x128xbf16> to vector<3x128xbf16>
    %cst_239 = arith.constant dense<0.000000e+00> : vector<78x128xf32>
    %295 = tpu.matmul %292, %294, %cst_239 {dimension_numbers = #tpu.dot_dimension_numbers<[1], [0], [0], [1], [0, 0, 1, 1], [], []>} : vector<78x3xbf16>, vector<3x128xbf16>, vector<78x128xf32> -> vector<78x128xf32>
    %296 = arith.addf %289, %295 : vector<78x128xf32>
    %c0_240 = arith.constant 0 : index
    %c450 = arith.constant 450 : index
    %c0_241 = arith.constant 0 : index
    %297 = vector.load %arg1[%c0_240, %c450, %c0_241] : memref<1x576x3xf32, #tpu.memory_space<vmem>>, vector<1x78x3xf32>
    %298 = vector.shape_cast %297 : vector<1x78x3xf32> to vector<78x3xf32>
    %299 = arith.truncf %298 : vector<78x3xf32> to vector<78x3xbf16>
    %c2_242 = arith.constant 2 : index
    %c0_243 = arith.constant 0 : index
    %c0_244 = arith.constant 0 : index
    %300 = vector.load %arg2[%c2_242, %c0_243, %c0_244] : memref<9x3x128xbf16, #tpu.memory_space<vmem>>, vector<1x3x128xbf16>
    %301 = vector.shape_cast %300 : vector<1x3x128xbf16> to vector<3x128xbf16>
    %cst_245 = arith.constant dense<0.000000e+00> : vector<78x128xf32>
    %302 = tpu.matmul %299, %301, %cst_245 {dimension_numbers = #tpu.dot_dimension_numbers<[1], [0], [0], [1], [0, 0, 1, 1], [], []>} : vector<78x3xbf16>, vector<3x128xbf16>, vector<78x128xf32> -> vector<78x128xf32>
    %303 = arith.addf %296, %302 : vector<78x128xf32>
    %c0_246 = arith.constant 0 : index
    %c472 = arith.constant 472 : index
    %c0_247 = arith.constant 0 : index
    %304 = vector.load %arg1[%c0_246, %c472, %c0_247] : memref<1x576x3xf32, #tpu.memory_space<vmem>>, vector<1x78x3xf32>
    %305 = vector.shape_cast %304 : vector<1x78x3xf32> to vector<78x3xf32>
    %306 = arith.truncf %305 : vector<78x3xf32> to vector<78x3xbf16>
    %c3_248 = arith.constant 3 : index
    %c0_249 = arith.constant 0 : index
    %c0_250 = arith.constant 0 : index
    %307 = vector.load %arg2[%c3_248, %c0_249, %c0_250] : memref<9x3x128xbf16, #tpu.memory_space<vmem>>, vector<1x3x128xbf16>
    %308 = vector.shape_cast %307 : vector<1x3x128xbf16> to vector<3x128xbf16>
    %cst_251 = arith.constant dense<0.000000e+00> : vector<78x128xf32>
    %309 = tpu.matmul %306, %308, %cst_251 {dimension_numbers = #tpu.dot_dimension_numbers<[1], [0], [0], [1], [0, 0, 1, 1], [], []>} : vector<78x3xbf16>, vector<3x128xbf16>, vector<78x128xf32> -> vector<78x128xf32>
    %310 = arith.addf %303, %309 : vector<78x128xf32>
    %c0_252 = arith.constant 0 : index
    %c473 = arith.constant 473 : index
    %c0_253 = arith.constant 0 : index
    %311 = vector.load %arg1[%c0_252, %c473, %c0_253] : memref<1x576x3xf32, #tpu.memory_space<vmem>>, vector<1x78x3xf32>
    %312 = vector.shape_cast %311 : vector<1x78x3xf32> to vector<78x3xf32>
    %313 = arith.truncf %312 : vector<78x3xf32> to vector<78x3xbf16>
    %c4_254 = arith.constant 4 : index
    %c0_255 = arith.constant 0 : index
    %c0_256 = arith.constant 0 : index
    %314 = vector.load %arg2[%c4_254, %c0_255, %c0_256] : memref<9x3x128xbf16, #tpu.memory_space<vmem>>, vector<1x3x128xbf16>
    %315 = vector.shape_cast %314 : vector<1x3x128xbf16> to vector<3x128xbf16>
    %cst_257 = arith.constant dense<0.000000e+00> : vector<78x128xf32>
    %316 = tpu.matmul %313, %315, %cst_257 {dimension_numbers = #tpu.dot_dimension_numbers<[1], [0], [0], [1], [0, 0, 1, 1], [], []>} : vector<78x3xbf16>, vector<3x128xbf16>, vector<78x128xf32> -> vector<78x128xf32>
    %317 = arith.addf %310, %316 : vector<78x128xf32>
    %c0_258 = arith.constant 0 : index
    %c474 = arith.constant 474 : index
    %c0_259 = arith.constant 0 : index
    %318 = vector.load %arg1[%c0_258, %c474, %c0_259] : memref<1x576x3xf32, #tpu.memory_space<vmem>>, vector<1x78x3xf32>
    %319 = vector.shape_cast %318 : vector<1x78x3xf32> to vector<78x3xf32>
    %320 = arith.truncf %319 : vector<78x3xf32> to vector<78x3xbf16>
    %c5_260 = arith.constant 5 : index
    %c0_261 = arith.constant 0 : index
    %c0_262 = arith.constant 0 : index
    %321 = vector.load %arg2[%c5_260, %c0_261, %c0_262] : memref<9x3x128xbf16, #tpu.memory_space<vmem>>, vector<1x3x128xbf16>
    %322 = vector.shape_cast %321 : vector<1x3x128xbf16> to vector<3x128xbf16>
    %cst_263 = arith.constant dense<0.000000e+00> : vector<78x128xf32>
    %323 = tpu.matmul %320, %322, %cst_263 {dimension_numbers = #tpu.dot_dimension_numbers<[1], [0], [0], [1], [0, 0, 1, 1], [], []>} : vector<78x3xbf16>, vector<3x128xbf16>, vector<78x128xf32> -> vector<78x128xf32>
    %324 = arith.addf %317, %323 : vector<78x128xf32>
    %c0_264 = arith.constant 0 : index
    %c496 = arith.constant 496 : index
    %c0_265 = arith.constant 0 : index
    %325 = vector.load %arg1[%c0_264, %c496, %c0_265] : memref<1x576x3xf32, #tpu.memory_space<vmem>>, vector<1x78x3xf32>
    %326 = vector.shape_cast %325 : vector<1x78x3xf32> to vector<78x3xf32>
    %327 = arith.truncf %326 : vector<78x3xf32> to vector<78x3xbf16>
    %c6_266 = arith.constant 6 : index
    %c0_267 = arith.constant 0 : index
    %c0_268 = arith.constant 0 : index
    %328 = vector.load %arg2[%c6_266, %c0_267, %c0_268] : memref<9x3x128xbf16, #tpu.memory_space<vmem>>, vector<1x3x128xbf16>
    %329 = vector.shape_cast %328 : vector<1x3x128xbf16> to vector<3x128xbf16>
    %cst_269 = arith.constant dense<0.000000e+00> : vector<78x128xf32>
    %330 = tpu.matmul %327, %329, %cst_269 {dimension_numbers = #tpu.dot_dimension_numbers<[1], [0], [0], [1], [0, 0, 1, 1], [], []>} : vector<78x3xbf16>, vector<3x128xbf16>, vector<78x128xf32> -> vector<78x128xf32>
    %331 = arith.addf %324, %330 : vector<78x128xf32>
    %c0_270 = arith.constant 0 : index
    %c497 = arith.constant 497 : index
    %c0_271 = arith.constant 0 : index
    %332 = vector.load %arg1[%c0_270, %c497, %c0_271] : memref<1x576x3xf32, #tpu.memory_space<vmem>>, vector<1x78x3xf32>
    %333 = vector.shape_cast %332 : vector<1x78x3xf32> to vector<78x3xf32>
    %334 = arith.truncf %333 : vector<78x3xf32> to vector<78x3xbf16>
    %c7_272 = arith.constant 7 : index
    %c0_273 = arith.constant 0 : index
    %c0_274 = arith.constant 0 : index
    %335 = vector.load %arg2[%c7_272, %c0_273, %c0_274] : memref<9x3x128xbf16, #tpu.memory_space<vmem>>, vector<1x3x128xbf16>
    %336 = vector.shape_cast %335 : vector<1x3x128xbf16> to vector<3x128xbf16>
    %cst_275 = arith.constant dense<0.000000e+00> : vector<78x128xf32>
    %337 = tpu.matmul %334, %336, %cst_275 {dimension_numbers = #tpu.dot_dimension_numbers<[1], [0], [0], [1], [0, 0, 1, 1], [], []>} : vector<78x3xbf16>, vector<3x128xbf16>, vector<78x128xf32> -> vector<78x128xf32>
    %338 = arith.addf %331, %337 : vector<78x128xf32>
    %c0_276 = arith.constant 0 : index
    %c498 = arith.constant 498 : index
    %c0_277 = arith.constant 0 : index
    %339 = vector.load %arg1[%c0_276, %c498, %c0_277] : memref<1x576x3xf32, #tpu.memory_space<vmem>>, vector<1x78x3xf32>
    %340 = vector.shape_cast %339 : vector<1x78x3xf32> to vector<78x3xf32>
    %341 = arith.truncf %340 : vector<78x3xf32> to vector<78x3xbf16>
    %c8_278 = arith.constant 8 : index
    %c0_279 = arith.constant 0 : index
    %c0_280 = arith.constant 0 : index
    %342 = vector.load %arg2[%c8_278, %c0_279, %c0_280] : memref<9x3x128xbf16, #tpu.memory_space<vmem>>, vector<1x3x128xbf16>
    %343 = vector.shape_cast %342 : vector<1x3x128xbf16> to vector<3x128xbf16>
    %cst_281 = arith.constant dense<0.000000e+00> : vector<78x128xf32>
    %344 = tpu.matmul %341, %343, %cst_281 {dimension_numbers = #tpu.dot_dimension_numbers<[1], [0], [0], [1], [0, 0, 1, 1], [], []>} : vector<78x3xbf16>, vector<3x128xbf16>, vector<78x128xf32> -> vector<78x128xf32>
    %345 = arith.addf %338, %344 : vector<78x128xf32>
    %346 = vector.broadcast %2 : vector<1x128xf32> to vector<78x128xf32>
    %347 = arith.addf %345, %346 : vector<78x128xf32>
    %cst_282 = arith.constant 0.000000e+00 : f32
    %348 = vector.broadcast %cst_282 : f32 to vector<78x128xf32>
    %349 = arith.cmpf ogt, %347, %348 : vector<78x128xf32>
    %350 = vector.broadcast %3 : vector<1x128xf32> to vector<78x128xf32>
    %351 = arith.mulf %347, %350 : vector<78x128xf32>
    %352 = arith.select %349, %347, %351 : vector<78x128xi1>, vector<78x128xf32>
    %c448_283 = arith.constant 448 : index
    %c0_284 = arith.constant 0 : index
    %353 = vector.load %arg12[%c448_283, %c0_284] : memref<528x128xf32, #tpu.memory_space<vmem>>, vector<78x128xf32>
    tpu.vector_store %arg12[%c448_283, %c0_284], %352 {strides = array<i32>} : memref<528x128xf32, #tpu.memory_space<vmem>>, vector<78x128xf32>,
    %c0_285 = arith.constant 0 : index
    %c0_286 = arith.constant 0 : index
    %354 = vector.load %arg12[%c0_285, %c0_286] : memref<528x128xf32, #tpu.memory_space<vmem>>, vector<22x128xf32>
    %c24_287 = arith.constant 24 : index
    %c0_288 = arith.constant 0 : index
    %355 = vector.load %arg12[%c24_287, %c0_288] : memref<528x128xf32, #tpu.memory_space<vmem>>, vector<22x128xf32>
    %356 = arith.maximumf %354, %355 : vector<22x128xf32>
    %c48_289 = arith.constant 48 : index
    %c0_290 = arith.constant 0 : index
    %357 = vector.load %arg12[%c48_289, %c0_290] : memref<528x128xf32, #tpu.memory_space<vmem>>, vector<22x128xf32>
    %358 = arith.maximumf %356, %357 : vector<22x128xf32>
    %c0_291 = arith.constant 0 : index
    %c0_292 = arith.constant 0 : index
    %359 = vector.load %arg13[%c0_291, %c0_292] : memref<264x128xf32, #tpu.memory_space<vmem>>, vector<22x128xf32>
    tpu.vector_store %arg13[%c0_291, %c0_292], %358 {strides = array<i32>} : memref<264x128xf32, #tpu.memory_space<vmem>>, vector<22x128xf32>,
    %c48_293 = arith.constant 48 : index
    %c0_294 = arith.constant 0 : index
    %360 = vector.load %arg12[%c48_293, %c0_294] : memref<528x128xf32, #tpu.memory_space<vmem>>, vector<22x128xf32>
    %c72 = arith.constant 72 : index
    %c0_295 = arith.constant 0 : index
    %361 = vector.load %arg12[%c72, %c0_295] : memref<528x128xf32, #tpu.memory_space<vmem>>, vector<22x128xf32>
    %362 = arith.maximumf %360, %361 : vector<22x128xf32>
    %c96 = arith.constant 96 : index
    %c0_296 = arith.constant 0 : index
    %363 = vector.load %arg12[%c96, %c0_296] : memref<528x128xf32, #tpu.memory_space<vmem>>, vector<22x128xf32>
    %364 = arith.maximumf %362, %363 : vector<22x128xf32>
    %c24_297 = arith.constant 24 : index
    %c0_298 = arith.constant 0 : index
    %365 = vector.load %arg13[%c24_297, %c0_298] : memref<264x128xf32, #tpu.memory_space<vmem>>, vector<22x128xf32>
    tpu.vector_store %arg13[%c24_297, %c0_298], %364 {strides = array<i32>} : memref<264x128xf32, #tpu.memory_space<vmem>>, vector<22x128xf32>,
    %c96_299 = arith.constant 96 : index
    %c0_300 = arith.constant 0 : index
    %366 = vector.load %arg12[%c96_299, %c0_300] : memref<528x128xf32, #tpu.memory_space<vmem>>, vector<22x128xf32>
    %c120 = arith.constant 120 : index
    %c0_301 = arith.constant 0 : index
    %367 = vector.load %arg12[%c120, %c0_301] : memref<528x128xf32, #tpu.memory_space<vmem>>, vector<22x128xf32>
    %368 = arith.maximumf %366, %367 : vector<22x128xf32>
    %c144 = arith.constant 144 : index
    %c0_302 = arith.constant 0 : index
    %369 = vector.load %arg12[%c144, %c0_302] : memref<528x128xf32, #tpu.memory_space<vmem>>, vector<22x128xf32>
    %370 = arith.maximumf %368, %369 : vector<22x128xf32>
    %c48_303 = arith.constant 48 : index
    %c0_304 = arith.constant 0 : index
    %371 = vector.load %arg13[%c48_303, %c0_304] : memref<264x128xf32, #tpu.memory_space<vmem>>, vector<22x128xf32>
    tpu.vector_store %arg13[%c48_303, %c0_304], %370 {strides = array<i32>} : memref<264x128xf32, #tpu.memory_space<vmem>>, vector<22x128xf32>,
    %c144_305 = arith.constant 144 : index
    %c0_306 = arith.constant 0 : index
    %372 = vector.load %arg12[%c144_305, %c0_306] : memref<528x128xf32, #tpu.memory_space<vmem>>, vector<22x128xf32>
    %c168 = arith.constant 168 : index
    %c0_307 = arith.constant 0 : index
    %373 = vector.load %arg12[%c168, %c0_307] : memref<528x128xf32, #tpu.memory_space<vmem>>, vector<22x128xf32>
    %374 = arith.maximumf %372, %373 : vector<22x128xf32>
    %c192 = arith.constant 192 : index
    %c0_308 = arith.constant 0 : index
    %375 = vector.load %arg12[%c192, %c0_308] : memref<528x128xf32, #tpu.memory_space<vmem>>, vector<22x128xf32>
    %376 = arith.maximumf %374, %375 : vector<22x128xf32>
    %c72_309 = arith.constant 72 : index
    %c0_310 = arith.constant 0 : index
    %377 = vector.load %arg13[%c72_309, %c0_310] : memref<264x128xf32, #tpu.memory_space<vmem>>, vector<22x128xf32>
    tpu.vector_store %arg13[%c72_309, %c0_310], %376 {strides = array<i32>} : memref<264x128xf32, #tpu.memory_space<vmem>>, vector<22x128xf32>,
    %c192_311 = arith.constant 192 : index
    %c0_312 = arith.constant 0 : index
    %378 = vector.load %arg12[%c192_311, %c0_312] : memref<528x128xf32, #tpu.memory_space<vmem>>, vector<22x128xf32>
    %c216 = arith.constant 216 : index
    %c0_313 = arith.constant 0 : index
    %379 = vector.load %arg12[%c216, %c0_313] : memref<528x128xf32, #tpu.memory_space<vmem>>, vector<22x128xf32>
    %380 = arith.maximumf %378, %379 : vector<22x128xf32>
    %c240 = arith.constant 240 : index
    %c0_314 = arith.constant 0 : index
    %381 = vector.load %arg12[%c240, %c0_314] : memref<528x128xf32, #tpu.memory_space<vmem>>, vector<22x128xf32>
    %382 = arith.maximumf %380, %381 : vector<22x128xf32>
    %c96_315 = arith.constant 96 : index
    %c0_316 = arith.constant 0 : index
    %383 = vector.load %arg13[%c96_315, %c0_316] : memref<264x128xf32, #tpu.memory_space<vmem>>, vector<22x128xf32>
    tpu.vector_store %arg13[%c96_315, %c0_316], %382 {strides = array<i32>} : memref<264x128xf32, #tpu.memory_space<vmem>>, vector<22x128xf32>,
    %c240_317 = arith.constant 240 : index
    %c0_318 = arith.constant 0 : index
    %384 = vector.load %arg12[%c240_317, %c0_318] : memref<528x128xf32, #tpu.memory_space<vmem>>, vector<22x128xf32>
    %c264 = arith.constant 264 : index
    %c0_319 = arith.constant 0 : index
    %385 = vector.load %arg12[%c264, %c0_319] : memref<528x128xf32, #tpu.memory_space<vmem>>, vector<22x128xf32>
    %386 = arith.maximumf %384, %385 : vector<22x128xf32>
    %c288 = arith.constant 288 : index
    %c0_320 = arith.constant 0 : index
    %387 = vector.load %arg12[%c288, %c0_320] : memref<528x128xf32, #tpu.memory_space<vmem>>, vector<22x128xf32>
    %388 = arith.maximumf %386, %387 : vector<22x128xf32>
    %c120_321 = arith.constant 120 : index
    %c0_322 = arith.constant 0 : index
    %389 = vector.load %arg13[%c120_321, %c0_322] : memref<264x128xf32, #tpu.memory_space<vmem>>, vector<22x128xf32>
    tpu.vector_store %arg13[%c120_321, %c0_322], %388 {strides = array<i32>} : memref<264x128xf32, #tpu.memory_space<vmem>>, vector<22x128xf32>,
    %c288_323 = arith.constant 288 : index
    %c0_324 = arith.constant 0 : index
    %390 = vector.load %arg12[%c288_323, %c0_324] : memref<528x128xf32, #tpu.memory_space<vmem>>, vector<22x128xf32>
    %c312 = arith.constant 312 : index
    %c0_325 = arith.constant 0 : index
    %391 = vector.load %arg12[%c312, %c0_325] : memref<528x128xf32, #tpu.memory_space<vmem>>, vector<22x128xf32>
    %392 = arith.maximumf %390, %391 : vector<22x128xf32>
    %c336_326 = arith.constant 336 : index
    %c0_327 = arith.constant 0 : index
    %393 = vector.load %arg12[%c336_326, %c0_327] : memref<528x128xf32, #tpu.memory_space<vmem>>, vector<22x128xf32>
    %394 = arith.maximumf %392, %393 : vector<22x128xf32>
    %c144_328 = arith.constant 144 : index
    %c0_329 = arith.constant 0 : index
    %395 = vector.load %arg13[%c144_328, %c0_329] : memref<264x128xf32, #tpu.memory_space<vmem>>, vector<22x128xf32>
    tpu.vector_store %arg13[%c144_328, %c0_329], %394 {strides = array<i32>} : memref<264x128xf32, #tpu.memory_space<vmem>>, vector<22x128xf32>,
    %c336_330 = arith.constant 336 : index
    %c0_331 = arith.constant 0 : index
    %396 = vector.load %arg12[%c336_330, %c0_331] : memref<528x128xf32, #tpu.memory_space<vmem>>, vector<22x128xf32>
    %c360_332 = arith.constant 360 : index
    %c0_333 = arith.constant 0 : index
    %397 = vector.load %arg12[%c360_332, %c0_333] : memref<528x128xf32, #tpu.memory_space<vmem>>, vector<22x128xf32>
    %398 = arith.maximumf %396, %397 : vector<22x128xf32>
    %c384_334 = arith.constant 384 : index
    %c0_335 = arith.constant 0 : index
    %399 = vector.load %arg12[%c384_334, %c0_335] : memref<528x128xf32, #tpu.memory_space<vmem>>, vector<22x128xf32>
    %400 = arith.maximumf %398, %399 : vector<22x128xf32>
    %c168_336 = arith.constant 168 : index
    %c0_337 = arith.constant 0 : index
    %401 = vector.load %arg13[%c168_336, %c0_337] : memref<264x128xf32, #tpu.memory_space<vmem>>, vector<22x128xf32>
    tpu.vector_store %arg13[%c168_336, %c0_337], %400 {strides = array<i32>} : memref<264x128xf32, #tpu.memory_space<vmem>>, vector<22x128xf32>,
    %c384_338 = arith.constant 384 : index
    %c0_339 = arith.constant 0 : index
    %402 = vector.load %arg12[%c384_338, %c0_339] : memref<528x128xf32, #tpu.memory_space<vmem>>, vector<22x128xf32>
    %c408 = arith.constant 408 : index
    %c0_340 = arith.constant 0 : index
    %403 = vector.load %arg12[%c408, %c0_340] : memref<528x128xf32, #tpu.memory_space<vmem>>, vector<22x128xf32>
    %404 = arith.maximumf %402, %403 : vector<22x128xf32>
    %c432 = arith.constant 432 : index
    %c0_341 = arith.constant 0 : index
    %405 = vector.load %arg12[%c432, %c0_341] : memref<528x128xf32, #tpu.memory_space<vmem>>, vector<22x128xf32>
    %406 = arith.maximumf %404, %405 : vector<22x128xf32>
    %c192_342 = arith.constant 192 : index
    %c0_343 = arith.constant 0 : index
    %407 = vector.load %arg13[%c192_342, %c0_343] : memref<264x128xf32, #tpu.memory_space<vmem>>, vector<22x128xf32>
    tpu.vector_store %arg13[%c192_342, %c0_343], %406 {strides = array<i32>} : memref<264x128xf32, #tpu.memory_space<vmem>>, vector<22x128xf32>,
    %c432_344 = arith.constant 432 : index
    %c0_345 = arith.constant 0 : index
    %408 = vector.load %arg12[%c432_344, %c0_345] : memref<528x128xf32, #tpu.memory_space<vmem>>, vector<22x128xf32>
    %c456 = arith.constant 456 : index
    %c0_346 = arith.constant 0 : index
    %409 = vector.load %arg12[%c456, %c0_346] : memref<528x128xf32, #tpu.memory_space<vmem>>, vector<22x128xf32>
    %410 = arith.maximumf %408, %409 : vector<22x128xf32>
    %c480 = arith.constant 480 : index
    %c0_347 = arith.constant 0 : index
    %411 = vector.load %arg12[%c480, %c0_347] : memref<528x128xf32, #tpu.memory_space<vmem>>, vector<22x128xf32>
    %412 = arith.maximumf %410, %411 : vector<22x128xf32>
    %c216_348 = arith.constant 216 : index
    %c0_349 = arith.constant 0 : index
    %413 = vector.load %arg13[%c216_348, %c0_349] : memref<264x128xf32, #tpu.memory_space<vmem>>, vector<22x128xf32>
    tpu.vector_store %arg13[%c216_348, %c0_349], %412 {strides = array<i32>} : memref<264x128xf32, #tpu.memory_space<vmem>>, vector<22x128xf32>,
    %c480_350 = arith.constant 480 : index
    %c0_351 = arith.constant 0 : index
    %414 = vector.load %arg12[%c480_350, %c0_351] : memref<528x128xf32, #tpu.memory_space<vmem>>, vector<22x128xf32>
    %c504 = arith.constant 504 : index
    %c0_352 = arith.constant 0 : index
    %415 = vector.load %arg12[%c504, %c0_352] : memref<528x128xf32, #tpu.memory_space<vmem>>, vector<22x128xf32>
    %416 = arith.maximumf %414, %415 : vector<22x128xf32>
    %c504_353 = arith.constant 504 : index
    %c0_354 = arith.constant 0 : index
    %417 = vector.load %arg12[%c504_353, %c0_354] : memref<528x128xf32, #tpu.memory_space<vmem>>, vector<22x128xf32>
    %418 = arith.maximumf %416, %417 : vector<22x128xf32>
    %c240_355 = arith.constant 240 : index
    %c0_356 = arith.constant 0 : index
    %419 = vector.load %arg13[%c240_355, %c0_356] : memref<264x128xf32, #tpu.memory_space<vmem>>, vector<22x128xf32>
    tpu.vector_store %arg13[%c240_355, %c0_356], %418 {strides = array<i32>} : memref<264x128xf32, #tpu.memory_space<vmem>>, vector<22x128xf32>,
    %c0_357 = arith.constant 0 : index
    %c0_358 = arith.constant 0 : index
    %420 = tpu.strided_load %arg13[%c0_357, %c0_358] {strides = array<i32: 2, 1>} : memref<264x128xf32, #tpu.memory_space<vmem>>, vector<11x128xf32>
    %c1_359 = arith.constant 1 : index
    %c0_360 = arith.constant 0 : index
    %421 = tpu.strided_load %arg13[%c1_359, %c0_360] {strides = array<i32: 2, 1>} : memref<264x128xf32, #tpu.memory_space<vmem>>, vector<11x128xf32>
    %c2_361 = arith.constant 2 : index
    %c0_362 = arith.constant 0 : index
    %422 = tpu.strided_load %arg13[%c2_361, %c0_362] {strides = array<i32: 2, 1>} : memref<264x128xf32, #tpu.memory_space<vmem>>, vector<11x128xf32>
    %423 = arith.maximumf %420, %421 : vector<11x128xf32>
    %424 = arith.maximumf %423, %422 : vector<11x128xf32>
    %c0_363 = arith.constant 0 : index
    %c0_364 = arith.constant 0 : index
    %425 = vector.load %arg14[%c0_363, %c0_364] : memref<128x128xf32, #tpu.memory_space<vmem>>, vector<11x128xf32>
    tpu.vector_store %arg14[%c0_363, %c0_364], %424 {strides = array<i32>} : memref<128x128xf32, #tpu.memory_space<vmem>>, vector<11x128xf32>,
    %c24_365 = arith.constant 24 : index
    %c0_366 = arith.constant 0 : index
    %426 = tpu.strided_load %arg13[%c24_365, %c0_366] {strides = array<i32: 2, 1>} : memref<264x128xf32, #tpu.memory_space<vmem>>, vector<11x128xf32>
    %c25_367 = arith.constant 25 : index
    %c0_368 = arith.constant 0 : index
    %427 = tpu.strided_load %arg13[%c25_367, %c0_368] {strides = array<i32: 2, 1>} : memref<264x128xf32, #tpu.memory_space<vmem>>, vector<11x128xf32>
    %c26_369 = arith.constant 26 : index
    %c0_370 = arith.constant 0 : index
    %428 = tpu.strided_load %arg13[%c26_369, %c0_370] {strides = array<i32: 2, 1>} : memref<264x128xf32, #tpu.memory_space<vmem>>, vector<11x128xf32>
    %429 = arith.maximumf %426, %427 : vector<11x128xf32>
    %430 = arith.maximumf %429, %428 : vector<11x128xf32>
    %c11 = arith.constant 11 : index
    %c0_371 = arith.constant 0 : index
    %431 = vector.load %arg14[%c11, %c0_371] : memref<128x128xf32, #tpu.memory_space<vmem>>, vector<11x128xf32>
    tpu.vector_store %arg14[%c11, %c0_371], %430 {strides = array<i32>} : memref<128x128xf32, #tpu.memory_space<vmem>>, vector<11x128xf32>,
    %c48_372 = arith.constant 48 : index
    %c0_373 = arith.constant 0 : index
    %432 = tpu.strided_load %arg13[%c48_372, %c0_373] {strides = array<i32: 2, 1>} : memref<264x128xf32, #tpu.memory_space<vmem>>, vector<11x128xf32>
    %c49_374 = arith.constant 49 : index
    %c0_375 = arith.constant 0 : index
    %433 = tpu.strided_load %arg13[%c49_374, %c0_375] {strides = array<i32: 2, 1>} : memref<264x128xf32, #tpu.memory_space<vmem>>, vector<11x128xf32>
    %c50_376 = arith.constant 50 : index
    %c0_377 = arith.constant 0 : index
    %434 = tpu.strided_load %arg13[%c50_376, %c0_377] {strides = array<i32: 2, 1>} : memref<264x128xf32, #tpu.memory_space<vmem>>, vector<11x128xf32>
    %435 = arith.maximumf %432, %433 : vector<11x128xf32>
    %436 = arith.maximumf %435, %434 : vector<11x128xf32>
    %c22 = arith.constant 22 : index
    %c0_378 = arith.constant 0 : index
    %437 = vector.load %arg14[%c22, %c0_378] : memref<128x128xf32, #tpu.memory_space<vmem>>, vector<11x128xf32>
    tpu.vector_store %arg14[%c22, %c0_378], %436 {strides = array<i32>} : memref<128x128xf32, #tpu.memory_space<vmem>>, vector<11x128xf32>,
    %c72_379 = arith.constant 72 : index
    %c0_380 = arith.constant 0 : index
    %438 = tpu.strided_load %arg13[%c72_379, %c0_380] {strides = array<i32: 2, 1>} : memref<264x128xf32, #tpu.memory_space<vmem>>, vector<11x128xf32>
    %c73 = arith.constant 73 : index
    %c0_381 = arith.constant 0 : index
    %439 = tpu.strided_load %arg13[%c73, %c0_381] {strides = array<i32: 2, 1>} : memref<264x128xf32, #tpu.memory_space<vmem>>, vector<11x128xf32>
    %c74 = arith.constant 74 : index
    %c0_382 = arith.constant 0 : index
    %440 = tpu.strided_load %arg13[%c74, %c0_382] {strides = array<i32: 2, 1>} : memref<264x128xf32, #tpu.memory_space<vmem>>, vector<11x128xf32>
    %441 = arith.maximumf %438, %439 : vector<11x128xf32>
    %442 = arith.maximumf %441, %440 : vector<11x128xf32>
    %c33 = arith.constant 33 : index
    %c0_383 = arith.constant 0 : index
    %443 = vector.load %arg14[%c33, %c0_383] : memref<128x128xf32, #tpu.memory_space<vmem>>, vector<11x128xf32>
    tpu.vector_store %arg14[%c33, %c0_383], %442 {strides = array<i32>} : memref<128x128xf32, #tpu.memory_space<vmem>>, vector<11x128xf32>,
    %c96_384 = arith.constant 96 : index
    %c0_385 = arith.constant 0 : index
    %444 = tpu.strided_load %arg13[%c96_384, %c0_385] {strides = array<i32: 2, 1>} : memref<264x128xf32, #tpu.memory_space<vmem>>, vector<11x128xf32>
    %c97 = arith.constant 97 : index
    %c0_386 = arith.constant 0 : index
    %445 = tpu.strided_load %arg13[%c97, %c0_386] {strides = array<i32: 2, 1>} : memref<264x128xf32, #tpu.memory_space<vmem>>, vector<11x128xf32>
    %c98 = arith.constant 98 : index
    %c0_387 = arith.constant 0 : index
    %446 = tpu.strided_load %arg13[%c98, %c0_387] {strides = array<i32: 2, 1>} : memref<264x128xf32, #tpu.memory_space<vmem>>, vector<11x128xf32>
    %447 = arith.maximumf %444, %445 : vector<11x128xf32>
    %448 = arith.maximumf %447, %446 : vector<11x128xf32>
    %c44 = arith.constant 44 : index
    %c0_388 = arith.constant 0 : index
    %449 = vector.load %arg14[%c44, %c0_388] : memref<128x128xf32, #tpu.memory_space<vmem>>, vector<11x128xf32>
    tpu.vector_store %arg14[%c44, %c0_388], %448 {strides = array<i32>} : memref<128x128xf32, #tpu.memory_space<vmem>>, vector<11x128xf32>,
    %c120_389 = arith.constant 120 : index
    %c0_390 = arith.constant 0 : index
    %450 = tpu.strided_load %arg13[%c120_389, %c0_390] {strides = array<i32: 2, 1>} : memref<264x128xf32, #tpu.memory_space<vmem>>, vector<11x128xf32>
    %c121 = arith.constant 121 : index
    %c0_391 = arith.constant 0 : index
    %451 = tpu.strided_load %arg13[%c121, %c0_391] {strides = array<i32: 2, 1>} : memref<264x128xf32, #tpu.memory_space<vmem>>, vector<11x128xf32>
    %c122 = arith.constant 122 : index
    %c0_392 = arith.constant 0 : index
    %452 = tpu.strided_load %arg13[%c122, %c0_392] {strides = array<i32: 2, 1>} : memref<264x128xf32, #tpu.memory_space<vmem>>, vector<11x128xf32>
    %453 = arith.maximumf %450, %451 : vector<11x128xf32>
    %454 = arith.maximumf %453, %452 : vector<11x128xf32>
    %c55 = arith.constant 55 : index
    %c0_393 = arith.constant 0 : index
    %455 = vector.load %arg14[%c55, %c0_393] : memref<128x128xf32, #tpu.memory_space<vmem>>, vector<11x128xf32>
    tpu.vector_store %arg14[%c55, %c0_393], %454 {strides = array<i32>} : memref<128x128xf32, #tpu.memory_space<vmem>>, vector<11x128xf32>,
    %c144_394 = arith.constant 144 : index
    %c0_395 = arith.constant 0 : index
    %456 = tpu.strided_load %arg13[%c144_394, %c0_395] {strides = array<i32: 2, 1>} : memref<264x128xf32, #tpu.memory_space<vmem>>, vector<11x128xf32>
    %c145 = arith.constant 145 : index
    %c0_396 = arith.constant 0 : index
    %457 = tpu.strided_load %arg13[%c145, %c0_396] {strides = array<i32: 2, 1>} : memref<264x128xf32, #tpu.memory_space<vmem>>, vector<11x128xf32>
    %c146 = arith.constant 146 : index
    %c0_397 = arith.constant 0 : index
    %458 = tpu.strided_load %arg13[%c146, %c0_397] {strides = array<i32: 2, 1>} : memref<264x128xf32, #tpu.memory_space<vmem>>, vector<11x128xf32>
    %459 = arith.maximumf %456, %457 : vector<11x128xf32>
    %460 = arith.maximumf %459, %458 : vector<11x128xf32>
    %c66 = arith.constant 66 : index
    %c0_398 = arith.constant 0 : index
    %461 = vector.load %arg14[%c66, %c0_398] : memref<128x128xf32, #tpu.memory_space<vmem>>, vector<11x128xf32>
    tpu.vector_store %arg14[%c66, %c0_398], %460 {strides = array<i32>} : memref<128x128xf32, #tpu.memory_space<vmem>>, vector<11x128xf32>,
    %c168_399 = arith.constant 168 : index
    %c0_400 = arith.constant 0 : index
    %462 = tpu.strided_load %arg13[%c168_399, %c0_400] {strides = array<i32: 2, 1>} : memref<264x128xf32, #tpu.memory_space<vmem>>, vector<11x128xf32>
    %c169 = arith.constant 169 : index
    %c0_401 = arith.constant 0 : index
    %463 = tpu.strided_load %arg13[%c169, %c0_401] {strides = array<i32: 2, 1>} : memref<264x128xf32, #tpu.memory_space<vmem>>, vector<11x128xf32>
    %c170 = arith.constant 170 : index
    %c0_402 = arith.constant 0 : index
    %464 = tpu.strided_load %arg13[%c170, %c0_402] {strides = array<i32: 2, 1>} : memref<264x128xf32, #tpu.memory_space<vmem>>, vector<11x128xf32>
    %465 = arith.maximumf %462, %463 : vector<11x128xf32>
    %466 = arith.maximumf %465, %464 : vector<11x128xf32>
    %c77 = arith.constant 77 : index
    %c0_403 = arith.constant 0 : index
    %467 = vector.load %arg14[%c77, %c0_403] : memref<128x128xf32, #tpu.memory_space<vmem>>, vector<11x128xf32>
    tpu.vector_store %arg14[%c77, %c0_403], %466 {strides = array<i32>} : memref<128x128xf32, #tpu.memory_space<vmem>>, vector<11x128xf32>,
    %c192_404 = arith.constant 192 : index
    %c0_405 = arith.constant 0 : index
    %468 = tpu.strided_load %arg13[%c192_404, %c0_405] {strides = array<i32: 2, 1>} : memref<264x128xf32, #tpu.memory_space<vmem>>, vector<11x128xf32>
    %c193 = arith.constant 193 : index
    %c0_406 = arith.constant 0 : index
    %469 = tpu.strided_load %arg13[%c193, %c0_406] {strides = array<i32: 2, 1>} : memref<264x128xf32, #tpu.memory_space<vmem>>, vector<11x128xf32>
    %c194 = arith.constant 194 : index
    %c0_407 = arith.constant 0 : index
    %470 = tpu.strided_load %arg13[%c194, %c0_407] {strides = array<i32: 2, 1>} : memref<264x128xf32, #tpu.memory_space<vmem>>, vector<11x128xf32>
    %471 = arith.maximumf %468, %469 : vector<11x128xf32>
    %472 = arith.maximumf %471, %470 : vector<11x128xf32>
    %c88 = arith.constant 88 : index
    %c0_408 = arith.constant 0 : index
    %473 = vector.load %arg14[%c88, %c0_408] : memref<128x128xf32, #tpu.memory_space<vmem>>, vector<11x128xf32>
    tpu.vector_store %arg14[%c88, %c0_408], %472 {strides = array<i32>} : memref<128x128xf32, #tpu.memory_space<vmem>>, vector<11x128xf32>,
    %c216_409 = arith.constant 216 : index
    %c0_410 = arith.constant 0 : index
    %474 = tpu.strided_load %arg13[%c216_409, %c0_410] {strides = array<i32: 2, 1>} : memref<264x128xf32, #tpu.memory_space<vmem>>, vector<11x128xf32>
    %c217 = arith.constant 217 : index
    %c0_411 = arith.constant 0 : index
    %475 = tpu.strided_load %arg13[%c217, %c0_411] {strides = array<i32: 2, 1>} : memref<264x128xf32, #tpu.memory_space<vmem>>, vector<11x128xf32>
    %c218 = arith.constant 218 : index
    %c0_412 = arith.constant 0 : index
    %476 = tpu.strided_load %arg13[%c218, %c0_412] {strides = array<i32: 2, 1>} : memref<264x128xf32, #tpu.memory_space<vmem>>, vector<11x128xf32>
    %477 = arith.maximumf %474, %475 : vector<11x128xf32>
    %478 = arith.maximumf %477, %476 : vector<11x128xf32>
    %c99 = arith.constant 99 : index
    %c0_413 = arith.constant 0 : index
    %479 = vector.load %arg14[%c99, %c0_413] : memref<128x128xf32, #tpu.memory_space<vmem>>, vector<11x128xf32>
    tpu.vector_store %arg14[%c99, %c0_413], %478 {strides = array<i32>} : memref<128x128xf32, #tpu.memory_space<vmem>>, vector<11x128xf32>,
    %c240_414 = arith.constant 240 : index
    %c0_415 = arith.constant 0 : index
    %480 = tpu.strided_load %arg13[%c240_414, %c0_415] {strides = array<i32: 2, 1>} : memref<264x128xf32, #tpu.memory_space<vmem>>, vector<11x128xf32>
    %c241 = arith.constant 241 : index
    %c0_416 = arith.constant 0 : index
    %481 = tpu.strided_load %arg13[%c241, %c0_416] {strides = array<i32: 2, 1>} : memref<264x128xf32, #tpu.memory_space<vmem>>, vector<11x128xf32>
    %c242 = arith.constant 242 : index
    %c0_417 = arith.constant 0 : index
    %482 = tpu.strided_load %arg13[%c242, %c0_417] {strides = array<i32: 2, 1>} : memref<264x128xf32, #tpu.memory_space<vmem>>, vector<11x128xf32>
    %483 = arith.maximumf %480, %481 : vector<11x128xf32>
    %484 = arith.maximumf %483, %482 : vector<11x128xf32>
    %c110 = arith.constant 110 : index
    %c0_418 = arith.constant 0 : index
    %485 = vector.load %arg14[%c110, %c0_418] : memref<128x128xf32, #tpu.memory_space<vmem>>, vector<11x128xf32>
    tpu.vector_store %arg14[%c110, %c0_418], %484 {strides = array<i32>} : memref<128x128xf32, #tpu.memory_space<vmem>>, vector<11x128xf32>,
    %c0_419 = arith.constant 0 : index
    %c0_420 = arith.constant 0 : index
    %486 = vector.load %arg6[%c0_419, %c0_420] : memref<1x128xf32, #tpu.memory_space<vmem>>, vector<1x128xf32>
    %c0_421 = arith.constant 0 : index
    %c0_422 = arith.constant 0 : index
    %487 = vector.load %arg7[%c0_421, %c0_422] : memref<1x128xf32, #tpu.memory_space<vmem>>, vector<1x128xf32>
    %c0_423 = arith.constant 0 : index
    %c0_424 = arith.constant 0 : index
    %488 = vector.load %arg14[%c0_423, %c0_424] : memref<128x128xf32, #tpu.memory_space<vmem>>, vector<97x128xf32>
    %489 = arith.truncf %488 : vector<97x128xf32> to vector<97x128xbf16>
    %c0_425 = arith.constant 0 : index
    %c0_426 = arith.constant 0 : index
    %c0_427 = arith.constant 0 : index
    %490 = vector.load %arg5[%c0_425, %c0_426, %c0_427] : memref<9x128x128xbf16, #tpu.memory_space<vmem>>, vector<1x128x128xbf16>
    %491 = vector.shape_cast %490 : vector<1x128x128xbf16> to vector<128x128xbf16>
    %cst_428 = arith.constant dense<0.000000e+00> : vector<97x128xf32>
    %492 = tpu.matmul %489, %491, %cst_428 {dimension_numbers = #tpu.dot_dimension_numbers<[1], [0], [0], [1], [0, 0, 1, 1], [], []>} : vector<97x128xbf16>, vector<128x128xbf16>, vector<97x128xf32> -> vector<97x128xf32>
    %c1_429 = arith.constant 1 : index
    %c0_430 = arith.constant 0 : index
    %493 = vector.load %arg14[%c1_429, %c0_430] : memref<128x128xf32, #tpu.memory_space<vmem>>, vector<97x128xf32>
    %494 = arith.truncf %493 : vector<97x128xf32> to vector<97x128xbf16>
    %c1_431 = arith.constant 1 : index
    %c0_432 = arith.constant 0 : index
    %c0_433 = arith.constant 0 : index
    %495 = vector.load %arg5[%c1_431, %c0_432, %c0_433] : memref<9x128x128xbf16, #tpu.memory_space<vmem>>, vector<1x128x128xbf16>
    %496 = vector.shape_cast %495 : vector<1x128x128xbf16> to vector<128x128xbf16>
    %cst_434 = arith.constant dense<0.000000e+00> : vector<97x128xf32>
    %497 = tpu.matmul %494, %496, %cst_434 {dimension_numbers = #tpu.dot_dimension_numbers<[1], [0], [0], [1], [0, 0, 1, 1], [], []>} : vector<97x128xbf16>, vector<128x128xbf16>, vector<97x128xf32> -> vector<97x128xf32>
    %498 = arith.addf %492, %497 : vector<97x128xf32>
    %c2_435 = arith.constant 2 : index
    %c0_436 = arith.constant 0 : index
    %499 = vector.load %arg14[%c2_435, %c0_436] : memref<128x128xf32, #tpu.memory_space<vmem>>, vector<97x128xf32>
    %500 = arith.truncf %499 : vector<97x128xf32> to vector<97x128xbf16>
    %c2_437 = arith.constant 2 : index
    %c0_438 = arith.constant 0 : index
    %c0_439 = arith.constant 0 : index
    %501 = vector.load %arg5[%c2_437, %c0_438, %c0_439] : memref<9x128x128xbf16, #tpu.memory_space<vmem>>, vector<1x128x128xbf16>
    %502 = vector.shape_cast %501 : vector<1x128x128xbf16> to vector<128x128xbf16>
    %cst_440 = arith.constant dense<0.000000e+00> : vector<97x128xf32>
    %503 = tpu.matmul %500, %502, %cst_440 {dimension_numbers = #tpu.dot_dimension_numbers<[1], [0], [0], [1], [0, 0, 1, 1], [], []>} : vector<97x128xbf16>, vector<128x128xbf16>, vector<97x128xf32> -> vector<97x128xf32>
    %504 = arith.addf %498, %503 : vector<97x128xf32>
    %c11_441 = arith.constant 11 : index
    %c0_442 = arith.constant 0 : index
    %505 = vector.load %arg14[%c11_441, %c0_442] : memref<128x128xf32, #tpu.memory_space<vmem>>, vector<97x128xf32>
    %506 = arith.truncf %505 : vector<97x128xf32> to vector<97x128xbf16>
    %c3_443 = arith.constant 3 : index
    %c0_444 = arith.constant 0 : index
    %c0_445 = arith.constant 0 : index
    %507 = vector.load %arg5[%c3_443, %c0_444, %c0_445] : memref<9x128x128xbf16, #tpu.memory_space<vmem>>, vector<1x128x128xbf16>
    %508 = vector.shape_cast %507 : vector<1x128x128xbf16> to vector<128x128xbf16>
    %cst_446 = arith.constant dense<0.000000e+00> : vector<97x128xf32>
    %509 = tpu.matmul %506, %508, %cst_446 {dimension_numbers = #tpu.dot_dimension_numbers<[1], [0], [0], [1], [0, 0, 1, 1], [], []>} : vector<97x128xbf16>, vector<128x128xbf16>, vector<97x128xf32> -> vector<97x128xf32>
    %510 = arith.addf %504, %509 : vector<97x128xf32>
    %c12 = arith.constant 12 : index
    %c0_447 = arith.constant 0 : index
    %511 = vector.load %arg14[%c12, %c0_447] : memref<128x128xf32, #tpu.memory_space<vmem>>, vector<97x128xf32>
    %512 = arith.truncf %511 : vector<97x128xf32> to vector<97x128xbf16>
    %c4_448 = arith.constant 4 : index
    %c0_449 = arith.constant 0 : index
    %c0_450 = arith.constant 0 : index
    %513 = vector.load %arg5[%c4_448, %c0_449, %c0_450] : memref<9x128x128xbf16, #tpu.memory_space<vmem>>, vector<1x128x128xbf16>
    %514 = vector.shape_cast %513 : vector<1x128x128xbf16> to vector<128x128xbf16>
    %cst_451 = arith.constant dense<0.000000e+00> : vector<97x128xf32>
    %515 = tpu.matmul %512, %514, %cst_451 {dimension_numbers = #tpu.dot_dimension_numbers<[1], [0], [0], [1], [0, 0, 1, 1], [], []>} : vector<97x128xbf16>, vector<128x128xbf16>, vector<97x128xf32> -> vector<97x128xf32>
    %516 = arith.addf %510, %515 : vector<97x128xf32>
    %c13 = arith.constant 13 : index
    %c0_452 = arith.constant 0 : index
    %517 = vector.load %arg14[%c13, %c0_452] : memref<128x128xf32, #tpu.memory_space<vmem>>, vector<97x128xf32>
    %518 = arith.truncf %517 : vector<97x128xf32> to vector<97x128xbf16>
    %c5_453 = arith.constant 5 : index
    %c0_454 = arith.constant 0 : index
    %c0_455 = arith.constant 0 : index
    %519 = vector.load %arg5[%c5_453, %c0_454, %c0_455] : memref<9x128x128xbf16, #tpu.memory_space<vmem>>, vector<1x128x128xbf16>
    %520 = vector.shape_cast %519 : vector<1x128x128xbf16> to vector<128x128xbf16>
    %cst_456 = arith.constant dense<0.000000e+00> : vector<97x128xf32>
    %521 = tpu.matmul %518, %520, %cst_456 {dimension_numbers = #tpu.dot_dimension_numbers<[1], [0], [0], [1], [0, 0, 1, 1], [], []>} : vector<97x128xbf16>, vector<128x128xbf16>, vector<97x128xf32> -> vector<97x128xf32>
    %522 = arith.addf %516, %521 : vector<97x128xf32>
    %c22_457 = arith.constant 22 : index
    %c0_458 = arith.constant 0 : index
    %523 = vector.load %arg14[%c22_457, %c0_458] : memref<128x128xf32, #tpu.memory_space<vmem>>, vector<97x128xf32>
    %524 = arith.truncf %523 : vector<97x128xf32> to vector<97x128xbf16>
    %c6_459 = arith.constant 6 : index
    %c0_460 = arith.constant 0 : index
    %c0_461 = arith.constant 0 : index
    %525 = vector.load %arg5[%c6_459, %c0_460, %c0_461] : memref<9x128x128xbf16, #tpu.memory_space<vmem>>, vector<1x128x128xbf16>
    %526 = vector.shape_cast %525 : vector<1x128x128xbf16> to vector<128x128xbf16>
    %cst_462 = arith.constant dense<0.000000e+00> : vector<97x128xf32>
    %527 = tpu.matmul %524, %526, %cst_462 {dimension_numbers = #tpu.dot_dimension_numbers<[1], [0], [0], [1], [0, 0, 1, 1], [], []>} : vector<97x128xbf16>, vector<128x128xbf16>, vector<97x128xf32> -> vector<97x128xf32>
    %528 = arith.addf %522, %527 : vector<97x128xf32>
    %c23 = arith.constant 23 : index
    %c0_463 = arith.constant 0 : index
    %529 = vector.load %arg14[%c23, %c0_463] : memref<128x128xf32, #tpu.memory_space<vmem>>, vector<97x128xf32>
    %530 = arith.truncf %529 : vector<97x128xf32> to vector<97x128xbf16>
    %c7_464 = arith.constant 7 : index
    %c0_465 = arith.constant 0 : index
    %c0_466 = arith.constant 0 : index
    %531 = vector.load %arg5[%c7_464, %c0_465, %c0_466] : memref<9x128x128xbf16, #tpu.memory_space<vmem>>, vector<1x128x128xbf16>
    %532 = vector.shape_cast %531 : vector<1x128x128xbf16> to vector<128x128xbf16>
    %cst_467 = arith.constant dense<0.000000e+00> : vector<97x128xf32>
    %533 = tpu.matmul %530, %532, %cst_467 {dimension_numbers = #tpu.dot_dimension_numbers<[1], [0], [0], [1], [0, 0, 1, 1], [], []>} : vector<97x128xbf16>, vector<128x128xbf16>, vector<97x128xf32> -> vector<97x128xf32>
    %534 = arith.addf %528, %533 : vector<97x128xf32>
    %c24_468 = arith.constant 24 : index
    %c0_469 = arith.constant 0 : index
    %535 = vector.load %arg14[%c24_468, %c0_469] : memref<128x128xf32, #tpu.memory_space<vmem>>, vector<97x128xf32>
    %536 = arith.truncf %535 : vector<97x128xf32> to vector<97x128xbf16>
    %c8_470 = arith.constant 8 : index
    %c0_471 = arith.constant 0 : index
    %c0_472 = arith.constant 0 : index
    %537 = vector.load %arg5[%c8_470, %c0_471, %c0_472] : memref<9x128x128xbf16, #tpu.memory_space<vmem>>, vector<1x128x128xbf16>
    %538 = vector.shape_cast %537 : vector<1x128x128xbf16> to vector<128x128xbf16>
    %cst_473 = arith.constant dense<0.000000e+00> : vector<97x128xf32>
    %539 = tpu.matmul %536, %538, %cst_473 {dimension_numbers = #tpu.dot_dimension_numbers<[1], [0], [0], [1], [0, 0, 1, 1], [], []>} : vector<97x128xbf16>, vector<128x128xbf16>, vector<97x128xf32> -> vector<97x128xf32>
    %540 = arith.addf %534, %539 : vector<97x128xf32>
    %541 = vector.broadcast %486 : vector<1x128xf32> to vector<97x128xf32>
    %542 = arith.addf %540, %541 : vector<97x128xf32>
    %cst_474 = arith.constant 0.000000e+00 : f32
    %543 = vector.broadcast %cst_474 : f32 to vector<97x128xf32>
    %544 = arith.cmpf ogt, %542, %543 : vector<97x128xf32>
    %545 = vector.broadcast %487 : vector<1x128xf32> to vector<97x128xf32>
    %546 = arith.mulf %542, %545 : vector<97x128xf32>
    %547 = arith.select %544, %542, %546 : vector<97x128xi1>, vector<97x128xf32>
    %c0_475 = arith.constant 0 : index
    %c0_476 = arith.constant 0 : index
    %548 = vector.load %arg12[%c0_475, %c0_476] : memref<528x128xf32, #tpu.memory_space<vmem>>, vector<97x128xf32>
    tpu.vector_store %arg12[%c0_475, %c0_476], %547 {strides = array<i32>} : memref<528x128xf32, #tpu.memory_space<vmem>>, vector<97x128xf32>,
    %c0_477 = arith.constant 0 : index
    %c0_478 = arith.constant 0 : index
    %549 = vector.load %arg12[%c0_477, %c0_478] : memref<528x128xf32, #tpu.memory_space<vmem>>, vector<9x128xf32>
    %c11_479 = arith.constant 11 : index
    %c0_480 = arith.constant 0 : index
    %550 = vector.load %arg12[%c11_479, %c0_480] : memref<528x128xf32, #tpu.memory_space<vmem>>, vector<9x128xf32>
    %551 = arith.maximumf %549, %550 : vector<9x128xf32>
    %c22_481 = arith.constant 22 : index
    %c0_482 = arith.constant 0 : index
    %552 = vector.load %arg12[%c22_481, %c0_482] : memref<528x128xf32, #tpu.memory_space<vmem>>, vector<9x128xf32>
    %553 = arith.maximumf %551, %552 : vector<9x128xf32>
    %c0_483 = arith.constant 0 : index
    %c0_484 = arith.constant 0 : index
    %554 = vector.load %arg13[%c0_483, %c0_484] : memref<264x128xf32, #tpu.memory_space<vmem>>, vector<9x128xf32>
    tpu.vector_store %arg13[%c0_483, %c0_484], %553 {strides = array<i32>} : memref<264x128xf32, #tpu.memory_space<vmem>>, vector<9x128xf32>,
    %c22_485 = arith.constant 22 : index
    %c0_486 = arith.constant 0 : index
    %555 = vector.load %arg12[%c22_485, %c0_486] : memref<528x128xf32, #tpu.memory_space<vmem>>, vector<9x128xf32>
    %c33_487 = arith.constant 33 : index
    %c0_488 = arith.constant 0 : index
    %556 = vector.load %arg12[%c33_487, %c0_488] : memref<528x128xf32, #tpu.memory_space<vmem>>, vector<9x128xf32>
    %557 = arith.maximumf %555, %556 : vector<9x128xf32>
    %c44_489 = arith.constant 44 : index
    %c0_490 = arith.constant 0 : index
    %558 = vector.load %arg12[%c44_489, %c0_490] : memref<528x128xf32, #tpu.memory_space<vmem>>, vector<9x128xf32>
    %559 = arith.maximumf %557, %558 : vector<9x128xf32>
    %c16 = arith.constant 16 : index
    %c0_491 = arith.constant 0 : index
    %560 = vector.load %arg13[%c16, %c0_491] : memref<264x128xf32, #tpu.memory_space<vmem>>, vector<9x128xf32>
    tpu.vector_store %arg13[%c16, %c0_491], %559 {strides = array<i32>} : memref<264x128xf32, #tpu.memory_space<vmem>>, vector<9x128xf32>,
    %c44_492 = arith.constant 44 : index
    %c0_493 = arith.constant 0 : index
    %561 = vector.load %arg12[%c44_492, %c0_493] : memref<528x128xf32, #tpu.memory_space<vmem>>, vector<9x128xf32>
    %c55_494 = arith.constant 55 : index
    %c0_495 = arith.constant 0 : index
    %562 = vector.load %arg12[%c55_494, %c0_495] : memref<528x128xf32, #tpu.memory_space<vmem>>, vector<9x128xf32>
    %563 = arith.maximumf %561, %562 : vector<9x128xf32>
    %c66_496 = arith.constant 66 : index
    %c0_497 = arith.constant 0 : index
    %564 = vector.load %arg12[%c66_496, %c0_497] : memref<528x128xf32, #tpu.memory_space<vmem>>, vector<9x128xf32>
    %565 = arith.maximumf %563, %564 : vector<9x128xf32>
    %c32 = arith.constant 32 : index
    %c0_498 = arith.constant 0 : index
    %566 = vector.load %arg13[%c32, %c0_498] : memref<264x128xf32, #tpu.memory_space<vmem>>, vector<9x128xf32>
    tpu.vector_store %arg13[%c32, %c0_498], %565 {strides = array<i32>} : memref<264x128xf32, #tpu.memory_space<vmem>>, vector<9x128xf32>,
    %c66_499 = arith.constant 66 : index
    %c0_500 = arith.constant 0 : index
    %567 = vector.load %arg12[%c66_499, %c0_500] : memref<528x128xf32, #tpu.memory_space<vmem>>, vector<9x128xf32>
    %c77_501 = arith.constant 77 : index
    %c0_502 = arith.constant 0 : index
    %568 = vector.load %arg12[%c77_501, %c0_502] : memref<528x128xf32, #tpu.memory_space<vmem>>, vector<9x128xf32>
    %569 = arith.maximumf %567, %568 : vector<9x128xf32>
    %c88_503 = arith.constant 88 : index
    %c0_504 = arith.constant 0 : index
    %570 = vector.load %arg12[%c88_503, %c0_504] : memref<528x128xf32, #tpu.memory_space<vmem>>, vector<9x128xf32>
    %571 = arith.maximumf %569, %570 : vector<9x128xf32>
    %c48_505 = arith.constant 48 : index
    %c0_506 = arith.constant 0 : index
    %572 = vector.load %arg13[%c48_505, %c0_506] : memref<264x128xf32, #tpu.memory_space<vmem>>, vector<9x128xf32>
    tpu.vector_store %arg13[%c48_505, %c0_506], %571 {strides = array<i32>} : memref<264x128xf32, #tpu.memory_space<vmem>>, vector<9x128xf32>,
    %c0_507 = arith.constant 0 : index
    %c0_508 = arith.constant 0 : index
    %573 = tpu.strided_load %arg13[%c0_507, %c0_508] {strides = array<i32: 2, 1>} : memref<264x128xf32, #tpu.memory_space<vmem>>, vector<4x128xf32>
    %c1_509 = arith.constant 1 : index
    %c0_510 = arith.constant 0 : index
    %574 = tpu.strided_load %arg13[%c1_509, %c0_510] {strides = array<i32: 2, 1>} : memref<264x128xf32, #tpu.memory_space<vmem>>, vector<4x128xf32>
    %c2_511 = arith.constant 2 : index
    %c0_512 = arith.constant 0 : index
    %575 = tpu.strided_load %arg13[%c2_511, %c0_512] {strides = array<i32: 2, 1>} : memref<264x128xf32, #tpu.memory_space<vmem>>, vector<4x128xf32>
    %576 = arith.maximumf %573, %574 : vector<4x128xf32>
    %577 = arith.maximumf %576, %575 : vector<4x128xf32>
    %c0_513 = arith.constant 0 : index
    %c0_514 = arith.constant 0 : index
    %578 = vector.load %arg15[%c0_513, %c0_514] : memref<16x128xf32, #tpu.memory_space<vmem>>, vector<4x128xf32>
    tpu.vector_store %arg15[%c0_513, %c0_514], %577 {strides = array<i32>} : memref<16x128xf32, #tpu.memory_space<vmem>>, vector<4x128xf32>,
    %c16_515 = arith.constant 16 : index
    %c0_516 = arith.constant 0 : index
    %579 = tpu.strided_load %arg13[%c16_515, %c0_516] {strides = array<i32: 2, 1>} : memref<264x128xf32, #tpu.memory_space<vmem>>, vector<4x128xf32>
    %c17 = arith.constant 17 : index
    %c0_517 = arith.constant 0 : index
    %580 = tpu.strided_load %arg13[%c17, %c0_517] {strides = array<i32: 2, 1>} : memref<264x128xf32, #tpu.memory_space<vmem>>, vector<4x128xf32>
    %c18 = arith.constant 18 : index
    %c0_518 = arith.constant 0 : index
    %581 = tpu.strided_load %arg13[%c18, %c0_518] {strides = array<i32: 2, 1>} : memref<264x128xf32, #tpu.memory_space<vmem>>, vector<4x128xf32>
    %582 = arith.maximumf %579, %580 : vector<4x128xf32>
    %583 = arith.maximumf %582, %581 : vector<4x128xf32>
    %c4_519 = arith.constant 4 : index
    %c0_520 = arith.constant 0 : index
    %584 = vector.load %arg15[%c4_519, %c0_520] : memref<16x128xf32, #tpu.memory_space<vmem>>, vector<4x128xf32>
    tpu.vector_store %arg15[%c4_519, %c0_520], %583 {strides = array<i32>} : memref<16x128xf32, #tpu.memory_space<vmem>>, vector<4x128xf32>,
    %c32_521 = arith.constant 32 : index
    %c0_522 = arith.constant 0 : index
    %585 = tpu.strided_load %arg13[%c32_521, %c0_522] {strides = array<i32: 2, 1>} : memref<264x128xf32, #tpu.memory_space<vmem>>, vector<4x128xf32>
    %c33_523 = arith.constant 33 : index
    %c0_524 = arith.constant 0 : index
    %586 = tpu.strided_load %arg13[%c33_523, %c0_524] {strides = array<i32: 2, 1>} : memref<264x128xf32, #tpu.memory_space<vmem>>, vector<4x128xf32>
    %c34 = arith.constant 34 : index
    %c0_525 = arith.constant 0 : index
    %587 = tpu.strided_load %arg13[%c34, %c0_525] {strides = array<i32: 2, 1>} : memref<264x128xf32, #tpu.memory_space<vmem>>, vector<4x128xf32>
    %588 = arith.maximumf %585, %586 : vector<4x128xf32>
    %589 = arith.maximumf %588, %587 : vector<4x128xf32>
    %c8_526 = arith.constant 8 : index
    %c0_527 = arith.constant 0 : index
    %590 = vector.load %arg15[%c8_526, %c0_527] : memref<16x128xf32, #tpu.memory_space<vmem>>, vector<4x128xf32>
    tpu.vector_store %arg15[%c8_526, %c0_527], %589 {strides = array<i32>} : memref<16x128xf32, #tpu.memory_space<vmem>>, vector<4x128xf32>,
    %c48_528 = arith.constant 48 : index
    %c0_529 = arith.constant 0 : index
    %591 = tpu.strided_load %arg13[%c48_528, %c0_529] {strides = array<i32: 2, 1>} : memref<264x128xf32, #tpu.memory_space<vmem>>, vector<4x128xf32>
    %c49_530 = arith.constant 49 : index
    %c0_531 = arith.constant 0 : index
    %592 = tpu.strided_load %arg13[%c49_530, %c0_531] {strides = array<i32: 2, 1>} : memref<264x128xf32, #tpu.memory_space<vmem>>, vector<4x128xf32>
    %c50_532 = arith.constant 50 : index
    %c0_533 = arith.constant 0 : index
    %593 = tpu.strided_load %arg13[%c50_532, %c0_533] {strides = array<i32: 2, 1>} : memref<264x128xf32, #tpu.memory_space<vmem>>, vector<4x128xf32>
    %594 = arith.maximumf %591, %592 : vector<4x128xf32>
    %595 = arith.maximumf %594, %593 : vector<4x128xf32>
    %c12_534 = arith.constant 12 : index
    %c0_535 = arith.constant 0 : index
    %596 = vector.load %arg15[%c12_534, %c0_535] : memref<16x128xf32, #tpu.memory_space<vmem>>, vector<4x128xf32>
    tpu.vector_store %arg15[%c12_534, %c0_535], %595 {strides = array<i32>} : memref<16x128xf32, #tpu.memory_space<vmem>>, vector<4x128xf32>,
    %c0_536 = arith.constant 0 : index
    %c0_537 = arith.constant 0 : index
    %597 = vector.load %arg9[%c0_536, %c0_537] : memref<1x128xf32, #tpu.memory_space<vmem>>, vector<1x128xf32>
    %c0_538 = arith.constant 0 : index
    %c0_539 = arith.constant 0 : index
    %598 = vector.load %arg10[%c0_538, %c0_539] : memref<1x128xf32, #tpu.memory_space<vmem>>, vector<1x128xf32>
    %c0_540 = arith.constant 0 : index
    %c0_541 = arith.constant 0 : index
    %599 = vector.load %arg15[%c0_540, %c0_541] : memref<16x128xf32, #tpu.memory_space<vmem>>, vector<11x128xf32>
    %600 = arith.truncf %599 : vector<11x128xf32> to vector<11x128xbf16>
    %c0_542 = arith.constant 0 : index
    %c0_543 = arith.constant 0 : index
    %c0_544 = arith.constant 0 : index
    %601 = vector.load %arg8[%c0_542, %c0_543, %c0_544] : memref<4x128x128xbf16, #tpu.memory_space<vmem>>, vector<1x128x128xbf16>
    %602 = vector.shape_cast %601 : vector<1x128x128xbf16> to vector<128x128xbf16>
    %cst_545 = arith.constant dense<0.000000e+00> : vector<11x128xf32>
    %603 = tpu.matmul %600, %602, %cst_545 {dimension_numbers = #tpu.dot_dimension_numbers<[1], [0], [0], [1], [0, 0, 1, 1], [], []>} : vector<11x128xbf16>, vector<128x128xbf16>, vector<11x128xf32> -> vector<11x128xf32>
    %c1_546 = arith.constant 1 : index
    %c0_547 = arith.constant 0 : index
    %604 = vector.load %arg15[%c1_546, %c0_547] : memref<16x128xf32, #tpu.memory_space<vmem>>, vector<11x128xf32>
    %605 = arith.truncf %604 : vector<11x128xf32> to vector<11x128xbf16>
    %c1_548 = arith.constant 1 : index
    %c0_549 = arith.constant 0 : index
    %c0_550 = arith.constant 0 : index
    %606 = vector.load %arg8[%c1_548, %c0_549, %c0_550] : memref<4x128x128xbf16, #tpu.memory_space<vmem>>, vector<1x128x128xbf16>
    %607 = vector.shape_cast %606 : vector<1x128x128xbf16> to vector<128x128xbf16>
    %cst_551 = arith.constant dense<0.000000e+00> : vector<11x128xf32>
    %608 = tpu.matmul %605, %607, %cst_551 {dimension_numbers = #tpu.dot_dimension_numbers<[1], [0], [0], [1], [0, 0, 1, 1], [], []>} : vector<11x128xbf16>, vector<128x128xbf16>, vector<11x128xf32> -> vector<11x128xf32>
    %609 = arith.addf %603, %608 : vector<11x128xf32>
    %c4_552 = arith.constant 4 : index
    %c0_553 = arith.constant 0 : index
    %610 = vector.load %arg15[%c4_552, %c0_553] : memref<16x128xf32, #tpu.memory_space<vmem>>, vector<11x128xf32>
    %611 = arith.truncf %610 : vector<11x128xf32> to vector<11x128xbf16>
    %c2_554 = arith.constant 2 : index
    %c0_555 = arith.constant 0 : index
    %c0_556 = arith.constant 0 : index
    %612 = vector.load %arg8[%c2_554, %c0_555, %c0_556] : memref<4x128x128xbf16, #tpu.memory_space<vmem>>, vector<1x128x128xbf16>
    %613 = vector.shape_cast %612 : vector<1x128x128xbf16> to vector<128x128xbf16>
    %cst_557 = arith.constant dense<0.000000e+00> : vector<11x128xf32>
    %614 = tpu.matmul %611, %613, %cst_557 {dimension_numbers = #tpu.dot_dimension_numbers<[1], [0], [0], [1], [0, 0, 1, 1], [], []>} : vector<11x128xbf16>, vector<128x128xbf16>, vector<11x128xf32> -> vector<11x128xf32>
    %615 = arith.addf %609, %614 : vector<11x128xf32>
    %c5_558 = arith.constant 5 : index
    %c0_559 = arith.constant 0 : index
    %616 = vector.load %arg15[%c5_558, %c0_559] : memref<16x128xf32, #tpu.memory_space<vmem>>, vector<11x128xf32>
    %617 = arith.truncf %616 : vector<11x128xf32> to vector<11x128xbf16>
    %c3_560 = arith.constant 3 : index
    %c0_561 = arith.constant 0 : index
    %c0_562 = arith.constant 0 : index
    %618 = vector.load %arg8[%c3_560, %c0_561, %c0_562] : memref<4x128x128xbf16, #tpu.memory_space<vmem>>, vector<1x128x128xbf16>
    %619 = vector.shape_cast %618 : vector<1x128x128xbf16> to vector<128x128xbf16>
    %cst_563 = arith.constant dense<0.000000e+00> : vector<11x128xf32>
    %620 = tpu.matmul %617, %619, %cst_563 {dimension_numbers = #tpu.dot_dimension_numbers<[1], [0], [0], [1], [0, 0, 1, 1], [], []>} : vector<11x128xbf16>, vector<128x128xbf16>, vector<11x128xf32> -> vector<11x128xf32>
    %621 = arith.addf %615, %620 : vector<11x128xf32>
    %622 = vector.broadcast %597 : vector<1x128xf32> to vector<11x128xf32>
    %623 = arith.addf %621, %622 : vector<11x128xf32>
    %cst_564 = arith.constant 0.000000e+00 : f32
    %624 = vector.broadcast %cst_564 : f32 to vector<11x128xf32>
    %625 = arith.cmpf ogt, %623, %624 : vector<11x128xf32>
    %626 = vector.broadcast %598 : vector<1x128xf32> to vector<11x128xf32>
    %627 = arith.mulf %623, %626 : vector<11x128xf32>
    %628 = arith.select %625, %623, %627 : vector<11x128xi1>, vector<11x128xf32>
    %c0_565 = arith.constant 0 : index
    %c0_566 = arith.constant 0 : index
    %629 = vector.load %arg12[%c0_565, %c0_566] : memref<528x128xf32, #tpu.memory_space<vmem>>, vector<11x128xf32>
    tpu.vector_store %arg12[%c0_565, %c0_566], %628 {strides = array<i32>} : memref<528x128xf32, #tpu.memory_space<vmem>>, vector<11x128xf32>,
    %c0_567 = arith.constant 0 : index
    %c0_568 = arith.constant 0 : index
    %630 = vector.load %arg12[%c0_567, %c0_568] : memref<528x128xf32, #tpu.memory_space<vmem>>, vector<3x64xf32>
    %c0_569 = arith.constant 0 : index
    %c0_570 = arith.constant 0 : index
    %c0_571 = arith.constant 0 : index
    %631 = vector.load %arg11[%c0_569, %c0_570, %c0_571] : memref<1x9x64xf32, #tpu.memory_space<vmem>>, vector<1x3x64xf32>
    %632 = vector.shape_cast %631 : vector<1x3x64xf32> to vector<3x64xf32>
    %633 = vector.shape_cast %630 : vector<3x64xf32> to vector<1x3x64xf32>
    tpu.vector_store %arg11[%c0_569, %c0_570, %c0_571], %633 {strides = array<i32>} : memref<1x9x64xf32, #tpu.memory_space<vmem>>, vector<1x3x64xf32>,
    %c4_572 = arith.constant 4 : index
    %c0_573 = arith.constant 0 : index
    %634 = vector.load %arg12[%c4_572, %c0_573] : memref<528x128xf32, #tpu.memory_space<vmem>>, vector<3x64xf32>
    %c0_574 = arith.constant 0 : index
    %c3_575 = arith.constant 3 : index
    %c0_576 = arith.constant 0 : index
    %635 = vector.load %arg11[%c0_574, %c3_575, %c0_576] : memref<1x9x64xf32, #tpu.memory_space<vmem>>, vector<1x3x64xf32>
    %636 = vector.shape_cast %635 : vector<1x3x64xf32> to vector<3x64xf32>
    %637 = vector.shape_cast %634 : vector<3x64xf32> to vector<1x3x64xf32>
    tpu.vector_store %arg11[%c0_574, %c3_575, %c0_576], %637 {strides = array<i32>} : memref<1x9x64xf32, #tpu.memory_space<vmem>>, vector<1x3x64xf32>,
    %c8_577 = arith.constant 8 : index
    %c0_578 = arith.constant 0 : index
    %638 = vector.load %arg12[%c8_577, %c0_578] : memref<528x128xf32, #tpu.memory_space<vmem>>, vector<3x64xf32>
    %c0_579 = arith.constant 0 : index
    %c6_580 = arith.constant 6 : index
    %c0_581 = arith.constant 0 : index
    %639 = vector.load %arg11[%c0_579, %c6_580, %c0_581] : memref<1x9x64xf32, #tpu.memory_space<vmem>>, vector<1x3x64xf32>
    %640 = vector.shape_cast %639 : vector<1x3x64xf32> to vector<3x64xf32>
    %641 = vector.shape_cast %638 : vector<3x64xf32> to vector<1x3x64xf32>
    tpu.vector_store %arg11[%c0_579, %c6_580, %c0_581], %641 {strides = array<i32>} : memref<1x9x64xf32, #tpu.memory_space<vmem>>, vector<1x3x64xf32>,
    return
  }
  func.func @transform_0(%arg0: i32) -> (i32, i32, i32) {
    %c0_i32 = arith.constant 0 : i32
    %c0_i32_0 = arith.constant 0 : i32
    %c0_i32_1 = arith.constant 0 : i32
    return %arg0, %c0_i32, %c0_i32_0 : i32, i32, i32
  }
  func.func @transform_1(%arg0: i32) -> (i32, i32, i32) {
    %c0_i32 = arith.constant 0 : i32
    %c0_i32_0 = arith.constant 0 : i32
    %c0_i32_1 = arith.constant 0 : i32
    %c0_i32_2 = arith.constant 0 : i32
    return %c0_i32, %c0_i32_0, %c0_i32_1 : i32, i32, i32
  }
  func.func @transform_2(%arg0: i32) -> (i32, i32) {
    %c0_i32 = arith.constant 0 : i32
    %c0_i32_0 = arith.constant 0 : i32
    %c0_i32_1 = arith.constant 0 : i32
    return %c0_i32, %c0_i32_0 : i32, i32
  }
  func.func @transform_3(%arg0: i32) -> (i32, i32) {
    %c0_i32 = arith.constant 0 : i32
    %c0_i32_0 = arith.constant 0 : i32
    %c0_i32_1 = arith.constant 0 : i32
    return %c0_i32, %c0_i32_0 : i32, i32
  }
  func.func @transform_4(%arg0: i32) -> (i32, i32, i32) {
    %c0_i32 = arith.constant 0 : i32
    %c0_i32_0 = arith.constant 0 : i32
    %c0_i32_1 = arith.constant 0 : i32
    %c0_i32_2 = arith.constant 0 : i32
    return %c0_i32, %c0_i32_0, %c0_i32_1 : i32, i32, i32
  }
  func.func @transform_5(%arg0: i32) -> (i32, i32) {
    %c0_i32 = arith.constant 0 : i32
    %c0_i32_0 = arith.constant 0 : i32
    %c0_i32_1 = arith.constant 0 : i32
    return %c0_i32, %c0_i32_0 : i32, i32
  }
  func.func @transform_6(%arg0: i32) -> (i32, i32) {
    %c0_i32 = arith.constant 0 : i32
    %c0_i32_0 = arith.constant 0 : i32
    %c0_i32_1 = arith.constant 0 : i32
    return %c0_i32, %c0_i32_0 : i32, i32
  }
  func.func @transform_7(%arg0: i32) -> (i32, i32, i32) {
    %c0_i32 = arith.constant 0 : i32
    %c0_i32_0 = arith.constant 0 : i32
    %c0_i32_1 = arith.constant 0 : i32
    %c0_i32_2 = arith.constant 0 : i32
    return %c0_i32, %c0_i32_0, %c0_i32_1 : i32, i32, i32
  }
  func.func @transform_8(%arg0: i32) -> (i32, i32) {
    %c0_i32 = arith.constant 0 : i32
    %c0_i32_0 = arith.constant 0 : i32
    %c0_i32_1 = arith.constant 0 : i32
    return %c0_i32, %c0_i32_0 : i32, i32
  }
  func.func @transform_9(%arg0: i32) -> (i32, i32) {
    %c0_i32 = arith.constant 0 : i32
    %c0_i32_0 = arith.constant 0 : i32
    %c0_i32_1 = arith.constant 0 : i32
    return %c0_i32, %c0_i32_0 : i32, i32
  }
  func.func @transform_10(%arg0: i32) -> (i32, i32, i32) {
    %c0_i32 = arith.constant 0 : i32
    %c0_i32_0 = arith.constant 0 : i32
    %c0_i32_1 = arith.constant 0 : i32
    return %arg0, %c0_i32, %c0_i32_0 : i32, i32, i32
  }
}

</mosaic_0001>

<bundles_post_ra>
// kernel: rnet_forward.3
= control target key start
LH: loop header
LB: loop body
LE: loop exit
PB: predicated region body
PF: predicated region fallthrough
CT: control target
= control target key end

     0   :  { %v785_v35 = vmov 0.0   ;;  %vm786_vm0 = vmmov 0   ;;  %vm329_vm1 = vcmask 523264   ;;  %vm589_vm3 = vcmask 64512   ;;  %s987_s1 = inlined_call_operand.vmem [shape: bf16[576,128], index: 1, kind: input, shape index: {}]   ;;  %s988_s0 = inlined_call_operand.vmem [shape: f32[8,576], index: 0, kind: input, shape index: {}]   ;;  %s989_s4 = inlined_call_operand.vmem [shape: bf16[128,8], index: 4, kind: input, shape index: {}]   ;;  %s990_s2 = inlined_call_operand.vmem [shape: f32[1,128], index: 2, kind: input, shape index: {}]   ;;  %s991_s3 = inlined_call_operand.vmem [shape: f32[1,128], index: 3, kind: input, shape index: {}]   ;;  %s992_s5 = inlined_call_operand.vmem [shape: f32[1,8], index: 5, kind: input, shape index: {}]   ;;  %s993_s6 = inlined_call_operand.vmem [shape: f32[8,8], index: 6, kind: output, shape index: {}]  }
   0x1   :  { %v737_v0 = vld [vmem:[%s987_s1 + $0x78] sm:$0xff]   ;;  %v741_v4 = vld [vmem:[%s987_s1 + $0x70] sm:$0xff]   ;;  %v745_v8 = vld [vmem:[%s987_s1 + $0x68] sm:$0xff]   ;;  %vm575_vm4 = vcmask 15360  }
   0x2   :  { %v738_v1 = vld [vmem:[%s987_s1 + $0x38] sm:$0xff]   ;;  %645 = vmatprep.subr.bf16.mxu0 %v737_v0  ;;  %v742_v5 = vld [vmem:[%s987_s1 + $0x30] sm:$0xff]   ;;  %v746_v9 = vld [vmem:[%s987_s1 + $0x28] sm:$0xff]  }
   0x3   :  { %v739_v2 = vld [vmem:[%s987_s1 + $0xf8] sm:$0xff]   ;;  %646 = vmatpush3.bf16.msra.mxu0 %v738_v1  ;;  %v743_v6 = vld [vmem:[%s987_s1 + $0xf0] sm:$0xff]   ;;  %v747_v10 = vld [vmem:[%s987_s1 + $0xe8] sm:$0xff]  }
   0x4   :  { %v740_v3 = vld [vmem:[%s987_s1 + $0xb8] sm:$0xff]   ;;  %667 = vmatprep.subr.bf16.mxu1 %v739_v2  ;;  %647 = vmatprep.subr.bf16.mxu0 %v741_v4  ;;  %v744_v7 = vld [vmem:[%s987_s1 + $0xb0] sm:$0xff]   ;;  %v748_v11 = vld [vmem:[%s987_s1 + $0xa8] sm:$0xff]  }
   0x5   :  { %668 = vmatpush3.bf16.msra.mxu1 %v740_v3  ;;  %v749_v12 = vld [vmem:[%s987_s1 + $0x60] sm:$0xff]   ;;  %v753_v16 = vld [vmem:[%s987_s1 + $0x58] sm:$0xff]   ;;  %v757_v20 = vld [vmem:[%s987_s1 + $0x50] sm:$0xff]  }
   0x6   :  { %669 = vmatprep.subr.bf16.mxu1 %v743_v6  ;;  %v750_v13 = vld [vmem:[%s987_s1 + $0x20] sm:$0xff]   ;;  %v754_v17 = vld [vmem:[%s987_s1 + $0x18] sm:$0xff]   ;;  %v758_v21 = vld [vmem:[%s987_s1 + $0x10] sm:$0xff]  }
   0x7   :  { %648 = vmatpush3.bf16.msra.mxu0 %v742_v5  ;;  %v751_v14 = vld [vmem:[%s987_s1 + $0xe0] sm:$0xff]   ;;  %v755_v18 = vld [vmem:[%s987_s1 + $0xd8] sm:$0xff]   ;;  %v759_v22 = vld [vmem:[%s987_s1 + $0xd0] sm:$0xff]  }
   0x8   :  { %649 = vmatprep.subr.bf16.mxu0 %v745_v8  ;;  %v752_v15 = vld [vmem:[%s987_s1 + $0xa0] sm:$0xff]   ;;  %v756_v19 = vld [vmem:[%s987_s1 + $0x98] sm:$0xff]   ;;  %v760_v23 = vld [vmem:[%s987_s1 + $0x90] sm:$0xff]  }
   0x9   :  { %670 = vmatpush3.bf16.msra.mxu1 %v744_v7  ;;  %v761_v24 = vld [vmem:[%s987_s1 + $0x48] sm:$0xff]   ;;  %v765_v28 = vld [vmem:[%s987_s1 + $0x40] sm:$0xff]   ;;  %v27_v36 = vld [vmem:[%s988_s0 + $0x18] sm:$0xff] }
   0xa   :  { %671 = vmatprep.subr.bf16.mxu1 %v747_v10  ;;  %v762_v25 = vld [vmem:[%s987_s1 + $0x8] sm:$0xff]   ;;  %v766_v29 = vld [vmem:[%s987_s1] sm:$0xff]   ;;  %v32_v38 = vpack.c.bf16 %v27_v36, %v27_v36  ;;  %v769_v39 = vld [vmem:[%s987_s1 + $0x118] sm:$0xff]  }
   0xb   :  { %650 = vmatpush3.bf16.msra.mxu0 %v746_v9  ;;  %v763_v26 = vld [vmem:[%s987_s1 + $0xc8] sm:$0xff]   ;;  %v767_v30 = vld [vmem:[%s987_s1 + $0xc0] sm:$0xff]   ;;  %v26_v40 = vld [vmem:[%s988_s0 + $0x10] sm:$0xff] }
   0xc   :  { %651 = vmatprep.subr.bf16.mxu0 %v749_v12  ;;  %v764_v27 = vld [vmem:[%s987_s1 + $0x88] sm:$0xff]   ;;  %v768_v33 = vld [vmem:[%s987_s1 + $0x80] sm:$0xff]   ;;  %405 = vmatprep.mubr.bf16.mxu1 %v32_v38  ;;  %v31_v41 = vpack.c.bf16 %v26_v40, %v26_v40  ;;  %v770_v42 = vld [vmem:[%s987_s1 + $0x110] sm:$0xff]  }
   0xd   :  { %672 = vmatpush3.bf16.msra.mxu1 %v748_v11  ;;  %v25_v31 = vld [vmem:[%s988_s0 + $0x8] sm:$0xff]  ;;  %v24_v34 = vld [vmem:[%s988_s0] sm:$0xff]  ;;  %v773_v44 = vld [vmem:[%s989_s4 + $0x38] sm:$0xff]  }
   0xe   :  { %673 = vmatprep.subr.bf16.mxu1 %v751_v14  ;;  %v30_v32 = vpack.c.bf16 %v25_v31, %v25_v31  ;;  %v29_v37 = vpack.c.bf16 %v24_v34, %v24_v34  ;;  %v771_v43 = vld [vmem:[%s987_s1 + $0x108] sm:$0xff]   ;;  %v774_v45 = vld [vmem:[%s989_s4 + $0x30] sm:$0xff]   ;;  %v772_v46 = vld [vmem:[%s987_s1 + $0x100] sm:$0xff]  }
   0xf   :  { %652 = vmatpush3.bf16.msra.mxu0 %v750_v13  ;;  %v28_v47 = vld [vmem:[%s988_s0 + $0x20] sm:$0xff]  ;;  %v775_v49 = vld [vmem:[%s989_s4 + $0x28] sm:$0xff]   ;;  %v777_v51 = vld [vmem:[%s989_s4 + $0x18] sm:$0xff]  }
  0x10   :  { %653 = vmatprep.subr.bf16.mxu0 %v753_v16  ;;  %365 = vmatprep.mubr.bf16.mxu0 %v30_v32  ;;  %v33_v48 = vpack.c.bf16 %v28_v47, %v28_v47  ;;  %v776_v50 = vld [vmem:[%s989_s4 + $0x20] sm:$0xff]   ;;  %v778_v52 = vld [vmem:[%s989_s4 + $0x10] sm:$0xff]   ;;  %v779_v53 = vld [vmem:[%s989_s4 + $0x8] sm:$0xff]  }
  0x11   :  { %674 = vmatpush3.bf16.msra.mxu1 %v752_v15  ;;  %v780_v54 = vld [vmem:[%s989_s4] sm:$0xff]  }
  0x12   :  { %675 = vmatprep.subr.bf16.mxu1 %v755_v18  ;;  %v597_v63 = vld [vmem:[%s990_s2] ss:$0 sm:$0xff] }
  0x13   :  { %654 = vmatpush3.bf16.msra.mxu0 %v754_v17  ;;  %v635_v5 = vld [vmem:[%s991_s3] ss:$0 sm:$0xff] }
  0x14   :  { %655 = vmatprep.subr.bf16.mxu0 %v757_v20  ;;  %v636_v13 = vld [vmem:[%s992_s5] ss:$0 sm:$0xff] }
  0x15   :  { %676 = vmatpush3.bf16.msra.mxu1 %v756_v19 }
  0x16   :  { %677 = vmatprep.subr.bf16.mxu1 %v759_v22 }
  0x17   :  { %656 = vmatpush3.bf16.msra.mxu0 %v758_v21 }
  0x18   :  { %657 = vmatprep.subr.bf16.mxu0 %v761_v24 }
  0x19   :  { %678 = vmatpush3.bf16.msra.mxu1 %v760_v23 }
  0x1a   :  { %679 = vmatprep.subr.bf16.mxu1 %v763_v26 }
  0x1b   :  { %658 = vmatpush3.bf16.msra.mxu0 %v762_v25 }
  0x1c   :  { %659 = vmatprep.subr.bf16.mxu0 %v765_v28 }
  0x1d   :  { %680 = vmatpush3.bf16.msra.mxu1 %v764_v27 }
  0x1e   :  { %681 = vmatprep.subr.bf16.mxu1 %v767_v30 }
  0x1f   :  { %660 = vmatpush3.bf16.msra.mxu0 %v766_v29 }
  0x20   :  { %703 = vmatprep.subr.bf16.mxu0 %v785_v35 }
  0x21   :  { %682 = vmatpush3.bf16.msra.mxu1 %v768_v33 }
  0x22   :  { %366 = vmatmul.mubr.bf16.vlgmr.msra.gmra.mxu0 %v29_v37  ;;  %715 = vmatprep.subr.bf16.mxu1 %v785_v35 }
  0x23   :  { %704 = vmatpush3.bf16.msra.mxu0 %v769_v39  ;;  %711 = vmatprep.mubr.msk.bf16.mxu0 %vm786_vm0, %v785_v35 }
  0x24   :  { %406 = vmatmul.mubr.bf16.vlgmr.msra.gmra.mxu1 %v31_v41  ;;  %705 = vmatprep.subr.bf16.mxu0 %v785_v35 }
  0x25   :  { %731 = vmatprep.mubr.msk.bf16.mxu1 %vm786_vm0, %v785_v35  ;;  %716 = vmatpush3.bf16.msra.mxu1 %v773_v44 }
  0x26   :  { %717 = vmatprep.subr.bf16.mxu1 %v785_v35 }
  0x27   :  { %706 = vmatpush3.bf16.msra.mxu0 %v770_v42 }
  0x28   :  { %707 = vmatprep.subr.bf16.mxu0 %v785_v35 }
  0x29   :  { %718 = vmatpush3.bf16.msra.mxu1 %v774_v45 }
  0x2a   :  { %719 = vmatprep.subr.bf16.mxu1 %v785_v35 }
  0x2b   :  { %708 = vmatpush3.bf16.msra.mxu0 %v771_v43 }
  0x2c   :  { %709 = vmatprep.subr.bf16.mxu0 %v785_v35 }
  0x2d   :  { %720 = vmatpush3.bf16.msra.mxu1 %v775_v49 }
  0x2e   :  { %721 = vmatprep.subr.bf16.mxu1 %v785_v35 }
  0x2f   :  { %710 = vmatpush3.bf16.msra.mxu0 %v772_v46 }
  0x31   :  { %722 = vmatpush3.bf16.msra.mxu1 %v776_v50 }
  0x32   :  { %712 = vmatmul.mubr.msk.bf16.vlgmr.msra.gmra.mxu0 %vm329_vm1, %v33_v48  ;;  %723 = vmatprep.subr.bf16.mxu1 %v785_v35 }
  0x35   :  { %724 = vmatpush3.bf16.msra.mxu1 %v777_v51 }
  0x36   :  { %725 = vmatprep.subr.bf16.mxu1 %v785_v35 }
  0x39   :  { %726 = vmatpush3.bf16.msra.mxu1 %v778_v52 }
  0x3a   :  { %727 = vmatprep.subr.bf16.mxu1 %v785_v35 }
  0x3d   :  { %728 = vmatpush3.bf16.msra.mxu1 %v779_v53 }
  0x3e   :  { %729 = vmatprep.subr.bf16.mxu1 %v785_v35 }
  0x41   :  { %730 = vmatpush3.bf16.msra.mxu1 %v780_v54 }
  0xe2   :  { %v661_v55 = vpop.f32.mrf.mxu0 }
  0xe4   :  { %v662_v56 = vpop.f32.mrf.mxu0  ;;  %v683_v57 = vpop.f32.mrf.mxu1 }
  0xe5   :  { %v663_v62 = vadd.f32 %v662_v56, %v661_v55 }
  0xe6   :  { %v664_v58 = vpop.f32.mrf.mxu0  ;;  %v684_v59 = vpop.f32.mrf.mxu1 }
  0xe7   :  { %v368_v1 = vadd.f32 %v663_v62, %v597_v63  ;;  %v685_v2 = vadd.f32 %v684_v59, %v683_v57 }
  0xe8   :  { %v665_v60 = vpop.f32.mrf.mxu0  ;;  %v686_v61 = vpop.f32.mrf.mxu1 }
  0xe9   :  { %v408_v3 = vadd.f32 %v685_v2, %v368_v1 }
  0xea   :  { %v687_v0 = vpop.f32.mrf.mxu1 }
  0xf2   :  { %v447_v4 = vpop.f32.mrf.mxu0 }
  0xf3   :  { %v448_v6 = vadd.f32 %v447_v4, %v408_v3 }
  0xf4   :  { %v713_v7 = vpop.f32.mrf.mxu0 }
  0xf5   :  { %vm453_vm2 = vcmp.gt.f32.partialorder %v448_v6, 0.0  ;;  %v461_v8 = vmul.f32 %v635_v5, %v448_v6 }
  0xf6   :  { %v450_v9 = vpop.f32.mrf.mxu0 }
  0xf7   :  { %v462_v10 = vsel %vm453_vm2, %v448_v6, %v461_v8 }
  0xf8   :  { %v463_v11 = vpack.c.bf16 %v462_v10, %v462_v10  ;;  %v714_v12 = vpop.f32.mrf.mxu0 }
  0xfa   :  { %732 = vmatmul.mubr.bf16.vlgmr.msra.gmra.mxu1 %v463_v11 }
 0x1ba   :  { %v569_v14 = vpop.f32.mrf.mxu1 }
 0x1bb   :  { %v570_v15 = vadd.f32 %v636_v13, %v569_v14 }
 0x1bc   :  { %v733_v16 = vpop.f32.mrf.mxu1 }
 0x1bd   :  { %590 = vst.msk [vmem:[%s993_s6] sm:$0xff] %vm589_vm3, %v570_v15  ;;  %v576_v17 = vsel %vm575_vm4, %v570_v15, -inf }
 0x1be   :  { %577 = vmax.xlane.f32.xlu0 %v576_v17  ;;  %v572_v18 = vpop.f32.mrf.mxu1 }
 0x1c0   :  { %v734_v19 = vpop.f32.mrf.mxu1 }
 0x247   :  { %v578_v20 = vpop.xlane.xlu0 %577 }
 0x248   :  { %v579_v21 = vsub.f32 %v570_v15, %v578_v20 }
 0x24a   :  { %v580_v22 = vmul.f32 1.442695, %v579_v21 }
 0x24c   :  { %781 = vpow2.f32 %v580_v22 }
 0x259   :  { %v782_v23 = vpop.eup %781 }
 0x25a   :  { %v582_v24 = vsel %vm575_vm4, %v782_v23, 0.0 }
 0x25b   :  { %583 = vadd.xlane.f32.xlu0 %v582_v24 }
 0x2e4   :  { %v584_v25 = vpop.xlane.xlu0 %583 }
 0x2e5   :  { %783 = vrcp.f32 %v584_v25 }
 0x2f2   :  { %v784_v26 = vpop.eup %783 }
 0x2f3   :  { %v586_v27 = vmul.f32 %v784_v26, %v584_v25 }
 0x2f5   :  { %v587_v28 = vsub.f32 2.0, %v586_v27 }
 0x2f7   :  { %v588_v29 = vmul.f32 %v784_v26, %v587_v28 }
 0x2f9   :  { %v591_v30 = vmul.f32 %v782_v23, %v588_v29 }
 0x2fb   :  { %592 = vst.msk [vmem:[%s993_s6] sm:$0xff] %vm575_vm4, %v591_v30 }

// kernel: rnet_forward.2
= control target key start
LH: loop header
LB: loop body
LE: loop exit
PB: predicated region body
PF: predicated region fallthrough
CT: control target
= control target key end

     0   :  { %s12853_s13 = smov 0   ;;  %s17200_s0 = inlined_call_operand.vmem [shape: f32[2,576,3], index: 0, kind: input, shape index: {}]   ;;  %s17201_s1 = inlined_call_operand.vmem [shape: bf16[9,3,128], index: 1, kind: input, shape index: {}]   ;;  %s17202_s2 = inlined_call_operand.vmem [shape: f32[1,128], index: 2, kind: input, shape index: {}]   ;;  %s17203_s3 = inlined_call_operand.vmem [shape: f32[1,128], index: 3, kind: input, shape index: {}]   ;;  %s17204_s4 = inlined_call_operand.vmem [shape: bf16[9,128,128], index: 4, kind: input, shape index: {}]   ;;  %s17205_s5 = inlined_call_operand.vmem [shape: f32[1,128], index: 5, kind: input, shape index: {}]   ;;  %s17206_s6 = inlined_call_operand.vmem [shape: f32[1,128], index: 6, kind: input, shape index: {}]   ;;  %s17207_s7 = inlined_call_operand.vmem [shape: bf16[4,128,128], index: 7, kind: input, shape index: {}]   ;;  %s17208_s8 = inlined_call_operand.vmem [shape: f32[1,128], index: 8, kind: input, shape index: {}]   ;;  %s17209_s9 = inlined_call_operand.vmem [shape: f32[1,128], index: 9, kind: input, shape index: {}]   ;;  %s17210_s10 = inlined_call_operand.vmem [shape: f32[2,9,64], index: 10, kind: output, shape index: {}]  }
   0x1 LB: > { %s9754_s14 = sadd.s32 4294967295, %s12792_s13   ;;  %p9758_p0 = scmp.ge.s32.totalorder %s12792_s13, 1  ;;  %s12792_s13 = sphi %s12853_s13, %s20_s13  }
   0x2   : > { %p312_p1 = scmp.lt.s32.totalorder %s12792_s13, 3 }
   0x4   : > { %p313_p2 = pnand %p9758_p0, %p312_p1 }
   0x6   : > { %316 = sbr.rel (%p313_p2) target bundleno = 2129 (0x851), region = 60 }
   0xb   : > { %v9762_v0 = vld [vmem:[%s17201_s1 + $0x2] sm:$0x3]  ;;  %vm463_vm0 = vcmask 1040384   ;;  %vm464_vm1 = vcmask 1041408   ;;  %v17211_v1 = vmov 0.0   ;;  %v12795_v2 = vmov 65535  }
   0xc   : > { %10901 = vmatprep.subr.bf16.mxu0 %v17211_v1  ;;  %v465_v3 = vsel %vm463_vm0, 4294967295, %v12795_v2  ;;  %12655 = vmatprep.subr.bf16.mxu1 %v17211_v1  ;;  %v417_v4 = vld [vmem:[%s17201_s1] sm:$0x3]  ;;  %p350_p3 = scmp.lt.s32.totalorder %s9754_s14, 1  ;;  %vm12796_vm2 = vmmov 0   ;;  %vm441_vm3 = vcmask 23552  }
   0xd   : > { %v12869_v5 = vsel %vm464_vm1, %v465_v3, 0  ;;  %10903 = vmatprep.mubr.msk.bf16.mxu0 %vm12796_vm2, %v17211_v1  ;;  %10937 = vmatprep.mubr.msk.bf16.mxu1 %vm12796_vm2, %v17211_v1  ;;  %v9785_v8 = vld [vmem:[%s17201_s1 + $0x6] sm:$0x3]  ;;  %v9801_v53 = vld [vmem:[%s17201_s1 + $0xa] sm:$0x3] }
   0xe   : > { %v468_v6 = vand.u32 %v9762_v0, %v12869_v5  ;;  %v581_v7 = vand.u32 %v12869_v5, %v417_v4  ;;  %s17255_s14 = smov (!%p350_p3, %s9754_s14), 1  ;;  %v867_v17 = vand.u32 %v9785_v8, %v12869_v5  ;;  %v1167_v56 = vand.u32 %v9801_v53, %v12869_v5  ;;  %v9777_v58 = vld [vmem:[%s17201_s1 + $0x4] sm:$0x3]  ;;  %v9793_v2 = vld [vmem:[%s17201_s1 + $0x8] sm:$0x3] }
   0xf   : > { %s12657_s19 = smul.u32 576, %s17255_s14  ;;  %v717_v61 = vand.u32 %v9777_v58, %v12869_v5  ;;  %s10387_s28 = sshll.u32 %s17255_s14, 4 }
  0x10   : > { %10902 = vmatpush3.bf16.msra.mxu0 %v468_v6  ;;  %12656 = vmatpush3.bf16.msra.mxu1 %v581_v7  ;;  %v1017_v6 = vand.u32 %v9793_v2, %v12869_v5  ;;  %s359_s11 = scalar_lea.vmem %s17210_s10, %s10387_s28 }
  0x11   : > { %10931 = vmatprep.subr.bf16.mxu0 %v17211_v1  ;;  %10991 = vmatprep.subr.bf16.mxu1 %v17211_v1  ;;  %s12888_s24 = scalar_lea.vmem %s17200_s0, %s12657_s19 }
  0x12   : > { %v418_v9 = vld [vmem:[%s12888_s24 + $0x1] sm:$0xff]  ;;  %v419_v10 = vld [vmem:[%s12888_s24 + $0x9] sm:$0xff]  ;;  %v12894_v13 = vld [vmem:[%s12888_s24 + $0x18] sm:$0xff] }
  0x13   : > { %v398_v11 = vld [vmem:[%s12888_s24 + $0x10] sm:$0xff]  ;;  %v432_v12 = vpack.c.bf16 %v419_v10, %v418_v9  ;;  %v12898_v15 = vld [vmem:[%s12888_s24 + $0x19] sm:$0xff]  ;;  %v12901_v16 = vld [vmem:[%s12888_s24 + $0x21] sm:$0xff] }
  0x14   : > { %v411_v14 = vpack.c.bf16 %v12894_v13, %v398_v11  ;;  %v420_v18 = vld [vmem:[%s12888_s24 + $0x11] sm:$0xff]  ;;  %v986_v19 = vpack.c.bf16 %v12901_v16, %v12898_v15  ;;  %v12910_v20 = vld [vmem:[%s12888_s24 + $0x20] sm:$0xff]  ;;  %v12913_v21 = vld [vmem:[%s12888_s24 + $0x29] sm:$0xff] }
  0x15   : > { %10904 = vmatmul.mubr.msk.bf16.vlgmr.msra.gmra.mxu0 %vm441_vm3, %v432_v12  ;;  %v12916_v22 = vld [vmem:[%s12888_s24 + $0x31] sm:$0xff]  ;;  %v12923_v23 = vld [vmem:[%s12888_s24 + $0x28] sm:$0xff]  ;;  %v12926_v24 = vld [vmem:[%s12888_s24 + $0x39] sm:$0xff]  ;;  %v433_v28 = vpack.c.bf16 %v12898_v15, %v420_v18  ;;  %v434_v35 = vpack.c.bf16 %v12913_v21, %v12901_v16  ;;  %v836_v55 = vpack.c.bf16 %v12910_v20, %v12894_v13 }
  0x16   : > { %10932 = vmatpush3.bf16.msra.mxu0 %v581_v7  ;;  %10938 = vmatmul.mubr.msk.bf16.vlgmr.msra.gmra.mxu1 %vm441_vm3, %v411_v14  ;;  %v12929_v25 = vld [vmem:[%s12888_s24 + $0x41] sm:$0xff]  ;;  %v987_v26 = vpack.c.bf16 %v12916_v22, %v12913_v21  ;;  %v412_v29 = vpack.c.bf16 %v12923_v23, %v12910_v20  ;;  %v12945_v30 = vld [vmem:[%s12888_s24 + $0x49] sm:$0xff]  ;;  %v12948_v31 = vld [vmem:[%s12888_s24 + $0x51] sm:$0xff]  ;;  %v12984_v42 = vpack.c.bf16 %v12926_v24, %v12916_v22 }
  0x17   : > { %10907 = vmatprep.mubr.msk.bf16.mxu0 %vm12796_vm2, %v17211_v1  ;;  %10941 = vmatprep.mubr.msk.bf16.mxu1 %vm12796_vm2, %v17211_v1  ;;  %v988_v27 = vpack.c.bf16 %v12929_v25, %v12926_v24  ;;  %v402_v32 = vld [vmem:[%s12888_s24 + $0x30] sm:$0xff]  ;;  %v12954_v33 = vld [vmem:[%s12888_s24 + $0x38] sm:$0xff]  ;;  %v989_v34 = vpack.c.bf16 %v12948_v31, %v12945_v30  ;;  %v12967_v38 = vld [vmem:[%s12888_s24 + $0x61] sm:$0xff]  ;;  %v13003_v46 = vpack.c.bf16 %v12945_v30, %v12929_v25 }
  0x18   : > { %10992 = vmatpush3.bf16.msra.mxu1 %v867_v17  ;;  %10961 = vmatprep.subr.bf16.mxu0 %v17211_v1  ;;  %v12961_v36 = vpack.c.bf16 %v12954_v33, %v402_v32  ;;  %v12964_v37 = vld [vmem:[%s12888_s24 + $0x59] sm:$0xff]  ;;  %v12972_v40 = vld [vmem:[%s12888_s24 + $0x48] sm:$0xff]  ;;  %v406_v44 = vld [vmem:[%s12888_s24 + $0x50] sm:$0xff]  ;;  %v837_v62 = vpack.c.bf16 %v402_v32, %v12923_v23 }
  0x19   : > { %11051 = vmatprep.subr.bf16.mxu1 %v17211_v1  ;;  %v404_v39 = vld [vmem:[%s12888_s24 + $0x40] sm:$0xff]  ;;  %v990_v41 = vpack.c.bf16 %v12967_v38, %v12964_v37  ;;  %v12999_v45 = vld [vmem:[%s12888_s24 + $0x58] sm:$0xff]  ;;  %v13018_v49 = vld [vmem:[%s12888_s24 + $0x68] sm:$0xff]  ;;  %v13022_v50 = vpack.c.bf16 %v12964_v37, %v12948_v31  ;;  %v839_v10 = vpack.c.bf16 %v406_v44, %v12972_v40 }
  0x1a   : > { %v12987_v43 = vpack.c.bf16 %v12972_v40, %v404_v39  ;;  %v13006_v47 = vpack.c.bf16 %v12999_v45, %v406_v44  ;;  %v408_v48 = vld [vmem:[%s12888_s24 + $0x60] sm:$0xff]  ;;  %v13028_v52 = vld [vmem:[%s12888_s24 + $0x69] sm:$0xff]  ;;  %v838_v4 = vpack.c.bf16 %v404_v39, %v12954_v33  ;;  %v674_v7 = vld [vmem:[%s12888_s24 + $0x12] sm:$0xff] }
  0x1b   : > { %v13025_v51 = vpack.c.bf16 %v13018_v49, %v408_v48  ;;  %v13043_v54 = vpack.c.bf16 %v13028_v52, %v12967_v38  ;;  %v396_v57 = vld [vmem:[%s12888_s24] sm:$0xff]  ;;  %v397_v59 = vld [vmem:[%s12888_s24 + $0x8] sm:$0xff]  ;;  %v840_v14 = vpack.c.bf16 %v408_v48, %v12999_v45  ;;  %v678_v17 = vld [vmem:[%s12888_s24 + $0x32] sm:$0xff] }
  0x1c   : > { %v410_v60 = vpack.c.bf16 %v397_v59, %v396_v57  ;;  %v672_v63 = vld [vmem:[%s12888_s24 + $0x2] sm:$0xff]  ;;  %v673_v0 = vld [vmem:[%s12888_s24 + $0xa] sm:$0xff]  ;;  %v675_v8 = vld [vmem:[%s12888_s24 + $0x1a] sm:$0xff] }
  0x1d   : > { %10908 = vmatmul.mubr.msk.bf16.gmra.mxu0 %vm441_vm3, %v433_v28  ;;  %v686_v3 = vpack.c.bf16 %v673_v0, %v672_v63  ;;  %v687_v9 = vpack.c.bf16 %v675_v8, %v674_v7  ;;  %v676_v11 = vld [vmem:[%s12888_s24 + $0x22] sm:$0xff]  ;;  %v677_v12 = vld [vmem:[%s12888_s24 + $0x2a] sm:$0xff]  ;;  %v679_v18 = vld [vmem:[%s12888_s24 + $0x3a] sm:$0xff] }
  0x1e   : > { %10942 = vmatmul.mubr.msk.bf16.gmra.mxu1 %vm441_vm3, %v412_v29  ;;  %10911 = vmatprep.mubr.msk.bf16.mxu0 %vm12796_vm2, %v17211_v1  ;;  %v688_v13 = vpack.c.bf16 %v677_v12, %v676_v11  ;;  %v13105_v20 = vld [vmem:[%s12888_s24 + $0x70] sm:$0xff]  ;;  %v13107_v23 = vpack.c.bf16 %v679_v18, %v678_v17  ;;  %v680_v29 = vld [vmem:[%s12888_s24 + $0x42] sm:$0xff]  ;;  %v13121_v33 = vld [vmem:[%s12888_s24 + $0x78] sm:$0xff]  ;;  %v1136_v53 = vpack.c.bf16 %v676_v11, %v675_v8 }
  0x1f   : > { %10945 = vmatprep.mubr.msk.bf16.mxu1 %vm12796_vm2, %v17211_v1  ;;  %v841_v28 = vpack.c.bf16 %v13105_v20, %v13018_v49  ;;  %v681_v32 = vld [vmem:[%s12888_s24 + $0x4a] sm:$0xff]  ;;  %v682_v44 = vld [vmem:[%s12888_s24 + $0x52] sm:$0xff]  ;;  %v683_v45 = vld [vmem:[%s12888_s24 + $0x5a] sm:$0xff]  ;;  %v1137_v59 = vpack.c.bf16 %v678_v17, %v677_v12 }
  0x20   : > { %v13126_v39 = vpack.c.bf16 %v681_v32, %v680_v29  ;;  %v9817_v48 = vld [vmem:[%s17201_s1 + $0xe] sm:$0x3]  ;;  %v13142_v49 = vpack.c.bf16 %v683_v45, %v682_v44  ;;  %v1139_v63 = vpack.c.bf16 %v682_v44, %v681_v32  ;;  %v13197_v16 = vld [vmem:[%s12888_s24 + $0x72] sm:$0xff]  ;;  %v13210_v21 = vld [vmem:[%s12888_s24 + $0x7a] sm:$0xff] }
  0x21   : > { %v685_v57 = vld [vmem:[%s12888_s24 + $0x6a] sm:$0xff]  ;;  %v13213_v22 = vld [vmem:[%s12888_s24 + $0x82] sm:$0xff]  ;;  %v984_v31 = vld [vmem:[%s12888_s24 + $0x79] sm:$0xff] }
  0x22   : > { %v1142_v24 = vpack.c.bf16 %v13213_v22, %v13210_v21  ;;  %v983_v25 = vld [vmem:[%s12888_s24 + $0x71] sm:$0xff] }
  0x23   : > { %v9825_v38 = vld [vmem:[%s17201_s1 + $0x10] sm:$0x3] }
  0x25   : > { %10912 = vmatmul.mubr.msk.bf16.gmra.mxu0 %vm441_vm3, %v434_v35  ;;  %v13124_v35 = vld [vmem:[%s12888_s24 + $0x80] sm:$0xff] }
  0x26   : > { %10946 = vmatmul.mubr.msk.bf16.gmra.mxu1 %vm441_vm3, %v12961_v36  ;;  %10915 = vmatprep.mubr.msk.bf16.mxu0 %vm12796_vm2, %v17211_v1  ;;  %v842_v40 = vpack.c.bf16 %v13124_v35, %v13121_v33 }
  0x27   : > { %10949 = vmatprep.mubr.msk.bf16.mxu1 %vm12796_vm2, %v17211_v1 }
  0x2d   : > { %10916 = vmatmul.mubr.msk.bf16.gmra.mxu0 %vm441_vm3, %v12984_v42 }
  0x2e   : > { %10950 = vmatmul.mubr.msk.bf16.gmra.mxu1 %vm441_vm3, %v12987_v43  ;;  %10919 = vmatprep.mubr.msk.bf16.mxu0 %vm12796_vm2, %v17211_v1 }
  0x2f   : > { %10953 = vmatprep.mubr.msk.bf16.mxu1 %vm12796_vm2, %v17211_v1 }
  0x35   : > { %10920 = vmatmul.mubr.msk.bf16.gmra.mxu0 %vm441_vm3, %v13003_v46 }
  0x36   : > { %10954 = vmatmul.mubr.msk.bf16.gmra.mxu1 %vm441_vm3, %v13006_v47  ;;  %10923 = vmatprep.mubr.msk.bf16.mxu0 %vm12796_vm2, %v17211_v1 }
  0x37   : > { %10957 = vmatprep.mubr.msk.bf16.mxu1 %vm12796_vm2, %v17211_v1 }
  0x3d   : > { %10924 = vmatmul.mubr.msk.bf16.gmra.mxu0 %vm441_vm3, %v13022_v50 }
  0x3e   : > { %10958 = vmatmul.mubr.msk.bf16.gmra.mxu1 %vm441_vm3, %v13025_v51  ;;  %10927 = vmatprep.mubr.msk.bf16.mxu0 %vm12796_vm2, %v17211_v1 }
  0x3f   : > { %10993 = vmatprep.mubr.msk.bf16.mxu1 %vm12796_vm2, %v17211_v1 }
  0x45   : > { %10928 = vmatmul.mubr.msk.bf16.gmra.mxu0 %vm441_vm3, %v13043_v54 }
  0x46   : > { %10994 = vmatmul.mubr.msk.bf16.vlgmr.msra.gmra.mxu1 %vm441_vm3, %v836_v55  ;;  %10933 = vmatprep.mubr.msk.bf16.mxu0 %vm12796_vm2, %v17211_v1  ;;  %v1467_v55 = vand.u32 %v9817_v48, %v12869_v5 }
  0x47   : > { %10997 = vmatprep.mubr.msk.bf16.mxu1 %vm12796_vm2, %v17211_v1  ;;  %11052 = vmatpush3.bf16.msra.mxu1 %v1167_v56  ;;  %v684_v56 = vld [vmem:[%s12888_s24 + $0x62] sm:$0xff] }
  0x48   : > { %11111 = vmatprep.subr.bf16.mxu1 %v17211_v1  ;;  %v13155_v58 = vpack.c.bf16 %v685_v57, %v684_v56  ;;  %v1140_v15 = vpack.c.bf16 %v684_v56, %v683_v45  ;;  %v9850_v45 = vld [vmem:[%s17201_s1 + $0x4] sm:$0x3] }
  0x4d   : > { %10934 = vmatmul.mubr.msk.bf16.vlgmr.msra.gmra.mxu0 %vm441_vm3, %v410_v60  ;;  %v9809_v60 = vld [vmem:[%s17201_s1 + $0xc] sm:$0x3] }
  0x4e   : > { %10962 = vmatpush3.bf16.msra.mxu0 %v717_v61  ;;  %10998 = vmatmul.mubr.msk.bf16.gmra.mxu1 %vm441_vm3, %v837_v62  ;;  %v1138_v61 = vpack.c.bf16 %v680_v29, %v679_v18  ;;  %v1317_v62 = vand.u32 %v9809_v60, %v12869_v5 }
  0x4f   : > { %10963 = vmatprep.mubr.msk.bf16.mxu0 %vm12796_vm2, %v17211_v1  ;;  %11001 = vmatprep.mubr.msk.bf16.mxu1 %vm12796_vm2, %v17211_v1 }
  0x50   : > { %11021 = vmatprep.subr.bf16.mxu0 %v17211_v1 }
  0x55   : > { %10964 = vmatmul.mubr.msk.bf16.vlgmr.msra.gmra.mxu0 %vm441_vm3, %v686_v3 }
  0x56   : > { %11002 = vmatmul.mubr.msk.bf16.gmra.mxu1 %vm441_vm3, %v838_v4  ;;  %11022 = vmatpush3.bf16.msra.mxu0 %v1017_v6 }
  0x57   : > { %10967 = vmatprep.mubr.msk.bf16.mxu0 %vm12796_vm2, %v17211_v1  ;;  %11005 = vmatprep.mubr.msk.bf16.mxu1 %vm12796_vm2, %v17211_v1 }
  0x58   : > { %11081 = vmatprep.subr.bf16.mxu0 %v17211_v1 }
  0x5d   : > { %10968 = vmatmul.mubr.msk.bf16.gmra.mxu0 %vm441_vm3, %v687_v9  ;;  %v13295_v9 = vld [vmem:[%s12888_s24 + $0x91] sm:$0xff] }
  0x5e   : > { %11006 = vmatmul.mubr.msk.bf16.gmra.mxu1 %vm441_vm3, %v839_v10  ;;  %10971 = vmatprep.mubr.msk.bf16.mxu0 %vm12796_vm2, %v17211_v1  ;;  %v13298_v10 = vld [vmem:[%s12888_s24 + $0x99] sm:$0xff] }
  0x5f   : > { %11009 = vmatprep.mubr.msk.bf16.mxu1 %vm12796_vm2, %v17211_v1  ;;  %v1442_v17 = vpack.c.bf16 %v13298_v10, %v13295_v9 }
  0x65   : > { %10972 = vmatmul.mubr.msk.bf16.gmra.mxu0 %vm441_vm3, %v688_v13 }
  0x66   : > { %11010 = vmatmul.mubr.msk.bf16.gmra.mxu1 %vm441_vm3, %v840_v14  ;;  %10975 = vmatprep.mubr.msk.bf16.mxu0 %vm12796_vm2, %v17211_v1 }
  0x67   : > { %11013 = vmatprep.mubr.msk.bf16.mxu1 %vm12796_vm2, %v17211_v1 }
  0x6d   : > { %10976 = vmatmul.mubr.msk.bf16.gmra.mxu0 %vm441_vm3, %v13107_v23 }
  0x6e   : > { %11014 = vmatmul.mubr.msk.bf16.gmra.mxu1 %vm441_vm3, %v841_v28  ;;  %10979 = vmatprep.mubr.msk.bf16.mxu0 %vm12796_vm2, %v17211_v1 }
  0x6f   : > { %11017 = vmatprep.mubr.msk.bf16.mxu1 %vm12796_vm2, %v17211_v1 }
  0x75   : > { %10980 = vmatmul.mubr.msk.bf16.gmra.mxu0 %vm441_vm3, %v13126_v39 }
  0x76   : > { %11018 = vmatmul.mubr.msk.bf16.gmra.mxu1 %vm441_vm3, %v842_v40  ;;  %10983 = vmatprep.mubr.msk.bf16.mxu0 %vm12796_vm2, %v17211_v1 }
  0x77   : > { %11053 = vmatprep.mubr.msk.bf16.mxu1 %vm12796_vm2, %v17211_v1 }
  0x7d   : > { %10984 = vmatmul.mubr.msk.bf16.gmra.mxu0 %vm441_vm3, %v13142_v49 }
  0x7e   : > { %11054 = vmatmul.mubr.msk.bf16.vlgmr.msra.gmra.mxu1 %vm441_vm3, %v1136_v53  ;;  %10987 = vmatprep.mubr.msk.bf16.mxu0 %vm12796_vm2, %v17211_v1 }
  0x7f   : > { %11057 = vmatprep.mubr.msk.bf16.mxu1 %vm12796_vm2, %v17211_v1  ;;  %11112 = vmatpush3.bf16.msra.mxu1 %v1467_v55 }
  0x80   : > { %11171 = vmatprep.subr.bf16.mxu1 %v17211_v1 }
  0x85   : > { %10988 = vmatmul.mubr.msk.bf16.gmra.mxu0 %vm441_vm3, %v13155_v58 }
  0x86   : > { %11058 = vmatmul.mubr.msk.bf16.gmra.mxu1 %vm441_vm3, %v1137_v59  ;;  %11023 = vmatprep.mubr.msk.bf16.mxu0 %vm12796_vm2, %v17211_v1  ;;  %v2118_v59 = vand.u32 %v9850_v45, %v12869_v5 }
  0x87   : > { %11061 = vmatprep.mubr.msk.bf16.mxu1 %vm12796_vm2, %v17211_v1 }
  0x8d   : > { %11024 = vmatmul.mubr.msk.bf16.vlgmr.msra.gmra.mxu0 %vm441_vm3, %v986_v19  ;;  %v1141_v19 = vpack.c.bf16 %v13197_v16, %v685_v57 }
  0x8e   : > { %11062 = vmatmul.mubr.msk.bf16.gmra.mxu1 %vm441_vm3, %v1138_v61  ;;  %11082 = vmatpush3.bf16.msra.mxu0 %v1317_v62 }
  0x8f   : > { %11027 = vmatprep.mubr.msk.bf16.mxu0 %vm12796_vm2, %v17211_v1  ;;  %11065 = vmatprep.mubr.msk.bf16.mxu1 %vm12796_vm2, %v17211_v1 }
  0x90   : > { %11141 = vmatprep.subr.bf16.mxu0 %v17211_v1 }
  0x95   : > { %11028 = vmatmul.mubr.msk.bf16.gmra.mxu0 %vm441_vm3, %v987_v26  ;;  %v9835_v26 = vld [vmem:[%s17201_s1 + $0x2] sm:$0x3] }
  0x96   : > { %11066 = vmatmul.mubr.msk.bf16.gmra.mxu1 %vm441_vm3, %v1139_v63  ;;  %11031 = vmatprep.mubr.msk.bf16.mxu0 %vm12796_vm2, %v17211_v1  ;;  %v1870_v30 = vand.u32 %v9835_v26, %v12869_v5 }
  0x97   : > { %11069 = vmatprep.mubr.msk.bf16.mxu1 %vm12796_vm2, %v17211_v1 }
  0x9d   : > { %11032 = vmatmul.mubr.msk.bf16.gmra.mxu0 %vm441_vm3, %v988_v27  ;;  %v991_v27 = vpack.c.bf16 %v983_v25, %v13028_v52 }
  0x9e   : > { %11070 = vmatmul.mubr.msk.bf16.gmra.mxu1 %vm441_vm3, %v1140_v15  ;;  %11035 = vmatprep.mubr.msk.bf16.mxu0 %vm12796_vm2, %v17211_v1  ;;  %v13341_v15 = vld [vmem:[%s12888_s24 + $0x98] sm:$0xff] }
  0x9f   : > { %11073 = vmatprep.mubr.msk.bf16.mxu1 %vm12796_vm2, %v17211_v1 }
  0xa5   : > { %11036 = vmatmul.mubr.msk.bf16.gmra.mxu0 %vm441_vm3, %v989_v34  ;;  %v985_v34 = vld [vmem:[%s12888_s24 + $0x81] sm:$0xff] }
  0xa6   : > { %11074 = vmatmul.mubr.msk.bf16.gmra.mxu1 %vm441_vm3, %v1141_v19  ;;  %11039 = vmatprep.mubr.msk.bf16.mxu0 %vm12796_vm2, %v17211_v1  ;;  %v992_v37 = vpack.c.bf16 %v985_v34, %v984_v31 }
  0xa7   : > { %11077 = vmatprep.mubr.msk.bf16.mxu1 %vm12796_vm2, %v17211_v1 }
  0xad   : > { %11040 = vmatmul.mubr.msk.bf16.gmra.mxu0 %vm441_vm3, %v990_v41  ;;  %v1617_v41 = vand.u32 %v9825_v38, %v12869_v5 }
  0xae   : > { %11078 = vmatmul.mubr.msk.bf16.gmra.mxu1 %vm441_vm3, %v1142_v24  ;;  %11043 = vmatprep.mubr.msk.bf16.mxu0 %vm12796_vm2, %v17211_v1 }
  0xaf   : > { %11113 = vmatprep.mubr.msk.bf16.mxu1 %vm12796_vm2, %v17211_v1 }
  0xb5   : > { %11044 = vmatmul.mubr.msk.bf16.gmra.mxu0 %vm441_vm3, %v991_v27 }
  0xb6   : > { %11114 = vmatmul.mubr.msk.bf16.vlgmr.msra.gmra.mxu1 %vm441_vm3, %v12984_v42  ;;  %11047 = vmatprep.mubr.msk.bf16.mxu0 %vm12796_vm2, %v17211_v1 }
  0xb7   : > { %11117 = vmatprep.mubr.msk.bf16.mxu1 %vm12796_vm2, %v17211_v1  ;;  %11172 = vmatpush3.bf16.msra.mxu1 %v1870_v30 }
  0xb8   : > { %11231 = vmatprep.subr.bf16.mxu1 %v17211_v1 }
  0xbd   : > { %11048 = vmatmul.mubr.msk.bf16.gmra.mxu0 %vm441_vm3, %v992_v37 }
  0xbe   : > { %11118 = vmatmul.mubr.msk.bf16.gmra.mxu1 %vm441_vm3, %v13003_v46  ;;  %11083 = vmatprep.mubr.msk.bf16.mxu0 %vm12796_vm2, %v17211_v1 }
  0xbf   : > { %11121 = vmatprep.mubr.msk.bf16.mxu1 %vm12796_vm2, %v17211_v1 }
  0xc5   : > { %11084 = vmatmul.mubr.msk.bf16.vlgmr.msra.gmra.mxu0 %vm441_vm3, %v12961_v36  ;;  %v1440_v36 = vpack.c.bf16 %v984_v31, %v983_v25 }
  0xc6   : > { %11122 = vmatmul.mubr.msk.bf16.gmra.mxu1 %vm441_vm3, %v13022_v50  ;;  %11142 = vmatpush3.bf16.msra.mxu0 %v1617_v41  ;;  %v13280_v50 = vld [vmem:[%s12888_s24 + $0x89] sm:$0xff] }
  0xc7   : > { %11087 = vmatprep.mubr.msk.bf16.mxu0 %vm12796_vm2, %v17211_v1  ;;  %11125 = vmatprep.mubr.msk.bf16.mxu1 %vm12796_vm2, %v17211_v1 }
  0xc8   : > { %11201 = vmatprep.subr.bf16.mxu0 %v17211_v1 }
  0xcd   : > { %11088 = vmatmul.mubr.msk.bf16.gmra.mxu0 %vm441_vm3, %v12987_v43 }
  0xce   : > { %11126 = vmatmul.mubr.msk.bf16.gmra.mxu1 %vm441_vm3, %v13043_v54  ;;  %11091 = vmatprep.mubr.msk.bf16.mxu0 %vm12796_vm2, %v17211_v1 }
  0xcf   : > { %11129 = vmatprep.mubr.msk.bf16.mxu1 %vm12796_vm2, %v17211_v1 }
  0xd5   : > { %v13270_v42 = vpop.f32.mrf.mxu0  ;;  %11092 = vmatmul.mubr.msk.bf16.gmra.mxu0 %vm441_vm3, %v13006_v47  ;;  %v1441_v47 = vpack.c.bf16 %v13280_v50, %v985_v34 }
  0xd6   : > { %v625_v46 = vpop.f32.mrf.mxu1  ;;  %11130 = vmatmul.mubr.msk.bf16.gmra.mxu1 %vm441_vm3, %v1440_v36  ;;  %11095 = vmatprep.mubr.msk.bf16.mxu0 %vm12796_vm2, %v17211_v1 }
  0xd7   : > { %v10905_v43 = vpop.f32.mrf.mxu0  ;;  %11133 = vmatprep.mubr.msk.bf16.mxu1 %vm12796_vm2, %v17211_v1 }
  0xd8   : > { %v10939_v52 = vpop.f32.mrf.mxu1 }
  0xd9   : > { %v13282_v54 = vpop.f32.mrf.mxu0 }
  0xda   : > { %v628_v0 = vpop.f32.mrf.mxu1 }
  0xdb   : > { %v10906_v2 = vpop.f32.mrf.mxu0 }
  0xdc   : > { %v10940_v3 = vpop.f32.mrf.mxu1 }
  0xdd   : > { %v512_v4 = vpop.f32.mrf.mxu0  ;;  %11096 = vmatmul.mubr.msk.bf16.gmra.mxu0 %vm441_vm3, %v13025_v51  ;;  %v13302_v51 = vpack.c.bf16 %v13121_v33, %v13105_v20  ;;  %v13316_v20 = vld [vmem:[%s12888_s24 + $0x88] sm:$0xff] }
  0xde   : > { %v13287_v6 = vadd.f32 %v625_v46, %v512_v4  ;;  %v633_v7 = vpop.f32.mrf.mxu1  ;;  %11134 = vmatmul.mubr.msk.bf16.gmra.mxu1 %vm441_vm3, %v1441_v47  ;;  %11099 = vmatprep.mubr.msk.bf16.mxu0 %vm12796_vm2, %v17211_v1  ;;  %v13325_v53 = vpack.c.bf16 %v13316_v20, %v13124_v35  ;;  %v13338_v35 = vld [vmem:[%s12888_s24 + $0x90] sm:$0xff]  ;;  %v1825_v46 = vld [vmem:[%s17201_s1] sm:$0x3] }
  0xdf   : > { %v10909_v8 = vpop.f32.mrf.mxu0  ;;  %11137 = vmatprep.mubr.msk.bf16.mxu1 %vm12796_vm2, %v17211_v1  ;;  %v13348_v26 = vpack.c.bf16 %v13341_v15, %v13338_v35 }
  0xe0   : > { %v10943_v11 = vpop.f32.mrf.mxu1 }
  0xe1   : > { %v515_v12 = vpop.f32.mrf.mxu0 }
  0xe2   : > { %v13304_v13 = vadd.f32 %v628_v0, %v515_v12  ;;  %v636_v14 = vpop.f32.mrf.mxu1 }
  0xe3   : > { %v10910_v18 = vpop.f32.mrf.mxu0 }
  0xe4   : > { %v10944_v28 = vpop.f32.mrf.mxu1  ;;  %v13380_v18 = vld [vmem:[%s12888_s24 + $0xa9] sm:$0xff] }
  0xe5   : > { %v520_v29 = vpop.f32.mrf.mxu0  ;;  %11100 = vmatmul.mubr.msk.bf16.gmra.mxu0 %vm441_vm3, %v13302_v51 }
  0xe6   : > { %v13310_v32 = vadd.f32 %v633_v7, %v520_v29  ;;  %v641_v40 = vpop.f32.mrf.mxu1  ;;  %11138 = vmatmul.mubr.msk.bf16.gmra.mxu1 %vm441_vm3, %v1442_v17  ;;  %11103 = vmatprep.mubr.msk.bf16.mxu0 %vm12796_vm2, %v17211_v1 }
  0xe7   : > { %v10913_v33 = vpop.f32.mrf.mxu0  ;;  %11173 = vmatprep.mubr.msk.bf16.mxu1 %vm12796_vm2, %v17211_v1 }
  0xe8   : > { %v10947_v44 = vpop.f32.mrf.mxu1 }
  0xe9   : > { %v523_v48 = vpop.f32.mrf.mxu0 }
  0xea   : > { %v13327_v55 = vadd.f32 %v636_v14, %v523_v48  ;;  %v644_v56 = vpop.f32.mrf.mxu1  ;;  %v13377_v14 = vld [vmem:[%s12888_s24 + $0xa1] sm:$0xff] }
  0xeb   : > { %v10914_v57 = vpop.f32.mrf.mxu0 }
  0xec   : > { %v10948_v60 = vpop.f32.mrf.mxu1 }
  0xed   : > { %v528_v61 = vpop.f32.mrf.mxu0  ;;  %11104 = vmatmul.mubr.msk.bf16.gmra.mxu0 %vm441_vm3, %v13325_v53  ;;  %v13400_v60 = vld [vmem:[%s12888_s24 + $0xb9] sm:$0xff] }
  0xee   : > { %v13332_v62 = vadd.f32 %v641_v40, %v528_v61  ;;  %v649_v63 = vpop.f32.mrf.mxu1  ;;  %11174 = vmatmul.mubr.msk.bf16.vlgmr.msra.gmra.mxu1 %vm441_vm3, %v1440_v36  ;;  %11107 = vmatprep.mubr.msk.bf16.mxu0 %vm12796_vm2, %v17211_v1  ;;  %v1843_v40 = vpack.c.bf16 %v13380_v18, %v13377_v14 }
  0xef   : > { %v10917_v19 = vpop.f32.mrf.mxu0  ;;  %11177 = vmatprep.mubr.msk.bf16.mxu1 %vm12796_vm2, %v17211_v1  ;;  %11232 = vmatpush3.bf16.msra.mxu1 %v2118_v59  ;;  %v13397_v59 = vld [vmem:[%s12888_s24 + $0xb1] sm:$0xff] }
  0xf0   : > { %v10951_v24 = vpop.f32.mrf.mxu1  ;;  %11291 = vmatprep.subr.bf16.mxu1 %v17211_v1 }
  0xf1   : > { %v531_v25 = vpop.f32.mrf.mxu0  ;;  %v1844_v24 = vpack.c.bf16 %v13400_v60, %v13397_v59 }
  0xf2   : > { %v13350_v27 = vadd.f32 %v644_v56, %v531_v25  ;;  %v652_v30 = vpop.f32.mrf.mxu1 }
  0xf3   : > { %v10918_v31 = vpop.f32.mrf.mxu0 }
  0xf4   : > { %v10952_v34 = vpop.f32.mrf.mxu1 }
  0xf5   : > { %v536_v37 = vpop.f32.mrf.mxu0  ;;  %11108 = vmatmul.mubr.msk.bf16.gmra.mxu0 %vm441_vm3, %v13348_v26 }
  0xf6   : > { %v13354_v38 = vadd.f32 %v649_v63, %v536_v37  ;;  %v657_v41 = vpop.f32.mrf.mxu1  ;;  %11178 = vmatmul.mubr.msk.bf16.gmra.mxu1 %vm441_vm3, %v1441_v47  ;;  %11143 = vmatprep.mubr.msk.bf16.mxu0 %vm12796_vm2, %v17211_v1  ;;  %v1983_v47 = vand.u32 %v1825_v46, %v12869_v5  ;;  %v13418_v46 = vld [vmem:[%s12888_s24 + $0xc9] sm:$0xff] }
  0xf7   : > { %v10921_v36 = vpop.f32.mrf.mxu0  ;;  %11181 = vmatprep.mubr.msk.bf16.mxu1 %vm12796_vm2, %v17211_v1 }
  0xf8   : > { %v10955_v43 = vpop.f32.mrf.mxu1  ;;  %v13415_v36 = vld [vmem:[%s12888_s24 + $0xc1] sm:$0xff] }
  0xf9   : > { %v539_v52 = vpop.f32.mrf.mxu0 }
  0xfa   : > { %v13364_v0 = vadd.f32 %v652_v30, %v539_v52  ;;  %v660_v2 = vpop.f32.mrf.mxu1 }
  0xfb   : > { %v10922_v3 = vpop.f32.mrf.mxu0 }
  0xfc   : > { %v10956_v4 = vpop.f32.mrf.mxu1 }
  0xfd   : > { %v544_v7 = vpop.f32.mrf.mxu0  ;;  %11144 = vmatmul.mubr.msk.bf16.vlgmr.msra.gmra.mxu0 %vm441_vm3, %v13107_v23 }
  0xfe   : > { %v13369_v8 = vadd.f32 %v657_v41, %v544_v7  ;;  %v665_v11 = vpop.f32.mrf.mxu1  ;;  %11182 = vmatmul.mubr.msk.bf16.gmra.mxu1 %vm441_vm3, %v1442_v17  ;;  %11202 = vmatpush3.bf16.msra.mxu0 %v1983_v47 }
  0xff   : > { %v10925_v12 = vpop.f32.mrf.mxu0  ;;  %11147 = vmatprep.mubr.msk.bf16.mxu0 %vm12796_vm2, %v17211_v1  ;;  %11185 = vmatprep.mubr.msk.bf16.mxu1 %vm12796_vm2, %v17211_v1 }
 0x100   : > { %v10959_v28 = vpop.f32.mrf.mxu1  ;;  %11261 = vmatprep.subr.bf16.mxu0 %v17211_v1 }
 0x101   : > { %v547_v23 = vpop.f32.mrf.mxu0  ;;  %v13434_v28 = vld [vmem:[%s12888_s24 + $0xd9] sm:$0xff] }
 0x102   : > { %v13383_v29 = vadd.f32 %v660_v2, %v547_v23  ;;  %v668_v17 = vpop.f32.mrf.mxu1  ;;  %v1845_v2 = vpack.c.bf16 %v13418_v46, %v13415_v36 }
 0x103   : > { %v10926_v33 = vpop.f32.mrf.mxu0 }
 0x104   : > { %v10960_v44 = vpop.f32.mrf.mxu1 }
 0x105   : > { %v552_v45 = vpop.f32.mrf.mxu0  ;;  %11148 = vmatmul.mubr.msk.bf16.gmra.mxu0 %vm441_vm3, %v13126_v39 }
 0x106   : > { %v13389_v48 = vadd.f32 %v665_v11, %v552_v45  ;;  %v903_v56 = vpop.f32.mrf.mxu1  ;;  %11186 = vmatmul.mubr.msk.bf16.gmra.mxu1 %vm441_vm3, %v1843_v40  ;;  %11151 = vmatprep.mubr.msk.bf16.mxu0 %vm12796_vm2, %v17211_v1  ;;  %v1590_v40 = vpack.c.bf16 %v13210_v21, %v13197_v16  ;;  %v13450_v16 = vld [vmem:[%s12888_s24 + $0x8a] sm:$0xff] }
 0x107   : > { %v10929_v57 = vpop.f32.mrf.mxu0  ;;  %11189 = vmatprep.mubr.msk.bf16.mxu1 %vm12796_vm2, %v17211_v1 }
 0x108   : > { %v10995_v61 = vpop.f32.mrf.mxu1 }
 0x109   : > { %v555_v39 = vpop.f32.mrf.mxu0 }
 0x10a   : > { %v13402_v63 = vadd.f32 %v668_v17, %v555_v39  ;;  %v906_v19 = vpop.f32.mrf.mxu1 }
 0x10b   : > { %v10930_v25 = vpop.f32.mrf.mxu0 }
 0x10c   : > { %v10996_v30 = vpop.f32.mrf.mxu1 }
 0x10d   : > { %v617_v31 = vpop.f32.mrf.mxu0  ;;  %11152 = vmatmul.mubr.msk.bf16.gmra.mxu0 %vm441_vm3, %v13142_v49 }
 0x10e   : > { %v618_v34 = vadd.f32 %v617_v31, %v13270_v42  ;;  %v911_v37 = vpop.f32.mrf.mxu1  ;;  %11190 = vmatmul.mubr.msk.bf16.gmra.mxu1 %vm441_vm3, %v1844_v24  ;;  %11155 = vmatprep.mubr.msk.bf16.mxu0 %vm12796_vm2, %v17211_v1 }
 0x10f   : > { %v10935_v41 = vpop.f32.mrf.mxu0  ;;  %11193 = vmatprep.mubr.msk.bf16.mxu1 %vm12796_vm2, %v17211_v1 }
 0x110   : > { %v10999_v43 = vpop.f32.mrf.mxu1 }
 0x111   : > { %v620_v49 = vpop.f32.mrf.mxu0 }
 0x112   : > { %v621_v42 = vadd.f32 %v620_v49, %v13282_v54  ;;  %v914_v52 = vpop.f32.mrf.mxu1  ;;  %v13431_v54 = vld [vmem:[%s12888_s24 + $0xd1] sm:$0xff] }
 0x113   : > { %v10936_v47 = vpop.f32.mrf.mxu0  ;;  %v1846_v45 = vpack.c.bf16 %v13434_v28, %v13431_v54 }
 0x114   : > { %v11000_v3 = vpop.f32.mrf.mxu1 }
 0x115   : > { %v753_v4 = vpop.f32.mrf.mxu0  ;;  %11156 = vmatmul.mubr.msk.bf16.gmra.mxu0 %vm441_vm3, %v13155_v58 }
 0x116   : > { %v808_v7 = vadd.f32 %v753_v4, %v618_v34  ;;  %v919_v11 = vpop.f32.mrf.mxu1  ;;  %11194 = vmatmul.mubr.msk.bf16.gmra.mxu1 %vm441_vm3, %v1845_v2  ;;  %11159 = vmatprep.mubr.msk.bf16.mxu0 %vm12796_vm2, %v17211_v1  ;;  %v1591_v34 = vpack.c.bf16 %v13450_v16, %v13213_v22  ;;  %v13471_v22 = vld [vmem:[%s12888_s24 + $0x92] sm:$0xff] }
 0x117   : > { %v10965_v12 = vpop.f32.mrf.mxu0  ;;  %11197 = vmatprep.mubr.msk.bf16.mxu1 %vm12796_vm2, %v17211_v1 }
 0x118   : > { %v11003_v23 = vpop.f32.mrf.mxu1  ;;  %v13436_v17 = vadd.f32 %v903_v56, %v808_v7 }
 0x119   : > { %v756_v58 = vpop.f32.mrf.mxu0 }
 0x11a   : > { %v809_v33 = vadd.f32 %v756_v58, %v621_v42  ;;  %v922_v44 = vpop.f32.mrf.mxu1 }
 0x11b   : > { %v10966_v57 = vpop.f32.mrf.mxu0 }
 0x11c   : > { %v11004_v61 = vpop.f32.mrf.mxu1  ;;  %v13442_v39 = vadd.f32 %v906_v19, %v809_v33 }
 0x11d   : > { %v761_v24 = vpop.f32.mrf.mxu0  ;;  %11160 = vmatmul.mubr.msk.bf16.gmra.mxu0 %vm441_vm3, %v1590_v40 }
 0x11e   : > { %v810_v25 = vadd.f32 %v761_v24, %v13287_v6  ;;  %v927_v56 = vpop.f32.mrf.mxu1  ;;  %11198 = vmatmul.mubr.msk.bf16.gmra.mxu1 %vm441_vm3, %v1846_v45  ;;  %11163 = vmatprep.mubr.msk.bf16.mxu0 %vm12796_vm2, %v17211_v1  ;;  %v9866_v6 = vld [vmem:[%s17201_s1 + $0x8] sm:$0x3] }
 0x11f   : > { %v10969_v21 = vpop.f32.mrf.mxu0  ;;  %11233 = vmatprep.mubr.msk.bf16.mxu1 %vm12796_vm2, %v17211_v1  ;;  %v2416_v42 = vand.u32 %v9866_v6, %v12869_v5 }
 0x120   : > { %v11007_v30 = vpop.f32.mrf.mxu1  ;;  %v13454_v19 = vadd.f32 %v911_v37, %v810_v25 }
 0x121   : > { %v764_v31 = vpop.f32.mrf.mxu0 }
 0x122   : > { %v811_v41 = vadd.f32 %v764_v31, %v13304_v13  ;;  %v930_v43 = vpop.f32.mrf.mxu1  ;;  %v13474_v13 = vld [vmem:[%s12888_s24 + $0x9a] sm:$0xff] }
 0x123   : > { %v10970_v49 = vpop.f32.mrf.mxu0  ;;  %v1592_v23 = vpack.c.bf16 %v13474_v13, %v13471_v22 }
 0x124   : > { %v11008_v2 = vpop.f32.mrf.mxu1  ;;  %v13463_v47 = vadd.f32 %v914_v52, %v811_v41 }
 0x125   : > { %v769_v37 = vpop.f32.mrf.mxu0  ;;  %11164 = vmatmul.mubr.msk.bf16.gmra.mxu0 %vm441_vm3, %v1591_v34 }
 0x126   : > { %v812_v3 = vadd.f32 %v769_v37, %v13310_v32  ;;  %v935_v4 = vpop.f32.mrf.mxu1  ;;  %11234 = vmatmul.mubr.msk.bf16.vlgmr.msra.gmra.mxu1 %vm441_vm3, %v1590_v40  ;;  %11167 = vmatprep.mubr.msk.bf16.mxu0 %vm12796_vm2, %v17211_v1 }
 0x127   : > { %v10973_v7 = vpop.f32.mrf.mxu0  ;;  %11237 = vmatprep.mubr.msk.bf16.mxu1 %vm12796_vm2, %v17211_v1  ;;  %11292 = vmatpush3.bf16.msra.mxu1 %v2416_v42 }
 0x128   : > { %v11011_v52 = vpop.f32.mrf.mxu1  ;;  %v13478_v12 = vadd.f32 %v919_v11, %v812_v3  ;;  %11351 = vmatprep.subr.bf16.mxu1 %v17211_v1 }
 0x129   : > { %v772_v32 = vpop.f32.mrf.mxu0 }
 0x12a   : > { %v813_v58 = vadd.f32 %v772_v32, %v13327_v55  ;;  %v938_v40 = vpop.f32.mrf.mxu1  ;;  %v9858_v55 = vld [vmem:[%s17201_s1 + $0x6] sm:$0x3] }
 0x12b   : > { %v10974_v33 = vpop.f32.mrf.mxu0  ;;  %v2267_v31 = vand.u32 %v9858_v55, %v12869_v5 }
 0x12c   : > { %v11012_v45 = vpop.f32.mrf.mxu1  ;;  %v13484_v57 = vadd.f32 %v922_v44, %v813_v58 }
 0x12d   : > { %v777_v61 = vpop.f32.mrf.mxu0  ;;  %11168 = vmatmul.mubr.msk.bf16.gmra.mxu0 %vm441_vm3, %v1592_v23 }
 0x12e   : > { %v814_v24 = vadd.f32 %v777_v61, %v13332_v62  ;;  %v943_v11 = vpop.f32.mrf.mxu1  ;;  %11238 = vmatmul.mubr.msk.bf16.gmra.mxu1 %vm441_vm3, %v1591_v34  ;;  %11203 = vmatprep.mubr.msk.bf16.mxu0 %vm12796_vm2, %v17211_v1 }
 0x12f   : > { %v10977_v25 = vpop.f32.mrf.mxu0  ;;  %11241 = vmatprep.mubr.msk.bf16.mxu1 %vm12796_vm2, %v17211_v1 }
 0x130   : > { %v11015_v44 = vpop.f32.mrf.mxu1  ;;  %v13496_v21 = vadd.f32 %v927_v56, %v814_v24  ;;  %v13536_v24 = vld [vmem:[%s12888_s24 + $0xb2] sm:$0xff] }
 0x131   : > { %v780_v30 = vpop.f32.mrf.mxu0 }
 0x132   : > { %v815_v62 = vadd.f32 %v780_v30, %v13350_v27  ;;  %v946_v6 = vpop.f32.mrf.mxu1  ;;  %v13511_v27 = vld [vmem:[%s12888_s24 + $0xa2] sm:$0xff] }
 0x133   : > { %v10978_v34 = vpop.f32.mrf.mxu0 }
 0x134   : > { %v11016_v41 = vpop.f32.mrf.mxu1  ;;  %v13500_v49 = vadd.f32 %v930_v43, %v815_v62  ;;  %v13514_v43 = vld [vmem:[%s12888_s24 + $0xaa] sm:$0xff] }
 0x135   : > { %v785_v42 = vpop.f32.mrf.mxu0  ;;  %11204 = vmatmul.mubr.msk.bf16.vlgmr.msra.gmra.mxu0 %vm441_vm3, %v13302_v51  ;;  %v13522_v32 = vpack.c.bf16 %v13514_v43, %v13511_v27 }
 0x136   : > { %v816_v2 = vadd.f32 %v785_v42, %v13354_v38  ;;  %v951_v56 = vpop.f32.mrf.mxu1  ;;  %11242 = vmatmul.mubr.msk.bf16.gmra.mxu1 %vm441_vm3, %v1592_v23  ;;  %11262 = vmatpush3.bf16.msra.mxu0 %v2267_v31 }
 0x137   : > { %v10981_v37 = vpop.f32.mrf.mxu0  ;;  %11207 = vmatprep.mubr.msk.bf16.mxu0 %vm12796_vm2, %v17211_v1  ;;  %11245 = vmatprep.mubr.msk.bf16.mxu1 %vm12796_vm2, %v17211_v1  ;;  %17226 = vst [vmem:[#allocation6_spill] sm:$0xff] %v13522_v32 }
 0x138   : > { %v11019_v3 = vpop.f32.mrf.mxu1  ;;  %11321 = vmatprep.subr.bf16.mxu0 %v17211_v1  ;;  %v13517_v51 = vadd.f32 %v935_v4, %v816_v2  ;;  %v13561_v2 = vld [vmem:[%s12888_s24 + $0xa8] sm:$0xff] }
 0x139   : > { %v788_v38 = vpop.f32.mrf.mxu0 }
 0x13a   : > { %v817_v7 = vadd.f32 %v788_v38, %v13364_v0  ;;  %v954_v52 = vpop.f32.mrf.mxu1 }
 0x13b   : > { %v10982_v23 = vpop.f32.mrf.mxu0 }
 0x13c   : > { %v11020_v58 = vpop.f32.mrf.mxu1  ;;  %v13524_v33 = vadd.f32 %v938_v40, %v817_v7  ;;  %v13539_v40 = vld [vmem:[%s12888_s24 + $0xba] sm:$0xff] }
 0x13d   : > { %v793_v45 = vpop.f32.mrf.mxu0  ;;  %11208 = vmatmul.mubr.msk.bf16.gmra.mxu0 %vm441_vm3, %v13325_v53  ;;  %v13546_v30 = vpack.c.bf16 %v13539_v40, %v13536_v24 }
 0x13e   : > { %v818_v4 = vadd.f32 %v793_v45, %v13369_v8  ;;  %v1203_v61 = vpop.f32.mrf.mxu1  ;;  %11246 = vmatmul.mubr.msk.bf16.gmra.mxu1 %vm441_vm3, %v13522_v32  ;;  %11211 = vmatprep.mubr.msk.bf16.mxu0 %vm12796_vm2, %v17211_v1 }
 0x13f   : > { %v10985_v0 = vpop.f32.mrf.mxu0  ;;  %11249 = vmatprep.mubr.msk.bf16.mxu1 %vm12796_vm2, %v17211_v1  ;;  %17227 = vst [vmem:[#allocation7_spill] sm:$0xff] %v13546_v30 }
 0x140   : > { %v11055_v25 = vpop.f32.mrf.mxu1  ;;  %v13541_v53 = vadd.f32 %v943_v11, %v818_v4 }
 0x141   : > { %v796_v8 = vpop.f32.mrf.mxu0 }
 0x142   : > { %v819_v55 = vadd.f32 %v796_v8, %v13383_v29  ;;  %v1206_v44 = vpop.f32.mrf.mxu1  ;;  %v13558_v29 = vld [vmem:[%s12888_s24 + $0xa0] sm:$0xff] }
 0x143   : > { %v10986_v62 = vpop.f32.mrf.mxu0  ;;  %v13575_v7 = vpack.c.bf16 %v13561_v2, %v13558_v29 }
 0x144   : > { %v11056_v31 = vpop.f32.mrf.mxu1  ;;  %v13548_v34 = vadd.f32 %v946_v6, %v819_v55  ;;  %v13566_v6 = vld [vmem:[%s12888_s24 + $0xc2] sm:$0xff]  ;;  %v13592_v62 = vld [vmem:[%s12888_s24 + $0xb8] sm:$0xff] }
 0x145   : > { %v801_v41 = vpop.f32.mrf.mxu0  ;;  %11212 = vmatmul.mubr.msk.bf16.gmra.mxu0 %vm441_vm3, %v13348_v26  ;;  %v13569_v26 = vld [vmem:[%s12888_s24 + $0xca] sm:$0xff] }
 0x146   : > { %v820_v11 = vadd.f32 %v801_v41, %v13389_v48  ;;  %v1211_v42 = vpop.f32.mrf.mxu1  ;;  %11250 = vmatmul.mubr.msk.bf16.gmra.mxu1 %vm441_vm3, %v13546_v30  ;;  %11215 = vmatprep.mubr.msk.bf16.mxu0 %vm12796_vm2, %v17211_v1  ;;  %v2093_v45 = vpack.c.bf16 %v13569_v26, %v13566_v6  ;;  %v13600_v41 = vld [vmem:[%s12888_s24 + $0xda] sm:$0xff] }
 0x147   : > { %v10989_v37 = vpop.f32.mrf.mxu0  ;;  %11253 = vmatprep.mubr.msk.bf16.mxu1 %vm12796_vm2, %v17211_v1  ;;  %17229 = vst [vmem:[#allocation9_spill] sm:$0xff] %v13600_v41 }
 0x148   : > { %v11059_v48 = vpop.f32.mrf.mxu1  ;;  %v13571_v3 = vadd.f32 %v951_v56, %v820_v11 }
 0x149   : > { %v804_v38 = vpop.f32.mrf.mxu0 }
 0x14a   : > { %v821_v23 = vadd.f32 %v804_v38, %v13402_v63  ;;  %v1214_v58 = vpop.f32.mrf.mxu1  ;;  %v13589_v63 = vld [vmem:[%s12888_s24 + $0xb0] sm:$0xff] }
 0x14b   : > { %v10990_v4 = vpop.f32.mrf.mxu0  ;;  %v13606_v48 = vpack.c.bf16 %v13592_v62, %v13589_v63 }
 0x14c   : > { %v11060_v0 = vpop.f32.mrf.mxu1  ;;  %v13580_v25 = vadd.f32 %v954_v52, %v821_v23  ;;  %v13597_v52 = vld [vmem:[%s12888_s24 + $0xd2] sm:$0xff] }
 0x14d   : > { %v1053_v56 = vpop.f32.mrf.mxu0  ;;  %11216 = vmatmul.mubr.msk.bf16.gmra.mxu0 %vm441_vm3, %v13575_v7  ;;  %17228 = vst [vmem:[#allocation8_spill] sm:$0xff] %v13597_v52 }
 0x14e   : > { %v1108_v8 = vadd.f32 %v1053_v56, %v13436_v17  ;;  %v1219_v55 = vpop.f32.mrf.mxu1  ;;  %11254 = vmatmul.mubr.msk.bf16.gmra.mxu1 %vm441_vm3, %v2093_v45  ;;  %11219 = vmatprep.mubr.msk.bf16.mxu0 %vm12796_vm2, %v17211_v1  ;;  %v2094_v45 = vpack.c.bf16 %v13600_v41, %v13597_v52 }
 0x14f   : > { %v11025_v31 = vpop.f32.mrf.mxu0  ;;  %11257 = vmatprep.mubr.msk.bf16.mxu1 %vm12796_vm2, %v17211_v1 }
 0x150   : > { %v11063_v11 = vpop.f32.mrf.mxu1  ;;  %v13602_v17 = vadd.f32 %v1203_v61, %v1108_v8 }
 0x151   : > { %v1056_v37 = vpop.f32.mrf.mxu0  ;;  %v13625_v11 = vld [vmem:[%s12888_s24 + $0xc8] sm:$0xff] }
 0x152   : > { %v1109_v38 = vadd.f32 %v1056_v37, %v13442_v39  ;;  %v1222_v23 = vpop.f32.mrf.mxu1  ;;  %v13622_v39 = vld [vmem:[%s12888_s24 + $0xc0] sm:$0xff] }
 0x153   : > { %v11026_v4 = vpop.f32.mrf.mxu0 }
 0x154   : > { %v11064_v0 = vpop.f32.mrf.mxu1  ;;  %v13611_v56 = vadd.f32 %v1206_v44, %v1109_v38  ;;  %v13636_v4 = vpack.c.bf16 %v13625_v11, %v13622_v39 }
 0x155   : > { %v1061_v31 = vpop.f32.mrf.mxu0  ;;  %11220 = vmatmul.mubr.msk.bf16.gmra.mxu0 %vm441_vm3, %v13606_v48 }
 0x156   : > { %v1110_v61 = vadd.f32 %v1061_v31, %v13454_v19  ;;  %v13616_v8 = vpop.f32.mrf.mxu1  ;;  %11258 = vmatmul.mubr.msk.bf16.gmra.mxu1 %vm441_vm3, %v2094_v45  ;;  %11223 = vmatprep.mubr.msk.bf16.mxu0 %vm12796_vm2, %v17211_v1  ;;  %v9882_v19 = vld [vmem:[%s17201_s1 + $0xc] sm:$0x3] }
 0x157   : > { %v11029_v37 = vpop.f32.mrf.mxu0  ;;  %11293 = vmatprep.mubr.msk.bf16.mxu1 %vm12796_vm2, %v17211_v1 }
 0x158   : > { %v11067_v44 = vpop.f32.mrf.mxu1  ;;  %v13629_v38 = vadd.f32 %v1211_v42, %v1110_v61  ;;  %v2386_v37 = vpack.c.bf16 %v13295_v9, %v13280_v50  ;;  %v2714_v42 = vand.u32 %v9882_v19, %v12869_v5  ;;  %v13654_v50 = vld [vmem:[%s12888_s24 + $0xd8] sm:$0xff] }
 0x159   : > { %v1064_v45 = vpop.f32.mrf.mxu0 }
 0x15a   : > { %v1111_v0 = vadd.f32 %v1064_v45, %v13463_v47  ;;  %v1230_v31 = vpop.f32.mrf.mxu1  ;;  %v17230_v47 = vmov 0.0   ;;  %v13651_v45 = vld [vmem:[%s12888_s24 + $0xd0] sm:$0xff] }
 0x15b   : > { %v11030_v44 = vpop.f32.mrf.mxu0 }
 0x15c   : > { %v11068_v61 = vpop.f32.mrf.mxu1  ;;  %v13642_v1 = vadd.f32 %v1214_v58, %v1111_v0  ;;  %v2387_v44 = vpack.c.bf16 %v13377_v14, %v13298_v10 }
 0x15d   : > { %v1069_v30 = vpop.f32.mrf.mxu0  ;;  %11224 = vmatmul.mubr.msk.bf16.gmra.mxu0 %vm441_vm3, %v13636_v4  ;;  %v12797_v61 = vmov -inf  }
 0x15e   : > { %v1112_v32 = vadd.f32 %v1069_v30, %v13478_v12  ;;  %v1235_v41 = vpop.f32.mrf.mxu1  ;;  %11294 = vmatmul.mubr.msk.bf16.vlgmr.msra.gmra.mxu1 %vm441_vm3, %v2386_v37  ;;  %11227 = vmatprep.mubr.msk.bf16.mxu0 %vm12796_vm2, %v17230_v47  ;;  %v13663_v30 = vpack.c.bf16 %v13654_v50, %v13651_v45  ;;  %363 = vst [vmem:[#allocation3 + $0x10] sm:$0xff] %v12797_v61  ;;  %366 = vst [vmem:[#allocation3 + $0x28] sm:$0xff] %v12797_v61 }
 0x15f   : > { %v11033_v9 = vpop.f32.mrf.mxu0  ;;  %11297 = vmatprep.mubr.msk.bf16.mxu1 %vm12796_vm2, %v17230_v47  ;;  %11352 = vmatpush3.bf16.msra.mxu1 %v2714_v42  ;;  %369 = vst [vmem:[#allocation3 + $0x40] sm:$0xff] %v12797_v61  ;;  %372 = vst [vmem:[#allocation3 + $0x58] sm:$0xff] %v12797_v61 }
 0x160   : > { %v11071_v58 = vpop.f32.mrf.mxu1  ;;  %v13658_v19 = vadd.f32 %v1219_v55, %v1112_v32  ;;  %11411 = vmatprep.subr.bf16.mxu1 %v17230_v47  ;;  %375 = vst [vmem:[#allocation3 + $0x70] sm:$0xff] %v12797_v61  ;;  %378 = vst [vmem:[#allocation3 + $0x88] sm:$0xff] %v12797_v61 }
 0x161   : > { %v1072_v12 = vpop.f32.mrf.mxu0  ;;  %381 = vst [vmem:[#allocation3 + $0xa0] sm:$0xff] %v12797_v61  ;;  %384 = vst [vmem:[#allocation3 + $0xb8] sm:$0xff] %v12797_v61 }
 0x162   : > { %v1113_v0 = vadd.f32 %v1072_v12, %v13484_v57  ;;  %v1238_v37 = vpop.f32.mrf.mxu1  ;;  %387 = vst [vmem:[#allocation3 + $0xd0] sm:$0xff] %v12797_v61  ;;  %390 = vst [vmem:[#allocation3 + $0xe8] sm:$0xff] %v12797_v61 }
 0x163   : > { %393 = vst [vmem:[#allocation3 + $0x100] sm:$0xff] %v12797_v61  ;;  %v11034_v32 = vpop.f32.mrf.mxu0 }
 0x164   : > { %v11072_v55 = vpop.f32.mrf.mxu1  ;;  %v13668_v42 = vadd.f32 %v1222_v23, %v1113_v0  ;;  %v9874_v23 = vld [vmem:[%s17201_s1 + $0xa] sm:$0x3]  ;;  %v2388_v32 = vpack.c.bf16 %v13397_v59, %v13380_v18 }
 0x165   : > { %v1077_v57 = vpop.f32.mrf.mxu0  ;;  %11228 = vmatmul.mubr.msk.bf16.gmra.mxu0 %vm441_vm3, %v13663_v30  ;;  %v2565_v55 = vand.u32 %v9874_v23, %v12869_v5  ;;  %v2389_v23 = vpack.c.bf16 %v13415_v36, %v13400_v60 }
 0x166   : > { %v1114_v10 = vadd.f32 %v1077_v57, %v13496_v21  ;;  %v1243_v14 = vpop.f32.mrf.mxu1  ;;  %11298 = vmatmul.mubr.msk.bf16.gmra.mxu1 %vm441_vm3, %v2387_v44  ;;  %11263 = vmatprep.mubr.msk.bf16.mxu0 %vm12796_vm2, %v17230_v47  ;;  %v2237_v21 = vpack.c.bf16 %v13338_v35, %v13316_v20 }
 0x167   : > { %v11037_v9 = vpop.f32.mrf.mxu0  ;;  %11301 = vmatprep.mubr.msk.bf16.mxu1 %vm12796_vm2, %v17230_v47 }
 0x168   : > { %v11075_v58 = vpop.f32.mrf.mxu1  ;;  %v13682_v12 = vadd.f32 %v13616_v8, %v1114_v10 }
 0x169   : > { %v1080_v0 = vpop.f32.mrf.mxu0 }
 0x16a   : > { %v1115_v44 = vadd.f32 %v1080_v0, %v13500_v49  ;;  %v1246_v61 = vpop.f32.mrf.mxu1  ;;  %v2238_v49 = vpack.c.bf16 %v13558_v29, %v13341_v15  ;;  %v2239_v29 = vpack.c.bf16 %v13589_v63, %v13561_v2 }
 0x16b   : > { %v11038_v57 = vpop.f32.mrf.mxu0 }
 0x16c   : > { %v11076_v9 = vpop.f32.mrf.mxu1  ;;  %v13690_v52 = vadd.f32 %v1230_v31, %v1115_v44  ;;  %v2390_v57 = vpack.c.bf16 %v13431_v54, %v13418_v46  ;;  %v13733_v46 = vld [vmem:[%s12888_s24 + $0xe1] sm:$0xff] }
 0x16d   : > { %v1085_v58 = vpop.f32.mrf.mxu0  ;;  %11264 = vmatmul.mubr.msk.bf16.vlgmr.msra.gmra.mxu0 %vm441_vm3, %v2237_v21 }
 0x16e   : > { %v1116_v8 = vadd.f32 %v1085_v58, %v13517_v51  ;;  %v1251_v10 = vpop.f32.mrf.mxu1  ;;  %11302 = vmatmul.mubr.msk.bf16.gmra.mxu1 %vm441_vm3, %v2388_v32  ;;  %11322 = vmatpush3.bf16.msra.mxu0 %v2565_v55 }
 0x16f   : > { %v11041_v20 = vpop.f32.mrf.mxu0  ;;  %11267 = vmatprep.mubr.msk.bf16.mxu0 %vm12796_vm2, %v17230_v47  ;;  %11305 = vmatprep.mubr.msk.bf16.mxu1 %vm12796_vm2, %v17230_v47 }
 0x170   : > { %v11079_v35 = vpop.f32.mrf.mxu1  ;;  %11381 = vmatprep.subr.bf16.mxu0 %v17230_v47  ;;  %v13700_v18 = vadd.f32 %v1235_v41, %v1116_v8 }
 0x171   : > { %v1088_v59 = vpop.f32.mrf.mxu0 }
 0x172   : > { %v1117_v51 = vadd.f32 %v1088_v59, %v13524_v33  ;;  %v1254_v31 = vpop.f32.mrf.mxu1 }
 0x173   : > { %v11042_v0 = vpop.f32.mrf.mxu0 }
 0x174   : > { %v11080_v21 = vpop.f32.mrf.mxu1  ;;  %v13707_v44 = vadd.f32 %v1238_v37, %v1117_v51 }
 0x175   : > { %v1093_v32 = vpop.f32.mrf.mxu0  ;;  %11268 = vmatmul.mubr.msk.bf16.gmra.mxu0 %vm441_vm3, %v2238_v49  ;;  %v2391_v49 = vpack.c.bf16 %v13733_v46, %v13434_v28  ;;  %v13752_v28 = vld [vmem:[%s12888_s24 + $0xe9] sm:$0xff] }
 0x176   : > { %v1118_v41 = vadd.f32 %v1093_v32, %v13541_v53  ;;  %v1503_v55 = vpop.f32.mrf.mxu1  ;;  %11306 = vmatmul.mubr.msk.bf16.gmra.mxu1 %vm441_vm3, %v2389_v23  ;;  %11271 = vmatprep.mubr.msk.bf16.mxu0 %vm12796_vm2, %v17230_v47 }
 0x177   : > { %v11045_v15 = vpop.f32.mrf.mxu0  ;;  %11309 = vmatprep.mubr.msk.bf16.mxu1 %vm12796_vm2, %v17230_v47 }
 0x178   : > { %v11115_v60 = vpop.f32.mrf.mxu1  ;;  %v13716_v36 = vadd.f32 %v1243_v14, %v1118_v41 }
 0x179   : > { %v1096_v33 = vpop.f32.mrf.mxu0 }
 0x17a   : > { %v1119_v53 = vadd.f32 %v1096_v33, %v13548_v34  ;;  %v1506_v37 = vpop.f32.mrf.mxu1 }
 0x17b   : > { %v11046_v9 = vpop.f32.mrf.mxu0 }
 0x17c   : > { %v11116_v58 = vpop.f32.mrf.mxu1  ;;  %v13723_v8 = vadd.f32 %v1246_v61, %v1119_v53 }
 0x17d   : > { %v1101_v20 = vpop.f32.mrf.mxu0  ;;  %11272 = vmatmul.mubr.msk.bf16.gmra.mxu0 %vm441_vm3, %v2239_v29 }
 0x17e   : > { %v1120_v14 = vadd.f32 %v1101_v20, %v13571_v3  ;;  %v1511_v35 = vpop.f32.mrf.mxu1  ;;  %11310 = vmatmul.mubr.msk.bf16.gmra.mxu1 %vm441_vm3, %v2390_v57  ;;  %11275 = vmatprep.mubr.msk.bf16.mxu0 %vm12796_vm2, %v17230_v47  ;;  %v2240_v3 = vpack.c.bf16 %v13622_v39, %v13592_v62  ;;  %v13755_v62 = vld [vmem:[%s12888_s24 + $0xf1] sm:$0xff] }
 0x17f   : > { %v11049_v34 = vpop.f32.mrf.mxu0  ;;  %11313 = vmatprep.mubr.msk.bf16.mxu1 %vm12796_vm2, %v17230_v47  ;;  %v2392_v33 = vpack.c.bf16 %v13755_v62, %v13752_v28 }
 0x180   : > { %v11119_v54 = vpop.f32.mrf.mxu1  ;;  %v13735_v2 = vadd.f32 %v1251_v10, %v1120_v14 }
 0x181   : > { %v1104_v63 = vpop.f32.mrf.mxu0 }
 0x182   : > { %v1121_v61 = vadd.f32 %v1104_v63, %v13580_v25  ;;  %v1514_v59 = vpop.f32.mrf.mxu1 }
 0x183   : > { %v11050_v51 = vpop.f32.mrf.mxu0 }
 0x184   : > { %v11120_v23 = vpop.f32.mrf.mxu1  ;;  %v13742_v0 = vadd.f32 %v1254_v31, %v1121_v61 }
 0x185   : > { %v1353_v21 = vpop.f32.mrf.mxu0  ;;  %11276 = vmatmul.mubr.msk.bf16.gmra.mxu0 %vm441_vm3, %v2240_v3 }
 0x186   : > { %v1408_v10 = vadd.f32 %v1353_v21, %v13602_v17  ;;  %v1519_v32 = vpop.f32.mrf.mxu1  ;;  %11314 = vmatmul.mubr.msk.bf16.gmra.mxu1 %vm441_vm3, %v2391_v49  ;;  %11279 = vmatprep.mubr.msk.bf16.mxu0 %vm12796_vm2, %v17230_v47  ;;  %v2241_v17 = vpack.c.bf16 %v13651_v45, %v13625_v11 }
 0x187   : > { %v11085_v25 = vpop.f32.mrf.mxu0  ;;  %11317 = vmatprep.mubr.msk.bf16.mxu1 %vm12796_vm2, %v17230_v47 }
 0x188   : > { %v11123_v39 = vpop.f32.mrf.mxu1  ;;  %v13757_v31 = vadd.f32 %v1503_v55, %v1408_v10 }
 0x189   : > { %v1356_v41 = vpop.f32.mrf.mxu0 }
 0x18a   : > { %v1409_v15 = vadd.f32 %v1356_v41, %v13611_v56  ;;  %v1522_v60 = vpop.f32.mrf.mxu1  ;;  %v13772_v56 = vld [vmem:[%s12888_s24 + $0xe0] sm:$0xff] }
 0x18b   : > { %v11086_v29 = vpop.f32.mrf.mxu0  ;;  %v2242_v14 = vpack.c.bf16 %v13772_v56, %v13654_v50  ;;  %v13797_v50 = vld [vmem:[%s12888_s24 + $0xf0] sm:$0xff] }
 0x18c   : > { %v11124_v53 = vpop.f32.mrf.mxu1  ;;  %v13764_v57 = vadd.f32 %v1506_v37, %v1409_v15 }
 0x18d   : > { %v1361_v9 = vpop.f32.mrf.mxu0  ;;  %11280 = vmatmul.mubr.msk.bf16.gmra.mxu0 %vm441_vm3, %v2241_v17 }
 0x18e   : > { %v1410_v55 = vadd.f32 %v1361_v9, %v13629_v38  ;;  %v1527_v58 = vpop.f32.mrf.mxu1  ;;  %11318 = vmatmul.mubr.msk.bf16.gmra.mxu1 %vm441_vm3, %v2392_v33  ;;  %11283 = vmatprep.mubr.msk.bf16.mxu0 %vm12796_vm2, %v17230_v47  ;;  %v9898_v38 = vld [vmem:[%s17201_s1 + $0x10] sm:$0x3] }
 0x18f   : > { %v11089_v11 = vpop.f32.mrf.mxu0  ;;  %11353 = vmatprep.mubr.msk.bf16.mxu1 %vm12796_vm2, %v17230_v47  ;;  %v3012_v3 = vand.u32 %v9898_v38, %v12869_v5 }
 0x190   : > { %v11127_v45 = vpop.f32.mrf.mxu1  ;;  %v13776_v37 = vadd.f32 %v1511_v35, %v1410_v55 }
 0x191   : > { %v1364_v20 = vpop.f32.mrf.mxu0 }
 0x192   : > { %v1411_v34 = vadd.f32 %v1364_v20, %v13642_v1  ;;  %v1530_v54 = vpop.f32.mrf.mxu1  ;;  %v13794_v1 = vld [vmem:[%s12888_s24 + $0xe8] sm:$0xff] }
 0x193   : > { %v11090_v63 = vpop.f32.mrf.mxu0 }
 0x194   : > { %v11128_v61 = vpop.f32.mrf.mxu1  ;;  %v13785_v49 = vadd.f32 %v1514_v59, %v1411_v34 }
 0x195   : > { %v1369_v35 = vpop.f32.mrf.mxu0  ;;  %11284 = vmatmul.mubr.msk.bf16.gmra.mxu0 %vm441_vm3, %v2242_v14 }
 0x196   : > { %v1412_v51 = vadd.f32 %v1369_v35, %v13658_v19  ;;  %v1535_v23 = vpop.f32.mrf.mxu1  ;;  %11354 = vmatmul.mubr.msk.bf16.vlgmr.msra.gmra.mxu1 %vm441_vm3, %v13575_v7  ;;  %11287 = vmatprep.mubr.msk.bf16.mxu0 %vm12796_vm2, %v17230_v47  ;;  %v2243_v7 = vpack.c.bf16 %v13797_v50, %v13794_v1 }
 0x197   : > { %v11093_v21 = vpop.f32.mrf.mxu0  ;;  %11357 = vmatprep.mubr.msk.bf16.mxu1 %vm12796_vm2, %v17230_v47  ;;  %11412 = vmatpush3.bf16.msra.mxu1 %v3012_v3 }
 0x198   : > { %v11131_v59 = vpop.f32.mrf.mxu1  ;;  %v13801_v10 = vadd.f32 %v1519_v32, %v1412_v51  ;;  %11471 = vmatprep.subr.bf16.mxu1 %v17230_v47 }
 0x199   : > { %v1372_v19 = vpop.f32.mrf.mxu0 }
 0x19a   : > { %v1413_v25 = vadd.f32 %v1372_v19, %v13668_v42  ;;  %v1538_v39 = vpop.f32.mrf.mxu1  ;;  %v9890_v42 = vld [vmem:[%s17201_s1 + $0xe] sm:$0x3] }
 0x19b   : > { %v11094_v41 = vpop.f32.mrf.mxu0  ;;  %v2863_v45 = vand.u32 %v9890_v42, %v12869_v5 }
 0x19c   : > { %v11132_v17 = vpop.f32.mrf.mxu1  ;;  %v13807_v15 = vadd.f32 %v1522_v60, %v1413_v25 }
 0x19d   : > { %v1377_v33 = vpop.f32.mrf.mxu0  ;;  %11288 = vmatmul.mubr.msk.bf16.gmra.mxu0 %vm441_vm3, %v2243_v7 }
 0x19e   : > { %v1414_v29 = vadd.f32 %v1377_v33, %v13682_v12  ;;  %v1543_v32 = vpop.f32.mrf.mxu1  ;;  %11358 = vmatmul.mubr.msk.bf16.gmra.mxu1 %vm441_vm3, %v13606_v48  ;;  %11323 = vmatprep.mubr.msk.bf16.mxu0 %vm12796_vm2, %v17230_v47  ;;  %v2535_v12 = vpack.c.bf16 %v13471_v22, %v13450_v16 }
 0x19f   : > { %v11097_v53 = vpop.f32.mrf.mxu0  ;;  %11361 = vmatprep.mubr.msk.bf16.mxu1 %vm12796_vm2, %v17230_v47 }
 0x1a0   : > { %v11135_v60 = vpop.f32.mrf.mxu1  ;;  %v13820_v9 = vadd.f32 %v1527_v58, %v1414_v29 }
 0x1a1   : > { %v1380_v55 = vpop.f32.mrf.mxu0 }
 0x1a2   : > { %v1415_v48 = vadd.f32 %v1380_v55, %v13690_v52  ;;  %v1546_v11 = vpop.f32.mrf.mxu1 }
 0x1a3   : > { %v11098_v38 = vpop.f32.mrf.mxu0 }
 0x1a4   : > { %v11136_v20 = vpop.f32.mrf.mxu1  ;;  %v13826_v14 = vadd.f32 %v1530_v54, %v1415_v48 }
 0x1a5   : > { %v1385_v34 = vpop.f32.mrf.mxu0  ;;  %11324 = vmatmul.mubr.msk.bf16.vlgmr.msra.gmra.mxu0 %vm441_vm3, %v2535_v12  ;;  %v17231_v20 = vld [vmem:[#allocation8_spill] sm:$0xff] }
 0x1a6   : > { %v1416_v63 = vadd.f32 %v1385_v34, %v13700_v18  ;;  %v1551_v58 = vpop.f32.mrf.mxu1  ;;  %11362 = vmatmul.mubr.msk.bf16.gmra.mxu1 %vm441_vm3, %v13636_v4  ;;  %11382 = vmatpush3.bf16.msra.mxu0 %v2863_v45  ;;  %v2536_v18 = vpack.c.bf16 %v13511_v27, %v13474_v13  ;;  %v2539_v34 = vpack.c.bf16 %v17231_v20, %v13569_v26 }
 0x1a7   : > { %v11101_v16 = vpop.f32.mrf.mxu0  ;;  %11327 = vmatprep.mubr.msk.bf16.mxu0 %vm12796_vm2, %v17230_v47  ;;  %11365 = vmatprep.mubr.msk.bf16.mxu1 %vm12796_vm2, %v17230_v47 }
 0x1a8   : > { %v11139_v22 = vpop.f32.mrf.mxu1  ;;  %11441 = vmatprep.subr.bf16.mxu0 %v17230_v47  ;;  %v13837_v52 = vadd.f32 %v1535_v23, %v1416_v63 }
 0x1a9   : > { %v1388_v54 = vpop.f32.mrf.mxu0 }
 0x1aa   : > { %v1417_v3 = vadd.f32 %v1388_v54, %v13707_v44  ;;  %v1554_v4 = vpop.f32.mrf.mxu1 }
 0x1ab   : > { %v11102_v61 = vpop.f32.mrf.mxu0 }
 0x1ac   : > { %v11140_v35 = vpop.f32.mrf.mxu1  ;;  %v13842_v51 = vadd.f32 %v1538_v39, %v1417_v3 }
 0x1ad   : > { %v1393_v21 = vpop.f32.mrf.mxu0  ;;  %11328 = vmatmul.mubr.msk.bf16.gmra.mxu0 %vm441_vm3, %v2536_v18  ;;  %v13920_v18 = vld [vmem:[%s17202_s2] ss:$0 sm:$0xff] }
 0x1ae   : > { %v1418_v59 = vadd.f32 %v1393_v21, %v13716_v36  ;;  %v13846_v19 = vpop.f32.mrf.mxu1  ;;  %11366 = vmatmul.mubr.msk.bf16.gmra.mxu1 %vm441_vm3, %v13663_v30  ;;  %11331 = vmatprep.mubr.msk.bf16.mxu0 %vm12796_vm2, %v17230_v47  ;;  %v2537_v36 = vpack.c.bf16 %v13536_v24, %v13514_v43  ;;  %v13863_v30 = vpack.c.bf16 %v13794_v1, %v13772_v56  ;;  %v13878_v24 = vld [vmem:[%s12888_s24 + $0xf8] sm:$0xff] }
 0x1af   : > { %v11105_v13 = vpop.f32.mrf.mxu0  ;;  %11369 = vmatprep.mubr.msk.bf16.mxu1 %vm12796_vm2, %v17230_v47  ;;  %v13889_v60 = vpack.c.bf16 %v13878_v24, %v13797_v50 }
 0x1b0   : > { %v11175_v27 = vpop.f32.mrf.mxu1  ;;  %v13854_v44 = vadd.f32 %v1543_v32, %v1418_v59  ;;  %v3208_v13 = vld [vmem:[%s17201_s1] sm:$0x3] }
 0x1b1   : > { %v1396_v23 = vpop.f32.mrf.mxu0  ;;  %v13944_v27 = vld [vmem:[%s17203_s3] ss:$0 sm:$0xff] }
 0x1b2   : > { %v1419_v7 = vadd.f32 %v1396_v23, %v13723_v8  ;;  %v13859_v25 = vpop.f32.mrf.mxu1 }
 0x1b3   : > { %v11106_v39 = vpop.f32.mrf.mxu0 }
 0x1b4   : > { %v11176_v41 = vpop.f32.mrf.mxu1  ;;  %v13865_v17 = vadd.f32 %v1546_v11, %v1419_v7 }
 0x1b5   : > { %v1401_v33 = vpop.f32.mrf.mxu0  ;;  %11332 = vmatmul.mubr.msk.bf16.gmra.mxu0 %vm441_vm3, %v2537_v36  ;;  %v17232_v36 = vld [vmem:[#allocation9_spill] sm:$0xff] }
 0x1b6   : > { %v1420_v29 = vadd.f32 %v1401_v33, %v13735_v2  ;;  %v13869_v32 = vpop.f32.mrf.mxu1  ;;  %11370 = vmatmul.mubr.msk.bf16.gmra.mxu1 %vm441_vm3, %v13863_v30  ;;  %11335 = vmatprep.mubr.msk.bf16.mxu0 %vm12796_vm2, %v17230_v47  ;;  %v2538_v2 = vpack.c.bf16 %v13566_v6, %v13539_v40  ;;  %v13903_v6 = vld [vmem:[%s12888_s24 + $0x100] sm:$0xff] }
 0x1b7   : > { %v11109_v43 = vpop.f32.mrf.mxu0  ;;  %11373 = vmatprep.mubr.msk.bf16.mxu1 %vm12796_vm2, %v17230_v47 }
 0x1b8   : > { %v11179_v8 = vpop.f32.mrf.mxu1  ;;  %v13880_v56 = vadd.f32 %v1551_v58, %v1420_v29  ;;  %v3366_v29 = vand.u32 %v3208_v13, %v12869_v5 }
 0x1b9   : > { %v1404_v1 = vpop.f32.mrf.mxu0 }
 0x1ba   : > { %v1421_v53 = vadd.f32 %v1404_v1, %v13742_v0  ;;  %v13885_v42 = vpop.f32.mrf.mxu1  ;;  %v13906_v0 = vld [vmem:[%s12888_s24 + $0x108] sm:$0xff] }
 0x1bb   : > { %v11110_v55 = vpop.f32.mrf.mxu0  ;;  %v13914_v58 = vpack.c.bf16 %v13906_v0, %v13903_v6 }
 0x1bc   : > { %v11180_v12 = vpop.f32.mrf.mxu1  ;;  %v13891_v48 = vadd.f32 %v1554_v4, %v1421_v53 }
 0x1bd   : > { %v1653_v11 = vpop.f32.mrf.mxu0  ;;  %11336 = vmatmul.mubr.msk.bf16.gmra.mxu0 %vm441_vm3, %v2538_v2 }
 0x1be   : > { %v13894_v45 = vpop.f32.mrf.mxu1  ;;  %11374 = vmatmul.mubr.msk.bf16.gmra.mxu1 %vm441_vm3, %v13889_v60  ;;  %11339 = vmatprep.mubr.msk.bf16.mxu0 %vm12796_vm2, %v17230_v47  ;;  %v1708_v22 = vadd.f32 %v1653_v11, %v13757_v31  ;;  %v13931_v31 = vld [vmem:[%s12888_s24 + $0xe2] sm:$0xff] }
 0x1bf   : > { %v11145_v40 = vpop.f32.mrf.mxu0  ;;  %11377 = vmatprep.mubr.msk.bf16.mxu1 %vm12796_vm2, %v17230_v47  ;;  %v2540_v7 = vpack.c.bf16 %v13931_v31, %v17232_v36 }
 0x1c0   : > { %v11183_v50 = vpop.f32.mrf.mxu1  ;;  %v1728_v35 = vadd.f32 %v13920_v18, %v1708_v22  ;;  %v17233_v40 = vld [vmem:[#allocation6_spill] sm:$0xff] }
 0x1c1   : > { %v1656_v38 = vpop.f32.mrf.mxu0  ;;  %v13966_v50 = vld [vmem:[%s12888_s24 + $0xea] sm:$0xff] }
 0x1c2   : > { %v13910_v63 = vpop.f32.mrf.mxu1  ;;  %v1709_v21 = vadd.f32 %v1656_v38, %v13764_v57  ;;  %v1762_v43 = vmul.f32 %v13944_v27, %v1728_v35  ;;  %vm1742_vm5 = vcmp.gt.f32.partialorder %v1728_v35, 0.0  ;;  %v13969_v38 = vld [vmem:[%s12888_s24 + $0xf2] sm:$0xff] }
 0x1c3   : > { %v11146_v16 = vpop.f32.mrf.mxu0 }
 0x1c4   : > { %v11184_v54 = vpop.f32.mrf.mxu1  ;;  %v1729_v8 = vadd.f32 %v13920_v18, %v1709_v21 }
 0x1c5   : > { %v1661_v3 = vpop.f32.mrf.mxu0  ;;  %11340 = vmatmul.mubr.msk.bf16.gmra.mxu0 %vm441_vm3, %v2539_v34  ;;  %v1776_v34 = vsel %vm1742_vm5, %v1728_v35, %v1762_v43 }
 0x1c6   : > { %v1710_v26 = vadd.f32 %v1661_v3, %v13776_v37  ;;  %v13924_v4 = vpop.f32.mrf.mxu1  ;;  %11378 = vmatmul.mubr.msk.bf16.gmra.mxu1 %vm441_vm3, %v13914_v58  ;;  %11343 = vmatprep.mubr.msk.bf16.mxu0 %vm12796_vm2, %v17230_v47  ;;  %vm1743_vm7 = vcmp.gt.f32.partialorder %v1729_v8, 0.0 }
 0x1c7   : > { %v11149_v61 = vpop.f32.mrf.mxu0  ;;  %11413 = vmatprep.mubr.msk.bf16.mxu1 %vm12796_vm2, %v17230_v47 }
 0x1c8   : > { %v1730_v37 = vadd.f32 %v13920_v18, %v1710_v26  ;;  %v11187_v59 = vpop.f32.mrf.mxu1  ;;  %v2541_v61 = vpack.c.bf16 %v13969_v38, %v13966_v50 }
 0x1c9   : > { %v1664_v23 = vpop.f32.mrf.mxu0 }
 0x1ca   : > { %vm1744_vm4 = vcmp.gt.f32.partialorder %v1730_v37, 0.0  ;;  %v1764_v39 = vmul.f32 %v13944_v27, %v1730_v37  ;;  %v1711_v57 = vadd.f32 %v1664_v23, %v13785_v49  ;;  %v13950_v41 = vpop.f32.mrf.mxu1 }
 0x1cb   : > { %v11150_v33 = vpop.f32.mrf.mxu0 }
 0x1cc   : > { %v1778_v1 = vsel %vm1744_vm4, %v1730_v37, %v1764_v39  ;;  %v1731_v2 = vadd.f32 %v13920_v18, %v1711_v57  ;;  %v11188_v53 = vpop.f32.mrf.mxu1  ;;  %v2819_v33 = vld [vmem:[%s12888_s24 + $0xa1] sm:$0xff] }
 0x1cd   : > { %1792 = vst [vmem:[#allocation2 + $0x10] sm:$0xff] %v1778_v1  ;;  %v1669_v55 = vpop.f32.mrf.mxu0  ;;  %11344 = vmatmul.mubr.msk.bf16.gmra.mxu0 %vm441_vm3, %v2540_v7  ;;  %v17234_v1 = vld [vmem:[#allocation7_spill] sm:$0xff] }
 0x1ce   : > { %vm1745_vm6 = vcmp.gt.f32.partialorder %v1731_v2, 0.0  ;;  %v1765_v49 = vmul.f32 %v13944_v27, %v1731_v2  ;;  %v1712_v12 = vadd.f32 %v1669_v55, %v13801_v10  ;;  %v13959_v11 = vpop.f32.mrf.mxu1  ;;  %11414 = vmatmul.mubr.msk.bf16.vlgmr.msra.gmra.mxu1 %vm441_vm3, %v17233_v40  ;;  %11347 = vmatprep.mubr.msk.bf16.mxu0 %vm12796_vm2, %v17230_v47  ;;  %v1763_v10 = vmul.f32 %v13944_v27, %v1729_v8  ;;  %v2973_v53 = vld [vmem:[%s12888_s24 + $0xca] sm:$0xff] }
 0x1cf   : > { %v11153_v20 = vpop.f32.mrf.mxu0  ;;  %11417 = vmatprep.mubr.msk.bf16.mxu1 %vm12796_vm2, %v17230_v47  ;;  %11472 = vmatpush3.bf16.msra.mxu1 %v3366_v29 }
 0x1d0   : > { %v1779_v16 = vsel %vm1745_vm6, %v1731_v2, %v1765_v49  ;;  %v1732_v22 = vadd.f32 %v13920_v18, %v1712_v12  ;;  %v11191_v54 = vpop.f32.mrf.mxu1  ;;  %11531 = vmatprep.subr.bf16.mxu1 %v17230_v47  ;;  %v1777_v13 = vsel %vm1743_vm7, %v1729_v8, %v1763_v10  ;;  %v2820_v8 = vld [vmem:[%s12888_s24 + $0xa9] sm:$0xff]  ;;  %v9906_v49 = vld [vmem:[%s17201_s1 + $0x2] sm:$0x3] }
 0x1d1   : > { %v7042_v3 = vmax.f32 %v1776_v34, %v1779_v16  ;;  %v1672_v26 = vpop.f32.mrf.mxu0  ;;  %v2972_v2 = vld [vmem:[%s12888_s24 + $0xc2] sm:$0xff]  ;;  %v2833_v34 = vpack.c.bf16 %v2820_v8, %v2819_v33  ;;  %v2822_v33 = vld [vmem:[%s12888_s24 + $0xb9] sm:$0xff] }
 0x1d2   : > { %vm1746_vm8 = vcmp.gt.f32.partialorder %v1732_v22, 0.0  ;;  %v1766_v21 = vmul.f32 %v13944_v27, %v1732_v22  ;;  %v1713_v35 = vadd.f32 %v1672_v26, %v13807_v15  ;;  %v13980_v37 = vpop.f32.mrf.mxu1  ;;  %v2984_v10 = vpack.c.bf16 %v2973_v53, %v2972_v2 }
 0x1d3   : > { %v11154_v59 = vpop.f32.mrf.mxu0  ;;  %v3253_v26 = vand.u32 %v9906_v49, %v12869_v5 }
 0x1d4   : > { %v1780_v23 = vsel %vm1746_vm8, %v1732_v22, %v1766_v21  ;;  %v1733_v36 = vadd.f32 %v13920_v18, %v1713_v35  ;;  %v11192_v7 = vpop.f32.mrf.mxu1 }
 0x1d5   : > { %v7043_v39 = vmax.f32 %v1777_v13, %v1780_v23  ;;  %v1677_v57 = vpop.f32.mrf.mxu0  ;;  %11348 = vmatmul.mubr.msk.bf16.gmra.mxu0 %vm441_vm3, %v2541_v61 }
 0x1d6   : > { %vm1747_vm9 = vcmp.gt.f32.partialorder %v1733_v36, 0.0  ;;  %v1767_v29 = vmul.f32 %v13944_v27, %v1733_v36  ;;  %v1714_v15 = vadd.f32 %v1677_v57, %v13820_v9  ;;  %v13987_v43 = vpop.f32.mrf.mxu1  ;;  %11418 = vmatmul.mubr.msk.bf16.gmra.mxu1 %vm441_vm3, %v17234_v1  ;;  %11383 = vmatprep.mubr.msk.bf16.mxu0 %vm12796_vm2, %v17230_v47  ;;  %v2821_v57 = vld [vmem:[%s12888_s24 + $0xb1] sm:$0xff] }
 0x1d7   : > { %v11157_v55 = vpop.f32.mrf.mxu0  ;;  %11421 = vmatprep.mubr.msk.bf16.mxu1 %vm12796_vm2, %v17230_v47 }
 0x1d8   : > { %v1781_v9 = vsel %vm1747_vm9, %v1733_v36, %v1767_v29  ;;  %v1734_v12 = vadd.f32 %v13920_v18, %v1714_v15  ;;  %v11195_v40 = vpop.f32.mrf.mxu1  ;;  %v2975_v15 = vld [vmem:[%s12888_s24 + $0xda] sm:$0xff]  ;;  %v2834_v55 = vpack.c.bf16 %v2822_v33, %v2821_v57 }
 0x1d9   : > { %1795 = vst [vmem:[#allocation2 + $0x28] sm:$0xff] %v1781_v9  ;;  %v1680_v20 = vpop.f32.mrf.mxu0 }
 0x1da   : > { %vm1748_vm10 = vcmp.gt.f32.partialorder %v1734_v12, 0.0  ;;  %v1768_v16 = vmul.f32 %v13944_v27, %v1734_v12  ;;  %v1715_v22 = vadd.f32 %v1680_v20, %v13826_v14  ;;  %v14004_v54 = vpop.f32.mrf.mxu1 }
 0x1db   : > { %v11158_v61 = vpop.f32.mrf.mxu0 }
 0x1dc   : > { %v14007_v21 = vsel %vm1748_vm10, %v1734_v12, %v1768_v16  ;;  %v1735_v35 = vadd.f32 %v13920_v18, %v1715_v22  ;;  %v11196_v59 = vpop.f32.mrf.mxu1  ;;  %v2823_v61 = vld [vmem:[%s12888_s24 + $0xc1] sm:$0xff] }
 0x1dd   : > { %v7048_v13 = vmax.f32 %v7042_v3, %v14007_v21  ;;  %v1685_v23 = vpop.f32.mrf.mxu0  ;;  %11384 = vmatmul.mubr.msk.bf16.vlgmr.msra.gmra.mxu0 %vm441_vm3, %v2833_v34  ;;  %v2974_v3 = vld [vmem:[%s12888_s24 + $0xd2] sm:$0xff] }
 0x1de   : > { %vm1749_vm11 = vcmp.gt.f32.partialorder %v1735_v35, 0.0  ;;  %v1769_v14 = vmul.f32 %v13944_v27, %v1735_v35  ;;  %v1716_v36 = vadd.f32 %v1685_v23, %v13837_v52  ;;  %v14014_v7 = vpop.f32.mrf.mxu1  ;;  %11422 = vmatmul.mubr.msk.bf16.gmra.mxu1 %vm441_vm3, %v2984_v10  ;;  %11442 = vmatpush3.bf16.msra.mxu0 %v3253_v26  ;;  %v2985_v40 = vpack.c.bf16 %v2975_v15, %v2974_v3 }
 0x1df   : > { %7051 = vst [vmem:[#allocation3] sm:$0xff] %v7048_v13  ;;  %v11161_v29 = vpop.f32.mrf.mxu0  ;;  %11387 = vmatprep.mubr.msk.bf16.mxu0 %vm12796_vm2, %v17230_v47  ;;  %11425 = vmatprep.mubr.msk.bf16.mxu1 %vm12796_vm2, %v17230_v47 }
 0x1e0   : > { %v14025_v1 = vsel %vm1749_vm11, %v1735_v35, %v1769_v14  ;;  %v1736_v52 = vadd.f32 %v13920_v18, %v1716_v36  ;;  %v11199_v8 = vpop.f32.mrf.mxu1  ;;  %11501 = vmatprep.subr.bf16.mxu0 %v17230_v47  ;;  %v2824_v35 = vld [vmem:[%s12888_s24 + $0xc9] sm:$0xff] }
 0x1e1   : > { %v7049_v2 = vmax.f32 %v7043_v39, %v14025_v1  ;;  %v1688_v53 = vpop.f32.mrf.mxu0  ;;  %v7041_v13 = vld [vmem:[#allocation2 + $0x28] sm:$0x3f]  ;;  %v2835_v33 = vpack.c.bf16 %v2824_v35, %v2823_v61  ;;  %v7038_v29 = vld [vmem:[#allocation2 + $0x10] sm:$0x3f]  ;;  %v14055_v8 = vpack.c.bf16 %v13966_v50, %v13931_v31 }
 0x1e2   : > { %vm1750_vm12 = vcmp.gt.f32.partialorder %v1736_v52, 0.0  ;;  %v1770_v49 = vmul.f32 %v13944_v27, %v1736_v52  ;;  %v1717_v9 = vadd.f32 %v1688_v53, %v13842_v51  ;;  %v14032_v12 = vpop.f32.mrf.mxu1 }
 0x1e3   : > { %7052 = vst [vmem:[#allocation3 + $0x8] sm:$0xff] %v7049_v2  ;;  %v11162_v20 = vpop.f32.mrf.mxu0  ;;  %v7044_v2 = vmax.f32 %v7038_v29, %v7041_v13 }
 0x1e4   : > { %v1784_v34 = vsel %vm1750_vm12, %v1736_v52, %v1770_v49  ;;  %v1737_v10 = vadd.f32 %v13920_v18, %v1717_v9  ;;  %v11200_v16 = vpop.f32.mrf.mxu1 }
 0x1e5   : > { %1798 = vst [vmem:[#allocation2 + $0x40] sm:$0xff] %v1784_v34  ;;  %v1693_v39 = vpop.f32.mrf.mxu0  ;;  %11388 = vmatmul.mubr.msk.bf16.gmra.mxu0 %vm441_vm3, %v2834_v55  ;;  %v2826_v16 = vld [vmem:[%s12888_s24 + $0xd9] sm:$0xff] }
 0x1e6   : > { %vm1751_vm13 = vcmp.gt.f32.partialorder %v1737_v10, 0.0  ;;  %v1771_v22 = vmul.f32 %v13944_v27, %v1737_v10  ;;  %v1718_v51 = vadd.f32 %v1693_v39, %v13854_v44  ;;  %v14038_v26 = vpop.f32.mrf.mxu1  ;;  %11426 = vmatmul.mubr.msk.bf16.gmra.mxu1 %vm441_vm3, %v2985_v40  ;;  %11391 = vmatprep.mubr.msk.bf16.mxu0 %vm12796_vm2, %v17230_v47  ;;  %v14073_v39 = vld [vmem:[%s12888_s24 + $0xfa] sm:$0xff] }
 0x1e7   : > { %v11165_v59 = vpop.f32.mrf.mxu0  ;;  %11429 = vmatprep.mubr.msk.bf16.mxu1 %vm12796_vm2, %v17230_v47 }
 0x1e8   : > { %v1785_v23 = vsel %vm1751_vm13, %v1737_v10, %v1771_v22  ;;  %v1738_v14 = vadd.f32 %v13920_v18, %v1718_v51  ;;  %v11235_v36 = vpop.f32.mrf.mxu1  ;;  %v2825_v10 = vld [vmem:[%s12888_s24 + $0xd1] sm:$0xff] }
 0x1e9   : > { %v7060_v44 = vmax.f32 %v14007_v21, %v1785_v23  ;;  %v1696_v57 = vpop.f32.mrf.mxu0  ;;  %v2836_v35 = vpack.c.bf16 %v2826_v16, %v2825_v10 }
 0x1ea   : > { %vm1752_vm14 = vcmp.gt.f32.partialorder %v1738_v14, 0.0  ;;  %v1772_v3 = vmul.f32 %v13944_v27, %v1738_v14  ;;  %v1719_v15 = vadd.f32 %v1696_v57, %v13865_v17  ;;  %v14051_v52 = vpop.f32.mrf.mxu1  ;;  %v7231_v36 = vld [vmem:[#allocation3] ss:$2 sm:$0xff]  ;;  %v7235_v57 = vld [vmem:[#allocation3 + $0x1] ss:$2 sm:$0xff] }
 0x1eb   : > { %v11166_v53 = vpop.f32.mrf.mxu0 }
 0x1ec   : > { %v7047_v55 = vld [vmem:[#allocation2 + $0x40] sm:$0x3f]  ;;  %v1786_v21 = vsel %vm1752_vm14, %v1738_v14, %v1772_v3  ;;  %v1739_v49 = vadd.f32 %v13920_v18, %v1719_v15  ;;  %v11236_v9 = vpop.f32.mrf.mxu1  ;;  %v14082_v14 = vpack.c.bf16 %v14073_v39, %v13969_v38 }
 0x1ed   : > { %v7050_v40 = vmax.f32 %v7044_v2, %v7047_v55  ;;  %v7061_v20 = vmax.f32 %v14025_v1, %v1786_v21  ;;  %v1701_v17 = vpop.f32.mrf.mxu0  ;;  %11392 = vmatmul.mubr.msk.bf16.gmra.mxu0 %vm441_vm3, %v2835_v33  ;;  %v14097_v9 = vld [vmem:[%s12888_s24 + $0x102] sm:$0xff] }
 0x1ee   : > { %vm1753_vm15 = vcmp.gt.f32.partialorder %v1739_v49, 0.0  ;;  %v1773_v31 = vmul.f32 %v13944_v27, %v1739_v49  ;;  %v1720_v50 = vadd.f32 %v1701_v17, %v13880_v56  ;;  %v14062_v34 = vpop.f32.mrf.mxu1  ;;  %11430 = vmatmul.mubr.msk.bf16.gmra.mxu1 %vm441_vm3, %v14055_v8  ;;  %11395 = vmatprep.mubr.msk.bf16.mxu0 %vm12796_vm2, %v17230_v47 }
 0x1ef   : > { %7053 = vst [vmem:[#allocation3 + $0x10] sm:$0x3f] %v7050_v40  ;;  %v11169_v1 = vpop.f32.mrf.mxu0  ;;  %11433 = vmatprep.mubr.msk.bf16.mxu1 %vm12796_vm2, %v17230_v47 }
 0x1f0   : > { %v1787_v22 = vsel %vm1753_vm15, %v1739_v49, %v1773_v31  ;;  %v1740_v56 = vadd.f32 %v13920_v18, %v1720_v50  ;;  %v11239_v51 = vpop.f32.mrf.mxu1 }
 0x1f1   : > { %1801 = vst [vmem:[#allocation2 + $0x58] sm:$0xff] %v1787_v22  ;;  %v1704_v61 = vpop.f32.mrf.mxu0  ;;  %v2837_v22 = vpack.c.bf16 %v13752_v28, %v13733_v46 }
 0x1f2   : > { %vm1754_vm0 = vcmp.gt.f32.partialorder %v1740_v56, 0.0  ;;  %v1774_v59 = vmul.f32 %v13944_v27, %v1740_v56  ;;  %v1721_v13 = vadd.f32 %v1704_v61, %v13891_v48  ;;  %v14078_v23 = vpop.f32.mrf.mxu1  ;;  %v7242_v48 = vmax.f32 %v7231_v36, %v7235_v57 }
 0x1f3   : > { %v11170_v33 = vpop.f32.mrf.mxu0 }
 0x1f4   : > { %v1788_v29 = vsel %vm1754_vm0, %v1740_v56, %v1774_v59  ;;  %v1741_v3 = vadd.f32 %v13920_v18, %v1721_v13  ;;  %v11240_v15 = vpop.f32.mrf.mxu1 }
 0x1f5   : > { %1802 = vst [vmem:[#allocation2 + $0x60] sm:$0xff] %v1788_v29  ;;  %v7066_v2 = vmax.f32 %v7060_v44, %v1788_v29  ;;  %v2019_v53 = vpop.f32.mrf.mxu0  ;;  %11396 = vmatmul.mubr.msk.bf16.gmra.mxu0 %vm441_vm3, %v2836_v35 }
 0x1f6   : > { %vm1755_vm1 = vcmp.gt.f32.partialorder %v1741_v3, 0.0  ;;  %v1775_v55 = vmul.f32 %v13944_v27, %v1741_v3  ;;  %v2020_v38 = vadd.f32 %v2019_v53, %v13846_v19  ;;  %v14088_v21 = vpop.f32.mrf.mxu1  ;;  %11434 = vmatmul.mubr.msk.bf16.gmra.mxu1 %vm441_vm3, %v14082_v14  ;;  %11399 = vmatprep.mubr.msk.bf16.mxu0 %vm12796_vm2, %v17230_v47  ;;  %v7233_v18 = vld [vmem:[#allocation3 + $0x10] ss:$2 sm:$0x7]  ;;  %v14100_v27 = vld [vmem:[%s12888_s24 + $0x10a] sm:$0xff] }
 0x1f7   : > { %v7239_v44 = vld [vmem:[#allocation3 + $0x2] ss:$2 sm:$0xff]  ;;  %7069 = vst [vmem:[#allocation3 + $0x18] sm:$0xff] %v7066_v2  ;;  %v11205_v49 = vpop.f32.mrf.mxu0  ;;  %11437 = vmatprep.mubr.msk.bf16.mxu1 %vm12796_vm2, %v17230_v47  ;;  %v7237_v19 = vld [vmem:[#allocation3 + $0x11] ss:$2 sm:$0x7]  ;;  %v14110_v35 = vpack.c.bf16 %v14100_v27, %v14097_v9 }
 0x1f8   : > { %v7244_v40 = vmax.f32 %v7242_v48, %v7239_v44  ;;  %v1789_v17 = vsel %vm1755_vm1, %v1741_v3, %v1775_v55  ;;  %v11243_v31 = vpop.f32.mrf.mxu1  ;;  %v14103_v50 = vadd.f32 %v14038_v26, %v2020_v38  ;;  %v7243_v10 = vmax.f32 %v7233_v18, %v7237_v19  ;;  %v7241_v56 = vld [vmem:[#allocation3 + $0x12] ss:$2 sm:$0x7] }
 0x1f9   : > { %1803 = vst [vmem:[#allocation2 + $0x68] sm:$0xff] %v1789_v17  ;;  %v7067_v16 = vmax.f32 %v7061_v20, %v1789_v17  ;;  %v2022_v1 = vpop.f32.mrf.mxu0 }
 0x1fa   : > { %7246 = vst [vmem:[#allocation4] sm:$0xff] %v7244_v40  ;;  %v2023_v51 = vadd.f32 %v2022_v1, %v13859_v25  ;;  %v2173_v61 = vpop.f32.mrf.mxu1  ;;  %v7245_v59 = vmax.f32 %v7243_v10, %v7241_v56  ;;  %v14122_v25 = vld [vmem:[%s12888_s24 + $0xf9] sm:$0xff]  ;;  %v3209_v56 = vld [vmem:[%s12888_s24 + $0xe1] sm:$0xff] }
 0x1fb   : > { %7070 = vst [vmem:[#allocation3 + $0x20] sm:$0xff] %v7067_v16  ;;  %v11206_v26 = vpop.f32.mrf.mxu0  ;;  %v2838_v3 = vpack.c.bf16 %v14122_v25, %v13755_v62  ;;  %v14146_v62 = vld [vmem:[%s12888_s24 + $0x101] sm:$0xff] }
 0x1fc   : > { %v11244_v13 = vpop.f32.mrf.mxu1  ;;  %v14113_v20 = vadd.f32 %v14051_v52, %v2023_v51  ;;  %7247 = vst [vmem:[#allocation4 + $0x8] sm:$0x7] %v7245_v59 }
 0x1fd   : > { %v2027_v36 = vpop.f32.mrf.mxu0  ;;  %11400 = vmatmul.mubr.msk.bf16.gmra.mxu0 %vm441_vm3, %v2837_v22 }
 0x1fe   : > { %v2028_v46 = vadd.f32 %v2027_v36, %v13869_v32  ;;  %v2178_v28 = vpop.f32.mrf.mxu1  ;;  %11438 = vmatmul.mubr.msk.bf16.gmra.mxu1 %vm441_vm3, %v14110_v35  ;;  %11403 = vmatprep.mubr.msk.bf16.mxu0 %vm12796_vm2, %v17230_v47  ;;  %v9929_v32 = vld [vmem:[%s17201_s1 + $0x6] sm:$0x3] }
 0x1ff   : > { %v11209_v57 = vpop.f32.mrf.mxu0  ;;  %11473 = vmatprep.mubr.msk.bf16.mxu1 %vm12796_vm2, %v17230_v47  ;;  %v3650_v48 = vand.u32 %v9929_v32, %v12869_v5 }
 0x200   : > { %v11247_v52 = vpop.f32.mrf.mxu1  ;;  %v14127_v33 = vadd.f32 %v14062_v34, %v2028_v46 }
 0x201   : > { %v2030_v29 = vpop.f32.mrf.mxu0 }
 0x202   : > { %v2031_v15 = vadd.f32 %v2030_v29, %v13885_v42  ;;  %v2181_v2 = vpop.f32.mrf.mxu1  ;;  %v14149_v42 = vld [vmem:[%s12888_s24 + $0x109] sm:$0xff] }
 0x203   : > { %v11210_v53 = vpop.f32.mrf.mxu0  ;;  %v14159_v19 = vpack.c.bf16 %v14149_v42, %v14146_v62 }
 0x204   : > { %v11248_v55 = vpop.f32.mrf.mxu1  ;;  %v14137_v34 = vadd.f32 %v14078_v23, %v2031_v15  ;;  %v14197_v53 = vld [vmem:[%s12888_s24 + $0x118] sm:$0xff] }
 0x205   : > { %v2035_v38 = vpop.f32.mrf.mxu0  ;;  %11404 = vmatmul.mubr.msk.bf16.gmra.mxu0 %vm441_vm3, %v2838_v3 }
 0x206   : > { %v2036_v18 = vadd.f32 %v2035_v38, %v13894_v45  ;;  %v2186_v44 = vpop.f32.mrf.mxu1  ;;  %11474 = vmatmul.mubr.msk.bf16.vlgmr.msra.gmra.mxu1 %vm441_vm3, %v13863_v30  ;;  %11407 = vmatprep.mubr.msk.bf16.mxu0 %vm12796_vm2, %v17230_v47 }
 0x207   : > { %v11213_v49 = vpop.f32.mrf.mxu0  ;;  %11477 = vmatprep.mubr.msk.bf16.mxu1 %vm12796_vm2, %v17230_v47  ;;  %11532 = vmatpush3.bf16.msra.mxu1 %v3650_v48 }
 0x208   : > { %v11251_v23 = vpop.f32.mrf.mxu1  ;;  %v14154_v45 = vadd.f32 %v14088_v21, %v2036_v18  ;;  %11591 = vmatprep.subr.bf16.mxu1 %v17230_v47 }
 0x209   : > { %v2038_v30 = vpop.f32.mrf.mxu0 }
 0x20a   : > { %v2039_v40 = vadd.f32 %v2038_v30, %v13910_v63  ;;  %v2189_v17 = vpop.f32.mrf.mxu1  ;;  %v3210_v63 = vld [vmem:[%s12888_s24 + $0xe9] sm:$0xff] }
 0x20b   : > { %v11214_v31 = vpop.f32.mrf.mxu0  ;;  %v3223_v13 = vpack.c.bf16 %v3210_v63, %v3209_v56 }
 0x20c   : > { %v11252_v10 = vpop.f32.mrf.mxu1  ;;  %v14162_v16 = vadd.f32 %v2173_v61, %v2039_v40  ;;  %v9921_v61 = vld [vmem:[%s17201_s1 + $0x4] sm:$0x3] }
 0x20d   : > { %v2043_v1 = vpop.f32.mrf.mxu0  ;;  %11408 = vmatmul.mubr.msk.bf16.gmra.mxu0 %vm441_vm3, %v14159_v19  ;;  %v3501_v46 = vand.u32 %v9921_v61, %v12869_v5 }
 0x20e   : > { %v2044_v21 = vadd.f32 %v2043_v1, %v13924_v4  ;;  %v2194_v22 = vpop.f32.mrf.mxu1  ;;  %11478 = vmatmul.mubr.msk.bf16.gmra.mxu1 %vm441_vm3, %v13889_v60  ;;  %11443 = vmatprep.mubr.msk.bf16.mxu0 %vm12796_vm2, %v17230_v47  ;;  %v14216_v1 = vld [vmem:[%s12888_s24 + $0x120] sm:$0xff] }
 0x20f   : > { %v11217_v51 = vpop.f32.mrf.mxu0  ;;  %11481 = vmatprep.mubr.msk.bf16.mxu1 %vm12796_vm2, %v17230_v47 }
 0x210   : > { %v11255_v59 = vpop.f32.mrf.mxu1  ;;  %v14178_v4 = vadd.f32 %v2178_v28, %v2044_v21  ;;  %v14219_v21 = vld [vmem:[%s12888_s24 + $0x128] sm:$0xff] }
 0x211   : > { %v2046_v26 = vpop.f32.mrf.mxu0  ;;  %v3205_v61 = vpack.c.bf16 %v14219_v21, %v14216_v1 }
 0x212   : > { %v2047_v60 = vadd.f32 %v2046_v26, %v13950_v41  ;;  %v2197_v36 = vpop.f32.mrf.mxu1  ;;  %v3211_v41 = vld [vmem:[%s12888_s24 + $0xf1] sm:$0xff] }
 0x213   : > { %v11218_v57 = vpop.f32.mrf.mxu0 }
 0x214   : > { %v11256_v52 = vpop.f32.mrf.mxu1  ;;  %v14182_v32 = vadd.f32 %v2181_v2, %v2047_v60  ;;  %v14194_v2 = vld [vmem:[%s12888_s24 + $0x110] sm:$0xff]  ;;  %v14238_v57 = vld [vmem:[%s12888_s24 + $0x119] sm:$0xff] }
 0x215   : > { %v2051_v29 = vpop.f32.mrf.mxu0  ;;  %11444 = vmatmul.mubr.msk.bf16.vlgmr.msra.gmra.mxu0 %vm441_vm3, %v3223_v13  ;;  %v3204_v49 = vpack.c.bf16 %v14197_v53, %v14194_v2 }
 0x216   : > { %v2052_v3 = vadd.f32 %v2051_v29, %v13959_v11  ;;  %v2202_v28 = vpop.f32.mrf.mxu1  ;;  %11482 = vmatmul.mubr.msk.bf16.gmra.mxu1 %vm441_vm3, %v13914_v58  ;;  %11502 = vmatpush3.bf16.msra.mxu0 %v3501_v46  ;;  %v3224_v58 = vpack.c.bf16 %v14122_v25, %v3211_v41  ;;  %v14246_v29 = vld [vmem:[%s12888_s24 + $0x138] sm:$0xff] }
 0x217   : > { %v11221_v15 = vpop.f32.mrf.mxu0  ;;  %11447 = vmatprep.mubr.msk.bf16.mxu0 %vm12796_vm2, %v17230_v47  ;;  %11485 = vmatprep.mubr.msk.bf16.mxu1 %vm12796_vm2, %v17230_v47 }
 0x218   : > { %v11259_v48 = vpop.f32.mrf.mxu1  ;;  %11561 = vmatprep.subr.bf16.mxu0 %v17230_v47  ;;  %v14200_v11 = vadd.f32 %v2186_v44, %v2052_v3 }
 0x219   : > { %v2054_v55 = vpop.f32.mrf.mxu0 }
 0x21a   : > { %v2055_v38 = vadd.f32 %v2054_v55, %v13980_v37  ;;  %v2205_v18 = vpop.f32.mrf.mxu1 }
 0x21b   : > { %v11222_v23 = vpop.f32.mrf.mxu0 }
 0x21c   : > { %v11260_v30 = vpop.f32.mrf.mxu1  ;;  %v14206_v40 = vadd.f32 %v2189_v17, %v2055_v38 }
 0x21d   : > { %v2059_v31 = vpop.f32.mrf.mxu0  ;;  %11448 = vmatmul.mubr.msk.bf16.gmra.mxu0 %vm441_vm3, %v3224_v58 }
 0x21e   : > { %v2060_v44 = vadd.f32 %v2059_v31, %v13987_v43  ;;  %v2452_v10 = vpop.f32.mrf.mxu1  ;;  %11486 = vmatmul.mubr.msk.bf16.gmra.mxu1 %vm441_vm3, %v3204_v49  ;;  %11451 = vmatprep.mubr.msk.bf16.mxu0 %vm12796_vm2, %v17230_v47  ;;  %v14269_v31 = vld [vmem:[%s12888_s24 + $0x129] sm:$0xff] }
 0x21f   : > { %v11225_v37 = vpop.f32.mrf.mxu0  ;;  %11489 = vmatprep.mubr.msk.bf16.mxu1 %vm12796_vm2, %v17230_v47 }
 0x220   : > { %v11295_v17 = vpop.f32.mrf.mxu1  ;;  %v14221_v56 = vadd.f32 %v2194_v22, %v2060_v44  ;;  %v14277_v37 = vld [vmem:[%s12888_s24 + $0x148] sm:$0xff] }
 0x221   : > { %v2062_v43 = vpop.f32.mrf.mxu0 }
 0x222   : > { %v2063_v63 = vadd.f32 %v2062_v43, %v14004_v54  ;;  %v2455_v51 = vpop.f32.mrf.mxu1  ;;  %v14235_v54 = vld [vmem:[%s12888_s24 + $0x111] sm:$0xff] }
 0x223   : > { %v11226_v59 = vpop.f32.mrf.mxu0  ;;  %v14252_v41 = vpack.c.bf16 %v14238_v57, %v14235_v54 }
 0x224   : > { %v11296_v26 = vpop.f32.mrf.mxu1  ;;  %v14226_v13 = vadd.f32 %v2197_v36, %v2063_v63  ;;  %v14243_v36 = vld [vmem:[%s12888_s24 + $0x130] sm:$0xff] }
 0x225   : > { %v2067_v60 = vpop.f32.mrf.mxu0  ;;  %11452 = vmatmul.mubr.msk.bf16.gmra.mxu0 %vm441_vm3, %v14159_v19  ;;  %v3206_v55 = vpack.c.bf16 %v14246_v29, %v14243_v36 }
 0x226   : > { %v2068_v22 = vadd.f32 %v2067_v60, %v14014_v7  ;;  %v2460_v46 = vpop.f32.mrf.mxu1  ;;  %11490 = vmatmul.mubr.msk.bf16.gmra.mxu1 %vm441_vm3, %v3205_v61  ;;  %11455 = vmatprep.mubr.msk.bf16.mxu0 %vm12796_vm2, %v17230_v47 }
 0x227   : > { %v11229_v52 = vpop.f32.mrf.mxu0  ;;  %11493 = vmatprep.mubr.msk.bf16.mxu1 %vm12796_vm2, %v17230_v47 }
 0x228   : > { %v11299_v19 = vpop.f32.mrf.mxu1  ;;  %v14248_v7 = vadd.f32 %v2202_v28, %v2068_v22 }
 0x229   : > { %v2070_v3 = vpop.f32.mrf.mxu0 }
 0x22a   : > { %v2071_v15 = vadd.f32 %v2070_v3, %v14032_v12  ;;  %v2463_v48 = vpop.f32.mrf.mxu1  ;;  %v14266_v12 = vld [vmem:[%s12888_s24 + $0x121] sm:$0xff] }
 0x22b   : > { %v11230_v58 = vpop.f32.mrf.mxu0  ;;  %v14283_v63 = vpack.c.bf16 %v14269_v31, %v14266_v12 }
 0x22c   : > { %v11300_v38 = vpop.f32.mrf.mxu1  ;;  %v14257_v49 = vadd.f32 %v2205_v18, %v2071_v15  ;;  %v14274_v18 = vld [vmem:[%s12888_s24 + $0x140] sm:$0xff] }
 0x22d   : > { %v2303_v28 = vpop.f32.mrf.mxu0  ;;  %11456 = vmatmul.mubr.msk.bf16.gmra.mxu0 %vm441_vm3, %v14252_v41  ;;  %v3207_v26 = vpack.c.bf16 %v14277_v37, %v14274_v18  ;;  %v14300_v15 = vld [vmem:[%s12888_s24 + $0x139] sm:$0xff] }
 0x22e   : > { %v2358_v23 = vadd.f32 %v2303_v28, %v14103_v50  ;;  %v2468_v30 = vpop.f32.mrf.mxu1  ;;  %11494 = vmatmul.mubr.msk.bf16.gmra.mxu1 %vm441_vm3, %v3206_v55  ;;  %11459 = vmatprep.mubr.msk.bf16.mxu0 %vm12796_vm2, %v17230_v47 }
 0x22f   : > { %v11265_v44 = vpop.f32.mrf.mxu0  ;;  %11497 = vmatprep.mubr.msk.bf16.mxu1 %vm12796_vm2, %v17230_v47 }
 0x230   : > { %v11303_v17 = vpop.f32.mrf.mxu1  ;;  %v14279_v50 = vadd.f32 %v2452_v10, %v2358_v23 }
 0x231   : > { %v2306_v43 = vpop.f32.mrf.mxu0  ;;  %v3620_v17 = vpack.c.bf16 %v13903_v6, %v13878_v24  ;;  %v14329_v24 = vld [vmem:[%s12888_s24 + $0x149] sm:$0xff] }
 0x232   : > { %v2359_v61 = vadd.f32 %v2306_v43, %v14113_v20  ;;  %v2471_v59 = vpop.f32.mrf.mxu1  ;;  %v14297_v20 = vld [vmem:[%s12888_s24 + $0x131] sm:$0xff] }
 0x233   : > { %v11266_v60 = vpop.f32.mrf.mxu0  ;;  %v14311_v28 = vpack.c.bf16 %v14300_v15, %v14297_v20 }
 0x234   : > { %v11304_v22 = vpop.f32.mrf.mxu1  ;;  %v14288_v52 = vadd.f32 %v2455_v51, %v2359_v61 }
 0x235   : > { %v2311_v19 = vpop.f32.mrf.mxu0  ;;  %11460 = vmatmul.mubr.msk.bf16.gmra.mxu0 %vm441_vm3, %v14283_v63 }
 0x236   : > { %v2360_v10 = vadd.f32 %v2311_v19, %v14127_v33  ;;  %v2476_v3 = vpop.f32.mrf.mxu1  ;;  %11498 = vmatmul.mubr.msk.bf16.gmra.mxu1 %vm441_vm3, %v3207_v26  ;;  %11463 = vmatprep.mubr.msk.bf16.mxu0 %vm12796_vm2, %v17230_v47  ;;  %v9945_v33 = vld [vmem:[%s17201_s1 + $0xa] sm:$0x3] }
 0x237   : > { %v11269_v55 = vpop.f32.mrf.mxu0  ;;  %11533 = vmatprep.mubr.msk.bf16.mxu1 %vm12796_vm2, %v17230_v47 }
 0x238   : > { %v11307_v51 = vpop.f32.mrf.mxu1  ;;  %v14304_v58 = vadd.f32 %v2460_v46, %v2360_v10  ;;  %v3948_v46 = vand.u32 %v9945_v33, %v12869_v5 }
 0x239   : > { %v2314_v38 = vpop.f32.mrf.mxu0 }
 0x23a   : > { %v2361_v23 = vadd.f32 %v2314_v38, %v14137_v34  ;;  %v2479_v44 = vpop.f32.mrf.mxu1  ;;  %v14326_v34 = vld [vmem:[%s12888_s24 + $0x141] sm:$0xff]  ;;  %v3621_v38 = vpack.c.bf16 %v14194_v2, %v13906_v0 }
 0x23b   : > { %v11270_v43 = vpop.f32.mrf.mxu0  ;;  %v14338_v55 = vpack.c.bf16 %v14329_v24, %v14326_v34  ;;  %v9937_v0 = vld [vmem:[%s17201_s1 + $0x8] sm:$0x3] }
 0x23c   : > { %v11308_v61 = vpop.f32.mrf.mxu1  ;;  %v14317_v26 = vadd.f32 %v2463_v48, %v2361_v23 }
 0x23d   : > { %v2319_v60 = vpop.f32.mrf.mxu0  ;;  %11464 = vmatmul.mubr.msk.bf16.gmra.mxu0 %vm441_vm3, %v14311_v28 }
 0x23e   : > { %v2362_v22 = vadd.f32 %v2319_v60, %v14154_v45  ;;  %v2484_v19 = vpop.f32.mrf.mxu1  ;;  %11534 = vmatmul.mubr.msk.bf16.vlgmr.msra.gmra.mxu1 %vm441_vm3, %v3620_v17  ;;  %11467 = vmatprep.mubr.msk.bf16.mxu0 %vm12796_vm2, %v17230_v47 }
 0x23f   : > { %v11273_v6 = vpop.f32.mrf.mxu0  ;;  %11537 = vmatprep.mubr.msk.bf16.mxu1 %vm12796_vm2, %v17230_v47  ;;  %11592 = vmatpush3.bf16.msra.mxu1 %v3948_v46 }
 0x240   : > { %v11311_v48 = vpop.f32.mrf.mxu1  ;;  %v14333_v10 = vadd.f32 %v2468_v30, %v2362_v22  ;;  %11651 = vmatprep.subr.bf16.mxu1 %v17230_v47  ;;  %v3622_v6 = vpack.c.bf16 %v14216_v1, %v14197_v53 }
 0x241   : > { %v2322_v45 = vpop.f32.mrf.mxu0  ;;  %v3799_v48 = vand.u32 %v9937_v0, %v12869_v5 }
 0x242   : > { %v2363_v51 = vadd.f32 %v2322_v45, %v14162_v16  ;;  %v2487_v33 = vpop.f32.mrf.mxu1 }
 0x243   : > { %v11274_v23 = vpop.f32.mrf.mxu0 }
 0x244   : > { %v11312_v17 = vpop.f32.mrf.mxu1  ;;  %v14343_v43 = vadd.f32 %v2471_v59, %v2363_v51 }
 0x245   : > { %v2327_v46 = vpop.f32.mrf.mxu0  ;;  %11468 = vmatmul.mubr.msk.bf16.gmra.mxu0 %vm441_vm3, %v14338_v55 }
 0x246   : > { %v2364_v30 = vadd.f32 %v2327_v46, %v14178_v4  ;;  %v2492_v61 = vpop.f32.mrf.mxu1  ;;  %11538 = vmatmul.mubr.msk.bf16.gmra.mxu1 %vm441_vm3, %v3621_v38  ;;  %11503 = vmatprep.mubr.msk.bf16.mxu0 %vm12796_vm2, %v17230_v47  ;;  %v3623_v46 = vpack.c.bf16 %v14243_v36, %v14219_v21 }
 0x247   : > { %v11277_v16 = vpop.f32.mrf.mxu0  ;;  %11541 = vmatprep.mubr.msk.bf16.mxu1 %vm12796_vm2, %v17230_v47 }
 0x248   : > { %v11315_v2 = vpop.f32.mrf.mxu1  ;;  %v14356_v59 = vadd.f32 %v2476_v3, %v2364_v30 }
 0x249   : > { %v2330_v60 = vpop.f32.mrf.mxu0 }
 0x24a   : > { %v2365_v4 = vadd.f32 %v2330_v60, %v14182_v32  ;;  %v2495_v22 = vpop.f32.mrf.mxu1 }
 0x24b   : > { %v11278_v45 = vpop.f32.mrf.mxu0 }
 0x24c   : > { %v11316_v51 = vpop.f32.mrf.mxu1  ;;  %v14362_v38 = vadd.f32 %v2479_v44, %v2365_v4 }
 0x24d   : > { %v2335_v23 = vpop.f32.mrf.mxu0  ;;  %11504 = vmatmul.mubr.msk.bf16.vlgmr.msra.gmra.mxu0 %vm441_vm3, %v14055_v8 }
 0x24e   : > { %v2366_v3 = vadd.f32 %v2335_v23, %v14200_v11  ;;  %v2500_v17 = vpop.f32.mrf.mxu1  ;;  %11542 = vmatmul.mubr.msk.bf16.gmra.mxu1 %vm441_vm3, %v3622_v6  ;;  %11562 = vmatpush3.bf16.msra.mxu0 %v3799_v48 }
 0x24f   : > { %v11281_v32 = vpop.f32.mrf.mxu0  ;;  %11507 = vmatprep.mubr.msk.bf16.mxu0 %vm12796_vm2, %v17230_v47  ;;  %11545 = vmatprep.mubr.msk.bf16.mxu1 %vm12796_vm2, %v17230_v47 }
 0x250   : > { %v11319_v53 = vpop.f32.mrf.mxu1  ;;  %11621 = vmatprep.subr.bf16.mxu0 %v17230_v47  ;;  %v14373_v1 = vadd.f32 %v2484_v19, %v2366_v3  ;;  %v14405_v3 = vld [vmem:[%s12888_s24 + $0x11a] sm:$0xff] }
 0x251   : > { %v2338_v44 = vpop.f32.mrf.mxu0 }
 0x252   : > { %v2367_v8 = vadd.f32 %v2338_v44, %v14206_v40  ;;  %v2503_v11 = vpop.f32.mrf.mxu1 }
 0x253   : > { %v11282_v30 = vpop.f32.mrf.mxu0 }
 0x254   : > { %v11320_v16 = vpop.f32.mrf.mxu1  ;;  %v14378_v0 = vadd.f32 %v2487_v33, %v2367_v8  ;;  %v3624_v33 = vpack.c.bf16 %v14274_v18, %v14246_v29  ;;  %v14410_v18 = vld [vmem:[%s12888_s24 + $0x150] sm:$0xff] }
 0x255   : > { %v2343_v2 = vpop.f32.mrf.mxu0  ;;  %11508 = vmatmul.mubr.msk.bf16.gmra.mxu0 %vm441_vm3, %v14082_v14  ;;  %v3625_v8 = vpack.c.bf16 %v14410_v18, %v14277_v37 }
 0x256   : > { %v2368_v60 = vadd.f32 %v2343_v2, %v14221_v56  ;;  %v2750_v4 = vpop.f32.mrf.mxu1  ;;  %11546 = vmatmul.mubr.msk.bf16.gmra.mxu1 %vm441_vm3, %v3623_v46  ;;  %11511 = vmatprep.mubr.msk.bf16.mxu0 %vm12796_vm2, %v17230_v47 }
 0x257   : > { %v11285_v40 = vpop.f32.mrf.mxu0  ;;  %11549 = vmatprep.mubr.msk.bf16.mxu1 %vm12796_vm2, %v17230_v47 }
 0x258   : > { %v11355_v21 = vpop.f32.mrf.mxu1  ;;  %v14388_v36 = vadd.f32 %v2492_v61, %v2368_v60  ;;  %v14430_v40 = vld [vmem:[%s12888_s24 + $0x12a] sm:$0xff] }
 0x259   : > { %v2346_v19 = vpop.f32.mrf.mxu0  ;;  %v14438_v21 = vld [vmem:[%s12888_s24 + $0x160] sm:$0xff] }
 0x25a   : > { %v2369_v14 = vadd.f32 %v2346_v19, %v14226_v13  ;;  %v2753_v56 = vpop.f32.mrf.mxu1  ;;  %v14402_v13 = vld [vmem:[%s12888_s24 + $0x112] sm:$0xff] }
 0x25b   : > { %v11286_v6 = vpop.f32.mrf.mxu0  ;;  %v3474_v32 = vpack.c.bf16 %v14405_v3, %v14402_v13 }
 0x25c   : > { %v11356_v48 = vpop.f32.mrf.mxu1  ;;  %v14393_v45 = vadd.f32 %v2495_v22, %v2369_v14 }
 0x25d   : > { %v2351_v51 = vpop.f32.mrf.mxu0  ;;  %11512 = vmatmul.mubr.msk.bf16.gmra.mxu0 %vm441_vm3, %v14110_v35 }
 0x25e   : > { %v2370_v23 = vadd.f32 %v2351_v51, %v14248_v7  ;;  %v2758_v61 = vpop.f32.mrf.mxu1  ;;  %11550 = vmatmul.mubr.msk.bf16.gmra.mxu1 %vm441_vm3, %v3624_v33  ;;  %11515 = vmatprep.mubr.msk.bf16.mxu0 %vm12796_vm2, %v17230_v47 }
 0x25f   : > { %v11289_v29 = vpop.f32.mrf.mxu0  ;;  %11553 = vmatprep.mubr.msk.bf16.mxu1 %vm12796_vm2, %v17230_v47 }
 0x260   : > { %v11359_v22 = vpop.f32.mrf.mxu1  ;;  %v14412_v35 = vadd.f32 %v2500_v17, %v2370_v23 }
 0x261   : > { %v2354_v7 = vpop.f32.mrf.mxu0 }
 0x262   : > { %v2371_v53 = vadd.f32 %v2354_v7, %v14257_v49  ;;  %v2761_v44 = vpop.f32.mrf.mxu1  ;;  %v14427_v49 = vld [vmem:[%s12888_s24 + $0x122] sm:$0xff] }
 0x263   : > { %v11290_v46 = vpop.f32.mrf.mxu0  ;;  %v3475_v33 = vpack.c.bf16 %v14430_v40, %v14427_v49 }
 0x264   : > { %v11360_v30 = vpop.f32.mrf.mxu1  ;;  %v14419_v16 = vadd.f32 %v2503_v11, %v2371_v53  ;;  %v14435_v11 = vld [vmem:[%s12888_s24 + $0x158] sm:$0xff] }
 0x265   : > { %v2601_v2 = vpop.f32.mrf.mxu0  ;;  %11516 = vmatmul.mubr.msk.bf16.gmra.mxu0 %vm441_vm3, %v3474_v32  ;;  %v3626_v51 = vpack.c.bf16 %v14438_v21, %v14435_v11  ;;  %v14458_v53 = vld [vmem:[%s12888_s24 + $0x13a] sm:$0xff] }
 0x266   : > { %v2656_v17 = vadd.f32 %v2601_v2, %v14279_v50  ;;  %v2766_v60 = vpop.f32.mrf.mxu1  ;;  %11554 = vmatmul.mubr.msk.bf16.gmra.mxu1 %vm441_vm3, %v3625_v8  ;;  %11519 = vmatprep.mubr.msk.bf16.mxu0 %vm12796_vm2, %v17230_v47 }
 0x267   : > { %v11325_v37 = vpop.f32.mrf.mxu0  ;;  %11557 = vmatprep.mubr.msk.bf16.mxu1 %vm12796_vm2, %v17230_v47 }
 0x268   : > { %v11363_v19 = vpop.f32.mrf.mxu1  ;;  %v14440_v50 = vadd.f32 %v2750_v4, %v2656_v17 }
 0x269   : > { %v2604_v14 = vpop.f32.mrf.mxu0  ;;  %v3918_v19 = vpack.c.bf16 %v14097_v9, %v14073_v39  ;;  %v14484_v39 = vld [vmem:[%s12888_s24 + $0x14a] sm:$0xff] }
 0x26a   : > { %v2657_v6 = vadd.f32 %v2604_v14, %v14288_v52  ;;  %v2769_v48 = vpop.f32.mrf.mxu1  ;;  %v14455_v52 = vld [vmem:[%s12888_s24 + $0x132] sm:$0xff] }
 0x26b   : > { %v11326_v23 = vpop.f32.mrf.mxu0  ;;  %v3476_v2 = vpack.c.bf16 %v14458_v53, %v14455_v52 }
 0x26c   : > { %v11364_v29 = vpop.f32.mrf.mxu1  ;;  %v14447_v22 = vadd.f32 %v2753_v56, %v2657_v6 }
 0x26d   : > { %v2609_v7 = vpop.f32.mrf.mxu0  ;;  %11520 = vmatmul.mubr.msk.bf16.gmra.mxu0 %vm441_vm3, %v3475_v33 }
 0x26e   : > { %v2658_v4 = vadd.f32 %v2609_v7, %v14304_v58  ;;  %v2774_v32 = vpop.f32.mrf.mxu1  ;;  %11558 = vmatmul.mubr.msk.bf16.gmra.mxu1 %vm441_vm3, %v3626_v51  ;;  %11523 = vmatprep.mubr.msk.bf16.mxu0 %vm12796_vm2, %v17230_v47  ;;  %v9961_v58 = vld [vmem:[%s17201_s1 + $0xe] sm:$0x3] }
 0x26f   : > { %v11329_v8 = vpop.f32.mrf.mxu0  ;;  %11593 = vmatprep.mubr.msk.bf16.mxu1 %vm12796_vm2, %v17230_v47 }
 0x270   : > { %v11367_v56 = vpop.f32.mrf.mxu1  ;;  %v14462_v46 = vadd.f32 %v2758_v61, %v2658_v4  ;;  %v4246_v61 = vand.u32 %v9961_v58, %v12869_v5  ;;  %v3919_v58 = vpack.c.bf16 %v14402_v13, %v14100_v27  ;;  %v9953_v27 = vld [vmem:[%s17201_s1 + $0xc] sm:$0x3] }
 0x271   : > { %v2612_v30 = vpop.f32.mrf.mxu0 }
 0x272   : > { %v2659_v17 = vadd.f32 %v2612_v30, %v14317_v26  ;;  %v2777_v37 = vpop.f32.mrf.mxu1  ;;  %v14481_v26 = vld [vmem:[%s12888_s24 + $0x142] sm:$0xff] }
 0x273   : > { %v11330_v14 = vpop.f32.mrf.mxu0  ;;  %v3477_v4 = vpack.c.bf16 %v14484_v39, %v14481_v26 }
 0x274   : > { %v11368_v33 = vpop.f32.mrf.mxu1  ;;  %v14473_v6 = vadd.f32 %v2761_v44, %v2659_v17 }
 0x275   : > { %v2617_v51 = vpop.f32.mrf.mxu0  ;;  %11524 = vmatmul.mubr.msk.bf16.gmra.mxu0 %vm441_vm3, %v3476_v2 }
 0x276   : > { %v2660_v23 = vadd.f32 %v2617_v51, %v14333_v10  ;;  %v2782_v29 = vpop.f32.mrf.mxu1  ;;  %11594 = vmatmul.mubr.msk.bf16.vlgmr.msra.gmra.mxu1 %vm441_vm3, %v3918_v19  ;;  %11527 = vmatprep.mubr.msk.bf16.mxu0 %vm12796_vm2, %v17230_v47 }
 0x277   : > { %v11333_v9 = vpop.f32.mrf.mxu0  ;;  %11597 = vmatprep.mubr.msk.bf16.mxu1 %vm12796_vm2, %v17230_v47  ;;  %11652 = vmatpush3.bf16.msra.mxu1 %v4246_v61 }
 0x278   : > { %v11371_v44 = vpop.f32.mrf.mxu1  ;;  %v14488_v7 = vadd.f32 %v2766_v60, %v2660_v23  ;;  %11711 = vmatprep.subr.bf16.mxu1 %v17230_v47  ;;  %v3920_v23 = vpack.c.bf16 %v14427_v49, %v14405_v3  ;;  %v4097_v9 = vand.u32 %v9953_v27, %v12869_v5 }
 0x279   : > { %v2620_v10 = vpop.f32.mrf.mxu0 }
 0x27a   : > { %v2661_v8 = vadd.f32 %v2620_v10, %v14343_v43  ;;  %v2785_v56 = vpop.f32.mrf.mxu1 }
 0x27b   : > { %v11334_v30 = vpop.f32.mrf.mxu0 }
 0x27c   : > { %v11372_v2 = vpop.f32.mrf.mxu1  ;;  %v14496_v17 = vadd.f32 %v2769_v48, %v2661_v8  ;;  %v3921_v30 = vpack.c.bf16 %v14455_v52, %v14430_v40  ;;  %v3771_v52 = vpack.c.bf16 %v14266_v12, %v14238_v57  ;;  %v14559_v12 = vld [vmem:[%s12888_s24 + $0x152] sm:$0xff] }
 0x27d   : > { %v2625_v19 = vpop.f32.mrf.mxu0  ;;  %11528 = vmatmul.mubr.msk.bf16.gmra.mxu0 %vm441_vm3, %v3477_v4 }
 0x27e   : > { %v2662_v60 = vadd.f32 %v2625_v19, %v14356_v59  ;;  %v2790_v14 = vpop.f32.mrf.mxu1  ;;  %11598 = vmatmul.mubr.msk.bf16.gmra.mxu1 %vm441_vm3, %v3919_v58  ;;  %11563 = vmatprep.mubr.msk.bf16.mxu0 %vm12796_vm2, %v17230_v47  ;;  %v3769_v59 = vpack.c.bf16 %v14146_v62, %v14122_v25 }
 0x27f   : > { %v11337_v43 = vpop.f32.mrf.mxu0  ;;  %11601 = vmatprep.mubr.msk.bf16.mxu1 %vm12796_vm2, %v17230_v47 }
 0x280   : > { %v11375_v13 = vpop.f32.mrf.mxu1  ;;  %v14508_v48 = vadd.f32 %v2774_v32, %v2662_v60 }
 0x281   : > { %v2628_v61 = vpop.f32.mrf.mxu0  ;;  %v3922_v13 = vpack.c.bf16 %v14481_v26, %v14458_v53 }
 0x282   : > { %v2663_v33 = vadd.f32 %v2628_v61, %v14362_v38  ;;  %v2793_v51 = vpop.f32.mrf.mxu1 }
 0x283   : > { %v11338_v44 = vpop.f32.mrf.mxu0 }
 0x284   : > { %v11376_v10 = vpop.f32.mrf.mxu1  ;;  %v14516_v4 = vadd.f32 %v2777_v37, %v2663_v33 }
 0x285   : > { %v2633_v8 = vpop.f32.mrf.mxu0  ;;  %11564 = vmatmul.mubr.msk.bf16.vlgmr.msra.gmra.mxu0 %vm441_vm3, %v3769_v59  ;;  %v3923_v10 = vpack.c.bf16 %v14559_v12, %v14484_v39 }
 0x286   : > { %v2664_v32 = vadd.f32 %v2633_v8, %v14373_v1  ;;  %v2798_v58 = vpop.f32.mrf.mxu1  ;;  %11602 = vmatmul.mubr.msk.bf16.gmra.mxu1 %vm441_vm3, %v3920_v23  ;;  %11622 = vmatpush3.bf16.msra.mxu0 %v4097_v9  ;;  %v3770_v1 = vpack.c.bf16 %v14235_v54, %v14149_v42 }
 0x287   : > { %v11341_v25 = vpop.f32.mrf.mxu0  ;;  %11567 = vmatprep.mubr.msk.bf16.mxu0 %vm12796_vm2, %v17230_v47  ;;  %11605 = vmatprep.mubr.msk.bf16.mxu1 %vm12796_vm2, %v17230_v47 }
 0x288   : > { %v11379_v62 = vpop.f32.mrf.mxu1  ;;  %11681 = vmatprep.subr.bf16.mxu0 %v17230_v47  ;;  %v14526_v38 = vadd.f32 %v2782_v29, %v2664_v32 }
 0x289   : > { %v2636_v3 = vpop.f32.mrf.mxu0 }
 0x28a   : > { %v2665_v49 = vadd.f32 %v2636_v3, %v14378_v0  ;;  %v2801_v37 = vpop.f32.mrf.mxu1 }
 0x28b   : > { %v11342_v2 = vpop.f32.mrf.mxu0 }
 0x28c   : > { %v11380_v19 = vpop.f32.mrf.mxu1  ;;  %v14533_v60 = vadd.f32 %v2785_v56, %v2665_v49 }
 0x28d   : > { %v2641_v43 = vpop.f32.mrf.mxu0  ;;  %11568 = vmatmul.mubr.msk.bf16.gmra.mxu0 %vm441_vm3, %v3770_v1 }
 0x28e   : > { %v2666_v29 = vadd.f32 %v2641_v43, %v14388_v36  ;;  %v3048_v27 = vpop.f32.mrf.mxu1  ;;  %11606 = vmatmul.mubr.msk.bf16.gmra.mxu1 %vm441_vm3, %v3921_v30  ;;  %11571 = vmatprep.mubr.msk.bf16.mxu0 %vm12796_vm2, %v17230_v47 }
 0x28f   : > { %v11345_v42 = vpop.f32.mrf.mxu0  ;;  %11609 = vmatprep.mubr.msk.bf16.mxu1 %vm12796_vm2, %v17230_v47 }
 0x290   : > { %v11415_v54 = vpop.f32.mrf.mxu1  ;;  %v14542_v0 = vadd.f32 %v2790_v14, %v2666_v29 }
 0x291   : > { %v2644_v40 = vpop.f32.mrf.mxu0 }
 0x292   : > { %v2667_v36 = vadd.f32 %v2644_v40, %v14393_v45  ;;  %v3051_v56 = vpop.f32.mrf.mxu1 }
 0x293   : > { %v11346_v61 = vpop.f32.mrf.mxu0 }
 0x294   : > { %v11416_v59 = vpop.f32.mrf.mxu1  ;;  %v14549_v33 = vadd.f32 %v2793_v51, %v2667_v36 }
 0x295   : > { %v2649_v23 = vpop.f32.mrf.mxu0  ;;  %11572 = vmatmul.mubr.msk.bf16.gmra.mxu0 %vm441_vm3, %v3771_v52 }
 0x296   : > { %v2668_v14 = vadd.f32 %v2649_v23, %v14412_v35  ;;  %v3056_v9 = vpop.f32.mrf.mxu1  ;;  %11610 = vmatmul.mubr.msk.bf16.gmra.mxu1 %vm441_vm3, %v3922_v13  ;;  %11575 = vmatprep.mubr.msk.bf16.mxu0 %vm12796_vm2, %v17230_v47  ;;  %v3772_v35 = vpack.c.bf16 %v14297_v20, %v14269_v31  ;;  %v14580_v20 = vld [vmem:[%s12888_s24 + $0x15a] sm:$0xff]  ;;  %v14613_v13 = vld [vmem:[%s12888_s24 + $0x151] sm:$0xff] }
 0x297   : > { %v11349_v57 = vpop.f32.mrf.mxu0  ;;  %11613 = vmatprep.mubr.msk.bf16.mxu1 %vm12796_vm2, %v17230_v47 }
 0x298   : > { %v11419_v45 = vpop.f32.mrf.mxu1  ;;  %v14561_v53 = vadd.f32 %v2798_v58, %v2668_v14  ;;  %v3774_v57 = vpack.c.bf16 %v14613_v13, %v14329_v24 }
 0x299   : > { %v2652_v26 = vpop.f32.mrf.mxu0  ;;  %v7059_v45 = vld [vmem:[#allocation2 + $0x58] sm:$0x3f] }
 0x29a   : > { %v2669_v51 = vadd.f32 %v2652_v26, %v14419_v16  ;;  %v3059_v44 = vpop.f32.mrf.mxu1  ;;  %v14583_v16 = vld [vmem:[%s12888_s24 + $0x162] sm:$0xff] }
 0x29b   : > { %v11350_v8 = vpop.f32.mrf.mxu0  ;;  %v3924_v43 = vpack.c.bf16 %v14583_v16, %v14580_v20 }
 0x29c   : > { %v11420_v32 = vpop.f32.mrf.mxu1  ;;  %v14568_v25 = vadd.f32 %v2801_v37, %v2669_v51  ;;  %v14590_v37 = vld [vmem:[%s17202_s2] ss:$0 sm:$0xff] }
 0x29d   : > { %v2899_v62 = vpop.f32.mrf.mxu0  ;;  %11576 = vmatmul.mubr.msk.bf16.gmra.mxu0 %vm441_vm3, %v3772_v35  ;;  %v7056_v32 = vld [vmem:[#allocation2 + $0x40] sm:$0x3f] }
 0x29e   : > { %v2954_v58 = vadd.f32 %v2899_v62, %v14440_v50  ;;  %v14572_v3 = vpop.f32.mrf.mxu1  ;;  %11614 = vmatmul.mubr.msk.bf16.gmra.mxu1 %vm441_vm3, %v3923_v10  ;;  %11579 = vmatprep.mubr.msk.bf16.mxu0 %vm12796_vm2, %v17230_v47  ;;  %v3773_v50 = vpack.c.bf16 %v14326_v34, %v14300_v15  ;;  %v14601_v15 = vld [vmem:[%s17203_s3] ss:$0 sm:$0xff]  ;;  %v7062_v24 = vmax.f32 %v7056_v32, %v7059_v45 }
 0x29f   : > { %v11385_v31 = vpop.f32.mrf.mxu0  ;;  %11617 = vmatprep.mubr.msk.bf16.mxu1 %vm12796_vm2, %v17230_v47 }
 0x2a0   : > { %v3103_v39 = vadd.f32 %v3048_v27, %v2954_v58  ;;  %v11423_v1 = vpop.f32.mrf.mxu1 }
 0x2a1   : > { %v2902_v49 = vpop.f32.mrf.mxu0 }
 0x2a2   : > { %v3117_v30 = vadd.f32 %v14590_v37, %v3103_v39  ;;  %v2955_v2 = vadd.f32 %v2902_v49, %v14447_v22  ;;  %v14594_v19 = vpop.f32.mrf.mxu1 }
 0x2a3   : > { %v11386_v29 = vpop.f32.mrf.mxu0 }
 0x2a4   : > { %vm3131_vm4 = vcmp.gt.f32.partialorder %v3117_v30, 0.0  ;;  %v3145_v34 = vmul.f32 %v14601_v15, %v3117_v30  ;;  %v3104_v27 = vadd.f32 %v3051_v56, %v2955_v2  ;;  %v11424_v42 = vpop.f32.mrf.mxu1  ;;  %v14644_v2 = vld [vmem:[%s12888_s24 + $0x161] sm:$0xff] }
 0x2a5   : > { %v2907_v54 = vpop.f32.mrf.mxu0  ;;  %11580 = vmatmul.mubr.msk.bf16.gmra.mxu0 %vm441_vm3, %v3773_v50 }
 0x2a6   : > { %v3159_v22 = vsel %vm3131_vm4, %v3117_v30, %v3145_v34  ;;  %v3118_v40 = vadd.f32 %v14590_v37, %v3104_v27  ;;  %v2956_v52 = vadd.f32 %v2907_v54, %v14462_v46  ;;  %v14607_v36 = vpop.f32.mrf.mxu1  ;;  %11618 = vmatmul.mubr.msk.bf16.gmra.mxu1 %vm441_vm3, %v3924_v43  ;;  %11583 = vmatprep.mubr.msk.bf16.mxu0 %vm12796_vm2, %v17230_v47  ;;  %v9977_v46 = vld [vmem:[%s17201_s1 + $0x2] sm:$0x3] }
 0x2a7   : > { %3173 = vst [vmem:[#allocation2 + $0x70] sm:$0xff] %v3159_v22  ;;  %v11389_v56 = vpop.f32.mrf.mxu0  ;;  %11653 = vmatprep.mubr.msk.bf16.mxu1 %vm12796_vm2, %v17230_v47 }
 0x2a8   : > { %vm3132_vm5 = vcmp.gt.f32.partialorder %v3118_v40, 0.0  ;;  %v3146_v61 = vmul.f32 %v14601_v15, %v3118_v40  ;;  %v3105_v59 = vadd.f32 %v3056_v9, %v2956_v52  ;;  %v11427_v23 = vpop.f32.mrf.mxu1  ;;  %v4636_v9 = vand.u32 %v9977_v46, %v12869_v5  ;;  %v7253_v46 = vld [vmem:[#allocation3 + $0x19] ss:$2 sm:$0xff] }
 0x2a9   : > { %v2910_v14 = vpop.f32.mrf.mxu0  ;;  %v7249_v23 = vld [vmem:[#allocation3 + $0x18] ss:$2 sm:$0xff] }
 0x2aa   : > { %v3160_v26 = vsel %vm3132_vm5, %v3118_v40, %v3146_v61  ;;  %v3119_v35 = vadd.f32 %v14590_v37, %v3105_v59  ;;  %v2957_v51 = vadd.f32 %v2910_v14, %v14473_v6  ;;  %v14625_v10 = vpop.f32.mrf.mxu1  ;;  %v12776_v14 = vld [vmem:[#allocation2 + $0x60] sm:$0xff] }
 0x2ab   : > { %v11390_v8 = vpop.f32.mrf.mxu0 }
 0x2ac   : > { %vm3133_vm6 = vcmp.gt.f32.partialorder %v3119_v35, 0.0  ;;  %v3147_v62 = vmul.f32 %v14601_v15, %v3119_v35  ;;  %v3106_v58 = vadd.f32 %v3059_v44, %v2957_v51  ;;  %v11428_v31 = vpop.f32.mrf.mxu1  ;;  %v14641_v44 = vld [vmem:[%s12888_s24 + $0x159] sm:$0xff] }
 0x2ad   : > { %v2915_v39 = vpop.f32.mrf.mxu0  ;;  %11584 = vmatmul.mubr.msk.bf16.gmra.mxu0 %vm441_vm3, %v3774_v57  ;;  %v3775_v42 = vpack.c.bf16 %v14644_v2, %v14641_v44  ;;  %v7078_v57 = vmax.f32 %v12776_v14, %v3160_v26  ;;  %v9969_v26 = vld [vmem:[%s17201_s1 + $0x10] sm:$0x3] }
 0x2ae   : > { %v7065_v1 = vld [vmem:[#allocation2 + $0x70] sm:$0x3f]  ;;  %v14630_v49 = vsel %vm3133_vm6, %v3119_v35, %v3147_v62  ;;  %v3120_v6 = vadd.f32 %v14590_v37, %v3106_v58  ;;  %v2958_v50 = vadd.f32 %v2915_v39, %v14488_v7  ;;  %v14634_v30 = vpop.f32.mrf.mxu1  ;;  %11654 = vmatmul.mubr.msk.bf16.vlgmr.msra.gmra.mxu1 %vm441_vm3, %v14252_v41  ;;  %11587 = vmatprep.mubr.msk.bf16.mxu0 %vm12796_vm2, %v17230_v47 }
 0x2af   : > { %v7068_v43 = vmax.f32 %v7062_v24, %v7065_v1  ;;  %v11393_v29 = vpop.f32.mrf.mxu0  ;;  %11657 = vmatprep.mubr.msk.bf16.mxu1 %vm12796_vm2, %v17230_v47  ;;  %11712 = vmatpush3.bf16.msra.mxu1 %v4636_v9  ;;  %v4054_v9 = vld [vmem:[%s12888_s24 + $0x118] sm:$0xff]  ;;  %v12777_v1 = vld [vmem:[#allocation2 + $0x68] sm:$0xff] }
 0x2b0   : > { %vm3134_vm7 = vcmp.gt.f32.partialorder %v3120_v6, 0.0  ;;  %v3148_v7 = vmul.f32 %v14601_v15, %v3120_v6  ;;  %v3107_v34 = vadd.f32 %v14572_v3, %v2958_v50  ;;  %v11431_v27 = vpop.f32.mrf.mxu1  ;;  %11771 = vmatprep.subr.bf16.mxu1 %v17230_v47  ;;  %v4395_v29 = vand.u32 %v9969_v26, %v12869_v5 }
 0x2b1   : > { %7071 = vst [vmem:[#allocation3 + $0x28] sm:$0x3f] %v7068_v43  ;;  %v2918_v41 = vpop.f32.mrf.mxu0 }
 0x2b2   : > { %v3162_v54 = vsel %vm3134_vm7, %v3120_v6, %v3148_v7  ;;  %v3121_v22 = vadd.f32 %v14590_v37, %v3107_v34  ;;  %v2959_v40 = vadd.f32 %v2918_v41, %v14496_v17  ;;  %v14655_v52 = vpop.f32.mrf.mxu1  ;;  %v7079_v6 = vmax.f32 %v12777_v1, %v14630_v49 }
 0x2b3   : > { %3176 = vst [vmem:[#allocation2 + $0x88] sm:$0xff] %v3162_v54  ;;  %v11394_v56 = vpop.f32.mrf.mxu0 }
 0x2b4   : > { %vm3135_vm8 = vcmp.gt.f32.partialorder %v3121_v22, 0.0  ;;  %v3149_v3 = vmul.f32 %v14601_v15, %v3121_v22  ;;  %v3108_v61 = vadd.f32 %v14594_v19, %v2959_v40  ;;  %v11432_v59 = vpop.f32.mrf.mxu1  ;;  %v4053_v19 = vld [vmem:[%s12888_s24 + $0x110] sm:$0xff] }
 0x2b5   : > { %v2923_v45 = vpop.f32.mrf.mxu0  ;;  %11588 = vmatmul.mubr.msk.bf16.gmra.mxu0 %vm441_vm3, %v3775_v42  ;;  %v4067_v43 = vpack.c.bf16 %v4054_v9, %v4053_v19 }
 0x2b6   : > { %v14660_v17 = vsel %vm3135_vm8, %v3121_v22, %v3149_v3  ;;  %v3122_v35 = vadd.f32 %v14590_v37, %v3108_v61  ;;  %v2960_v51 = vadd.f32 %v2923_v45, %v14508_v48  ;;  %v14664_v8 = vpop.f32.mrf.mxu1  ;;  %11658 = vmatmul.mubr.msk.bf16.gmra.mxu1 %vm441_vm3, %v14283_v63  ;;  %11623 = vmatprep.mubr.msk.bf16.mxu0 %vm12796_vm2, %v17230_v47  ;;  %v4055_v45 = vld [vmem:[%s12888_s24 + $0x120] sm:$0xff] }
 0x2b7   : > { %v7084_v32 = vmax.f32 %v7078_v57, %v14660_v17  ;;  %v11397_v62 = vpop.f32.mrf.mxu0  ;;  %11661 = vmatprep.mubr.msk.bf16.mxu1 %vm12796_vm2, %v17230_v47  ;;  %v7260_v48 = vmax.f32 %v7249_v23, %v7253_v46 }
 0x2b8   : > { %vm3136_vm9 = vcmp.gt.f32.partialorder %v3122_v35, 0.0  ;;  %v3150_v58 = vmul.f32 %v14601_v15, %v3122_v35  ;;  %v3109_v63 = vadd.f32 %v14607_v36, %v2960_v51  ;;  %v11435_v31 = vpop.f32.mrf.mxu1  ;;  %v7257_v24 = vld [vmem:[#allocation3 + $0x1a] ss:$2 sm:$0xff]  ;;  %v7255_v34 = vld [vmem:[#allocation3 + $0x29] ss:$2 sm:$0x7] }
 0x2b9   : > { %v7251_v39 = vld [vmem:[#allocation3 + $0x28] ss:$2 sm:$0x7]  ;;  %7087 = vst [vmem:[#allocation3 + $0x30] sm:$0xff] %v7084_v32  ;;  %v2926_v50 = vpop.f32.mrf.mxu0  ;;  %v7262_v7 = vmax.f32 %v7260_v48, %v7257_v24  ;;  %v7074_v24 = vld [vmem:[#allocation2 + $0x70] sm:$0x3f] }
 0x2ba   : > { %v14682_v27 = vsel %vm3136_vm9, %v3122_v35, %v3150_v58  ;;  %v3123_v41 = vadd.f32 %v14590_v37, %v3109_v63  ;;  %v2961_v42 = vadd.f32 %v2926_v50, %v14516_v4  ;;  %v14686_v36 = vpop.f32.mrf.mxu1  ;;  %v7261_v54 = vmax.f32 %v7251_v39, %v7255_v34  ;;  %v7259_v61 = vld [vmem:[#allocation3 + $0x2a] ss:$2 sm:$0x7]  ;;  %v7077_v26 = vld [vmem:[#allocation2 + $0x88] sm:$0x3f] }
 0x2bb   : > { %v7085_v22 = vmax.f32 %v7079_v6, %v14682_v27  ;;  %v11398_v40 = vpop.f32.mrf.mxu0  ;;  %7264 = vst [vmem:[#allocation4 + $0xb] sm:$0xff] %v7262_v7  ;;  %v7080_v6 = vmax.f32 %v7074_v24, %v7077_v26  ;;  %v4058_v34 = vld [vmem:[%s12888_s24 + $0x138] sm:$0xff] }
 0x2bc   : > { %vm3137_vm10 = vcmp.gt.f32.partialorder %v3123_v41, 0.0  ;;  %v3151_v49 = vmul.f32 %v14601_v15, %v3123_v41  ;;  %v3110_v56 = vadd.f32 %v14625_v10, %v2961_v42  ;;  %v11436_v3 = vpop.f32.mrf.mxu1  ;;  %v7263_v4 = vmax.f32 %v7261_v54, %v7259_v61  ;;  %v4056_v10 = vld [vmem:[%s12888_s24 + $0x128] sm:$0xff] }
 0x2bd   : > { %7088 = vst [vmem:[#allocation3 + $0x38] sm:$0xff] %v7085_v22  ;;  %v2931_v59 = vpop.f32.mrf.mxu0  ;;  %11624 = vmatmul.mubr.msk.bf16.vlgmr.msra.gmra.mxu0 %vm441_vm3, %v4067_v43  ;;  %v4068_v9 = vpack.c.bf16 %v4056_v10, %v4055_v45  ;;  %v4059_v45 = vld [vmem:[%s12888_s24 + $0x140] sm:$0xff] }
 0x2be   : > { %v3165_v23 = vsel %vm3137_vm10, %v3123_v41, %v3151_v49  ;;  %v3124_v46 = vadd.f32 %v14590_v37, %v3110_v56  ;;  %v2962_v14 = vadd.f32 %v2931_v59, %v14526_v38  ;;  %v14694_v57 = vpop.f32.mrf.mxu1  ;;  %11662 = vmatmul.mubr.msk.bf16.gmra.mxu1 %vm441_vm3, %v14311_v28  ;;  %11682 = vmatpush3.bf16.msra.mxu0 %v4395_v29 }
 0x2bf   : > { %3179 = vst [vmem:[#allocation2 + $0xa0] sm:$0xff] %v3165_v23  ;;  %v11401_v35 = vpop.f32.mrf.mxu0  ;;  %11627 = vmatprep.mubr.msk.bf16.mxu0 %vm12796_vm2, %v17230_v47  ;;  %11665 = vmatprep.mubr.msk.bf16.mxu1 %vm12796_vm2, %v17230_v47  ;;  %7265 = vst [vmem:[#allocation4 + $0x13] sm:$0x7] %v7263_v4  ;;  %v14739_v59 = vpack.c.bf16 %v14641_v44, %v14613_v13 }
 0x2c0   : > { %vm3138_vm11 = vcmp.gt.f32.partialorder %v3124_v46, 0.0  ;;  %v3152_v38 = vmul.f32 %v14601_v15, %v3124_v46  ;;  %v3111_v51 = vadd.f32 %v14634_v30, %v2962_v14  ;;  %v11439_v19 = vpop.f32.mrf.mxu1  ;;  %11741 = vmatprep.subr.bf16.mxu0 %v17230_v47 }
 0x2c1   : > { %v2934_v28 = vpop.f32.mrf.mxu0 }
 0x2c2   : > { %v3166_v32 = vsel %vm3138_vm11, %v3124_v46, %v3152_v38  ;;  %v3125_v62 = vadd.f32 %v14590_v37, %v3111_v51  ;;  %v2963_v48 = vadd.f32 %v2934_v28, %v14533_v60  ;;  %v14709_v58 = vpop.f32.mrf.mxu1 }
 0x2c3   : > { %v7096_v63 = vmax.f32 %v14660_v17, %v3166_v32  ;;  %v11402_v31 = vpop.f32.mrf.mxu0 }
 0x2c4   : > { %vm3139_vm12 = vcmp.gt.f32.partialorder %v3125_v62, 0.0  ;;  %v3153_v30 = vmul.f32 %v14601_v15, %v3125_v62  ;;  %v3112_v39 = vadd.f32 %v14655_v52, %v2963_v48  ;;  %v11440_v1 = vpop.f32.mrf.mxu1  ;;  %v4057_v52 = vld [vmem:[%s12888_s24 + $0x130] sm:$0xff]  ;;  %v7267_v38 = vld [vmem:[#allocation3 + $0x30] ss:$2 sm:$0xff]  ;;  %v7271_v51 = vld [vmem:[#allocation3 + $0x31] ss:$2 sm:$0xff] }
 0x2c5   : > { %v2939_v50 = vpop.f32.mrf.mxu0  ;;  %11628 = vmatmul.mubr.msk.bf16.gmra.mxu0 %vm441_vm3, %v4068_v9  ;;  %v4069_v49 = vpack.c.bf16 %v4058_v34, %v4057_v52 }
 0x2c6   : > { %v7083_v43 = vld [vmem:[#allocation2 + $0xa0] sm:$0x3f]  ;;  %v14715_v60 = vsel %vm3139_vm12, %v3125_v62, %v3153_v30  ;;  %v3126_v29 = vadd.f32 %v14590_v37, %v3112_v39  ;;  %v2964_v17 = vadd.f32 %v2939_v50, %v14542_v0  ;;  %v14719_v7 = vpop.f32.mrf.mxu1  ;;  %11666 = vmatmul.mubr.msk.bf16.gmra.mxu1 %vm441_vm3, %v14338_v55  ;;  %11631 = vmatprep.mubr.msk.bf16.mxu0 %vm12796_vm2, %v17230_v47 }
 0x2c7   : > { %v7086_v41 = vmax.f32 %v7080_v6, %v7083_v43  ;;  %v7097_v42 = vmax.f32 %v14682_v27, %v14715_v60  ;;  %v11405_v54 = vpop.f32.mrf.mxu0  ;;  %11669 = vmatprep.mubr.msk.bf16.mxu1 %vm12796_vm2, %v17230_v47  ;;  %v7278_v30 = vmax.f32 %v7267_v38, %v7271_v51 }
 0x2c8   : > { %vm3140_vm13 = vcmp.gt.f32.partialorder %v3126_v29, 0.0  ;;  %v3154_v0 = vmul.f32 %v14601_v15, %v3126_v29  ;;  %v3113_v22 = vadd.f32 %v14664_v8, %v2964_v17  ;;  %v11475_v40 = vpop.f32.mrf.mxu1 }
 0x2c9   : > { %7089 = vst [vmem:[#allocation3 + $0x40] sm:$0x3f] %v7086_v41  ;;  %v2942_v55 = vpop.f32.mrf.mxu0  ;;  %v14784_v40 = vld [vmem:[%s12888_s24 + $0x171] sm:$0xff] }
 0x2ca   : > { %v3168_v56 = vsel %vm3140_vm13, %v3126_v29, %v3154_v0  ;;  %v3127_v3 = vadd.f32 %v14590_v37, %v3113_v22  ;;  %v2965_v27 = vadd.f32 %v2942_v55, %v14549_v33  ;;  %v14735_v61 = vpop.f32.mrf.mxu1  ;;  %v4060_v33 = vld [vmem:[%s12888_s24 + $0x148] sm:$0xff]  ;;  %v14787_v55 = vld [vmem:[%s12888_s24 + $0x179] sm:$0xff] }
 0x2cb   : > { %3182 = vst [vmem:[#allocation2 + $0xb8] sm:$0xff] %v3168_v56  ;;  %v11406_v8 = vpop.f32.mrf.mxu0  ;;  %v4070_v48 = vpack.c.bf16 %v4060_v33, %v4059_v45  ;;  %v4071_v56 = vpack.c.bf16 %v14435_v11, %v14410_v18 }
 0x2cc   : > { %vm3141_vm14 = vcmp.gt.f32.partialorder %v3127_v3, 0.0  ;;  %v3155_v4 = vmul.f32 %v14601_v15, %v3127_v3  ;;  %v3114_v23 = vadd.f32 %v14686_v36, %v2965_v27  ;;  %v11476_v46 = vpop.f32.mrf.mxu1  ;;  %v14757_v36 = vld [vmem:[%s12888_s24 + $0x169] sm:$0xff] }
 0x2cd   : > { %v2947_v14 = vpop.f32.mrf.mxu0  ;;  %11632 = vmatmul.mubr.msk.bf16.gmra.mxu0 %vm441_vm3, %v4069_v49  ;;  %v14766_v31 = vpack.c.bf16 %v14757_v36, %v14644_v2 }
 0x2ce   : > { %v14746_v10 = vsel %vm3141_vm14, %v3127_v3, %v3155_v4  ;;  %v3128_v35 = vadd.f32 %v14590_v37, %v3114_v23  ;;  %v2966_v13 = vadd.f32 %v2947_v14, %v14561_v53  ;;  %v14750_v44 = vpop.f32.mrf.mxu1  ;;  %11670 = vmatmul.mubr.msk.bf16.gmra.mxu1 %vm441_vm3, %v14739_v59  ;;  %11635 = vmatprep.mubr.msk.bf16.mxu0 %vm12796_vm2, %v17230_v47  ;;  %v7092_v14 = vld [vmem:[#allocation2 + $0xa0] sm:$0x3f] }
 0x2cf   : > { %17235 = vst [vmem:[#allocation8_spill] sm:$0xff] %v14746_v10  ;;  %v7102_v19 = vmax.f32 %v7096_v63, %v14746_v10  ;;  %v11409_v28 = vpop.f32.mrf.mxu0  ;;  %11673 = vmatprep.mubr.msk.bf16.mxu1 %vm12796_vm2, %v17230_v47  ;;  %v14799_v23 = vpack.c.bf16 %v14787_v55, %v14784_v40 }
 0x2d0   : > { %vm3142_vm15 = vcmp.gt.f32.partialorder %v3128_v35, 0.0  ;;  %v3156_v53 = vmul.f32 %v14601_v15, %v3128_v35  ;;  %v3115_v9 = vadd.f32 %v14694_v57, %v2966_v13  ;;  %v11479_v26 = vpop.f32.mrf.mxu1  ;;  %v7269_v32 = vld [vmem:[#allocation3 + $0x40] ss:$2 sm:$0x7]  ;;  %v14812_v13 = vld [vmem:[%s12888_s24 + $0x168] sm:$0xff] }
 0x2d1   : > { %7105 = vst [vmem:[#allocation3 + $0x48] sm:$0xff] %v7102_v19  ;;  %v2950_v62 = vpop.f32.mrf.mxu0  ;;  %v7273_v24 = vld [vmem:[#allocation3 + $0x41] ss:$2 sm:$0x7]  ;;  %v7275_v63 = vld [vmem:[#allocation3 + $0x32] ss:$2 sm:$0xff] }
 0x2d2   : > { %v3170_v39 = vsel %vm3142_vm15, %v3128_v35, %v3156_v53  ;;  %v3129_v1 = vadd.f32 %v14590_v37, %v3115_v9  ;;  %v2967_v6 = vadd.f32 %v2950_v62, %v14568_v25  ;;  %v3413_v50 = vpop.f32.mrf.mxu1  ;;  %v7279_v43 = vmax.f32 %v7269_v32, %v7273_v24  ;;  %v7277_v34 = vld [vmem:[#allocation3 + $0x42] ss:$2 sm:$0x7]  ;;  %v7095_v3 = vld [vmem:[#allocation2 + $0xb8] sm:$0x3f] }
 0x2d3   : > { %3184 = vst [vmem:[#allocation2 + $0xc8] sm:$0xff] %v3170_v39  ;;  %v7103_v57 = vmax.f32 %v7097_v42, %v3170_v39  ;;  %v11410_v60 = vpop.f32.mrf.mxu0  ;;  %v7280_v29 = vmax.f32 %v7278_v30, %v7275_v63  ;;  %v7098_v33 = vmax.f32 %v7092_v14, %v7095_v3  ;;  %v4072_v53 = vpack.c.bf16 %v14812_v13, %v14438_v21  ;;  %v14832_v21 = vld [vmem:[%s12888_s24 + $0x170] sm:$0xff]  ;;  %v4352_v3 = vld [vmem:[%s12888_s24 + $0x11a] sm:$0xff] }
 0x2d4   : > { %vm3143_vm0 = vcmp.gt.f32.partialorder %v3129_v1, 0.0  ;;  %v3157_v17 = vmul.f32 %v14601_v15, %v3129_v1  ;;  %v3116_v2 = vadd.f32 %v14709_v58, %v2967_v6  ;;  %v11480_v52 = vpop.f32.mrf.mxu1  ;;  %v7281_v25 = vmax.f32 %v7279_v43, %v7277_v34  ;;  %v14835_v6 = vld [vmem:[%s12888_s24 + $0x178] sm:$0xff] }
 0x2d5   : > { %7106 = vst [vmem:[#allocation3 + $0x50] sm:$0xff] %v7103_v57  ;;  %v3289_v41 = vpop.f32.mrf.mxu0  ;;  %11636 = vmatmul.mubr.msk.bf16.gmra.mxu0 %vm441_vm3, %v4070_v48  ;;  %7282 = vst [vmem:[#allocation4 + $0x16] sm:$0xff] %v7280_v29 }
 0x2d6   : > { %v3171_v54 = vsel %vm3143_vm0, %v3129_v1, %v3157_v17  ;;  %v3130_v42 = vadd.f32 %v14590_v37, %v3116_v2  ;;  %v14775_v0 = vadd.f32 %v14719_v7, %v3289_v41  ;;  %v3418_v22 = vpop.f32.mrf.mxu1  ;;  %11674 = vmatmul.mubr.msk.bf16.gmra.mxu1 %vm441_vm3, %v14766_v31  ;;  %11639 = vmatprep.mubr.msk.bf16.mxu0 %vm12796_vm2, %v17230_v47 }
 0x2d7   : > { %3185 = vst [vmem:[#allocation2 + $0xd0] sm:$0xff] %v3171_v54  ;;  %v11445_v58 = vpop.f32.mrf.mxu0  ;;  %11677 = vmatprep.mubr.msk.bf16.mxu1 %vm12796_vm2, %v17230_v47  ;;  %7283 = vst [vmem:[#allocation4 + $0x1e] sm:$0x7] %v7281_v25 }
 0x2d8   : > { %vm3144_vm1 = vcmp.gt.f32.partialorder %v3130_v42, 0.0  ;;  %v3158_v37 = vmul.f32 %v14601_v15, %v3130_v42  ;;  %v11483_v7 = vpop.f32.mrf.mxu1 }
 0x2d9   : > { %v3292_v49 = vpop.f32.mrf.mxu0 }
 0x2da   : > { %v14792_v27 = vsel %vm3144_vm1, %v3130_v42, %v3158_v37  ;;  %v14795_v8 = vadd.f32 %v14735_v61, %v3292_v49  ;;  %v3421_v4 = vpop.f32.mrf.mxu1 }
 0x2db   : > { %17236 = vst [vmem:[#allocation9_spill] sm:$0xff] %v14792_v27  ;;  %v11446_v46 = vpop.f32.mrf.mxu0 }
 0x2dc   : > { %v11484_v45 = vpop.f32.mrf.mxu1  ;;  %v7285_v63 = vld [vmem:[#allocation3 + $0x48] ss:$2 sm:$0xff]  ;;  %v7289_v30 = vld [vmem:[#allocation3 + $0x49] ss:$2 sm:$0xff] }
 0x2dd   : > { %v3297_v18 = vpop.f32.mrf.mxu0  ;;  %11640 = vmatmul.mubr.msk.bf16.gmra.mxu0 %vm441_vm3, %v4071_v56  ;;  %v7296_v29 = vmax.f32 %v7285_v63, %v7289_v30  ;;  %v4351_v56 = vld [vmem:[%s12888_s24 + $0x112] sm:$0xff]  ;;  %v4591_v46 = vld [vmem:[%s17201_s1] sm:$0x3] }
 0x2de   : > { %v7101_v11 = vld [vmem:[#allocation2 + $0xd0] sm:$0x3f]  ;;  %v14805_v35 = vadd.f32 %v14750_v44, %v3297_v18  ;;  %v3426_v61 = vpop.f32.mrf.mxu1  ;;  %11678 = vmatmul.mubr.msk.bf16.gmra.mxu1 %vm441_vm3, %v14799_v23  ;;  %11643 = vmatprep.mubr.msk.bf16.mxu0 %vm12796_vm2, %v17230_v47  ;;  %v9992_v44 = vld [vmem:[%s17201_s1 + $0x4] sm:$0x3] }
 0x2df   : > { %v7104_v38 = vmax.f32 %v7098_v33, %v7101_v11  ;;  %v11449_v51 = vpop.f32.mrf.mxu0  ;;  %11713 = vmatprep.mubr.msk.bf16.mxu1 %vm12796_vm2, %v17230_v47  ;;  %v4884_v62 = vand.u32 %v9992_v44, %v12869_v5  ;;  %v4365_v33 = vpack.c.bf16 %v4352_v3, %v4351_v56  ;;  %v4749_v11 = vand.u32 %v4591_v46, %v12869_v5 }
 0x2e0   : > { %v11487_v19 = vpop.f32.mrf.mxu1 }
 0x2e1   : > { %7107 = vst [vmem:[#allocation3 + $0x58] sm:$0x3f] %v7104_v38  ;;  %v3300_v28 = vpop.f32.mrf.mxu0 }
 0x2e2   : > { %v14821_v9 = vadd.f32 %v3413_v50, %v3300_v28  ;;  %v3429_v26 = vpop.f32.mrf.mxu1  ;;  %v4353_v28 = vld [vmem:[%s12888_s24 + $0x122] sm:$0xff] }
 0x2e3   : > { %v11450_v32 = vpop.f32.mrf.mxu0 }
 0x2e4   : > { %v11488_v48 = vpop.f32.mrf.mxu1  ;;  %v14876_v32 = vld [vmem:[%s12888_s24 + $0x181] sm:$0xff] }
 0x2e5   : > { %v3305_v24 = vpop.f32.mrf.mxu0  ;;  %11644 = vmatmul.mubr.msk.bf16.gmra.mxu0 %vm441_vm3, %v4072_v53  ;;  %v4354_v53 = vld [vmem:[%s12888_s24 + $0x12a] sm:$0xff] }
 0x2e6   : > { %v14825_v39 = vadd.f32 %v3418_v22, %v3305_v24  ;;  %v3434_v1 = vpop.f32.mrf.mxu1  ;;  %11714 = vmatmul.mubr.msk.bf16.vlgmr.msra.gmra.mxu1 %vm441_vm3, %v14739_v59  ;;  %11647 = vmatprep.mubr.msk.bf16.mxu0 %vm12796_vm2, %v17230_v47  ;;  %v14842_v59 = vpack.c.bf16 %v14835_v6, %v14832_v21  ;;  %v4366_v24 = vpack.c.bf16 %v4354_v53, %v4353_v28 }
 0x2e7   : > { %v11453_v50 = vpop.f32.mrf.mxu0  ;;  %11717 = vmatprep.mubr.msk.bf16.mxu1 %vm12796_vm2, %v17230_v47  ;;  %11772 = vmatpush3.bf16.msra.mxu1 %v4884_v62  ;;  %v14879_v62 = vld [vmem:[%s12888_s24 + $0x189] sm:$0xff] }
 0x2e8   : > { %v11491_v43 = vpop.f32.mrf.mxu1  ;;  %11831 = vmatprep.subr.bf16.mxu1 %v17230_v47  ;;  %v7287_v57 = vld [vmem:[#allocation3 + $0x58] ss:$2 sm:$0x7]  ;;  %v7291_v60 = vld [vmem:[#allocation3 + $0x59] ss:$2 sm:$0x7] }
 0x2e9   : > { %v3308_v17 = vpop.f32.mrf.mxu0  ;;  %v7293_v2 = vld [vmem:[#allocation3 + $0x4a] ss:$2 sm:$0xff]  ;;  %v7297_v52 = vmax.f32 %v7287_v57, %v7291_v60  ;;  %v7295_v25 = vld [vmem:[#allocation3 + $0x5a] ss:$2 sm:$0x7] }
 0x2ea   : > { %v14844_v34 = vadd.f32 %v3421_v4, %v3308_v17  ;;  %v3437_v41 = vpop.f32.mrf.mxu1  ;;  %v7298_v54 = vmax.f32 %v7296_v29, %v7293_v2  ;;  %v4355_v17 = vld [vmem:[%s12888_s24 + $0x132] sm:$0xff]  ;;  %v4356_v2 = vld [vmem:[%s12888_s24 + $0x13a] sm:$0xff] }
 0x2eb   : > { %v11454_v42 = vpop.f32.mrf.mxu0  ;;  %v7299_v22 = vmax.f32 %v7297_v52, %v7295_v25  ;;  %v14900_v25 = vld [vmem:[%s12888_s24 + $0x199] sm:$0xff] }
 0x2ec   : > { %v11492_v58 = vpop.f32.mrf.mxu1  ;;  %7300 = vst [vmem:[#allocation4 + $0x21] sm:$0xff] %v7298_v54 }
 0x2ed   : > { %v3313_v37 = vpop.f32.mrf.mxu0  ;;  %11648 = vmatmul.mubr.msk.bf16.gmra.mxu0 %vm441_vm3, %v14842_v59  ;;  %7301 = vst [vmem:[#allocation4 + $0x29] sm:$0x7] %v7299_v22  ;;  %v4367_v22 = vpack.c.bf16 %v4356_v2, %v4355_v17 }
 0x2ee   : > { %v14848_v7 = vadd.f32 %v3426_v61, %v3313_v37  ;;  %v3442_v49 = vpop.f32.mrf.mxu1  ;;  %11718 = vmatmul.mubr.msk.bf16.gmra.mxu1 %vm441_vm3, %v14766_v31  ;;  %11683 = vmatprep.mubr.msk.bf16.mxu0 %vm12796_vm2, %v17230_v47 }
 0x2ef   : > { %v11457_v4 = vpop.f32.mrf.mxu0  ;;  %11721 = vmatprep.mubr.msk.bf16.mxu1 %vm12796_vm2, %v17230_v47 }
 0x2f0   : > { %v11495_v14 = vpop.f32.mrf.mxu1 }
 0x2f1   : > { %v3316_v45 = vpop.f32.mrf.mxu0 }
 0x2f2   : > { %v14861_v18 = vadd.f32 %v3429_v26, %v3316_v45  ;;  %v3445_v31 = vpop.f32.mrf.mxu1  ;;  %v4357_v45 = vld [vmem:[%s12888_s24 + $0x142] sm:$0xff] }
 0x2f3   : > { %v11458_v61 = vpop.f32.mrf.mxu0 }
 0x2f4   : > { %v11496_v38 = vpop.f32.mrf.mxu1  ;;  %v14920_v61 = vld [vmem:[%s12888_s24 + $0x1a9] sm:$0xff] }
 0x2f5   : > { %v3321_v51 = vpop.f32.mrf.mxu0  ;;  %11684 = vmatmul.mubr.msk.bf16.vlgmr.msra.gmra.mxu0 %vm441_vm3, %v4365_v33  ;;  %v4358_v33 = vld [vmem:[%s12888_s24 + $0x14a] sm:$0xff] }
 0x2f6   : > { %v14865_v19 = vadd.f32 %v3434_v1, %v3321_v51  ;;  %v3450_v44 = vpop.f32.mrf.mxu1  ;;  %11722 = vmatmul.mubr.msk.bf16.gmra.mxu1 %vm441_vm3, %v14799_v23  ;;  %11742 = vmatpush3.bf16.msra.mxu0 %v4749_v11  ;;  %v4609_v1 = vpack.c.bf16 %v14879_v62, %v14876_v32  ;;  %v14917_v11 = vld [vmem:[%s12888_s24 + $0x1a1] sm:$0xff] }
 0x2f7   : > { %v11461_v26 = vpop.f32.mrf.mxu0  ;;  %11687 = vmatprep.mubr.msk.bf16.mxu0 %vm12796_vm2, %v17230_v47  ;;  %11725 = vmatprep.mubr.msk.bf16.mxu1 %vm12796_vm2, %v17230_v47 }
 0x2f8   : > { %v11499_v48 = vpop.f32.mrf.mxu1  ;;  %11801 = vmatprep.subr.bf16.mxu0 %v17230_v47  ;;  %v4611_v26 = vpack.c.bf16 %v14920_v61, %v14917_v11 }
 0x2f9   : > { %v3324_v23 = vpop.f32.mrf.mxu0 }
 0x2fa   : > { %v14882_v63 = vadd.f32 %v3437_v41, %v3324_v23  ;;  %v3453_v30 = vpop.f32.mrf.mxu1  ;;  %v14897_v41 = vld [vmem:[%s12888_s24 + $0x191] sm:$0xff] }
 0x2fb   : > { %v11462_v50 = vpop.f32.mrf.mxu0 }
 0x2fc   : > { %v11500_v43 = vpop.f32.mrf.mxu1 }
 0x2fd   : > { %v3329_v57 = vpop.f32.mrf.mxu0  ;;  %11688 = vmatmul.mubr.msk.bf16.gmra.mxu0 %vm441_vm3, %v4366_v24 }
 0x2fe   : > { %v14887_v60 = vadd.f32 %v3442_v49, %v3329_v57  ;;  %v3686_v29 = vpop.f32.mrf.mxu1  ;;  %11726 = vmatmul.mubr.msk.bf16.gmra.mxu1 %vm441_vm3, %v4609_v1  ;;  %11691 = vmatprep.mubr.msk.bf16.mxu0 %vm12796_vm2, %v17230_v47  ;;  %v4610_v49 = vpack.c.bf16 %v14900_v25, %v14897_v41  ;;  %v14937_v57 = vld [vmem:[%s12888_s24 + $0x1b9] sm:$0xff] }
 0x2ff   : > { %v11465_v52 = vpop.f32.mrf.mxu0  ;;  %11729 = vmatprep.mubr.msk.bf16.mxu1 %vm12796_vm2, %v17230_v47 }
 0x300   : > { %v11535_v54 = vpop.f32.mrf.mxu1 }
 0x301   : > { %v3332_v42 = vpop.f32.mrf.mxu0 }
 0x302   : > { %v14902_v58 = vadd.f32 %v3445_v31, %v3332_v42  ;;  %v3689_v37 = vpop.f32.mrf.mxu1 }
 0x303   : > { %v11466_v56 = vpop.f32.mrf.mxu0 }
 0x304   : > { %v11536_v3 = vpop.f32.mrf.mxu1 }
 0x305   : > { %v3337_v4 = vpop.f32.mrf.mxu0  ;;  %11692 = vmatmul.mubr.msk.bf16.gmra.mxu0 %vm441_vm3, %v4367_v22 }
 0x306   : > { %v14907_v46 = vadd.f32 %v3450_v44, %v3337_v4  ;;  %v3694_v14 = vpop.f32.mrf.mxu1  ;;  %11730 = vmatmul.mubr.msk.bf16.gmra.mxu1 %vm441_vm3, %v4610_v49  ;;  %11695 = vmatprep.mubr.msk.bf16.mxu0 %vm12796_vm2, %v17230_v47  ;;  %v4368_v44 = vpack.c.bf16 %v4358_v33, %v4357_v45 }
 0x307   : > { %v11469_v31 = vpop.f32.mrf.mxu0  ;;  %11733 = vmatprep.mubr.msk.bf16.mxu1 %vm12796_vm2, %v17230_v47 }
 0x308   : > { %v11539_v38 = vpop.f32.mrf.mxu1 }
 0x309   : > { %v3340_v51 = vpop.f32.mrf.mxu0 }
 0x30a   : > { %v14922_v28 = vadd.f32 %v3453_v30, %v3340_v51  ;;  %v3697_v53 = vpop.f32.mrf.mxu1  ;;  %v14934_v30 = vld [vmem:[%s12888_s24 + $0x1b1] sm:$0xff] }
 0x30b   : > { %v11470_v48 = vpop.f32.mrf.mxu0  ;;  %v4612_v22 = vpack.c.bf16 %v14937_v57, %v14934_v30 }
 0x30c   : > { %v11540_v23 = vpop.f32.mrf.mxu1 }
 0x30d   : > { %v3537_v24 = vpop.f32.mrf.mxu0  ;;  %11696 = vmatmul.mubr.msk.bf16.gmra.mxu0 %vm441_vm3, %v4368_v44 }
 0x30e   : > { %v3592_v1 = vadd.f32 %v3537_v24, %v14775_v0  ;;  %v3702_v50 = vpop.f32.mrf.mxu1  ;;  %11734 = vmatmul.mubr.msk.bf16.gmra.mxu1 %vm441_vm3, %v4611_v26  ;;  %11699 = vmatprep.mubr.msk.bf16.mxu0 %vm12796_vm2, %v17230_v47  ;;  %v4369_v0 = vpack.c.bf16 %v14580_v20, %v14559_v12  ;;  %v14954_v12 = vld [vmem:[%s12888_s24 + $0x16a] sm:$0xff] }
 0x30f   : > { %v11505_v43 = vpop.f32.mrf.mxu0  ;;  %11737 = vmatprep.mubr.msk.bf16.mxu1 %vm12796_vm2, %v17230_v47  ;;  %v4370_v31 = vpack.c.bf16 %v14954_v12, %v14583_v16  ;;  %v14975_v16 = vld [vmem:[%s12888_s24 + $0x172] sm:$0xff] }
 0x310   : > { %v11543_v17 = vpop.f32.mrf.mxu1  ;;  %v14939_v2 = vadd.f32 %v3686_v29, %v3592_v1 }
 0x311   : > { %v3540_v52 = vpop.f32.mrf.mxu0 }
 0x312   : > { %v3593_v54 = vadd.f32 %v3540_v52, %v14795_v8  ;;  %v3705_v42 = vpop.f32.mrf.mxu1 }
 0x313   : > { %v11506_v49 = vpop.f32.mrf.mxu0 }
 0x314   : > { %v11544_v56 = vpop.f32.mrf.mxu1  ;;  %v14946_v3 = vadd.f32 %v3689_v37, %v3593_v54 }
 0x315   : > { %v3545_v4 = vpop.f32.mrf.mxu0  ;;  %11700 = vmatmul.mubr.msk.bf16.gmra.mxu0 %vm441_vm3, %v4369_v0 }
 0x316   : > { %v3594_v29 = vadd.f32 %v3545_v4, %v14805_v35  ;;  %v3710_v45 = vpop.f32.mrf.mxu1  ;;  %11738 = vmatmul.mubr.msk.bf16.gmra.mxu1 %vm441_vm3, %v4612_v22  ;;  %11703 = vmatprep.mubr.msk.bf16.mxu0 %vm12796_vm2, %v17230_v47  ;;  %v10008_v35 = vld [vmem:[%s17201_s1 + $0x8] sm:$0x3] }
 0x317   : > { %v11509_v20 = vpop.f32.mrf.mxu0  ;;  %11773 = vmatprep.mubr.msk.bf16.mxu1 %vm12796_vm2, %v17230_v47  ;;  %v5182_v26 = vand.u32 %v10008_v35, %v12869_v5 }
 0x318   : > { %v11547_v8 = vpop.f32.mrf.mxu1  ;;  %v14958_v37 = vadd.f32 %v3694_v14, %v3594_v29  ;;  %v4570_v20 = vld [vmem:[%s12888_s24 + $0x150] sm:$0xff] }
 0x319   : > { %v3548_v33 = vpop.f32.mrf.mxu0  ;;  %v4571_v8 = vld [vmem:[%s12888_s24 + $0x158] sm:$0xff] }
 0x31a   : > { %v3595_v38 = vadd.f32 %v3548_v33, %v14821_v9  ;;  %v3713_v51 = vpop.f32.mrf.mxu1  ;;  %v14978_v9 = vld [vmem:[%s12888_s24 + $0x17a] sm:$0xff] }
 0x31b   : > { %v11510_v44 = vpop.f32.mrf.mxu0  ;;  %v4371_v52 = vpack.c.bf16 %v14978_v9, %v14975_v16 }
 0x31c   : > { %v11548_v48 = vpop.f32.mrf.mxu1  ;;  %v14967_v23 = vadd.f32 %v3697_v53, %v3595_v38  ;;  %v4584_v38 = vpack.c.bf16 %v4571_v8, %v4570_v20 }
 0x31d   : > { %v3553_v14 = vpop.f32.mrf.mxu0  ;;  %11704 = vmatmul.mubr.msk.bf16.gmra.mxu0 %vm441_vm3, %v4370_v31 }
 0x31e   : > { %v3596_v24 = vadd.f32 %v3553_v14, %v14825_v39  ;;  %v3718_v1 = vpop.f32.mrf.mxu1  ;;  %11774 = vmatmul.mubr.msk.bf16.vlgmr.msra.gmra.mxu1 %vm441_vm3, %v4369_v0  ;;  %11707 = vmatprep.mubr.msk.bf16.mxu0 %vm12796_vm2, %v17230_v47 }
 0x31f   : > { %v11513_v43 = vpop.f32.mrf.mxu0  ;;  %11777 = vmatprep.mubr.msk.bf16.mxu1 %vm12796_vm2, %v17230_v47  ;;  %11832 = vmatpush3.bf16.msra.mxu1 %v5182_v26 }
 0x320   : > { %v11551_v53 = vpop.f32.mrf.mxu1  ;;  %v14982_v17 = vadd.f32 %v3702_v50, %v3596_v24  ;;  %11891 = vmatprep.subr.bf16.mxu1 %v17230_v47 }
 0x321   : > { %v3556_v39 = vpop.f32.mrf.mxu0 }
 0x322   : > { %v3597_v0 = vadd.f32 %v3556_v39, %v14844_v34  ;;  %v3721_v54 = vpop.f32.mrf.mxu1  ;;  %v10000_v34 = vld [vmem:[%s17201_s1 + $0x6] sm:$0x3] }
 0x323   : > { %v11514_v22 = vpop.f32.mrf.mxu0  ;;  %v5033_v26 = vand.u32 %v10000_v34, %v12869_v5  ;;  %v4572_v39 = vld [vmem:[%s12888_s24 + $0x160] sm:$0xff] }
 0x324   : > { %v11552_v49 = vpop.f32.mrf.mxu1  ;;  %v14988_v56 = vadd.f32 %v3705_v42, %v3597_v0  ;;  %v15017_v0 = vld [vmem:[%s12888_s24 + $0x182] sm:$0xff] }
 0x325   : > { %v3561_v4 = vpop.f32.mrf.mxu0  ;;  %11708 = vmatmul.mubr.msk.bf16.gmra.mxu0 %vm441_vm3, %v4371_v52 }
 0x326   : > { %v3598_v50 = vadd.f32 %v3561_v4, %v14848_v7  ;;  %v3726_v29 = vpop.f32.mrf.mxu1  ;;  %11778 = vmatmul.mubr.msk.bf16.gmra.mxu1 %vm441_vm3, %v4370_v31  ;;  %11743 = vmatprep.mubr.msk.bf16.mxu0 %vm12796_vm2, %v17230_v47 }
 0x327   : > { %v11517_v35 = vpop.f32.mrf.mxu0  ;;  %11781 = vmatprep.mubr.msk.bf16.mxu1 %vm12796_vm2, %v17230_v47 }
 0x328   : > { %v11555_v42 = vpop.f32.mrf.mxu1  ;;  %v15002_v33 = vadd.f32 %v3710_v45, %v3598_v50 }
 0x329   : > { %v3564_v7 = vpop.f32.mrf.mxu0 }
 0x32a   : > { %v3599_v31 = vadd.f32 %v3564_v7, %v14861_v18  ;;  %v3729_v44 = vpop.f32.mrf.mxu1 }
 0x32b   : > { %v11518_v48 = vpop.f32.mrf.mxu0 }
 0x32c   : > { %v11556_v14 = vpop.f32.mrf.mxu1  ;;  %v15006_v24 = vadd.f32 %v3713_v51, %v3599_v31  ;;  %v15020_v51 = vld [vmem:[%s12888_s24 + $0x18a] sm:$0xff] }
 0x32d   : > { %v3569_v43 = vpop.f32.mrf.mxu0  ;;  %11744 = vmatmul.mubr.msk.bf16.vlgmr.msra.gmra.mxu0 %vm441_vm3, %v4584_v38  ;;  %v15029_v20 = vpack.c.bf16 %v15020_v51, %v15017_v0  ;;  %v15042_v38 = vld [vmem:[%s12888_s24 + $0x192] sm:$0xff] }
 0x32e   : > { %v3600_v53 = vadd.f32 %v3569_v43, %v14865_v19  ;;  %v3734_v45 = vpop.f32.mrf.mxu1  ;;  %11782 = vmatmul.mubr.msk.bf16.gmra.mxu1 %vm441_vm3, %v4371_v52  ;;  %11802 = vmatpush3.bf16.msra.mxu0 %v5033_v26  ;;  %v4585_v52 = vpack.c.bf16 %v14812_v13, %v4572_v39 }
 0x32f   : > { %v11521_v18 = vpop.f32.mrf.mxu0  ;;  %11747 = vmatprep.mubr.msk.bf16.mxu0 %vm12796_vm2, %v17230_v47  ;;  %11785 = vmatprep.mubr.msk.bf16.mxu1 %vm12796_vm2, %v17230_v47  ;;  %17237 = vst [vmem:[#allocation6_spill] sm:$0xff] %v15029_v20 }
 0x330   : > { %v11559_v22 = vpop.f32.mrf.mxu1  ;;  %11861 = vmatprep.subr.bf16.mxu0 %v17230_v47  ;;  %v15023_v19 = vadd.f32 %v3718_v1, %v3600_v53 }
 0x331   : > { %v3572_v49 = vpop.f32.mrf.mxu0 }
 0x332   : > { %v3601_v4 = vadd.f32 %v3572_v49, %v14882_v63  ;;  %v3737_v50 = vpop.f32.mrf.mxu1 }
 0x333   : > { %v11522_v8 = vpop.f32.mrf.mxu0 }
 0x334   : > { %v11560_v35 = vpop.f32.mrf.mxu1  ;;  %v15031_v34 = vadd.f32 %v3721_v54, %v3601_v4  ;;  %v15045_v54 = vld [vmem:[%s12888_s24 + $0x19a] sm:$0xff] }
 0x335   : > { %v3577_v42 = vpop.f32.mrf.mxu0  ;;  %11748 = vmatmul.mubr.msk.bf16.gmra.mxu0 %vm441_vm3, %v4585_v52  ;;  %v15052_v43 = vpack.c.bf16 %v15045_v54, %v15042_v38  ;;  %v15067_v52 = vld [vmem:[%s12888_s24 + $0x188] sm:$0xff] }
 0x336   : > { %v3602_v1 = vadd.f32 %v3577_v42, %v14887_v60  ;;  %v3984_v7 = vpop.f32.mrf.mxu1  ;;  %11786 = vmatmul.mubr.msk.bf16.gmra.mxu1 %vm441_vm3, %v15029_v20  ;;  %11751 = vmatprep.mubr.msk.bf16.mxu0 %vm12796_vm2, %v17230_v47  ;;  %v5152_v20 = vpack.c.bf16 %v14784_v40, %v14757_v36  ;;  %v15164_v36 = vld [vmem:[%s12888_s24 + $0x1b8] sm:$0xff] }
 0x337   : > { %v11525_v63 = vpop.f32.mrf.mxu0  ;;  %11789 = vmatprep.mubr.msk.bf16.mxu1 %vm12796_vm2, %v17230_v47  ;;  %17238 = vst [vmem:[#allocation7_spill] sm:$0xff] %v15052_v43 }
 0x338   : > { %v11595_v31 = vpop.f32.mrf.mxu1  ;;  %v15047_v26 = vadd.f32 %v3726_v29, %v3602_v1 }
 0x339   : > { %v3580_v60 = vpop.f32.mrf.mxu0 }
 0x33a   : > { %v3603_v48 = vadd.f32 %v3580_v60, %v14902_v58  ;;  %v3987_v14 = vpop.f32.mrf.mxu1  ;;  %v15064_v58 = vld [vmem:[%s12888_s24 + $0x180] sm:$0xff] }
 0x33b   : > { %v11526_v53 = vpop.f32.mrf.mxu0  ;;  %v15081_v42 = vpack.c.bf16 %v15067_v52, %v15064_v58 }
 0x33c   : > { %v11596_v39 = vpop.f32.mrf.mxu1  ;;  %v15054_v18 = vadd.f32 %v3729_v44, %v3603_v48  ;;  %v15072_v44 = vld [vmem:[%s12888_s24 + $0x1a2] sm:$0xff] }
 0x33d   : > { %v3585_v22 = vpop.f32.mrf.mxu0  ;;  %11752 = vmatmul.mubr.msk.bf16.gmra.mxu0 %vm441_vm3, %v14842_v59  ;;  %v15075_v59 = vld [vmem:[%s12888_s24 + $0x1aa] sm:$0xff] }
 0x33e   : > { %v3604_v29 = vadd.f32 %v3585_v22, %v14907_v46  ;;  %v3992_v49 = vpop.f32.mrf.mxu1  ;;  %11790 = vmatmul.mubr.msk.bf16.gmra.mxu1 %vm441_vm3, %v15052_v43  ;;  %11755 = vmatprep.mubr.msk.bf16.mxu0 %vm12796_vm2, %v17230_v47  ;;  %17239 = vst [vmem:[#allocation10_spill] sm:$0xff] %v15075_v59  ;;  %v15086_v31 = vpack.c.bf16 %v15075_v59, %v15072_v44 }
 0x33f   : > { %v11529_v4 = vpop.f32.mrf.mxu0  ;;  %11793 = vmatprep.mubr.msk.bf16.mxu1 %vm12796_vm2, %v17230_v47 }
 0x340   : > { %v11599_v46 = vpop.f32.mrf.mxu1  ;;  %v15077_v8 = vadd.f32 %v3734_v45, %v3604_v29  ;;  %17240 = vst [vmem:[#allocation11_spill] sm:$0xff] %v15086_v31  ;;  %v15101_v29 = vld [vmem:[%s12888_s24 + $0x198] sm:$0xff] }
 0x341   : > { %v3588_v35 = vpop.f32.mrf.mxu0  ;;  %v15109_v46 = vld [vmem:[%s12888_s24 + $0x1ba] sm:$0xff] }
 0x342   : > { %v3605_v1 = vadd.f32 %v3588_v35, %v14922_v28  ;;  %v3995_v63 = vpop.f32.mrf.mxu1  ;;  %v15098_v28 = vld [vmem:[%s12888_s24 + $0x190] sm:$0xff]  ;;  %17242 = vst [vmem:[#allocation13_spill] sm:$0xff] %v15109_v46 }
 0x343   : > { %v11530_v60 = vpop.f32.mrf.mxu0 }
 0x344   : > { %v11600_v48 = vpop.f32.mrf.mxu1  ;;  %v15088_v53 = vadd.f32 %v3737_v50, %v3605_v1  ;;  %v15106_v50 = vld [vmem:[%s12888_s24 + $0x1b2] sm:$0xff]  ;;  %v15115_v60 = vpack.c.bf16 %v15101_v29, %v15098_v28 }
 0x345   : > { %v3835_v45 = vpop.f32.mrf.mxu0  ;;  %11756 = vmatmul.mubr.msk.bf16.gmra.mxu0 %vm441_vm3, %v15081_v42  ;;  %17241 = vst [vmem:[#allocation12_spill] sm:$0xff] %v15106_v50 }
 0x346   : > { %v3890_v39 = vadd.f32 %v3835_v45, %v14939_v2  ;;  %v4000_v22 = vpop.f32.mrf.mxu1  ;;  %11794 = vmatmul.mubr.msk.bf16.gmra.mxu1 %vm441_vm3, %v15086_v31  ;;  %11759 = vmatprep.mubr.msk.bf16.mxu0 %vm12796_vm2, %v17230_v47 }
 0x347   : > { %v11565_v4 = vpop.f32.mrf.mxu0  ;;  %11797 = vmatprep.mubr.msk.bf16.mxu1 %vm12796_vm2, %v17230_v47 }
 0x348   : > { %v11603_v2 = vpop.f32.mrf.mxu1  ;;  %v15111_v35 = vadd.f32 %v3984_v7, %v3890_v39  ;;  %v15120_v4 = vpack.c.bf16 %v15109_v46, %v15106_v50 }
 0x349   : > { %v3838_v1 = vpop.f32.mrf.mxu0 }
 0x34a   : > { %v3891_v48 = vadd.f32 %v3838_v1, %v14946_v3  ;;  %v4003_v45 = vpop.f32.mrf.mxu1  ;;  %17243 = vst [vmem:[#allocation14_spill] sm:$0xff] %v15120_v4  ;;  %v15132_v3 = vld [vmem:[%s12888_s24 + $0x1a0] sm:$0xff]  ;;  %v15135_v1 = vld [vmem:[%s12888_s24 + $0x1a8] sm:$0xff] }
 0x34b   : > { %v11566_v15 = vpop.f32.mrf.mxu0 }
 0x34c   : > { %v11604_v31 = vpop.f32.mrf.mxu1  ;;  %v15122_v43 = vadd.f32 %v3987_v14, %v3891_v48 }
 0x34d   : > { %v3843_v2 = vpop.f32.mrf.mxu0  ;;  %11760 = vmatmul.mubr.msk.bf16.gmra.mxu0 %vm441_vm3, %v15115_v60 }
 0x34e   : > { %v3892_v7 = vadd.f32 %v3843_v2, %v14958_v37  ;;  %v4008_v39 = vpop.f32.mrf.mxu1  ;;  %11798 = vmatmul.mubr.msk.bf16.gmra.mxu1 %vm441_vm3, %v15120_v4  ;;  %11763 = vmatprep.mubr.msk.bf16.mxu0 %vm12796_vm2, %v17230_v47  ;;  %v10024_v37 = vld [vmem:[%s17201_s1 + $0xc] sm:$0x3]  ;;  %v15146_v2 = vpack.c.bf16 %v15135_v1, %v15132_v3 }
 0x34f   : > { %v11569_v15 = vpop.f32.mrf.mxu0  ;;  %11833 = vmatprep.mubr.msk.bf16.mxu1 %vm12796_vm2, %v17230_v47 }
 0x350   : > { %v11607_v14 = vpop.f32.mrf.mxu1  ;;  %v15139_v31 = vadd.f32 %v3992_v49, %v3892_v7  ;;  %v5480_v49 = vand.u32 %v10024_v37, %v12869_v5 }
 0x351   : > { %v3846_v48 = vpop.f32.mrf.mxu0 }
 0x352   : > { %v3893_v4 = vadd.f32 %v3846_v48, %v14967_v23  ;;  %v4011_v15 = vpop.f32.mrf.mxu1  ;;  %v15161_v23 = vld [vmem:[%s12888_s24 + $0x1b0] sm:$0xff]  ;;  %v5153_v48 = vpack.c.bf16 %v14876_v32, %v14787_v55  ;;  %v10016_v55 = vld [vmem:[%s17201_s1 + $0xa] sm:$0x3] }
 0x353   : > { %v11570_v14 = vpop.f32.mrf.mxu0 }
 0x354   : > { %v11608_v7 = vpop.f32.mrf.mxu1  ;;  %v15152_v27 = vadd.f32 %v3995_v63, %v3893_v4 }
 0x355   : > { %v3851_v10 = vpop.f32.mrf.mxu0  ;;  %11764 = vmatmul.mubr.msk.bf16.gmra.mxu0 %vm441_vm3, %v15146_v2 }
 0x356   : > { %v3894_v46 = vadd.f32 %v3851_v10, %v14982_v17  ;;  %v4016_v50 = vpop.f32.mrf.mxu1  ;;  %11834 = vmatmul.mubr.msk.bf16.vlgmr.msra.gmra.mxu1 %vm441_vm3, %v5152_v20  ;;  %11767 = vmatprep.mubr.msk.bf16.mxu0 %vm12796_vm2, %v17230_v47  ;;  %v15173_v17 = vpack.c.bf16 %v15164_v36, %v15161_v23 }
 0x357   : > { %v11573_v40 = vpop.f32.mrf.mxu0  ;;  %11837 = vmatprep.mubr.msk.bf16.mxu1 %vm12796_vm2, %v17230_v47  ;;  %11892 = vmatpush3.bf16.msra.mxu1 %v5480_v49 }
 0x358   : > { %v11611_v63 = vpop.f32.mrf.mxu1  ;;  %v15168_v4 = vadd.f32 %v4000_v22, %v3894_v46  ;;  %11951 = vmatprep.subr.bf16.mxu1 %v17230_v47 }
 0x359   : > { %v3854_v10 = vpop.f32.mrf.mxu0 }
 0x35a   : > { %v3895_v20 = vadd.f32 %v3854_v10, %v14988_v56  ;;  %v4019_v37 = vpop.f32.mrf.mxu1 }
 0x35b   : > { %v11574_v14 = vpop.f32.mrf.mxu0 }
 0x35c   : > { %v11612_v7 = vpop.f32.mrf.mxu1  ;;  %v15178_v40 = vadd.f32 %v4003_v45, %v3895_v20  ;;  %v5331_v14 = vand.u32 %v10016_v55, %v12869_v5 }
 0x35d   : > { %v3859_v49 = vpop.f32.mrf.mxu0  ;;  %11768 = vmatmul.mubr.msk.bf16.gmra.mxu0 %vm441_vm3, %v15173_v17 }
 0x35e   : > { %v3896_v22 = vadd.f32 %v3859_v49, %v15002_v33  ;;  %v4024_v46 = vpop.f32.mrf.mxu1  ;;  %11838 = vmatmul.mubr.msk.bf16.gmra.mxu1 %vm441_vm3, %v5153_v48  ;;  %11803 = vmatprep.mubr.msk.bf16.mxu0 %vm12796_vm2, %v17230_v47  ;;  %v5003_v33 = vpack.c.bf16 %v14832_v21, %v14812_v13  ;;  %v5154_v48 = vpack.c.bf16 %v14897_v41, %v14879_v62 }
 0x35f   : > { %v11577_v56 = vpop.f32.mrf.mxu0  ;;  %11841 = vmatprep.mubr.msk.bf16.mxu1 %vm12796_vm2, %v17230_v47 }
 0x360   : > { %v11615_v32 = vpop.f32.mrf.mxu1  ;;  %v15191_v45 = vadd.f32 %v4008_v39, %v3896_v22 }
 0x361   : > { %v3862_v63 = vpop.f32.mrf.mxu0 }
 0x362   : > { %v3897_v10 = vadd.f32 %v3862_v63, %v15006_v24  ;;  %v4027_v20 = vpop.f32.mrf.mxu1  ;;  %v5004_v24 = vpack.c.bf16 %v15064_v58, %v14835_v6  ;;  %v5005_v58 = vpack.c.bf16 %v15098_v28, %v15067_v52 }
 0x363   : > { %v11578_v7 = vpop.f32.mrf.mxu0 }
 0x364   : > { %v11616_v49 = vpop.f32.mrf.mxu1  ;;  %v15199_v56 = vadd.f32 %v4011_v15, %v3897_v10  ;;  %v5155_v15 = vpack.c.bf16 %v14917_v11, %v14900_v25 }
 0x365   : > { %v3867_v59 = vpop.f32.mrf.mxu0  ;;  %11804 = vmatmul.mubr.msk.bf16.vlgmr.msra.gmra.mxu0 %vm441_vm3, %v5003_v33 }
 0x366   : > { %v3898_v39 = vadd.f32 %v3867_v59, %v15023_v19  ;;  %v4032_v22 = vpop.f32.mrf.mxu1  ;;  %11842 = vmatmul.mubr.msk.bf16.gmra.mxu1 %vm441_vm3, %v5154_v48  ;;  %11862 = vmatpush3.bf16.msra.mxu0 %v5331_v14  ;;  %v5156_v48 = vpack.c.bf16 %v14934_v30, %v14920_v61  ;;  %v15242_v61 = vld [vmem:[%s12888_s24 + $0x1c1] sm:$0xff] }
 0x367   : > { %v11581_v13 = vpop.f32.mrf.mxu0  ;;  %11807 = vmatprep.mubr.msk.bf16.mxu0 %vm12796_vm2, %v17230_v47  ;;  %11845 = vmatprep.mubr.msk.bf16.mxu1 %vm12796_vm2, %v17230_v47 }
 0x368   : > { %v11619_v21 = vpop.f32.mrf.mxu1  ;;  %11921 = vmatprep.subr.bf16.mxu0 %v17230_v47  ;;  %v15209_v62 = vadd.f32 %v4016_v50, %v3898_v39 }
 0x369   : > { %v3870_v41 = vpop.f32.mrf.mxu0 }
 0x36a   : > { %v3899_v19 = vadd.f32 %v3870_v41, %v15031_v34  ;;  %v4035_v59 = vpop.f32.mrf.mxu1  ;;  %v5157_v41 = vpack.c.bf16 %v15242_v61, %v14937_v57  ;;  %v15261_v57 = vld [vmem:[%s12888_s24 + $0x1c9] sm:$0xff] }
 0x36b   : > { %v11582_v55 = vpop.f32.mrf.mxu0 }
 0x36c   : > { %v11620_v32 = vpop.f32.mrf.mxu1  ;;  %v15216_v63 = vadd.f32 %v4019_v37, %v3899_v19 }
 0x36d   : > { %v3875_v33 = vpop.f32.mrf.mxu0  ;;  %11808 = vmatmul.mubr.msk.bf16.gmra.mxu0 %vm441_vm3, %v5004_v24 }
 0x36e   : > { %v3900_v50 = vadd.f32 %v3875_v33, %v15047_v26  ;;  %v4282_v10 = vpop.f32.mrf.mxu1  ;;  %11846 = vmatmul.mubr.msk.bf16.gmra.mxu1 %vm441_vm3, %v5155_v15  ;;  %11811 = vmatprep.mubr.msk.bf16.mxu0 %vm12796_vm2, %v17230_v47 }
 0x36f   : > { %v11585_v6 = vpop.f32.mrf.mxu0  ;;  %11849 = vmatprep.mubr.msk.bf16.mxu1 %vm12796_vm2, %v17230_v47 }
 0x370   : > { %v11655_v25 = vpop.f32.mrf.mxu1  ;;  %v15225_v11 = vadd.f32 %v4024_v46, %v3900_v50 }
 0x371   : > { %v3878_v34 = vpop.f32.mrf.mxu0 }
 0x372   : > { %v3901_v26 = vadd.f32 %v3878_v34, %v15054_v18  ;;  %v4285_v37 = vpop.f32.mrf.mxu1 }
 0x373   : > { %v11586_v14 = vpop.f32.mrf.mxu0 }
 0x374   : > { %v11656_v7 = vpop.f32.mrf.mxu1  ;;  %v15232_v49 = vadd.f32 %v4027_v20, %v3901_v26 }
 0x375   : > { %v3883_v39 = vpop.f32.mrf.mxu0  ;;  %11812 = vmatmul.mubr.msk.bf16.gmra.mxu0 %vm441_vm3, %v5005_v58 }
 0x376   : > { %v3902_v46 = vadd.f32 %v3883_v39, %v15077_v8  ;;  %v4290_v13 = vpop.f32.mrf.mxu1  ;;  %11850 = vmatmul.mubr.msk.bf16.gmra.mxu1 %vm441_vm3, %v5156_v48  ;;  %11815 = vmatprep.mubr.msk.bf16.mxu0 %vm12796_vm2, %v17230_v47  ;;  %v5006_v8 = vpack.c.bf16 %v15132_v3, %v15101_v29  ;;  %v15264_v29 = vld [vmem:[%s12888_s24 + $0x1d1] sm:$0xff] }
 0x377   : > { %v11589_v18 = vpop.f32.mrf.mxu0  ;;  %11853 = vmatprep.mubr.msk.bf16.mxu1 %vm12796_vm2, %v17230_v47  ;;  %v5158_v25 = vpack.c.bf16 %v15264_v29, %v15261_v57 }
 0x378   : > { %v11659_v30 = vpop.f32.mrf.mxu1  ;;  %v15244_v52 = vadd.f32 %v4032_v22, %v3902_v46 }
 0x379   : > { %v3886_v28 = vpop.f32.mrf.mxu0 }
 0x37a   : > { %v3903_v20 = vadd.f32 %v3886_v28, %v15088_v53  ;;  %v4293_v21 = vpop.f32.mrf.mxu1 }
 0x37b   : > { %v11590_v24 = vpop.f32.mrf.mxu0 }
 0x37c   : > { %v11660_v19 = vpop.f32.mrf.mxu1  ;;  %v15251_v15 = vadd.f32 %v4035_v59, %v3903_v20 }
 0x37d   : > { %v4133_v55 = vpop.f32.mrf.mxu0  ;;  %11816 = vmatmul.mubr.msk.bf16.gmra.mxu0 %vm441_vm3, %v5006_v8 }
 0x37e   : > { %v4188_v22 = vadd.f32 %v4133_v55, %v15111_v35  ;;  %v4298_v32 = vpop.f32.mrf.mxu1  ;;  %11854 = vmatmul.mubr.msk.bf16.gmra.mxu1 %vm441_vm3, %v5157_v41  ;;  %11819 = vmatprep.mubr.msk.bf16.mxu0 %vm12796_vm2, %v17230_v47  ;;  %v5007_v35 = vpack.c.bf16 %v15161_v23, %v15135_v1 }
 0x37f   : > { %v11625_v53 = vpop.f32.mrf.mxu0  ;;  %11857 = vmatprep.mubr.msk.bf16.mxu1 %vm12796_vm2, %v17230_v47 }
 0x380   : > { %v11663_v3 = vpop.f32.mrf.mxu1  ;;  %v15266_v59 = vadd.f32 %v4282_v10, %v4188_v22 }
 0x381   : > { %v4136_v33 = vpop.f32.mrf.mxu0 }
 0x382   : > { %v4189_v50 = vadd.f32 %v4136_v33, %v15122_v43  ;;  %v4301_v6 = vpop.f32.mrf.mxu1  ;;  %v15281_v43 = vld [vmem:[%s12888_s24 + $0x1c0] sm:$0xff] }
 0x383   : > { %v11626_v34 = vpop.f32.mrf.mxu0  ;;  %v5008_v39 = vpack.c.bf16 %v15281_v43, %v15164_v36  ;;  %v15306_v36 = vld [vmem:[%s12888_s24 + $0x1d0] sm:$0xff] }
 0x384   : > { %v11664_v58 = vpop.f32.mrf.mxu1  ;;  %v15273_v26 = vadd.f32 %v4285_v37, %v4189_v50 }
 0x385   : > { %v4141_v48 = vpop.f32.mrf.mxu0  ;;  %11820 = vmatmul.mubr.msk.bf16.gmra.mxu0 %vm441_vm3, %v5007_v35 }
 0x386   : > { %v4190_v10 = vadd.f32 %v4141_v48, %v15139_v31  ;;  %v4306_v14 = vpop.f32.mrf.mxu1  ;;  %11858 = vmatmul.mubr.msk.bf16.gmra.mxu1 %vm441_vm3, %v5158_v25  ;;  %11823 = vmatprep.mubr.msk.bf16.mxu0 %vm12796_vm2, %v17230_v47  ;;  %v10040_v31 = vld [vmem:[%s17201_s1 + $0x10] sm:$0x3] }
 0x387   : > { %v11629_v1 = vpop.f32.mrf.mxu0  ;;  %11893 = vmatprep.mubr.msk.bf16.mxu1 %vm12796_vm2, %v17230_v47  ;;  %v5778_v28 = vand.u32 %v10040_v31, %v12869_v5 }
 0x388   : > { %v11667_v23 = vpop.f32.mrf.mxu1  ;;  %v15285_v37 = vadd.f32 %v4290_v13, %v4190_v10 }
 0x389   : > { %v4144_v7 = vpop.f32.mrf.mxu0 }
 0x38a   : > { %v4191_v46 = vadd.f32 %v4144_v7, %v15152_v27  ;;  %v4309_v18 = vpop.f32.mrf.mxu1  ;;  %v15303_v27 = vld [vmem:[%s12888_s24 + $0x1c8] sm:$0xff] }
 0x38b   : > { %v11630_v30 = vpop.f32.mrf.mxu0 }
 0x38c   : > { %v11668_v8 = vpop.f32.mrf.mxu1  ;;  %v15294_v20 = vadd.f32 %v4293_v21, %v4191_v46 }
 0x38d   : > { %v4149_v13 = vpop.f32.mrf.mxu0  ;;  %11824 = vmatmul.mubr.msk.bf16.gmra.mxu0 %vm441_vm3, %v5008_v39 }
 0x38e   : > { %v4192_v41 = vadd.f32 %v4149_v13, %v15168_v4  ;;  %v4314_v24 = vpop.f32.mrf.mxu1  ;;  %11894 = vmatmul.mubr.msk.bf16.vlgmr.msra.gmra.mxu1 %vm441_vm3, %v15081_v42  ;;  %11827 = vmatprep.mubr.msk.bf16.mxu0 %vm12796_vm2, %v17230_v47  ;;  %v5009_v42 = vpack.c.bf16 %v15306_v36, %v15303_v27 }
 0x38f   : > { %v11633_v19 = vpop.f32.mrf.mxu0  ;;  %11897 = vmatprep.mubr.msk.bf16.mxu1 %vm12796_vm2, %v17230_v47  ;;  %11952 = vmatpush3.bf16.msra.mxu1 %v5778_v28 }
 0x390   : > { %v11671_v21 = vpop.f32.mrf.mxu1  ;;  %v15310_v55 = vadd.f32 %v4298_v32, %v4192_v41  ;;  %12003 = vmatprep.subr.bf16.mxu1 %v17230_v47 }
 0x391   : > { %v4152_v4 = vpop.f32.mrf.mxu0 }
 0x392   : > { %v4193_v22 = vadd.f32 %v4152_v4, %v15178_v40  ;;  %v4317_v53 = vpop.f32.mrf.mxu1  ;;  %v10032_v40 = vld [vmem:[%s17201_s1 + $0xe] sm:$0x3] }
 0x393   : > { %v11634_v3 = vpop.f32.mrf.mxu0  ;;  %v5629_v1 = vand.u32 %v10032_v40, %v12869_v5 }
 0x394   : > { %v11672_v33 = vpop.f32.mrf.mxu1  ;;  %v15316_v35 = vadd.f32 %v4301_v6, %v4193_v22 }
 0x395   : > { %v4157_v50 = vpop.f32.mrf.mxu0  ;;  %11828 = vmatmul.mubr.msk.bf16.gmra.mxu0 %vm441_vm3, %v5009_v42 }
 0x396   : > { %v4194_v25 = vadd.f32 %v4157_v50, %v15191_v45  ;;  %v4322_v32 = vpop.f32.mrf.mxu1  ;;  %11898 = vmatmul.mubr.msk.bf16.gmra.mxu1 %vm441_vm3, %v15115_v60  ;;  %11863 = vmatprep.mubr.msk.bf16.mxu0 %vm12796_vm2, %v17230_v47  ;;  %v5301_v45 = vpack.c.bf16 %v14975_v16, %v14954_v12 }
 0x397   : > { %v11637_v34 = vpop.f32.mrf.mxu0  ;;  %11901 = vmatprep.mubr.msk.bf16.mxu1 %vm12796_vm2, %v17230_v47 }
 0x398   : > { %v11675_v6 = vpop.f32.mrf.mxu1  ;;  %v15329_v58 = vadd.f32 %v4306_v14, %v4194_v25 }
 0x399   : > { %v4160_v48 = vpop.f32.mrf.mxu0 }
 0x39a   : > { %v4195_v60 = vadd.f32 %v4160_v48, %v15199_v56  ;;  %v4325_v10 = vpop.f32.mrf.mxu1 }
 0x39b   : > { %v11638_v23 = vpop.f32.mrf.mxu0 }
 0x39c   : > { %v11676_v31 = vpop.f32.mrf.mxu1  ;;  %v15335_v7 = vadd.f32 %v4309_v18, %v4195_v60 }
 0x39d   : > { %v4165_v39 = vpop.f32.mrf.mxu0  ;;  %11864 = vmatmul.mubr.msk.bf16.vlgmr.msra.gmra.mxu0 %vm441_vm3, %v5301_v45 }
 0x39e   : > { %v4196_v46 = vadd.f32 %v4165_v39, %v15209_v62  ;;  %v4330_v14 = vpop.f32.mrf.mxu1  ;;  %11902 = vmatmul.mubr.msk.bf16.gmra.mxu1 %vm441_vm3, %v15146_v2  ;;  %11922 = vmatpush3.bf16.msra.mxu0 %v5629_v1  ;;  %v5302_v62 = vpack.c.bf16 %v15017_v0, %v14978_v9  ;;  %v17244_v39 = vld [vmem:[#allocation10_spill] sm:$0xff] }
 0x39f   : > { %v11641_v12 = vpop.f32.mrf.mxu0  ;;  %11867 = vmatprep.mubr.msk.bf16.mxu0 %vm12796_vm2, %v17230_v47  ;;  %11905 = vmatprep.mubr.msk.bf16.mxu1 %vm12796_vm2, %v17230_v47 }
 0x3a0   : > { %v11679_v16 = vpop.f32.mrf.mxu1  ;;  %11981 = vmatprep.subr.bf16.mxu0 %v17230_v47  ;;  %v15346_v56 = vadd.f32 %v4314_v24, %v4196_v46  ;;  %v17245_v46 = vld [vmem:[#allocation12_spill] sm:$0xff]  ;;  %v15429_v12 = vld [vmem:[%s17203_s3] ss:$0 sm:$0xff] }
 0x3a1   : > { %v4168_v18 = vpop.f32.mrf.mxu0 }
 0x3a2   : > { %v4197_v30 = vadd.f32 %v4168_v18, %v15216_v63  ;;  %v4333_v2 = vpop.f32.mrf.mxu1 }
 0x3a3   : > { %v11642_v28 = vpop.f32.mrf.mxu0 }
 0x3a4   : > { %v11680_v8 = vpop.f32.mrf.mxu1  ;;  %v15351_v13 = vadd.f32 %v4317_v53, %v4197_v30 }
 0x3a5   : > { %v4173_v41 = vpop.f32.mrf.mxu0  ;;  %11868 = vmatmul.mubr.msk.bf16.gmra.mxu0 %vm441_vm3, %v5302_v62 }
 0x3a6   : > { %v4198_v19 = vadd.f32 %v4173_v41, %v15225_v11  ;;  %v15355_v21 = vpop.f32.mrf.mxu1  ;;  %11906 = vmatmul.mubr.msk.bf16.gmra.mxu1 %vm441_vm3, %v15173_v17  ;;  %11871 = vmatprep.mubr.msk.bf16.mxu0 %vm12796_vm2, %v17230_v47  ;;  %v5303_v11 = vpack.c.bf16 %v15042_v38, %v15020_v51  ;;  %v15372_v17 = vpack.c.bf16 %v15303_v27, %v15281_v43  ;;  %v15387_v38 = vld [vmem:[%s12888_s24 + $0x1d8] sm:$0xff] }
 0x3a7   : > { %v11645_v9 = vpop.f32.mrf.mxu0  ;;  %11909 = vmatprep.mubr.msk.bf16.mxu1 %vm12796_vm2, %v17230_v47  ;;  %v15398_v40 = vpack.c.bf16 %v15387_v38, %v15306_v36 }
 0x3a8   : > { %v11715_v0 = vpop.f32.mrf.mxu1  ;;  %v15363_v63 = vadd.f32 %v4322_v32, %v4198_v19 }
 0x3a9   : > { %v4176_v24 = vpop.f32.mrf.mxu0 }
 0x3aa   : > { %v4199_v4 = vadd.f32 %v4176_v24, %v15232_v49  ;;  %v15368_v42 = vpop.f32.mrf.mxu1  ;;  %v15450_v24 = vld [vmem:[%s12888_s24 + $0x1c2] sm:$0xff] }
 0x3ab   : > { %v11646_v22 = vpop.f32.mrf.mxu0 }
 0x3ac   : > { %v11716_v53 = vpop.f32.mrf.mxu1  ;;  %v15374_v3 = vadd.f32 %v4325_v10, %v4199_v4 }
 0x3ad   : > { %v4181_v33 = vpop.f32.mrf.mxu0  ;;  %11872 = vmatmul.mubr.msk.bf16.gmra.mxu0 %vm441_vm3, %v5303_v11 }
 0x3ae   : > { %v4200_v50 = vadd.f32 %v4181_v33, %v15244_v52  ;;  %v15378_v25 = vpop.f32.mrf.mxu1  ;;  %11910 = vmatmul.mubr.msk.bf16.gmra.mxu1 %vm441_vm3, %v15372_v17  ;;  %11875 = vmatprep.mubr.msk.bf16.mxu0 %vm12796_vm2, %v17230_v47  ;;  %v5304_v52 = vpack.c.bf16 %v15072_v44, %v15045_v54  ;;  %v15413_v44 = vld [vmem:[%s12888_s24 + $0x1e0] sm:$0xff] }
 0x3af   : > { %v11649_v51 = vpop.f32.mrf.mxu0  ;;  %11913 = vmatprep.mubr.msk.bf16.mxu1 %vm12796_vm2, %v17230_v47 }
 0x3b0   : > { %v11719_v49 = vpop.f32.mrf.mxu1  ;;  %v15389_v43 = vadd.f32 %v4330_v14, %v4200_v50  ;;  %v5305_v14 = vpack.c.bf16 %v17245_v46, %v17244_v39  ;;  %v17246_v50 = vld [vmem:[#allocation13_spill] sm:$0xff] }
 0x3b1   : > { %v4184_v27 = vpop.f32.mrf.mxu0  ;;  %v5306_v51 = vpack.c.bf16 %v15450_v24, %v17246_v50 }
 0x3b2   : > { %v4201_v32 = vadd.f32 %v4184_v27, %v15251_v15  ;;  %v15394_v34 = vpop.f32.mrf.mxu1  ;;  %v15416_v15 = vld [vmem:[%s12888_s24 + $0x1e8] sm:$0xff] }
 0x3b3   : > { %v11650_v6 = vpop.f32.mrf.mxu0  ;;  %v15437_v30 = vpack.c.bf16 %v15416_v15, %v15413_v44 }
 0x3b4   : > { %v11720_v48 = vpop.f32.mrf.mxu1  ;;  %v15400_v45 = vadd.f32 %v4333_v2, %v4201_v32 }
 0x3b5   : > { %v4431_v60 = vpop.f32.mrf.mxu0  ;;  %11876 = vmatmul.mubr.msk.bf16.gmra.mxu0 %vm441_vm3, %v5304_v52 }
 0x3b6   : > { %v4486_v10 = vadd.f32 %v4431_v60, %v15266_v59  ;;  %v15404_v1 = vpop.f32.mrf.mxu1  ;;  %11914 = vmatmul.mubr.msk.bf16.gmra.mxu1 %vm441_vm3, %v15398_v40  ;;  %11879 = vmatprep.mubr.msk.bf16.mxu0 %vm12796_vm2, %v17230_v47  ;;  %v15421_v59 = vld [vmem:[%s17202_s2] ss:$0 sm:$0xff] }
 0x3b7   : > { %v11685_v54 = vpop.f32.mrf.mxu0  ;;  %11917 = vmatprep.mubr.msk.bf16.mxu1 %vm12796_vm2, %v17230_v47 }
 0x3b8   : > { %v4500_v36 = vadd.f32 %v15421_v59, %v4486_v10  ;;  %v11723_v23 = vpop.f32.mrf.mxu1  ;;  %v17247_v54 = vld [vmem:[#allocation8_spill] sm:$0xff] }
 0x3b9   : > { %v4434_v31 = vpop.f32.mrf.mxu0 }
 0x3ba   : > { %vm4514_vm4 = vcmp.gt.f32.partialorder %v4500_v36, 0.0  ;;  %v4528_v16 = vmul.f32 %v15429_v12, %v4500_v36  ;;  %v4487_v18 = vadd.f32 %v4434_v31, %v15273_v26  ;;  %v15433_v62 = vpop.f32.mrf.mxu1 }
 0x3bb   : > { %v11686_v2 = vpop.f32.mrf.mxu0 }
 0x3bc   : > { %v4542_v28 = vsel %vm4514_vm4, %v4500_v36, %v4528_v16  ;;  %v4501_v8 = vadd.f32 %v15421_v59, %v4487_v18  ;;  %v11724_v41 = vpop.f32.mrf.mxu1  ;;  %v17248_v36 = vld [vmem:[#allocation9_spill] sm:$0xff]  ;;  %v17250_v18 = vld [vmem:[#allocation6_spill] sm:$0xff] }
 0x3bd   : > { %v4439_v19 = vpop.f32.mrf.mxu0  ;;  %11880 = vmatmul.mubr.msk.bf16.gmra.mxu0 %vm441_vm3, %v5305_v14  ;;  %v17249_v23 = vmax.f32 %v17247_v54, %v17248_v36  ;;  %v15482_v2 = vld [vmem:[%s12888_s24 + $0x1ca] sm:$0xff] }
 0x3be   : > { %vm4515_vm5 = vcmp.gt.f32.partialorder %v4501_v8, 0.0  ;;  %v4529_v9 = vmul.f32 %v15429_v12, %v4501_v8  ;;  %v4488_v0 = vadd.f32 %v4439_v19, %v15285_v37  ;;  %v15443_v26 = vpop.f32.mrf.mxu1  ;;  %11918 = vmatmul.mubr.msk.bf16.gmra.mxu1 %vm441_vm3, %v15437_v30  ;;  %11883 = vmatprep.mubr.msk.bf16.mxu0 %vm12796_vm2, %v17230_v47  ;;  %v5968_v37 = vld [vmem:[%s17201_s1] sm:$0x3]  ;;  %v5586_v54 = vld [vmem:[%s12888_s24 + $0x189] sm:$0xff] }
 0x3bf   : > { %v11689_v11 = vpop.f32.mrf.mxu0  ;;  %11953 = vmatprep.mubr.msk.bf16.mxu1 %vm12796_vm2, %v17230_v47  ;;  %v6092_v6 = vand.u32 %v5968_v37, %v12869_v5 }
 0x3c0   : > { %v4543_v4 = vsel %vm4515_vm5, %v4501_v8, %v4529_v9  ;;  %v4502_v22 = vadd.f32 %v15421_v59, %v4488_v0  ;;  %v11727_v53 = vpop.f32.mrf.mxu1  ;;  %v15485_v8 = vld [vmem:[%s12888_s24 + $0x1d2] sm:$0xff] }
 0x3c1   : > { %4557 = vst [vmem:[#allocation2 + $0xe8] sm:$0xff] %v4543_v4  ;;  %v4442_v33 = vpop.f32.mrf.mxu0 }
 0x3c2   : > { %vm4516_vm6 = vcmp.gt.f32.partialorder %v4502_v22, 0.0  ;;  %v4530_v49 = vmul.f32 %v15429_v12, %v4502_v22  ;;  %v4489_v27 = vadd.f32 %v4442_v33, %v15294_v20  ;;  %v15462_v52 = vpop.f32.mrf.mxu1  ;;  %v7109_v20 = vld [vmem:[#allocation2 + $0xc8] sm:$0xff] }
 0x3c3   : > { %v11690_v32 = vpop.f32.mrf.mxu0  ;;  %v7115_v41 = vmax.f32 %v7109_v20, %v4542_v28 }
 0x3c4   : > { %v15465_v48 = vsel %vm4516_vm6, %v4502_v22, %v4530_v49  ;;  %v4503_v60 = vadd.f32 %v15421_v59, %v4489_v27  ;;  %v11728_v10 = vpop.f32.mrf.mxu1  ;;  %v5307_v22 = vpack.c.bf16 %v15485_v8, %v15482_v2 }
 0x3c5   : > { %v7120_v31 = vmax.f32 %v17249_v23, %v15465_v48  ;;  %v4447_v39 = vpop.f32.mrf.mxu0  ;;  %11884 = vmatmul.mubr.msk.bf16.gmra.mxu0 %vm441_vm3, %v5306_v51  ;;  %v5585_v10 = vld [vmem:[%s12888_s24 + $0x181] sm:$0xff] }
 0x3c6   : > { %vm4517_vm7 = vcmp.gt.f32.partialorder %v4503_v60, 0.0  ;;  %v4531_v46 = vmul.f32 %v15429_v12, %v4503_v60  ;;  %v4490_v14 = vadd.f32 %v4447_v39, %v15310_v55  ;;  %v15475_v16 = vpop.f32.mrf.mxu1  ;;  %11954 = vmatmul.mubr.msk.bf16.vlgmr.msra.gmra.mxu1 %vm441_vm3, %v17250_v18  ;;  %11887 = vmatprep.mubr.msk.bf16.mxu0 %vm12796_vm2, %v17230_v47  ;;  %v10048_v23 = vld [vmem:[%s17201_s1 + $0x2] sm:$0x3]  ;;  %v5599_v18 = vpack.c.bf16 %v5586_v54, %v5585_v10  ;;  %v5588_v10 = vld [vmem:[%s12888_s24 + $0x199] sm:$0xff] }
 0x3c7   : > { %7123 = vst [vmem:[#allocation3 + $0x60] sm:$0xff] %v7120_v31  ;;  %v11693_v19 = vpop.f32.mrf.mxu0  ;;  %11957 = vmatprep.mubr.msk.bf16.mxu1 %vm12796_vm2, %v17230_v47  ;;  %12004 = vmatpush3.bf16.msra.mxu1 %v6092_v6 }
 0x3c8   : > { %v15489_v55 = vsel %vm4517_vm7, %v4503_v60, %v4531_v46  ;;  %v4504_v9 = vadd.f32 %v15421_v59, %v4490_v14  ;;  %v11731_v0 = vpop.f32.mrf.mxu1  ;;  %12047 = vmatprep.subr.bf16.mxu1 %v17230_v47  ;;  %v17251_v60 = vld [vmem:[#allocation7_spill] sm:$0xff]  ;;  %v7113_v31 = vld [vmem:[#allocation2 + $0xe8] sm:$0x3f] }
 0x3c9   : > { %v7121_v11 = vmax.f32 %v7115_v41, %v15489_v55  ;;  %v4450_v4 = vpop.f32.mrf.mxu0  ;;  %v7110_v41 = vld [vmem:[#allocation2 + $0xd0] sm:$0x3f] }
 0x3ca   : > { %vm4518_vm8 = vcmp.gt.f32.partialorder %v4504_v9, 0.0  ;;  %v4532_v28 = vmul.f32 %v15429_v12, %v4504_v9  ;;  %v4491_v53 = vadd.f32 %v4450_v4, %v15316_v35  ;;  %v15498_v37 = vpop.f32.mrf.mxu1  ;;  %v7116_v4 = vmax.f32 %v7110_v41, %v7113_v31 }
 0x3cb   : > { %7124 = vst [vmem:[#allocation3 + $0x68] sm:$0xff] %v7121_v11  ;;  %v11694_v33 = vpop.f32.mrf.mxu0  ;;  %v6001_v11 = vand.u32 %v10048_v23, %v12869_v5 }
 0x3cc   : > { %v4546_v50 = vsel %vm4518_vm8, %v4504_v9, %v4532_v28  ;;  %v4505_v51 = vadd.f32 %v15421_v59, %v4491_v53  ;;  %v11732_v49 = vpop.f32.mrf.mxu1 }
 0x3cd   : > { %4560 = vst [vmem:[#allocation2 + $0x100] sm:$0xff] %v4546_v50  ;;  %v4455_v27 = vpop.f32.mrf.mxu0  ;;  %11888 = vmatmul.mubr.msk.bf16.gmra.mxu0 %vm441_vm3, %v5307_v22 }
 0x3ce   : > { %vm4519_vm9 = vcmp.gt.f32.partialorder %v4505_v51, 0.0  ;;  %v4533_v32 = vmul.f32 %v15429_v12, %v4505_v51  ;;  %v4492_v6 = vadd.f32 %v4455_v27, %v15329_v58  ;;  %v15504_v35 = vpop.f32.mrf.mxu1  ;;  %11958 = vmatmul.mubr.msk.bf16.gmra.mxu1 %vm441_vm3, %v17251_v60  ;;  %11923 = vmatprep.mubr.msk.bf16.mxu0 %vm12796_vm2, %v17230_v47  ;;  %v5587_v60 = vld [vmem:[%s12888_s24 + $0x191] sm:$0xff] }
 0x3cf   : > { %v11697_v36 = vpop.f32.mrf.mxu0  ;;  %11961 = vmatprep.mubr.msk.bf16.mxu1 %vm12796_vm2, %v17230_v47  ;;  %v5600_v31 = vpack.c.bf16 %v5588_v10, %v5587_v60 }
 0x3d0   : > { %v4547_v58 = vsel %vm4519_vm9, %v4505_v51, %v4533_v32  ;;  %v4506_v39 = vadd.f32 %v15421_v59, %v4492_v6  ;;  %v11735_v20 = vpop.f32.mrf.mxu1  ;;  %v17252_v6 = vld [vmem:[#allocation11_spill] sm:$0xff] }
 0x3d1   : > { %v7132_v46 = vmax.f32 %v15465_v48, %v4547_v58  ;;  %v4458_v14 = vpop.f32.mrf.mxu0 }
 0x3d2   : > { %vm4520_vm10 = vcmp.gt.f32.partialorder %v4506_v39, 0.0  ;;  %v4534_v19 = vmul.f32 %v15429_v12, %v4506_v39  ;;  %v4493_v9 = vadd.f32 %v4458_v14, %v15335_v7  ;;  %v15521_v0 = vpop.f32.mrf.mxu1  ;;  %v7303_v14 = vld [vmem:[#allocation3 + $0x60] ss:$2 sm:$0xff] }
 0x3d3   : > { %v11698_v22 = vpop.f32.mrf.mxu0 }
 0x3d4   : > { %v7119_v28 = vld [vmem:[#allocation2 + $0x100] sm:$0x3f]  ;;  %v4548_v53 = vsel %vm4520_vm10, %v4506_v39, %v4534_v19  ;;  %v4507_v48 = vadd.f32 %v15421_v59, %v4493_v9  ;;  %v11736_v33 = vpop.f32.mrf.mxu1 }
 0x3d5   : > { %v7122_v50 = vmax.f32 %v7116_v4, %v7119_v28  ;;  %v7133_v51 = vmax.f32 %v15489_v55, %v4548_v53  ;;  %v4463_v49 = vpop.f32.mrf.mxu0  ;;  %11924 = vmatmul.mubr.msk.bf16.vlgmr.msra.gmra.mxu0 %vm441_vm3, %v5599_v18  ;;  %v7307_v18 = vld [vmem:[#allocation3 + $0x61] ss:$2 sm:$0xff]  ;;  %v17253_v33 = vld [vmem:[#allocation14_spill] sm:$0xff] }
 0x3d6   : > { %vm4521_vm11 = vcmp.gt.f32.partialorder %v4507_v48, 0.0  ;;  %v4535_v7 = vmul.f32 %v15429_v12, %v4507_v48  ;;  %v4494_v27 = vadd.f32 %v4463_v49, %v15346_v56  ;;  %v15529_v32 = vpop.f32.mrf.mxu1  ;;  %11962 = vmatmul.mubr.msk.bf16.gmra.mxu1 %vm441_vm3, %v17252_v6  ;;  %11982 = vmatpush3.bf16.msra.mxu0 %v6001_v11  ;;  %v7314_v28 = vmax.f32 %v7303_v14, %v7307_v18  ;;  %v5590_v49 = vld [vmem:[%s12888_s24 + $0x1a9] sm:$0xff] }
 0x3d7   : > { %7125 = vst [vmem:[#allocation3 + $0x70] sm:$0x3f] %v7122_v50  ;;  %v11701_v54 = vpop.f32.mrf.mxu0  ;;  %11927 = vmatprep.mubr.msk.bf16.mxu0 %vm12796_vm2, %v17230_v47  ;;  %11965 = vmatprep.mubr.msk.bf16.mxu1 %vm12796_vm2, %v17230_v47  ;;  %v5589_v50 = vld [vmem:[%s12888_s24 + $0x1a1] sm:$0xff] }
 0x3d8   : > { %v4549_v55 = vsel %vm4521_vm11, %v4507_v48, %v4535_v7  ;;  %v4508_v36 = vadd.f32 %v15421_v59, %v4494_v27  ;;  %v11739_v56 = vpop.f32.mrf.mxu1  ;;  %12025 = vmatprep.subr.bf16.mxu0 %v17230_v47 }
 0x3d9   : > { %4563 = vst [vmem:[#allocation2 + $0x118] sm:$0xff] %v4549_v55  ;;  %v4466_v23 = vpop.f32.mrf.mxu0 }
 0x3da   : > { %vm4522_vm12 = vcmp.gt.f32.partialorder %v4508_v36, 0.0  ;;  %v4536_v58 = vmul.f32 %v15429_v12, %v4508_v36  ;;  %v4495_v39 = vadd.f32 %v4466_v23, %v15351_v13  ;;  %v15543_v20 = vpop.f32.mrf.mxu1  ;;  %v5601_v23 = vpack.c.bf16 %v5590_v49, %v5589_v50 }
 0x3db   : > { %v11702_v41 = vpop.f32.mrf.mxu0 }
 0x3dc   : > { %v15545_v19 = vsel %vm4522_vm12, %v4508_v36, %v4536_v58  ;;  %v4509_v9 = vadd.f32 %v15421_v59, %v4495_v39  ;;  %v11740_v11 = vpop.f32.mrf.mxu1 }
 0x3dd   : > { %v7138_v4 = vmax.f32 %v7132_v46, %v15545_v19  ;;  %v4471_v22 = vpop.f32.mrf.mxu0  ;;  %11928 = vmatmul.mubr.msk.bf16.gmra.mxu0 %vm441_vm3, %v5600_v31  ;;  %v15568_v31 = vpack.c.bf16 %v15482_v2, %v15450_v24 }
 0x3de   : > { %vm4523_vm13 = vcmp.gt.f32.partialorder %v4509_v9, 0.0  ;;  %v4537_v13 = vmul.f32 %v15429_v12, %v4509_v9  ;;  %v4496_v53 = vadd.f32 %v4471_v22, %v15363_v63  ;;  %v15552_v48 = vpop.f32.mrf.mxu1  ;;  %11966 = vmatmul.mubr.msk.bf16.gmra.mxu1 %vm441_vm3, %v17253_v33  ;;  %11931 = vmatprep.mubr.msk.bf16.mxu0 %vm12796_vm2, %v17230_v47  ;;  %v7311_v46 = vld [vmem:[#allocation3 + $0x62] ss:$2 sm:$0xff]  ;;  %v7309_v60 = vld [vmem:[#allocation3 + $0x71] ss:$2 sm:$0x7] }
 0x3df   : > { %7141 = vst [vmem:[#allocation3 + $0x78] sm:$0xff] %v7138_v4  ;;  %v11705_v7 = vpop.f32.mrf.mxu0  ;;  %11969 = vmatprep.mubr.msk.bf16.mxu1 %vm12796_vm2, %v17230_v47  ;;  %v7316_v27 = vmax.f32 %v7314_v28, %v7311_v46  ;;  %v7305_v6 = vld [vmem:[#allocation3 + $0x70] ss:$2 sm:$0x7]  ;;  %v5591_v28 = vld [vmem:[%s12888_s24 + $0x1b1] sm:$0xff] }
 0x3e0   : > { %v15562_v63 = vsel %vm4523_vm13, %v4509_v9, %v4537_v13  ;;  %v4510_v10 = vadd.f32 %v15421_v59, %v4496_v53  ;;  %v11775_v54 = vpop.f32.mrf.mxu1  ;;  %v7315_v55 = vmax.f32 %v7305_v6, %v7309_v60  ;;  %v7313_v58 = vld [vmem:[#allocation3 + $0x72] ss:$2 sm:$0x7]  ;;  %v5592_v13 = vld [vmem:[%s12888_s24 + $0x1b9] sm:$0xff] }
 0x3e1   : > { %v7139_v36 = vmax.f32 %v7133_v51, %v15562_v63  ;;  %v4474_v56 = vpop.f32.mrf.mxu0  ;;  %7318 = vst [vmem:[#allocation4 + $0x2c] sm:$0xff] %v7316_v27  ;;  %v15589_v33 = vld [vmem:[%s12888_s24 + $0x1da] sm:$0xff]  ;;  %v5602_v6 = vpack.c.bf16 %v5592_v13, %v5591_v28  ;;  %v5603_v13 = vpack.c.bf16 %v15261_v57, %v15242_v61 }
 0x3e2   : > { %vm4524_vm14 = vcmp.gt.f32.partialorder %v4510_v10, 0.0  ;;  %v4538_v39 = vmul.f32 %v15429_v12, %v4510_v10  ;;  %v4497_v14 = vadd.f32 %v4474_v56, %v15374_v3  ;;  %v15572_v18 = vpop.f32.mrf.mxu1  ;;  %v7317_v41 = vmax.f32 %v7315_v55, %v7313_v58  ;;  %v7131_v50 = vld [vmem:[#allocation2 + $0x118] sm:$0x3f]  ;;  %v7128_v60 = vld [vmem:[#allocation2 + $0x100] sm:$0x3f] }
 0x3e3   : > { %7142 = vst [vmem:[#allocation3 + $0x80] sm:$0xff] %v7139_v36  ;;  %v11706_v51 = vpop.f32.mrf.mxu0  ;;  %v15602_v36 = vpack.c.bf16 %v15589_v33, %v15485_v8  ;;  %v7134_v56 = vmax.f32 %v7128_v60, %v7131_v50 }
 0x3e4   : > { %v4552_v9 = vsel %vm4524_vm14, %v4510_v10, %v4538_v39  ;;  %v4511_v11 = vadd.f32 %v15421_v59, %v4497_v14  ;;  %v11776_v24 = vpop.f32.mrf.mxu1  ;;  %7319 = vst [vmem:[#allocation4 + $0x34] sm:$0x7] %v7317_v41 }
 0x3e5   : > { %4566 = vst [vmem:[#allocation2 + $0x130] sm:$0xff] %v4552_v9  ;;  %v4479_v2 = vpop.f32.mrf.mxu0  ;;  %11932 = vmatmul.mubr.msk.bf16.gmra.mxu0 %vm441_vm3, %v5601_v23 }
 0x3e6   : > { %vm4525_vm15 = vcmp.gt.f32.partialorder %v4511_v11, 0.0  ;;  %v4539_v3 = vmul.f32 %v15429_v12, %v4511_v11  ;;  %v4498_v4 = vadd.f32 %v4479_v2, %v15389_v43  ;;  %v15578_v22 = vpop.f32.mrf.mxu1  ;;  %11970 = vmatmul.mubr.msk.bf16.gmra.mxu1 %vm441_vm3, %v15568_v31  ;;  %11935 = vmatprep.mubr.msk.bf16.mxu0 %vm12796_vm2, %v17230_v47  ;;  %v15621_v2 = vld [vmem:[%s12888_s24 + $0x1e2] sm:$0xff] }
 0x3e7   : > { %v11709_v53 = vpop.f32.mrf.mxu0  ;;  %11973 = vmatprep.mubr.msk.bf16.mxu1 %vm12796_vm2, %v17230_v47 }
 0x3e8   : > { %v15591_v49 = vsel %vm4525_vm15, %v4511_v11, %v4539_v3  ;;  %v4512_v43 = vadd.f32 %v15421_v59, %v4498_v4  ;;  %v11779_v46 = vpop.f32.mrf.mxu1  ;;  %v15624_v3 = vld [vmem:[%s12888_s24 + $0x1ea] sm:$0xff] }
 0x3e9   : > { %v7150_v7 = vmax.f32 %v15545_v19, %v15591_v49  ;;  %v4482_v27 = vpop.f32.mrf.mxu0 }
 0x3ea   : > { %vm4526_vm0 = vcmp.gt.f32.partialorder %v4512_v43, 0.0  ;;  %v4540_v10 = vmul.f32 %v15429_v12, %v4512_v43  ;;  %v4499_v54 = vadd.f32 %v4482_v27, %v15400_v45  ;;  %v15598_v55 = vpop.f32.mrf.mxu1  ;;  %v7321_v27 = vld [vmem:[#allocation3 + $0x78] ss:$2 sm:$0xff] }
 0x3eb   : > { %v11710_v23 = vpop.f32.mrf.mxu0 }
 0x3ec   : > { %v7137_v58 = vld [vmem:[#allocation2 + $0x130] sm:$0x3f]  ;;  %v15604_v39 = vsel %vm4526_vm0, %v4512_v43, %v4540_v10  ;;  %v4513_v14 = vadd.f32 %v15421_v59, %v4499_v54  ;;  %v11780_v41 = vpop.f32.mrf.mxu1  ;;  %v15634_v43 = vpack.c.bf16 %v15624_v3, %v15621_v2  ;;  %v15641_v54 = vld [vmem:[%s12888_s24 + $0x1d9] sm:$0xff] }
 0x3ed   : > { %v7140_v51 = vmax.f32 %v7134_v56, %v7137_v58  ;;  %v7151_v45 = vmax.f32 %v15562_v63, %v15604_v39  ;;  %v4785_v9 = vpop.f32.mrf.mxu0  ;;  %11936 = vmatmul.mubr.msk.bf16.gmra.mxu0 %vm441_vm3, %v5602_v6  ;;  %v7325_v6 = vld [vmem:[#allocation3 + $0x79] ss:$2 sm:$0xff] }
 0x3ee   : > { %vm4527_vm1 = vcmp.gt.f32.partialorder %v4513_v14, 0.0  ;;  %v4541_v8 = vmul.f32 %v15429_v12, %v4513_v14  ;;  %v4786_v11 = vadd.f32 %v4785_v9, %v15355_v21  ;;  %v15612_v24 = vpop.f32.mrf.mxu1  ;;  %11974 = vmatmul.mubr.msk.bf16.gmra.mxu1 %vm441_vm3, %v15602_v36  ;;  %11939 = vmatprep.mubr.msk.bf16.mxu0 %vm12796_vm2, %v17230_v47  ;;  %v7332_v58 = vmax.f32 %v7321_v27, %v7325_v6 }
 0x3ef   : > { %7143 = vst [vmem:[#allocation3 + $0x88] sm:$0x3f] %v7140_v51  ;;  %v11745_v59 = vpop.f32.mrf.mxu0  ;;  %11977 = vmatprep.mubr.msk.bf16.mxu1 %vm12796_vm2, %v17230_v47 }
 0x3f0   : > { %v4555_v12 = vsel %vm4527_vm1, %v4513_v14, %v4541_v8  ;;  %v11783_v21 = vpop.f32.mrf.mxu1  ;;  %v15627_v4 = vadd.f32 %v15552_v48, %v4786_v11 }
 0x3f1   : > { %4569 = vst [vmem:[#allocation2 + $0x148] sm:$0xff] %v4555_v12  ;;  %v4788_v28 = vpop.f32.mrf.mxu0  ;;  %v5604_v12 = vpack.c.bf16 %v15641_v54, %v15264_v29 }
 0x3f2   : > { %v4789_v53 = vadd.f32 %v4788_v28, %v15368_v42  ;;  %v4939_v50 = vpop.f32.mrf.mxu1 }
 0x3f3   : > { %v11746_v46 = vpop.f32.mrf.mxu0 }
 0x3f4   : > { %v11784_v60 = vpop.f32.mrf.mxu1  ;;  %v15637_v10 = vadd.f32 %v15572_v18, %v4789_v53 }
 0x3f5   : > { %v4793_v48 = vpop.f32.mrf.mxu0  ;;  %11940 = vmatmul.mubr.msk.bf16.gmra.mxu0 %vm441_vm3, %v5603_v13 }
 0x3f6   : > { %v4794_v61 = vadd.f32 %v4793_v48, %v15378_v25  ;;  %v4944_v42 = vpop.f32.mrf.mxu1  ;;  %11978 = vmatmul.mubr.msk.bf16.gmra.mxu1 %vm441_vm3, %v15634_v43  ;;  %11943 = vmatprep.mubr.msk.bf16.mxu0 %vm12796_vm2, %v17230_v47  ;;  %v7323_v56 = vld [vmem:[#allocation3 + $0x88] ss:$2 sm:$0x7]  ;;  %v7327_v23 = vld [vmem:[#allocation3 + $0x89] ss:$2 sm:$0x7] }
 0x3f7   : > { %v11749_v14 = vpop.f32.mrf.mxu0  ;;  %12005 = vmatprep.mubr.msk.bf16.mxu1 %vm12796_vm2, %v17230_v47  ;;  %v7329_v18 = vld [vmem:[#allocation3 + $0x7a] ss:$2 sm:$0xff]  ;;  %v7333_v41 = vmax.f32 %v7323_v56, %v7327_v23  ;;  %v10065_v25 = vld [vmem:[%s17201_s1 + $0x6] sm:$0x3] }
 0x3f8   : > { %v11787_v51 = vpop.f32.mrf.mxu1  ;;  %v15654_v9 = vadd.f32 %v15578_v22, %v4794_v61  ;;  %v7331_v8 = vld [vmem:[#allocation3 + $0x8a] ss:$2 sm:$0x7]  ;;  %v7334_v11 = vmax.f32 %v7332_v58, %v7329_v18  ;;  %v6316_v46 = vand.u32 %v10065_v25, %v12869_v5  ;;  %v15673_v48 = vld [vmem:[%s12888_s24 + $0x1e9] sm:$0xff] }
 0x3f9   : > { %v4796_v59 = vpop.f32.mrf.mxu0  ;;  %v7335_v21 = vmax.f32 %v7333_v41, %v7331_v8  ;;  %v5969_v8 = vld [vmem:[%s12888_s24 + $0x1c1] sm:$0xff] }
 0x3fa   : > { %v4797_v28 = vadd.f32 %v4796_v59, %v15394_v34  ;;  %v4947_v13 = vpop.f32.mrf.mxu1  ;;  %7336 = vst [vmem:[#allocation4 + $0x37] sm:$0xff] %v7334_v11  ;;  %v15670_v34 = vld [vmem:[%s12888_s24 + $0x1e1] sm:$0xff] }
 0x3fb   : > { %v11750_v53 = vpop.f32.mrf.mxu0  ;;  %7337 = vst [vmem:[#allocation4 + $0x3f] sm:$0x7] %v7335_v21  ;;  %v15683_v56 = vpack.c.bf16 %v15673_v48, %v15670_v34 }
 0x3fc   : > { %v11788_v27 = vpop.f32.mrf.mxu1  ;;  %v15661_v22 = vadd.f32 %v15598_v55, %v4797_v28 }
 0x3fd   : > { %v4801_v6 = vpop.f32.mrf.mxu0  ;;  %11944 = vmatmul.mubr.msk.bf16.gmra.mxu0 %vm441_vm3, %v5604_v12  ;;  %v5979_v12 = vpack.c.bf16 %v15261_v57, %v5969_v8  ;;  %v5971_v57 = vld [vmem:[%s12888_s24 + $0x1d1] sm:$0xff] }
 0x3fe   : > { %v4802_v29 = vadd.f32 %v4801_v6, %v15404_v1  ;;  %v4952_v60 = vpop.f32.mrf.mxu1  ;;  %12006 = vmatmul.mubr.msk.bf16.vlgmr.msra.gmra.mxu1 %vm441_vm3, %v15372_v17  ;;  %11947 = vmatprep.mubr.msk.bf16.mxu0 %vm12796_vm2, %v17230_v47 }
 0x3ff   : > { %v11753_v61 = vpop.f32.mrf.mxu0  ;;  %12009 = vmatprep.mubr.msk.bf16.mxu1 %vm12796_vm2, %v17230_v47  ;;  %12048 = vmatpush3.bf16.msra.mxu1 %v6316_v46 }
 0x400   : > { %v11791_v55 = vpop.f32.mrf.mxu1  ;;  %v15678_v1 = vadd.f32 %v15612_v24, %v4802_v29  ;;  %12091 = vmatprep.subr.bf16.mxu1 %v17230_v47  ;;  %v15721_v61 = vld [vmem:[%s12888_s24 + $0x1f8] sm:$0xff] }
 0x401   : > { %v4804_v17 = vpop.f32.mrf.mxu0 }
 0x402   : > { %v4805_v23 = vadd.f32 %v4804_v17, %v15433_v62  ;;  %v4955_v58 = vpop.f32.mrf.mxu1 }
 0x403   : > { %v11754_v14 = vpop.f32.mrf.mxu0 }
 0x404   : > { %v11792_v18 = vpop.f32.mrf.mxu1  ;;  %v15686_v41 = vadd.f32 %v4939_v50, %v4805_v23  ;;  %v10059_v50 = vld [vmem:[%s17201_s1 + $0x4] sm:$0x3] }
 0x405   : > { %v4809_v51 = vpop.f32.mrf.mxu0  ;;  %11948 = vmatmul.mubr.msk.bf16.gmra.mxu0 %vm441_vm3, %v15683_v56  ;;  %v6199_v28 = vand.u32 %v10059_v50, %v12869_v5 }
 0x406   : > { %v4810_v24 = vadd.f32 %v4809_v51, %v15443_v26  ;;  %v4960_v25 = vpop.f32.mrf.mxu1  ;;  %12010 = vmatmul.mubr.msk.bf16.gmra.mxu1 %vm441_vm3, %v15398_v40  ;;  %11983 = vmatprep.mubr.msk.bf16.mxu0 %vm12796_vm2, %v17230_v47 }
 0x407   : > { %v11757_v62 = vpop.f32.mrf.mxu0  ;;  %12013 = vmatprep.mubr.msk.bf16.mxu1 %vm12796_vm2, %v17230_v47 }
 0x408   : > { %v11795_v11 = vpop.f32.mrf.mxu1  ;;  %v15701_v59 = vadd.f32 %v4944_v42, %v4810_v24 }
 0x409   : > { %v4812_v26 = vpop.f32.mrf.mxu0  ;;  %v15743_v11 = vld [vmem:[%s12888_s24 + $0x200] sm:$0xff] }
 0x40a   : > { %v4813_v40 = vadd.f32 %v4812_v26, %v15462_v52  ;;  %v4963_v21 = vpop.f32.mrf.mxu1 }
 0x40b   : > { %v11758_v53 = vpop.f32.mrf.mxu0 }
 0x40c   : > { %v11796_v46 = vpop.f32.mrf.mxu1  ;;  %v15706_v27 = vadd.f32 %v4947_v13, %v4813_v40  ;;  %v15718_v13 = vld [vmem:[%s12888_s24 + $0x1f0] sm:$0xff] }
 0x40d   : > { %v4817_v6 = vpop.f32.mrf.mxu0  ;;  %11984 = vmatmul.mubr.msk.bf16.vlgmr.msra.gmra.mxu0 %vm441_vm3, %v5979_v12  ;;  %v15730_v18 = vpack.c.bf16 %v15721_v61, %v15718_v13 }
 0x40e   : > { %v4818_v42 = vadd.f32 %v4817_v6, %v15475_v16  ;;  %v4968_v29 = vpop.f32.mrf.mxu1  ;;  %12014 = vmatmul.mubr.msk.bf16.gmra.mxu1 %vm441_vm3, %v15437_v30  ;;  %12026 = vmatpush3.bf16.msra.mxu0 %v6199_v28  ;;  %v5980_v30 = vpack.c.bf16 %v15641_v54, %v5971_v57 }
 0x40f   : > { %v11761_v52 = vpop.f32.mrf.mxu0  ;;  %11987 = vmatprep.mubr.msk.bf16.mxu0 %vm12796_vm2, %v17230_v47  ;;  %12017 = vmatprep.mubr.msk.bf16.mxu1 %vm12796_vm2, %v17230_v47 }
 0x410   : > { %v11799_v55 = vpop.f32.mrf.mxu1  ;;  %12069 = vmatprep.subr.bf16.mxu0 %v17230_v47  ;;  %v15724_v16 = vadd.f32 %v4952_v60, %v4818_v42 }
 0x411   : > { %v4820_v17 = vpop.f32.mrf.mxu0 }
 0x412   : > { %v4821_v23 = vadd.f32 %v4820_v17, %v15498_v37  ;;  %v4971_v14 = vpop.f32.mrf.mxu1 }
 0x413   : > { %v11762_v51 = vpop.f32.mrf.mxu0 }
 0x414   : > { %v11800_v24 = vpop.f32.mrf.mxu1  ;;  %v15732_v8 = vadd.f32 %v4955_v58, %v4821_v23  ;;  %v5962_v58 = vld [vmem:[%s12888_s24 + $0x208] sm:$0x3f] }
 0x415   : > { %v4825_v62 = vpop.f32.mrf.mxu0  ;;  %11988 = vmatmul.mubr.msk.bf16.gmra.mxu0 %vm441_vm3, %v5980_v30  ;;  %v5967_v53 = vpack.c.bf16 %v5962_v58, %v15743_v11 }
 0x416   : > { %v4826_v60 = vadd.f32 %v4825_v62, %v15504_v35  ;;  %v5218_v50 = vpop.f32.mrf.mxu1  ;;  %12018 = vmatmul.mubr.msk.bf16.gmra.mxu1 %vm441_vm3, %v15730_v18  ;;  %11991 = vmatprep.mubr.msk.bf16.mxu0 %vm12796_vm2, %v17230_v47  ;;  %v6294_v62 = vpack.c.bf16 %v15413_v44, %v15387_v38  ;;  %v5978_v38 = vld [vmem:[%s12888_s24 + $0x209] sm:$0x3f] }
 0x417   : > { %v11765_v37 = vpop.f32.mrf.mxu0  ;;  %12021 = vmatprep.mubr.msk.bf16.mxu1 %vm12796_vm2, %v17230_v47 }
 0x418   : > { %v11835_v26 = vpop.f32.mrf.mxu1  ;;  %v15746_v12 = vadd.f32 %v4960_v25, %v4826_v60  ;;  %v15762_v25 = vld [vmem:[%s12888_s24 + $0x1f9] sm:$0xff] }
 0x419   : > { %v4828_v35 = vpop.f32.mrf.mxu0 }
 0x41a   : > { %v4829_v40 = vadd.f32 %v4828_v35, %v15521_v0  ;;  %v5221_v28 = vpop.f32.mrf.mxu1  ;;  %v15759_v0 = vld [vmem:[%s12888_s24 + $0x1f1] sm:$0xff] }
 0x41b   : > { %v11766_v46 = vpop.f32.mrf.mxu0  ;;  %v15773_v23 = vpack.c.bf16 %v15762_v25, %v15759_v0 }
 0x41c   : > { %v11836_v6 = vpop.f32.mrf.mxu1  ;;  %v15750_v42 = vadd.f32 %v4963_v21, %v4829_v40 }
 0x41d   : > { %v4833_v57 = vpop.f32.mrf.mxu0  ;;  %11992 = vmatmul.mubr.msk.bf16.gmra.mxu0 %vm441_vm3, %v15683_v56  ;;  %v10077_v56 = vld [vmem:[%s17201_s1 + $0xa] sm:$0x3] }
 0x41e   : > { %v4834_v52 = vadd.f32 %v4833_v57, %v15529_v32  ;;  %v5226_v55 = vpop.f32.mrf.mxu1  ;;  %12022 = vmatmul.mubr.msk.bf16.gmra.mxu1 %vm441_vm3, %v5967_v53  ;;  %11995 = vmatprep.mubr.msk.bf16.mxu0 %vm12796_vm2, %v17230_v47  ;;  %v6550_v37 = vand.u32 %v10077_v56, %v12869_v5 }
 0x41f   : > { %v11769_v17 = vpop.f32.mrf.mxu0  ;;  %12049 = vmatprep.mubr.msk.bf16.mxu1 %vm12796_vm2, %v17230_v47 }
 0x420   : > { %v11839_v21 = vpop.f32.mrf.mxu1  ;;  %v15769_v32 = vadd.f32 %v4968_v29, %v4834_v52  ;;  %v6295_v52 = vpack.c.bf16 %v15718_v13, %v15416_v15  ;;  %v10071_v15 = vld [vmem:[%s17201_s1 + $0x8] sm:$0x3] }
 0x421   : > { %v4836_v30 = vpop.f32.mrf.mxu0 }
 0x422   : > { %v4837_v51 = vadd.f32 %v4836_v30, %v15543_v20  ;;  %v5229_v24 = vpop.f32.mrf.mxu1  ;;  %v15788_v20 = vld [vmem:[%s12888_s24 + $0x201] sm:$0xff] }
 0x423   : > { %v11770_v60 = vpop.f32.mrf.mxu0  ;;  %v5983_v46 = vpack.c.bf16 %v5978_v38, %v15788_v20 }
 0x424   : > { %v11840_v58 = vpop.f32.mrf.mxu1  ;;  %v15779_v26 = vadd.f32 %v4971_v14, %v4837_v51 }
 0x425   : > { %v5069_v29 = vpop.f32.mrf.mxu0  ;;  %11996 = vmatmul.mubr.msk.bf16.gmra.mxu0 %vm441_vm3, %v15773_v23  ;;  %v6433_v58 = vand.u32 %v10071_v15, %v12869_v5  ;;  %v15851_v15 = vld [vmem:[%s12888_s24 + $0x218] sm:$0xff] }
 0x426   : > { %v5124_v35 = vadd.f32 %v5069_v29, %v15627_v4  ;;  %v5234_v40 = vpop.f32.mrf.mxu1  ;;  %12050 = vmatmul.mubr.msk.bf16.vlgmr.msra.gmra.mxu1 %vm441_vm3, %v6294_v62  ;;  %11999 = vmatprep.mubr.msk.bf16.mxu0 %vm12796_vm2, %v17230_v47 }
 0x427   : > { %v11805_v44 = vpop.f32.mrf.mxu0  ;;  %12053 = vmatprep.mubr.msk.bf16.mxu1 %vm12796_vm2, %v17230_v47  ;;  %12092 = vmatpush3.bf16.msra.mxu1 %v6550_v37  ;;  %v6296_v37 = vpack.c.bf16 %v15743_v11, %v15721_v61  ;;  %v15829_v61 = vld [vmem:[%s12888_s24 + $0x208] sm:$0xff] }
 0x428   : > { %v11843_v14 = vpop.f32.mrf.mxu1  ;;  %v15793_v53 = vadd.f32 %v5218_v50, %v5124_v35  ;;  %12135 = vmatprep.subr.bf16.mxu1 %v17230_v47 }
 0x429   : > { %v5072_v4 = vpop.f32.mrf.mxu0 }
 0x42a   : > { %v5125_v6 = vadd.f32 %v5072_v4, %v15637_v10  ;;  %v5237_v57 = vpop.f32.mrf.mxu1 }
 0x42b   : > { %v11806_v17 = vpop.f32.mrf.mxu0 }
 0x42c   : > { %v11844_v21 = vpop.f32.mrf.mxu1  ;;  %v15800_v56 = vadd.f32 %v5221_v28, %v5125_v6 }
 0x42d   : > { %v5077_v30 = vpop.f32.mrf.mxu0  ;;  %12000 = vmatmul.mubr.msk.bf16.gmra.mxu0 %vm441_vm3, %v5983_v46 }
 0x42e   : > { %v5126_v50 = vadd.f32 %v5077_v30, %v15654_v9  ;;  %v5242_v51 = vpop.f32.mrf.mxu1  ;;  %12054 = vmatmul.mubr.msk.bf16.gmra.mxu1 %vm441_vm3, %v6295_v52  ;;  %12027 = vmatprep.mubr.msk.bf16.mxu0 %vm12796_vm2, %v17230_v47 }
 0x42f   : > { %v11809_v10 = vpop.f32.mrf.mxu0  ;;  %12057 = vmatprep.mubr.msk.bf16.mxu1 %vm12796_vm2, %v17230_v47 }
 0x430   : > { %v11847_v13 = vpop.f32.mrf.mxu1  ;;  %v15812_v28 = vadd.f32 %v5226_v55, %v5126_v50 }
 0x431   : > { %v5080_v62 = vpop.f32.mrf.mxu0 }
 0x432   : > { %v5127_v9 = vadd.f32 %v5080_v62, %v15661_v22  ;;  %v5245_v60 = vpop.f32.mrf.mxu1 }
 0x433   : > { %v11810_v29 = vpop.f32.mrf.mxu0 }
 0x434   : > { %v11848_v35 = vpop.f32.mrf.mxu1  ;;  %v15818_v38 = vadd.f32 %v5229_v24, %v5127_v9  ;;  %v15832_v24 = vld [vmem:[%s12888_s24 + $0x210] sm:$0xff] }
 0x435   : > { %v5085_v44 = vpop.f32.mrf.mxu0  ;;  %12028 = vmatmul.mubr.msk.bf16.vlgmr.msra.gmra.mxu0 %vm441_vm3, %v15568_v31  ;;  %v6297_v52 = vpack.c.bf16 %v15832_v24, %v15829_v61 }
 0x436   : > { %v5128_v55 = vadd.f32 %v5085_v44, %v15678_v1  ;;  %v5250_v14 = vpop.f32.mrf.mxu1  ;;  %12058 = vmatmul.mubr.msk.bf16.gmra.mxu1 %vm441_vm3, %v6296_v37  ;;  %12070 = vmatpush3.bf16.msra.mxu0 %v6433_v58 }
 0x437   : > { %v11813_v22 = vpop.f32.mrf.mxu0  ;;  %12031 = vmatprep.mubr.msk.bf16.mxu0 %vm12796_vm2, %v17230_v47  ;;  %12061 = vmatprep.mubr.msk.bf16.mxu1 %vm12796_vm2, %v17230_v47 }
 0x438   : > { %v11851_v4 = vpop.f32.mrf.mxu1  ;;  %12113 = vmatprep.subr.bf16.mxu0 %v17230_v47  ;;  %v15835_v31 = vadd.f32 %v5234_v40, %v5128_v55 }
 0x439   : > { %v5088_v1 = vpop.f32.mrf.mxu0 }
 0x43a   : > { %v5129_v46 = vadd.f32 %v5088_v1, %v15686_v41  ;;  %v5253_v6 = vpop.f32.mrf.mxu1  ;;  %v10089_v1 = vld [vmem:[%s17201_s1 + $0xe] sm:$0x3] }
 0x43b   : > { %v11814_v17 = vpop.f32.mrf.mxu0 }
 0x43c   : > { %v11852_v21 = vpop.f32.mrf.mxu1  ;;  %v15840_v30 = vadd.f32 %v5237_v57, %v5129_v46  ;;  %v6293_v57 = vld [vmem:[%s12888_s24 + $0x220] sm:$0x3f] }
 0x43d   : > { %v5093_v50 = vpop.f32.mrf.mxu0  ;;  %12032 = vmatmul.mubr.msk.bf16.gmra.mxu0 %vm441_vm3, %v15602_v36  ;;  %v6298_v37 = vpack.c.bf16 %v6293_v57, %v15851_v15  ;;  %v6528_v21 = vpack.c.bf16 %v15621_v2, %v15589_v33  ;;  %v6176_v33 = vld [vmem:[%s12888_s24 + $0x20a] sm:$0x3f] }
 0x43e   : > { %v5130_v40 = vadd.f32 %v5093_v50, %v15701_v59  ;;  %v5258_v10 = vpop.f32.mrf.mxu1  ;;  %12062 = vmatmul.mubr.msk.bf16.gmra.mxu1 %vm441_vm3, %v6297_v52  ;;  %12035 = vmatprep.mubr.msk.bf16.mxu0 %vm12796_vm2, %v17230_v47 }
 0x43f   : > { %v11817_v41 = vpop.f32.mrf.mxu0  ;;  %12065 = vmatprep.mubr.msk.bf16.mxu1 %vm12796_vm2, %v17230_v47 }
 0x440   : > { %v11855_v13 = vpop.f32.mrf.mxu1  ;;  %v15854_v62 = vadd.f32 %v5242_v51, %v5130_v40  ;;  %v6174_v51 = vld [vmem:[%s12888_s24 + $0x1fa] sm:$0xff]  ;;  %v6784_v40 = vand.u32 %v10089_v1, %v12869_v5 }
 0x441   : > { %v5096_v36 = vpop.f32.mrf.mxu0 }
 0x442   : > { %v5131_v59 = vadd.f32 %v5096_v36, %v15706_v27  ;;  %v5261_v9 = vpop.f32.mrf.mxu1  ;;  %v6173_v27 = vld [vmem:[%s12888_s24 + $0x1f2] sm:$0xff] }
 0x443   : > { %v11818_v58 = vpop.f32.mrf.mxu0  ;;  %v15875_v46 = vpack.c.bf16 %v6174_v51, %v6173_v27 }
 0x444   : > { %v11856_v29 = vpop.f32.mrf.mxu1  ;;  %v15858_v35 = vadd.f32 %v5245_v60, %v5131_v59 }
 0x445   : > { %v5101_v44 = vpop.f32.mrf.mxu0  ;;  %12036 = vmatmul.mubr.msk.bf16.gmra.mxu0 %vm441_vm3, %v15634_v43 }
 0x446   : > { %v5132_v55 = vadd.f32 %v5101_v44, %v15724_v16  ;;  %v5266_v22 = vpop.f32.mrf.mxu1  ;;  %12066 = vmatmul.mubr.msk.bf16.gmra.mxu1 %vm441_vm3, %v6298_v37  ;;  %12039 = vmatprep.mubr.msk.bf16.mxu0 %vm12796_vm2, %v17230_v47  ;;  %v6529_v44 = vpack.c.bf16 %v6173_v27, %v15624_v3  ;;  %v10083_v3 = vld [vmem:[%s17201_s1 + $0xc] sm:$0x3] }
 0x447   : > { %v11821_v4 = vpop.f32.mrf.mxu0  ;;  %12093 = vmatprep.mubr.msk.bf16.mxu1 %vm12796_vm2, %v17230_v47 }
 0x448   : > { %v11859_v60 = vpop.f32.mrf.mxu1  ;;  %v15873_v43 = vadd.f32 %v5250_v14, %v5132_v55 }
 0x449   : > { %v5104_v16 = vpop.f32.mrf.mxu0 }
 0x44a   : > { %v5133_v52 = vadd.f32 %v5104_v16, %v15732_v8  ;;  %v5269_v17 = vpop.f32.mrf.mxu1  ;;  %v15890_v8 = vld [vmem:[%s12888_s24 + $0x202] sm:$0xff] }
 0x44b   : > { %v11822_v50 = vpop.f32.mrf.mxu0  ;;  %v6181_v37 = vpack.c.bf16 %v6176_v33, %v15890_v8 }
 0x44c   : > { %v11860_v41 = vpop.f32.mrf.mxu1  ;;  %v15881_v57 = vadd.f32 %v5253_v6, %v5133_v52 }
 0x44d   : > { %v5109_v13 = vpop.f32.mrf.mxu0  ;;  %12040 = vmatmul.mubr.msk.bf16.gmra.mxu0 %vm441_vm3, %v15875_v46  ;;  %v6667_v41 = vand.u32 %v10083_v3, %v12869_v5 }
 0x44e   : > { %v5134_v14 = vadd.f32 %v5109_v13, %v15746_v12  ;;  %v5516_v36 = vpop.f32.mrf.mxu1  ;;  %12094 = vmatmul.mubr.msk.bf16.vlgmr.msra.gmra.mxu1 %vm441_vm3, %v6528_v21  ;;  %12043 = vmatprep.mubr.msk.bf16.mxu0 %vm12796_vm2, %v17230_v47 }
 0x44f   : > { %v11825_v2 = vpop.f32.mrf.mxu0  ;;  %12097 = vmatprep.mubr.msk.bf16.mxu1 %vm12796_vm2, %v17230_v47  ;;  %12136 = vmatpush3.bf16.msra.mxu1 %v6784_v40  ;;  %v6530_v40 = vpack.c.bf16 %v15890_v8, %v6174_v51 }
 0x450   : > { %v11895_v6 = vpop.f32.mrf.mxu1  ;;  %12179 = vmatprep.subr.bf16.mxu1 %v17230_v47  ;;  %v15896_v59 = vadd.f32 %v5258_v10, %v5134_v14 }
 0x451   : > { %v5112_v12 = vpop.f32.mrf.mxu0 }
 0x452   : > { %v5135_v58 = vadd.f32 %v5112_v12, %v15750_v42  ;;  %v5519_v29 = vpop.f32.mrf.mxu1  ;;  %v6412_v12 = vpack.c.bf16 %v15759_v0, %v15673_v48  ;;  %v15953_v0 = vld [vmem:[%s12888_s24 + $0x21a] sm:$0xff] }
 0x453   : > { %v11826_v55 = vpop.f32.mrf.mxu0 }
 0x454   : > { %v11896_v4 = vpop.f32.mrf.mxu1  ;;  %v15901_v60 = vadd.f32 %v5261_v9, %v5135_v58 }
 0x455   : > { %v5117_v1 = vpop.f32.mrf.mxu0  ;;  %12044 = vmatmul.mubr.msk.bf16.gmra.mxu0 %vm441_vm3, %v6181_v37 }
 0x456   : > { %v5136_v16 = vadd.f32 %v5117_v1, %v15769_v32  ;;  %v5524_v52 = vpop.f32.mrf.mxu1  ;;  %12098 = vmatmul.mubr.msk.bf16.gmra.mxu1 %vm441_vm3, %v6529_v44  ;;  %12071 = vmatprep.mubr.msk.bf16.mxu0 %vm12796_vm2, %v17230_v47  ;;  %v6411_v32 = vpack.c.bf16 %v15670_v34, %v15641_v54  ;;  %v15930_v34 = vld [vmem:[%s12888_s24 + $0x20a] sm:$0xff] }
 0x457   : > { %v11829_v10 = vpop.f32.mrf.mxu0  ;;  %12101 = vmatprep.mubr.msk.bf16.mxu1 %vm12796_vm2, %v17230_v47 }
 0x458   : > { %v11899_v42 = vpop.f32.mrf.mxu1  ;;  %v15913_v9 = vadd.f32 %v5266_v22, %v5136_v16 }
 0x459   : > { %v5120_v27 = vpop.f32.mrf.mxu0 }
 0x45a   : > { %v5137_v21 = vadd.f32 %v5120_v27, %v15779_v26  ;;  %v5527_v50 = vpop.f32.mrf.mxu1  ;;  %v15933_v26 = vld [vmem:[%s12888_s24 + $0x212] sm:$0xff] }
 0x45b   : > { %v11830_v13 = vpop.f32.mrf.mxu0  ;;  %v6531_v44 = vpack.c.bf16 %v15933_v26, %v15930_v34 }
 0x45c   : > { %v11900_v14 = vpop.f32.mrf.mxu1  ;;  %v15920_v33 = vadd.f32 %v5269_v17, %v5137_v21 }
 0x45d   : > { %v5367_v2 = vpop.f32.mrf.mxu0  ;;  %12072 = vmatmul.mubr.msk.bf16.vlgmr.msra.gmra.mxu0 %vm441_vm3, %v6411_v32 }
 0x45e   : > { %v5422_v22 = vadd.f32 %v5367_v2, %v15793_v53  ;;  %v5532_v6 = vpop.f32.mrf.mxu1  ;;  %12102 = vmatmul.mubr.msk.bf16.gmra.mxu1 %vm441_vm3, %v6530_v40  ;;  %12114 = vmatpush3.bf16.msra.mxu0 %v6667_v41 }
 0x45f   : > { %v11865_v54 = vpop.f32.mrf.mxu0  ;;  %12075 = vmatprep.mubr.msk.bf16.mxu0 %vm12796_vm2, %v17230_v47  ;;  %12105 = vmatprep.mubr.msk.bf16.mxu1 %vm12796_vm2, %v17230_v47 }
 0x460   : > { %v11903_v51 = vpop.f32.mrf.mxu1  ;;  %12157 = vmatprep.subr.bf16.mxu0 %v17230_v47  ;;  %v15936_v17 = vadd.f32 %v5516_v36, %v5422_v22 }
 0x461   : > { %v5370_v53 = vpop.f32.mrf.mxu0 }
 0x462   : > { %v5423_v37 = vadd.f32 %v5370_v53, %v15800_v56  ;;  %v5535_v58 = vpop.f32.mrf.mxu1  ;;  %v6527_v56 = vld [vmem:[%s12888_s24 + $0x222] sm:$0x3f] }
 0x463   : > { %v11866_v55 = vpop.f32.mrf.mxu0  ;;  %v6532_v21 = vpack.c.bf16 %v6527_v56, %v15953_v0 }
 0x464   : > { %v11904_v4 = vpop.f32.mrf.mxu1  ;;  %v15943_v1 = vadd.f32 %v5519_v29, %v5423_v37 }
 0x465   : > { %v5375_v16 = vpop.f32.mrf.mxu0  ;;  %12076 = vmatmul.mubr.msk.bf16.gmra.mxu0 %vm441_vm3, %v6412_v12 }
 0x466   : > { %v5424_v36 = vadd.f32 %v5375_v16, %v15812_v28  ;;  %v5540_v10 = vpop.f32.mrf.mxu1  ;;  %12106 = vmatmul.mubr.msk.bf16.gmra.mxu1 %vm441_vm3, %v6531_v44  ;;  %12079 = vmatprep.mubr.msk.bf16.mxu0 %vm12796_vm2, %v17230_v47  ;;  %v6413_v28 = vpack.c.bf16 %v15788_v20, %v15762_v25  ;;  %v6407_v25 = vld [vmem:[%s12888_s24 + $0x209] sm:$0xff]  ;;  %v12670_v44 = vld [vmem:[%s17204_s4 + $0x78] sm:$0xff]  }
 0x467   : > { %v11869_v48 = vpop.f32.mrf.mxu0  ;;  %12109 = vmatprep.mubr.msk.bf16.mxu1 %vm12796_vm2, %v17230_v47 }
 0x468   : > { %v11907_v29 = vpop.f32.mrf.mxu1  ;;  %v15956_v3 = vadd.f32 %v5524_v52, %v5424_v36  ;;  %v6410_v48 = vld [vmem:[%s12888_s24 + $0x221] sm:$0x3f] }
 0x469   : > { %v5378_v42 = vpop.f32.mrf.mxu0 }
 0x46a   : > { %v5425_v27 = vadd.f32 %v5378_v42, %v15818_v38  ;;  %v5543_v32 = vpop.f32.mrf.mxu1  ;;  %v15971_v38 = vld [vmem:[%s12888_s24 + $0x211] sm:$0xff] }
 0x46b   : > { %v11870_v40 = vpop.f32.mrf.mxu0 }
 0x46c   : > { %v11908_v41 = vpop.f32.mrf.mxu1  ;;  %v15962_v13 = vadd.f32 %v5527_v50, %v5425_v27 }
 0x46d   : > { %v5383_v14 = vpop.f32.mrf.mxu0  ;;  %12080 = vmatmul.mubr.msk.bf16.gmra.mxu0 %vm441_vm3, %v6413_v28  ;;  %v12672_v41 = vld [vmem:[%s17204_s4 + $0x68] sm:$0xff]  }
 0x46e   : > { %v5426_v52 = vadd.f32 %v5383_v14, %v15835_v31  ;;  %v5548_v2 = vpop.f32.mrf.mxu1  ;;  %12110 = vmatmul.mubr.msk.bf16.gmra.mxu1 %vm441_vm3, %v6532_v21  ;;  %12083 = vmatprep.mubr.msk.bf16.mxu0 %vm12796_vm2, %v17230_v47  ;;  %v6414_v31 = vpack.c.bf16 %v15971_v38, %v6407_v25  ;;  %v6763_v21 = vpack.c.bf16 %v6407_v25, %v15788_v20 }
 0x46f   : > { %v11873_v22 = vpop.f32.mrf.mxu0  ;;  %12137 = vmatprep.mubr.msk.bf16.mxu1 %vm12796_vm2, %v17230_v47 }
 0x470   : > { %v11911_v50 = vpop.f32.mrf.mxu1  ;;  %v15975_v54 = vadd.f32 %v5532_v6, %v5426_v52 }
 0x471   : > { %v5386_v51 = vpop.f32.mrf.mxu0 }
 0x472   : > { %v5427_v53 = vadd.f32 %v5386_v51, %v15840_v30  ;;  %v5551_v12 = vpop.f32.mrf.mxu1  ;;  %v6409_v30 = vld [vmem:[%s12888_s24 + $0x219] sm:$0xff] }
 0x473   : > { %v11874_v37 = vpop.f32.mrf.mxu0  ;;  %v6415_v42 = vpack.c.bf16 %v6410_v48, %v6409_v30 }
 0x474   : > { %v11912_v55 = vpop.f32.mrf.mxu1  ;;  %v15982_v4 = vadd.f32 %v5535_v58, %v5427_v53  ;;  %v12671_v58 = vld [vmem:[%s17204_s4 + $0x70] sm:$0xff]   ;;  %v6764_v37 = vpack.c.bf16 %v6409_v30, %v15971_v38  ;;  %v6758_v30 = vld [vmem:[%s12888_s24 + $0x221] sm:$0xff] }
 0x475   : > { %v5391_v16 = vpop.f32.mrf.mxu0  ;;  %12084 = vmatmul.mubr.msk.bf16.gmra.mxu0 %vm441_vm3, %v6414_v31 }
 0x476   : > { %v5428_v6 = vadd.f32 %v5391_v16, %v15854_v62  ;;  %v15986_v36 = vpop.f32.mrf.mxu1  ;;  %12138 = vmatmul.mubr.msk.bf16.vlgmr.msra.gmra.mxu1 %vm441_vm3, %v15773_v23  ;;  %12087 = vmatprep.mubr.msk.bf16.mxu0 %vm12796_vm2, %v17230_v47 }
 0x477   : > { %v11877_v56 = vpop.f32.mrf.mxu0  ;;  %12141 = vmatprep.mubr.msk.bf16.mxu1 %vm12796_vm2, %v17230_v47  ;;  %12180 = vmatpush3.bf16.msra.mxu1 %v12670_v44 }
 0x478   : > { %v11915_v62 = vpop.f32.mrf.mxu1  ;;  %12181 = vmatprep.subr.bf16.mxu1 %v17230_v47  ;;  %v16000_v29 = vadd.f32 %v5540_v10, %v5428_v6 }
 0x479   : > { %v5394_v23 = vpop.f32.mrf.mxu0  ;;  %v6646_v62 = vpack.c.bf16 %v15829_v61, %v15743_v11 }
 0x47a   : > { %v5429_v28 = vadd.f32 %v5394_v23, %v15858_v35  ;;  %v5559_v27 = vpop.f32.mrf.mxu1 }
 0x47b   : > { %v11878_v40 = vpop.f32.mrf.mxu0  ;;  %12182 = vmatpush3.bf16.msra.mxu1 %v12671_v58 }
 0x47c   : > { %v11916_v14 = vpop.f32.mrf.mxu1  ;;  %12183 = vmatprep.subr.bf16.mxu1 %v17230_v47  ;;  %v16008_v52 = vadd.f32 %v5543_v32, %v5429_v28  ;;  %v10095_v32 = vld [vmem:[%s17201_s1 + $0x10] sm:$0x3] }
 0x47d   : > { %v5399_v10 = vpop.f32.mrf.mxu0  ;;  %12088 = vmatmul.mubr.msk.bf16.gmra.mxu0 %vm441_vm3, %v6415_v42  ;;  %v6901_v44 = vand.u32 %v10095_v32, %v12869_v5 }
 0x47e   : > { %v5430_v22 = vadd.f32 %v5399_v10, %v15873_v43  ;;  %v16012_v35 = vpop.f32.mrf.mxu1  ;;  %12142 = vmatmul.mubr.msk.bf16.gmra.mxu1 %vm441_vm3, %v6763_v21  ;;  %12115 = vmatprep.mubr.msk.bf16.mxu0 %vm12796_vm2, %v17230_v47  ;;  %v12673_v43 = vld [vmem:[%s17204_s4 + $0x60] sm:$0xff]   ;;  %v6761_v10 = vld [vmem:[%s12888_s24 + $0x239] sm:$0x3f] }
 0x47f   : > { %v11881_v20 = vpop.f32.mrf.mxu0  ;;  %12145 = vmatprep.mubr.msk.bf16.mxu1 %vm12796_vm2, %v17230_v47  ;;  %12184 = vmatpush3.bf16.msra.mxu1 %v12672_v41 }
 0x480   : > { %v11919_v25 = vpop.f32.mrf.mxu1  ;;  %12185 = vmatprep.subr.bf16.mxu1 %v17230_v47  ;;  %v16026_v50 = vadd.f32 %v5548_v2, %v5430_v22  ;;  %v12674_v2 = vld [vmem:[%s17204_s4 + $0x58] sm:$0xff]   ;;  %v12677_v20 = vld [vmem:[%s17204_s4 + $0x40] sm:$0xff]  }
 0x481   : > { %v5402_v51 = vpop.f32.mrf.mxu0 }
 0x482   : > { %v5431_v31 = vadd.f32 %v5402_v51, %v15881_v57  ;;  %v5567_v53 = vpop.f32.mrf.mxu1 }
 0x483   : > { %v11882_v55 = vpop.f32.mrf.mxu0  ;;  %12186 = vmatpush3.bf16.msra.mxu1 %v12673_v43  ;;  %v6647_v43 = vpack.c.bf16 %v15851_v15, %v15832_v24 }
 0x484   : > { %v11920_v16 = vpop.f32.mrf.mxu1  ;;  %12187 = vmatprep.subr.bf16.mxu1 %v17230_v47  ;;  %v16035_v6 = vadd.f32 %v5551_v12, %v5431_v31  ;;  %v6759_v12 = vld [vmem:[%s12888_s24 + $0x229] sm:$0xff] }
 0x485   : > { %v5407_v48 = vpop.f32.mrf.mxu0  ;;  %12116 = vmatmul.mubr.msk.bf16.vlgmr.msra.gmra.mxu0 %vm441_vm3, %v15730_v18  ;;  %v12675_v18 = vld [vmem:[%s17204_s4 + $0x50] sm:$0xff]   ;;  %v6765_v28 = vpack.c.bf16 %v6759_v12, %v6758_v30  ;;  %v6642_v16 = vld [vmem:[%s12888_s24 + $0x228] sm:$0xff] }
 0x486   : > { %v5432_v57 = vadd.f32 %v5407_v48, %v15896_v59  ;;  %v5814_v5 = vpop.f32.mrf.mxu1  ;;  %12146 = vmatmul.mubr.msk.bf16.gmra.mxu1 %vm441_vm3, %v6764_v37  ;;  %12158 = vmatpush3.bf16.msra.mxu0 %v6901_v44  ;;  %v7467_v30 = vld [vmem:[#allocation4 + $0x9] sm:$0xff] }
 0x487   : > { %v11885_v38 = vpop.f32.mrf.mxu0  ;;  %12119 = vmatprep.mubr.msk.bf16.mxu0 %vm12796_vm2, %v17230_v47  ;;  %12149 = vmatprep.mubr.msk.bf16.mxu1 %vm12796_vm2, %v17230_v47 }
 0x488   : > { %v11955_v56 = vpop.f32.mrf.mxu1  ;;  %12188 = vmatpush3.bf16.msra.mxu1 %v12674_v2  ;;  %12223 = vmatprep.subr.bf16.mxu0 %v17230_v47  ;;  %v16052_v59 = vadd.f32 %v15986_v36, %v5432_v57  ;;  %v12676_v36 = vld [vmem:[%s17204_s4 + $0x48] sm:$0xff]  }
 0x489   : > { %v5410_v58 = vpop.f32.mrf.mxu0  ;;  %12189 = vmatprep.subr.bf16.mxu1 %v17230_v47 }
 0x48a   : > { %v5433_v23 = vadd.f32 %v5410_v58, %v15901_v60  ;;  %v5817_v42 = vpop.f32.mrf.mxu1 }
 0x48b   : > { %v11886_v21 = vpop.f32.mrf.mxu0 }
 0x48c   : > { %v11956_v40 = vpop.f32.mrf.mxu1  ;;  %12190 = vmatpush3.bf16.msra.mxu1 %v12675_v18  ;;  %v16061_v41 = vadd.f32 %v5559_v27, %v5433_v23  ;;  %v6760_v27 = vld [vmem:[%s12888_s24 + $0x231] sm:$0xff] }
 0x48d   : > { %v5415_v14 = vpop.f32.mrf.mxu0  ;;  %12120 = vmatmul.mubr.msk.bf16.gmra.mxu0 %vm441_vm3, %v6646_v62  ;;  %12191 = vmatprep.subr.bf16.mxu1 %v17230_v47  ;;  %v6766_v31 = vpack.c.bf16 %v6761_v10, %v6760_v27  ;;  %v7466_v62 = vld [vmem:[#allocation4 + $0x1] sm:$0xff]  ;;  %v6643_v27 = vld [vmem:[%s12888_s24 + $0x230] sm:$0xff] }
 0x48e   : > { %v5434_v11 = vadd.f32 %v5415_v14, %v15913_v9  ;;  %v16066_v61 = vpop.f32.mrf.mxu1  ;;  %12150 = vmatmul.mubr.msk.bf16.gmra.mxu1 %vm441_vm3, %v6765_v28  ;;  %12123 = vmatprep.mubr.msk.bf16.mxu0 %vm12796_vm2, %v17230_v47  ;;  %v7479_v40 = vpack.c.bf16 %v7467_v30, %v7466_v62  ;;  %v6644_v10 = vld [vmem:[%s12888_s24 + $0x238] sm:$0x3f] }
 0x48f   : > { %v11889_v60 = vpop.f32.mrf.mxu0  ;;  %12153 = vmatprep.mubr.msk.bf16.mxu1 %vm12796_vm2, %v17230_v47 }
 0x490   : > { %v11959_v22 = vpop.f32.mrf.mxu1  ;;  %12192 = vmatpush3.bf16.msra.mxu1 %v12676_v36  ;;  %v16079_v9 = vadd.f32 %v16012_v35, %v5434_v11 }
 0x491   : > { %v5418_v32 = vpop.f32.mrf.mxu0  ;;  %12193 = vmatprep.subr.bf16.mxu1 %v17230_v47 }
 0x492   : > { %v5435_v25 = vadd.f32 %v5418_v32, %v15920_v33  ;;  %v16085_v51 = vpop.f32.mrf.mxu1  ;;  %v6641_v33 = vld [vmem:[%s12888_s24 + $0x220] sm:$0xff] }
 0x493   : > { %v11890_v37 = vpop.f32.mrf.mxu0  ;;  %v6648_v38 = vpack.c.bf16 %v6642_v16, %v6641_v33 }
 0x494   : > { %v11960_v44 = vpop.f32.mrf.mxu1  ;;  %12194 = vmatpush3.bf16.msra.mxu1 %v12677_v20  ;;  %v16087_v55 = vadd.f32 %v5567_v53, %v5435_v25  ;;  %v6649_v25 = vpack.c.bf16 %v6644_v10, %v6643_v27  ;;  %v12782_v27 = vld [vmem:[#allocation4 + $0x21] sm:$0xff] }
 0x495   : > { %v5665_v35 = vpop.f32.mrf.mxu0  ;;  %12124 = vmatmul.mubr.msk.bf16.gmra.mxu0 %vm441_vm3, %v6647_v43  ;;  %12267 = vmatprep.subr.bf16.mxu1 %v17230_v47 }
 0x496   : > { %v5720_v24 = vadd.f32 %v5665_v35, %v15936_v17  ;;  %v16092_v15 = vpop.f32.mrf.mxu1  ;;  %12154 = vmatmul.mubr.msk.bf16.gmra.mxu1 %vm441_vm3, %v6766_v31  ;;  %12127 = vmatprep.mubr.msk.bf16.mxu0 %vm12796_vm2, %v17230_v47  ;;  %v16104_v17 = vld [vmem:[%s17202_s2] ss:$0 sm:$0xff]  ;;  %v7469_v31 = vld [vmem:[#allocation4 + $0x19] sm:$0xff] }
 0x497   : > { %v11925_v2 = vpop.f32.mrf.mxu0  ;;  %12195 = vmatprep.mubr.msk.bf16.mxu1 %vm12796_vm2, %v17230_v47 }
 0x498   : > { %v5869_v53 = vadd.f32 %v5814_v5, %v5720_v24  ;;  %v11963_v48 = vpop.f32.mrf.mxu1  ;;  %v16113_v5 = vld [vmem:[%s17203_s3] ss:$0 sm:$0xff] }
 0x499   : > { %v5668_v57 = vpop.f32.mrf.mxu0 }
 0x49a   : > { %v5883_v12 = vadd.f32 %v16104_v17, %v5869_v53  ;;  %v5721_v56 = vadd.f32 %v5668_v57, %v15943_v1  ;;  %v16108_v18 = vpop.f32.mrf.mxu1 }
 0x49b   : > { %v11926_v58 = vpop.f32.mrf.mxu0 }
 0x49c   : > { %vm5897_vm4 = vcmp.gt.f32.partialorder %v5883_v12, 0.0  ;;  %v5911_v23 = vmul.f32 %v16113_v5, %v5883_v12  ;;  %v5870_v28 = vadd.f32 %v5817_v42, %v5721_v56  ;;  %v11964_v21 = vpop.f32.mrf.mxu1 }
 0x49d   : > { %v5673_v36 = vpop.f32.mrf.mxu0  ;;  %12128 = vmatmul.mubr.msk.bf16.gmra.mxu0 %vm441_vm3, %v6648_v38 }
 0x49e   : > { %v16117_v1 = vsel %vm5897_vm4, %v5883_v12, %v5911_v23  ;;  %v5884_v14 = vadd.f32 %v16104_v17, %v5870_v28  ;;  %v5722_v11 = vadd.f32 %v5673_v36, %v15956_v3  ;;  %v16121_v60 = vpop.f32.mrf.mxu1  ;;  %12196 = vmatmul.mubr.bf16.vlgmr.msra.gmra.mxu1 %v7479_v40  ;;  %12131 = vmatprep.mubr.msk.bf16.mxu0 %vm12796_vm2, %v17230_v47  ;;  %v7471_v12 = vld [vmem:[#allocation4 + $0x29] sm:$0xff]  ;;  %v7146_v40 = vld [vmem:[#allocation2 + $0x130] sm:$0x3f] }
 0x49f   : > { %v7156_v42 = vmax.f32 %v7150_v7, %v16117_v1  ;;  %v11929_v22 = vpop.f32.mrf.mxu0  ;;  %12199 = vmatprep.mubr.msk.bf16.mxu1 %vm12796_vm2, %v17230_v47  ;;  %v7481_v10 = vpack.c.bf16 %v7471_v12, %v12782_v27  ;;  %v12681_v12 = vld [vmem:[%s17204_s4 + $0x20] sm:$0xff]  }
 0x4a0   : > { %vm5898_vm5 = vcmp.gt.f32.partialorder %v5884_v14, 0.0  ;;  %v5912_v3 = vmul.f32 %v16113_v5, %v5884_v14  ;;  %v5871_v20 = vadd.f32 %v16066_v61, %v5722_v11  ;;  %v11967_v32 = vpop.f32.mrf.mxu1  ;;  %v7468_v61 = vld [vmem:[#allocation4 + $0x11] sm:$0xff] }
 0x4a1   : > { %7159 = vst [vmem:[#allocation3 + $0x90] sm:$0xff] %v7156_v42  ;;  %v5676_v43 = vpop.f32.mrf.mxu0  ;;  %v7480_v2 = vpack.c.bf16 %v7469_v31, %v7468_v61 }
 0x4a2   : > { %v16135_v37 = vsel %vm5898_vm5, %v5884_v14, %v5912_v3  ;;  %v5885_v44 = vadd.f32 %v16104_v17, %v5871_v20  ;;  %v5723_v19 = vadd.f32 %v5676_v43, %v15962_v13  ;;  %v16139_v49 = vpop.f32.mrf.mxu1 }
 0x4a3   : > { %v7157_v7 = vmax.f32 %v7151_v45, %v16135_v37  ;;  %v11930_v35 = vpop.f32.mrf.mxu0 }
 0x4a4   : > { %vm5899_vm6 = vcmp.gt.f32.partialorder %v5885_v44, 0.0  ;;  %v5913_v24 = vmul.f32 %v16113_v5, %v5885_v44  ;;  %v5872_v33 = vadd.f32 %v16085_v51, %v5723_v19  ;;  %v11968_v16 = vpop.f32.mrf.mxu1 }
 0x4a5   : > { %7160 = vst [vmem:[#allocation3 + $0x98] sm:$0xff] %v7157_v7  ;;  %v5681_v53 = vpop.f32.mrf.mxu0  ;;  %12132 = vmatmul.mubr.msk.bf16.gmra.mxu0 %vm441_vm3, %v6649_v25  ;;  %v7473_v7 = vld [vmem:[#allocation4 + $0x39] sm:$0xff] }
 0x4a6   : > { %v5927_v13 = vsel %vm5899_vm6, %v5885_v44, %v5913_v24  ;;  %v5886_v48 = vadd.f32 %v16104_v17, %v5872_v33  ;;  %v5724_v57 = vadd.f32 %v5681_v53, %v15975_v54  ;;  %v16150_v63 = vpop.f32.mrf.mxu1  ;;  %12200 = vmatmul.mubr.bf16.gmra.mxu1 %v7480_v2  ;;  %12159 = vmatprep.mubr.msk.bf16.mxu0 %vm12796_vm2, %v17230_v47  ;;  %v7149_v54 = vld [vmem:[#allocation2 + $0x148] sm:$0x3f] }
 0x4a7   : > { %5941 = vst [vmem:[#allocation2 + $0x160] sm:$0xff] %v5927_v13  ;;  %v11933_v39 = vpop.f32.mrf.mxu0  ;;  %12203 = vmatprep.mubr.msk.bf16.mxu1 %vm12796_vm2, %v17230_v47  ;;  %v7472_v2 = vld [vmem:[#allocation4 + $0x31] sm:$0xff] }
 0x4a8   : > { %vm5900_vm7 = vcmp.gt.f32.partialorder %v5886_v48, 0.0  ;;  %v5914_v45 = vmul.f32 %v16113_v5, %v5886_v48  ;;  %v5873_v51 = vadd.f32 %v16092_v15, %v5724_v57  ;;  %v11971_v38 = vpop.f32.mrf.mxu1  ;;  %v12678_v15 = vld [vmem:[%s17204_s4 + $0x38] sm:$0xff]   ;;  %v7482_v13 = vpack.c.bf16 %v7473_v7, %v7472_v2 }
 0x4a9   : > { %v5684_v30 = vpop.f32.mrf.mxu0 }
 0x4aa   : > { %v16158_v56 = vsel %vm5900_vm7, %v5886_v48, %v5914_v45  ;;  %v5887_v58 = vadd.f32 %v16104_v17, %v5873_v51  ;;  %v5725_v62 = vadd.f32 %v5684_v30, %v15982_v4  ;;  %v16162_v23 = vpop.f32.mrf.mxu1  ;;  %v7152_v4 = vmax.f32 %v7146_v40, %v7149_v54 }
 0x4ab   : > { %v7168_v28 = vmax.f32 %v16117_v1, %v16158_v56  ;;  %v11934_v21 = vpop.f32.mrf.mxu0 }
 0x4ac   : > { %vm5901_vm8 = vcmp.gt.f32.partialorder %v5887_v58, 0.0  ;;  %v5915_v36 = vmul.f32 %v16113_v5, %v5887_v58  ;;  %v5874_v14 = vadd.f32 %v16108_v18, %v5725_v62  ;;  %v11972_v11 = vpop.f32.mrf.mxu1  ;;  %v7343_v48 = vld [vmem:[#allocation3 + $0x91] ss:$2 sm:$0xff] }
 0x4ad   : > { %v5689_v42 = vpop.f32.mrf.mxu0  ;;  %12160 = vmatmul.mubr.msk.bf16.vlgmr.msra.gmra.mxu0 %vm441_vm3, %v15875_v46  ;;  %v12679_v46 = vld [vmem:[%s17204_s4 + $0x30] sm:$0xff]  }
 0x4ae   : > { %v7155_v1 = vld [vmem:[#allocation2 + $0x160] sm:$0x3f]  ;;  %v16173_v22 = vsel %vm5901_vm8, %v5887_v58, %v5915_v36  ;;  %v5888_v3 = vadd.f32 %v16104_v17, %v5874_v14  ;;  %v5726_v20 = vadd.f32 %v5689_v42, %v16000_v29  ;;  %v16177_v32 = vpop.f32.mrf.mxu1  ;;  %12204 = vmatmul.mubr.bf16.gmra.mxu1 %v7481_v10  ;;  %12163 = vmatprep.mubr.msk.bf16.mxu0 %vm12796_vm2, %v17230_v47 }
 0x4af   : > { %v7158_v18 = vmax.f32 %v7152_v4, %v7155_v1  ;;  %v7169_v43 = vmax.f32 %v16135_v37, %v16173_v22  ;;  %v11937_v25 = vpop.f32.mrf.mxu0  ;;  %12207 = vmatprep.mubr.msk.bf16.mxu1 %vm12796_vm2, %v17230_v47  ;;  %12224 = vmatpush3.bf16.msra.mxu0 %v12678_v15  ;;  %v6880_v37 = vpack.c.bf16 %v15930_v34, %v15890_v8  ;;  %v12682_v1 = vld [vmem:[%s17204_s4 + $0x18] sm:$0xff]  }
 0x4b0   : > { %vm5902_vm9 = vcmp.gt.f32.partialorder %v5888_v3, 0.0  ;;  %v5916_v29 = vmul.f32 %v16113_v5, %v5888_v3  ;;  %v5875_v31 = vadd.f32 %v16121_v60, %v5726_v20  ;;  %v11975_v44 = vpop.f32.mrf.mxu1  ;;  %12225 = vmatprep.subr.bf16.mxu0 %v17230_v47  ;;  %v12680_v60 = vld [vmem:[%s17204_s4 + $0x28] sm:$0xff]   ;;  %v6881_v15 = vpack.c.bf16 %v15953_v0, %v15933_v26 }
 0x4b1   : > { %7161 = vst [vmem:[#allocation3 + $0xa0] sm:$0x3f] %v7158_v18  ;;  %v5692_v19 = vpop.f32.mrf.mxu0  ;;  %v12683_v44 = vld [vmem:[%s17204_s4 + $0x10] sm:$0xff]  }
 0x4b2   : > { %v5930_v35 = vsel %vm5902_vm9, %v5888_v3, %v5916_v29  ;;  %v5889_v61 = vadd.f32 %v16104_v17, %v5875_v31  ;;  %v5727_v24 = vadd.f32 %v5692_v19, %v16008_v52  ;;  %v16195_v33 = vpop.f32.mrf.mxu1  ;;  %v7339_v52 = vld [vmem:[#allocation3 + $0x90] ss:$2 sm:$0xff] }
 0x4b3   : > { %5944 = vst [vmem:[#allocation2 + $0x178] sm:$0xff] %v5930_v35  ;;  %v11938_v16 = vpop.f32.mrf.mxu0  ;;  %12226 = vmatpush3.bf16.msra.mxu0 %v12679_v46  ;;  %v7350_v54 = vmax.f32 %v7339_v52, %v7343_v48  ;;  %v6875_v29 = vld [vmem:[%s12888_s24 + $0x222] sm:$0xff] }
 0x4b4   : > { %vm5903_vm10 = vcmp.gt.f32.partialorder %v5889_v61, 0.0  ;;  %v5917_v53 = vmul.f32 %v16113_v5, %v5889_v61  ;;  %v5876_v8 = vadd.f32 %v16139_v49, %v5727_v24  ;;  %v11976_v34 = vpop.f32.mrf.mxu1  ;;  %12227 = vmatprep.subr.bf16.mxu0 %v17230_v47 }
 0x4b5   : > { %v5697_v57 = vpop.f32.mrf.mxu0  ;;  %12164 = vmatmul.mubr.msk.bf16.gmra.mxu0 %vm441_vm3, %v6880_v37  ;;  %v7164_v34 = vld [vmem:[#allocation2 + $0x160] sm:$0x3f] }
 0x4b6   : > { %v16204_v39 = vsel %vm5903_vm10, %v5889_v61, %v5917_v53  ;;  %v5890_v45 = vadd.f32 %v16104_v17, %v5876_v8  ;;  %v5728_v51 = vadd.f32 %v5697_v57, %v16026_v50  ;;  %v16208_v38 = vpop.f32.mrf.mxu1  ;;  %12208 = vmatmul.mubr.bf16.gmra.mxu1 %v7482_v13  ;;  %12167 = vmatprep.mubr.msk.bf16.mxu0 %vm12796_vm2, %v17230_v47 }
 0x4b7   : > { %v7174_v49 = vmax.f32 %v7168_v28, %v16204_v39  ;;  %v11941_v30 = vpop.f32.mrf.mxu0  ;;  %12228 = vmatpush3.bf16.msra.mxu0 %v12680_v60  ;;  %12211 = vmatprep.mubr.msk.bf16.mxu1 %vm12796_vm2, %v17230_v47 }
 0x4b8   : > { %vm5904_vm11 = vcmp.gt.f32.partialorder %v5890_v45, 0.0  ;;  %v5918_v50 = vmul.f32 %v16113_v5, %v5890_v45  ;;  %v5877_v56 = vadd.f32 %v16150_v63, %v5728_v51  ;;  %v11979_v58 = vpop.f32.mrf.mxu1  ;;  %12229 = vmatprep.subr.bf16.mxu0 %v17230_v47  ;;  %v7341_v62 = vld [vmem:[#allocation3 + $0xa0] ss:$2 sm:$0x7] }
 0x4b9   : > { %v7347_v28 = vld [vmem:[#allocation3 + $0x92] ss:$2 sm:$0xff]  ;;  %7177 = vst [vmem:[#allocation3 + $0xa8] sm:$0xff] %v7174_v49  ;;  %v5700_v21 = vpop.f32.mrf.mxu0  ;;  %v7345_v40 = vld [vmem:[#allocation3 + $0xa1] ss:$2 sm:$0x7] }
 0x4ba   : > { %v7352_v36 = vmax.f32 %v7350_v54, %v7347_v28  ;;  %v16223_v14 = vsel %vm5904_vm11, %v5890_v45, %v5918_v50  ;;  %v5891_v11 = vadd.f32 %v16104_v17, %v5877_v56  ;;  %v5729_v27 = vadd.f32 %v5700_v21, %v16035_v6  ;;  %v16227_v10 = vpop.f32.mrf.mxu1  ;;  %v7349_v26 = vld [vmem:[#allocation3 + $0xa2] ss:$2 sm:$0x7]  ;;  %v7167_v61 = vld [vmem:[#allocation2 + $0x178] sm:$0x3f]  ;;  %v12685_v58 = vld [vmem:[%s17204_s4] sm:$0xff]  }
 0x4bb   : > { %v7351_v63 = vmax.f32 %v7341_v62, %v7345_v40  ;;  %v7175_v4 = vmax.f32 %v7169_v43, %v16223_v14  ;;  %v11942_v42 = vpop.f32.mrf.mxu0  ;;  %12230 = vmatpush3.bf16.msra.mxu0 %v12681_v12  ;;  %v6877_v12 = vld [vmem:[%s12888_s24 + $0x232] sm:$0xff] }
 0x4bc   : > { %7354 = vst [vmem:[#allocation4 + $0x42] sm:$0xff] %v7352_v36  ;;  %vm5905_vm12 = vcmp.gt.f32.partialorder %v5891_v11, 0.0  ;;  %v5919_v0 = vmul.f32 %v16113_v5, %v5891_v11  ;;  %v5878_v6 = vadd.f32 %v16162_v23, %v5729_v27  ;;  %v11980_v22 = vpop.f32.mrf.mxu1  ;;  %12231 = vmatprep.subr.bf16.mxu0 %v17230_v47  ;;  %v6876_v23 = vld [vmem:[%s12888_s24 + $0x22a] sm:$0xff] }
 0x4bd   : > { %v7353_v3 = vmax.f32 %v7351_v63, %v7349_v26  ;;  %7178 = vst [vmem:[#allocation3 + $0xb0] sm:$0xff] %v7175_v4  ;;  %v5705_v20 = vpop.f32.mrf.mxu0  ;;  %12168 = vmatmul.mubr.msk.bf16.gmra.mxu0 %vm441_vm3, %v6881_v15  ;;  %v6882_v35 = vpack.c.bf16 %v6876_v23, %v6875_v29 }
 0x4be   : > { %v5933_v18 = vsel %vm5905_vm12, %v5891_v11, %v5919_v0  ;;  %v5892_v43 = vadd.f32 %v16104_v17, %v5878_v6  ;;  %v5730_v25 = vadd.f32 %v5705_v20, %v16052_v59  ;;  %v16239_v46 = vpop.f32.mrf.mxu1  ;;  %12171 = vmatprep.mubr.msk.bf16.mxu0 %vm12796_vm2, %v17230_v47  ;;  %v7431_v20 = vld [vmem:[#allocation4 + $0x8] sm:$0xff] }
 0x4bf   : > { %7355 = vst [vmem:[#allocation4 + $0x4a] sm:$0x7] %v7353_v3  ;;  %5947 = vst [vmem:[#allocation2 + $0x190] sm:$0xff] %v5933_v18  ;;  %v11945_v31 = vpop.f32.mrf.mxu0  ;;  %12232 = vmatpush3.bf16.msra.mxu0 %v12682_v1 }
 0x4c0   : > { %vm5906_vm13 = vcmp.gt.f32.partialorder %v5892_v43, 0.0  ;;  %v5920_v19 = vmul.f32 %v16113_v5, %v5892_v43  ;;  %v5879_v59 = vadd.f32 %v16177_v32, %v5730_v25  ;;  %v12007_v37 = vpop.f32.mrf.mxu1  ;;  %12233 = vmatprep.subr.bf16.mxu0 %v17230_v47  ;;  %v12684_v32 = vld [vmem:[%s17204_s4 + $0x8] sm:$0xff]  }
 0x4c1   : > { %v5708_v7 = vpop.f32.mrf.mxu0 }
 0x4c2   : > { %v5934_v24 = vsel %vm5906_vm13, %v5892_v43, %v5920_v19  ;;  %v5893_v16 = vadd.f32 %v16104_v17, %v5879_v59  ;;  %v5731_v2 = vadd.f32 %v5708_v7, %v16061_v41  ;;  %v16253_v60 = vpop.f32.mrf.mxu1  ;;  %v7170_v41 = vmax.f32 %v7164_v34, %v7167_v61  ;;  %v12783_v61 = vld [vmem:[#allocation4] sm:$0xff] }
 0x4c3   : > { %v7186_v53 = vmax.f32 %v16204_v39, %v5934_v24  ;;  %v11946_v8 = vpop.f32.mrf.mxu0  ;;  %12234 = vmatpush3.bf16.msra.mxu0 %v12683_v44  ;;  %v7443_v24 = vpack.c.bf16 %v7431_v20, %v12783_v61 }
 0x4c4   : > { %vm5907_vm14 = vcmp.gt.f32.partialorder %v5893_v16, 0.0  ;;  %v5921_v13 = vmul.f32 %v16113_v5, %v5893_v16  ;;  %v5880_v52 = vadd.f32 %v16195_v33, %v5731_v2  ;;  %v12008_v48 = vpop.f32.mrf.mxu1  ;;  %12235 = vmatprep.subr.bf16.mxu0 %v17230_v47  ;;  %v6878_v33 = vld [vmem:[%s12888_s24 + $0x23a] sm:$0x3f] }
 0x4c5   : > { %v5713_v57 = vpop.f32.mrf.mxu0  ;;  %12172 = vmatmul.mubr.msk.bf16.gmra.mxu0 %vm441_vm3, %v6882_v35  ;;  %v6883_v15 = vpack.c.bf16 %v6878_v33, %v6877_v12  ;;  %v7357_v42 = vld [vmem:[#allocation3 + $0xa8] ss:$2 sm:$0xff]  ;;  %v7361_v1 = vld [vmem:[#allocation3 + $0xa9] ss:$2 sm:$0xff] }
 0x4c6   : > { %v7173_v39 = vld [vmem:[#allocation2 + $0x190] sm:$0x3f]  ;;  %v5935_v45 = vsel %vm5907_vm14, %v5893_v16, %v5921_v13  ;;  %v5894_v51 = vadd.f32 %v16104_v17, %v5880_v52  ;;  %v5732_v49 = vadd.f32 %v5713_v57, %v16079_v9  ;;  %v16265_v30 = vpop.f32.mrf.mxu1  ;;  %12175 = vmatprep.mubr.msk.bf16.mxu0 %vm12796_vm2, %v17230_v47  ;;  %v7368_v18 = vmax.f32 %v7357_v42, %v7361_v1  ;;  %v7474_v57 = vld [vmem:[#allocation4 + $0x41] sm:$0xff] }
 0x4c7   : > { %v7176_v54 = vmax.f32 %v7170_v41, %v7173_v39  ;;  %v7187_v50 = vmax.f32 %v16223_v14, %v5935_v45  ;;  %v11949_v56 = vpop.f32.mrf.mxu0  ;;  %12236 = vmatpush3.bf16.msra.mxu0 %v12684_v32  ;;  %v7433_v13 = vld [vmem:[#allocation4 + $0x18] sm:$0xff]  ;;  %v7432_v45 = vld [vmem:[#allocation4 + $0x10] sm:$0xff] }
 0x4c8   : > { %vm5908_vm15 = vcmp.gt.f32.partialorder %v5894_v51, 0.0  ;;  %v5922_v62 = vmul.f32 %v16113_v5, %v5894_v51  ;;  %v5881_v9 = vadd.f32 %v16208_v38, %v5732_v49  ;;  %v12011_v28 = vpop.f32.mrf.mxu1  ;;  %12237 = vmatprep.subr.bf16.mxu0 %v17230_v47  ;;  %v7444_v12 = vpack.c.bf16 %v7433_v13, %v7432_v45  ;;  %v7437_v42 = vld [vmem:[#allocation4 + $0x38] sm:$0xff] }
 0x4c9   : > { %7179 = vst [vmem:[#allocation3 + $0xb8] sm:$0x3f] %v7176_v54  ;;  %v5716_v21 = vpop.f32.mrf.mxu0 }
 0x4ca   : > { %v5936_v40 = vsel %vm5908_vm15, %v5894_v51, %v5922_v62  ;;  %v5895_v36 = vadd.f32 %v16104_v17, %v5881_v9  ;;  %v5733_v14 = vadd.f32 %v5716_v21, %v16087_v55  ;;  %v6139_v11 = vpop.f32.mrf.mxu1  ;;  %v7435_v62 = vld [vmem:[#allocation4 + $0x28] sm:$0xff] }
 0x4cb   : > { %5950 = vst [vmem:[#allocation2 + $0x1a8] sm:$0xff] %v5936_v40  ;;  %v11950_v27 = vpop.f32.mrf.mxu0  ;;  %12238 = vmatpush3.bf16.msra.mxu0 %v12685_v58 }
 0x4cc   : > { %vm5909_vm0 = vcmp.gt.f32.partialorder %v5895_v36, 0.0  ;;  %v5923_v63 = vmul.f32 %v16113_v5, %v5895_v36  ;;  %v5882_v38 = vadd.f32 %v16227_v10, %v5733_v14  ;;  %v12012_v4 = vpop.f32.mrf.mxu1  ;;  %12311 = vmatprep.subr.bf16.mxu0 %v17230_v47 }
 0x4cd   : > { %v6037_v26 = vpop.f32.mrf.mxu0  ;;  %12176 = vmatmul.mubr.msk.bf16.gmra.mxu0 %vm441_vm3, %v6883_v15  ;;  %v7434_v15 = vld [vmem:[#allocation4 + $0x20] sm:$0xff] }
 0x4ce   : > { %v16284_v0 = vsel %vm5909_vm0, %v5895_v36, %v5923_v63  ;;  %v5896_v55 = vadd.f32 %v16104_v17, %v5882_v38  ;;  %v16288_v6 = vadd.f32 %v16239_v46, %v6037_v26  ;;  %v6144_v22 = vpop.f32.mrf.mxu1  ;;  %12239 = vmatprep.mubr.msk.bf16.mxu0 %vm12796_vm2, %v17230_v47  ;;  %v7445_v36 = vpack.c.bf16 %v7435_v62, %v7434_v15  ;;  %v12691_v62 = vld [vmem:[%s17204_s4 + $0xf0] sm:$0xff]  }
 0x4cf   : > { %v7192_v10 = vmax.f32 %v7186_v53, %v16284_v0  ;;  %v11985_v3 = vpop.f32.mrf.mxu0 }
 0x4d0   : > { %vm5910_vm1 = vcmp.gt.f32.partialorder %v5896_v55, 0.0  ;;  %v5924_v43 = vmul.f32 %v16113_v5, %v5896_v55  ;;  %v12015_v25 = vpop.f32.mrf.mxu1  ;;  %v7365_v29 = vld [vmem:[#allocation3 + $0xaa] ss:$2 sm:$0xff]  ;;  %v7363_v46 = vld [vmem:[#allocation3 + $0xb9] ss:$2 sm:$0x7] }
 0x4d1   : > { %v7359_v23 = vld [vmem:[#allocation3 + $0xb8] ss:$2 sm:$0x7]  ;;  %7195 = vst [vmem:[#allocation3 + $0xc0] sm:$0xff] %v7192_v10  ;;  %v6040_v17 = vpop.f32.mrf.mxu0  ;;  %v7370_v31 = vmax.f32 %v7368_v18, %v7365_v29 }
 0x4d2   : > { %v16294_v44 = vsel %vm5910_vm1, %v5896_v55, %v5924_v43  ;;  %v16297_v19 = vadd.f32 %v16253_v60, %v6040_v17  ;;  %v6147_v59 = vpop.f32.mrf.mxu1  ;;  %v7369_v37 = vmax.f32 %v7359_v23, %v7363_v46  ;;  %v7367_v5 = vld [vmem:[#allocation3 + $0xba] ss:$2 sm:$0x7] }
 0x4d3   : > { %v7193_v7 = vmax.f32 %v7187_v50, %v16294_v44  ;;  %v11986_v35 = vpop.f32.mrf.mxu0  ;;  %7372 = vst [vmem:[#allocation4 + $0x4d] sm:$0xff] %v7370_v31 }
 0x4d4   : > { %v12016_v16 = vpop.f32.mrf.mxu1  ;;  %v7371_v2 = vmax.f32 %v7369_v37, %v7367_v5  ;;  %v7438_v37 = vld [vmem:[#allocation4 + $0x40] sm:$0xff] }
 0x4d5   : > { %7196 = vst [vmem:[#allocation3 + $0xc8] sm:$0xff] %v7193_v7  ;;  %v6045_v53 = vpop.f32.mrf.mxu0  ;;  %12240 = vmatmul.mubr.bf16.vlgmr.msra.gmra.mxu0 %v7443_v24 }
 0x4d6   : > { %v16301_v8 = vadd.f32 %v16265_v30, %v6045_v53  ;;  %v6152_v32 = vpop.f32.mrf.mxu1  ;;  %12243 = vmatprep.mubr.msk.bf16.mxu0 %vm12796_vm2, %v17230_v47  ;;  %7373 = vst [vmem:[#allocation4 + $0x55] sm:$0x7] %v7371_v2 }
 0x4d7   : > { %v11989_v60 = vpop.f32.mrf.mxu0 }
 0x4d8   : > { %v12019_v34 = vpop.f32.mrf.mxu1 }
 0x4d9   : > { %v6048_v52 = vpop.f32.mrf.mxu0 }
 0x4da   : > { %v16305_v48 = vadd.f32 %v6139_v11, %v6048_v52  ;;  %v6155_v41 = vpop.f32.mrf.mxu1  ;;  %v7475_v39 = vld [vmem:[#allocation4 + $0x49] sm:$0xff] }
 0x4db   : > { %v11990_v51 = vpop.f32.mrf.mxu0  ;;  %v7483_v49 = vpack.c.bf16 %v7475_v39, %v7474_v57  ;;  %v7439_v17 = vld [vmem:[#allocation4 + $0x48] sm:$0xff] }
 0x4dc   : > { %v12020_v30 = vpop.f32.mrf.mxu1  ;;  %v7447_v35 = vpack.c.bf16 %v7439_v17, %v7438_v37 }
 0x4dd   : > { %v6053_v33 = vpop.f32.mrf.mxu0  ;;  %12212 = vmatmul.mubr.bf16.gmra.mxu1 %v7483_v49  ;;  %12244 = vmatmul.mubr.bf16.gmra.mxu0 %v7444_v12  ;;  %v12686_v49 = vld [vmem:[%s17204_s4 + $0xb8] sm:$0xff]  }
 0x4de   : > { %v16307_v54 = vadd.f32 %v6144_v22, %v6053_v33  ;;  %v6160_v50 = vpop.f32.mrf.mxu1  ;;  %12247 = vmatprep.mubr.msk.bf16.mxu0 %vm12796_vm2, %v17230_v47  ;;  %12215 = vmatprep.mubr.msk.bf16.mxu1 %vm12796_vm2, %v17230_v47  ;;  %v7436_v22 = vld [vmem:[#allocation4 + $0x30] sm:$0xff]  ;;  %v12690_v12 = vld [vmem:[%s17204_s4 + $0xf8] sm:$0xff]  }
 0x4df   : > { %v11993_v56 = vpop.f32.mrf.mxu0  ;;  %v7446_v3 = vpack.c.bf16 %v7437_v42, %v7436_v22  ;;  %12268 = vmatpush3.bf16.msra.mxu1 %v12686_v49  ;;  %12312 = vmatpush3.bf16.msra.mxu0 %v12690_v12  ;;  %v12695_v22 = vld [vmem:[%s17204_s4 + $0xe0] sm:$0xff]  }
 0x4e0   : > { %v12023_v58 = vpop.f32.mrf.mxu1  ;;  %12269 = vmatprep.subr.bf16.mxu1 %v17230_v47  ;;  %12313 = vmatprep.subr.bf16.mxu0 %v17230_v47 }
 0x4e1   : > { %v6056_v9 = vpop.f32.mrf.mxu0 }
 0x4e2   : > { %v16313_v28 = vadd.f32 %v6147_v59, %v6056_v9  ;;  %v6163_v21 = vpop.f32.mrf.mxu1 }
 0x4e3   : > { %v11994_v40 = vpop.f32.mrf.mxu0  ;;  %12314 = vmatpush3.bf16.msra.mxu0 %v12691_v62 }
 0x4e4   : > { %v12024_v14 = vpop.f32.mrf.mxu1  ;;  %12315 = vmatprep.subr.bf16.mxu0 %v17230_v47 }
 0x4e5   : > { %v6061_v11 = vpop.f32.mrf.mxu0  ;;  %12248 = vmatmul.mubr.bf16.gmra.mxu0 %v7445_v36  ;;  %v12693_v14 = vld [vmem:[%s17204_s4 + $0xe8] sm:$0xff]  }
 0x4e6   : > { %v16315_v27 = vadd.f32 %v6152_v32, %v6061_v11  ;;  %v6352_v63 = vpop.f32.mrf.mxu1  ;;  %12251 = vmatprep.mubr.msk.bf16.mxu0 %vm12796_vm2, %v17230_v47 }
 0x4e7   : > { %v11997_v38 = vpop.f32.mrf.mxu0  ;;  %12316 = vmatpush3.bf16.msra.mxu0 %v12693_v14 }
 0x4e8   : > { %v12051_v4 = vpop.f32.mrf.mxu1  ;;  %12317 = vmatprep.subr.bf16.mxu0 %v17230_v47 }
 0x4e9   : > { %v6064_v1 = vpop.f32.mrf.mxu0  ;;  %v12688_v4 = vld [vmem:[%s17204_s4 + $0xa8] sm:$0xff]  }
 0x4ea   : > { %v16319_v26 = vadd.f32 %v6155_v41, %v6064_v1  ;;  %v6355_v55 = vpop.f32.mrf.mxu1 }
 0x4eb   : > { %v11998_v10 = vpop.f32.mrf.mxu0  ;;  %12318 = vmatpush3.bf16.msra.mxu0 %v12695_v22 }
 0x4ec   : > { %v12052_v20 = vpop.f32.mrf.mxu1  ;;  %12319 = vmatprep.subr.bf16.mxu0 %v17230_v47 }
 0x4ed   : > { %v6069_v18 = vpop.f32.mrf.mxu0  ;;  %12252 = vmatmul.mubr.bf16.gmra.mxu0 %v7446_v3 }
 0x4ee   : > { %v16321_v43 = vadd.f32 %v6160_v50, %v6069_v18  ;;  %v6360_v25 = vpop.f32.mrf.mxu1  ;;  %12255 = vmatprep.mubr.msk.bf16.mxu0 %vm12796_vm2, %v17230_v47  ;;  %v12687_v50 = vld [vmem:[%s17204_s4 + $0xb0] sm:$0xff]  }
 0x4ef   : > { %v12001_v29 = vpop.f32.mrf.mxu0  ;;  %12270 = vmatpush3.bf16.msra.mxu1 %v12687_v50 }
 0x4f0   : > { %v12055_v23 = vpop.f32.mrf.mxu1  ;;  %12271 = vmatprep.subr.bf16.mxu1 %v17230_v47  ;;  %v12696_v29 = vld [vmem:[%s17204_s4 + $0xd8] sm:$0xff]  }
 0x4f1   : > { %v6072_v31 = vpop.f32.mrf.mxu0  ;;  %12320 = vmatpush3.bf16.msra.mxu0 %v12696_v29 }
 0x4f2   : > { %v16325_v46 = vadd.f32 %v6163_v21, %v6072_v31  ;;  %v6363_v59 = vpop.f32.mrf.mxu1  ;;  %12321 = vmatprep.subr.bf16.mxu0 %v17230_v47 }
 0x4f3   : > { %v12002_v7 = vpop.f32.mrf.mxu0  ;;  %12272 = vmatpush3.bf16.msra.mxu1 %v12688_v4 }
 0x4f4   : > { %v12056_v61 = vpop.f32.mrf.mxu1  ;;  %12273 = vmatprep.subr.bf16.mxu1 %v17230_v47  ;;  %v12698_v7 = vld [vmem:[%s17204_s4 + $0xd0] sm:$0xff]  }
 0x4f5   : > { %v6235_v24 = vpop.f32.mrf.mxu0  ;;  %12256 = vmatmul.mubr.bf16.gmra.mxu0 %v7447_v35 }
 0x4f6   : > { %v6274_v5 = vadd.f32 %v6235_v24, %v16288_v6  ;;  %v6368_v16 = vpop.f32.mrf.mxu1  ;;  %12259 = vmatprep.mubr.msk.bf16.mxu0 %vm12796_vm2, %v17230_v47  ;;  %12322 = vmatpush3.bf16.msra.mxu0 %v12698_v7 }
 0x4f7   : > { %v12029_v2 = vpop.f32.mrf.mxu0  ;;  %12323 = vmatprep.subr.bf16.mxu0 %v17230_v47 }
 0x4f8   : > { %v12059_v53 = vpop.f32.mrf.mxu1  ;;  %v16330_v32 = vadd.f32 %v6352_v63, %v6274_v5 }
 0x4f9   : > { %v6238_v60 = vpop.f32.mrf.mxu0  ;;  %v12699_v53 = vld [vmem:[%s17204_s4 + $0xc8] sm:$0xff]  }
 0x4fa   : > { %v6275_v34 = vadd.f32 %v6238_v60, %v16297_v19  ;;  %v6371_v13 = vpop.f32.mrf.mxu1  ;;  %12324 = vmatpush3.bf16.msra.mxu0 %v12699_v53 }
 0x4fb   : > { %v12030_v52 = vpop.f32.mrf.mxu0  ;;  %12325 = vmatprep.subr.bf16.mxu0 %v17230_v47 }
 0x4fc   : > { %v12060_v41 = vpop.f32.mrf.mxu1  ;;  %v16333_v57 = vadd.f32 %v6355_v55, %v6275_v34  ;;  %v12689_v55 = vld [vmem:[%s17204_s4 + $0xa0] sm:$0xff]  }
 0x4fd   : > { %v6243_v39 = vpop.f32.mrf.mxu0  ;;  %12274 = vmatpush3.bf16.msra.mxu1 %v12689_v55 }
 0x4fe   : > { %v6276_v45 = vadd.f32 %v6243_v39, %v16301_v8  ;;  %v6376_v6 = vpop.f32.mrf.mxu1  ;;  %12275 = vmatprep.subr.bf16.mxu1 %v17230_v47 }
 0x4ff   : > { %v12033_v51 = vpop.f32.mrf.mxu0 }
 0x500   : > { %v12063_v30 = vpop.f32.mrf.mxu1  ;;  %v16342_v19 = vadd.f32 %v6360_v25, %v6276_v45  ;;  %v12701_v45 = vld [vmem:[%s17204_s4 + $0xc0] sm:$0xff]  }
 0x501   : > { %v6246_v33 = vpop.f32.mrf.mxu0  ;;  %12326 = vmatpush3.bf16.msra.mxu0 %v12701_v45 }
 0x502   : > { %v6277_v8 = vadd.f32 %v6246_v33, %v16305_v48  ;;  %v6379_v56 = vpop.f32.mrf.mxu1  ;;  %12399 = vmatprep.subr.bf16.mxu0 %v17230_v47  ;;  %v12697_v33 = vld [vmem:[%s17204_s4 + $0x88] sm:$0xff]  }
 0x503   : > { %v12034_v58 = vpop.f32.mrf.mxu0 }
 0x504   : > { %v12064_v9 = vpop.f32.mrf.mxu1  ;;  %v16353_v21 = vadd.f32 %v6363_v59, %v6277_v8 }
 0x505   : > { %v6251_v15 = vpop.f32.mrf.mxu0  ;;  %v12700_v9 = vld [vmem:[%s17204_s4 + $0x80] sm:$0xff]  }
 0x506   : > { %v6278_v40 = vadd.f32 %v6251_v15, %v16307_v54  ;;  %v6384_v36 = vpop.f32.mrf.mxu1 }
 0x507   : > { %v12037_v48 = vpop.f32.mrf.mxu0 }
 0x508   : > { %v12067_v11 = vpop.f32.mrf.mxu1  ;;  %v16361_v63 = vadd.f32 %v6368_v16, %v6278_v40 }
 0x509   : > { %v6254_v38 = vpop.f32.mrf.mxu0 }
 0x50a   : > { %v6279_v54 = vadd.f32 %v6254_v38, %v16313_v28  ;;  %v6387_v42 = vpop.f32.mrf.mxu1 }
 0x50b   : > { %v12038_v1 = vpop.f32.mrf.mxu0 }
 0x50c   : > { %v12068_v10 = vpop.f32.mrf.mxu1  ;;  %v16374_v3 = vadd.f32 %v6371_v13, %v6279_v54 }
 0x50d   : > { %v6259_v20 = vpop.f32.mrf.mxu0 }
 0x50e   : > { %v6280_v28 = vadd.f32 %v6259_v20, %v16315_v27  ;;  %v6586_v18 = vpop.f32.mrf.mxu1 }
 0x50f   : > { %v12041_v25 = vpop.f32.mrf.mxu0 }
 0x510   : > { %v12095_v23 = vpop.f32.mrf.mxu1  ;;  %v16382_v17 = vadd.f32 %v6376_v6, %v6280_v28 }
 0x511   : > { %v6262_v31 = vpop.f32.mrf.mxu0 }
 0x512   : > { %v6281_v59 = vadd.f32 %v6262_v31, %v16319_v26  ;;  %v6589_v37 = vpop.f32.mrf.mxu1  ;;  %v12692_v26 = vld [vmem:[%s17204_s4 + $0x98] sm:$0xff]  }
 0x513   : > { %v12042_v27 = vpop.f32.mrf.mxu0  ;;  %12276 = vmatpush3.bf16.msra.mxu1 %v12692_v26 }
 0x514   : > { %v12096_v35 = vpop.f32.mrf.mxu1  ;;  %v16390_v61 = vadd.f32 %v6379_v56, %v6281_v59  ;;  %12277 = vmatprep.subr.bf16.mxu1 %v17230_v47 }
 0x515   : > { %v6267_v24 = vpop.f32.mrf.mxu0 }
 0x516   : > { %v6282_v5 = vadd.f32 %v6267_v24, %v16321_v43  ;;  %v6594_v16 = vpop.f32.mrf.mxu1  ;;  %v12694_v43 = vld [vmem:[%s17204_s4 + $0x90] sm:$0xff]  }
 0x517   : > { %v12045_v2 = vpop.f32.mrf.mxu0  ;;  %12278 = vmatpush3.bf16.msra.mxu1 %v12694_v43 }
 0x518   : > { %v12099_v60 = vpop.f32.mrf.mxu1  ;;  %v16400_v34 = vadd.f32 %v6384_v36, %v6282_v5  ;;  %12279 = vmatprep.subr.bf16.mxu1 %v17230_v47 }
 0x519   : > { %v6270_v13 = vpop.f32.mrf.mxu0 }
 0x51a   : > { %v6283_v52 = vadd.f32 %v6270_v13, %v16325_v46  ;;  %v6597_v41 = vpop.f32.mrf.mxu1 }
 0x51b   : > { %v12046_v39 = vpop.f32.mrf.mxu0  ;;  %12280 = vmatpush3.bf16.msra.mxu1 %v12697_v33 }
 0x51c   : > { %v12100_v6 = vpop.f32.mrf.mxu1  ;;  %v16411_v51 = vadd.f32 %v6387_v42, %v6283_v52  ;;  %12281 = vmatprep.subr.bf16.mxu1 %v17230_v47 }
 0x51d   : > { %v6469_v49 = vpop.f32.mrf.mxu0 }
 0x51e   : > { %v6508_v12 = vadd.f32 %v6469_v49, %v16330_v32  ;;  %v6602_v30 = vpop.f32.mrf.mxu1 }
 0x51f   : > { %v12073_v46 = vpop.f32.mrf.mxu0  ;;  %12282 = vmatpush3.bf16.msra.mxu1 %v12700_v9 }
 0x520   : > { %v12103_v50 = vpop.f32.mrf.mxu1  ;;  %v16419_v8 = vadd.f32 %v6586_v18, %v6508_v12  ;;  %12355 = vmatprep.subr.bf16.mxu1 %v17230_v47 }
 0x521   : > { %v6472_v56 = vpop.f32.mrf.mxu0 }
 0x522   : > { %v6509_v58 = vadd.f32 %v6472_v56, %v16333_v57  ;;  %v6605_v62 = vpop.f32.mrf.mxu1 }
 0x523   : > { %v12074_v32 = vpop.f32.mrf.mxu0 }
 0x524   : > { %v12104_v15 = vpop.f32.mrf.mxu1  ;;  %v16426_v40 = vadd.f32 %v6589_v37, %v6509_v58 }
 0x525   : > { %v6477_v36 = vpop.f32.mrf.mxu0 }
 0x526   : > { %v6510_v48 = vadd.f32 %v6477_v36, %v16342_v19  ;;  %v6610_v14 = vpop.f32.mrf.mxu1 }
 0x527   : > { %v12077_v11 = vpop.f32.mrf.mxu0 }
 0x528   : > { %v12107_v57 = vpop.f32.mrf.mxu1  ;;  %v16430_v38 = vadd.f32 %v6594_v16, %v6510_v48 }
 0x529   : > { %v6480_v4 = vpop.f32.mrf.mxu0 }
 0x52a   : > { %v6511_v54 = vadd.f32 %v6480_v4, %v16353_v21  ;;  %v6613_v42 = vpop.f32.mrf.mxu1 }
 0x52b   : > { %v12078_v1 = vpop.f32.mrf.mxu0 }
 0x52c   : > { %v12108_v55 = vpop.f32.mrf.mxu1  ;;  %v16433_v22 = vadd.f32 %v6597_v41, %v6511_v54 }
 0x52d   : > { %v6485_v10 = vpop.f32.mrf.mxu0 }
 0x52e   : > { %v6512_v20 = vadd.f32 %v6485_v10, %v16361_v63  ;;  %v6618_v28 = vpop.f32.mrf.mxu1 }
 0x52f   : > { %v12081_v19 = vpop.f32.mrf.mxu0 }
 0x530   : > { %v12111_v18 = vpop.f32.mrf.mxu1  ;;  %v16436_v25 = vadd.f32 %v6602_v30, %v6512_v20 }
 0x531   : > { %v6488_v29 = vpop.f32.mrf.mxu0 }
 0x532   : > { %v6513_v23 = vadd.f32 %v6488_v29, %v16374_v3  ;;  %v6621_v31 = vpop.f32.mrf.mxu1 }
 0x533   : > { %v12082_v59 = vpop.f32.mrf.mxu0 }
 0x534   : > { %v12112_v37 = vpop.f32.mrf.mxu1  ;;  %v16439_v21 = vadd.f32 %v6605_v62, %v6513_v23 }
 0x535   : > { %v6493_v27 = vpop.f32.mrf.mxu0 }
 0x536   : > { %v6514_v7 = vadd.f32 %v6493_v27, %v16382_v17  ;;  %v16442_v35 = vpop.f32.mrf.mxu1 }
 0x537   : > { %v12085_v24 = vpop.f32.mrf.mxu0 }
 0x538   : > { %v12139_v63 = vpop.f32.mrf.mxu1  ;;  %v16444_v5 = vadd.f32 %v6610_v14, %v6514_v7 }
 0x539   : > { %v6496_v16 = vpop.f32.mrf.mxu0 }
 0x53a   : > { %v6515_v2 = vadd.f32 %v6496_v16, %v16390_v61  ;;  %v16447_v26 = vpop.f32.mrf.mxu1 }
 0x53b   : > { %v12086_v3 = vpop.f32.mrf.mxu0 }
 0x53c   : > { %v12140_v53 = vpop.f32.mrf.mxu1  ;;  %v16449_v60 = vadd.f32 %v6613_v42, %v6515_v2 }
 0x53d   : > { %v6501_v13 = vpop.f32.mrf.mxu0 }
 0x53e   : > { %v6516_v43 = vadd.f32 %v6501_v13, %v16400_v34  ;;  %v16452_v52 = vpop.f32.mrf.mxu1 }
 0x53f   : > { %v12089_v17 = vpop.f32.mrf.mxu0 }
 0x540   : > { %v12143_v41 = vpop.f32.mrf.mxu1  ;;  %v16454_v39 = vadd.f32 %v6618_v28, %v6516_v43 }
 0x541   : > { %v6504_v45 = vpop.f32.mrf.mxu0 }
 0x542   : > { %v6517_v6 = vadd.f32 %v6504_v45, %v16411_v51  ;;  %v16457_v49 = vpop.f32.mrf.mxu1 }
 0x543   : > { %v12090_v61 = vpop.f32.mrf.mxu0 }
 0x544   : > { %v12144_v12 = vpop.f32.mrf.mxu1  ;;  %v16459_v30 = vadd.f32 %v6621_v31, %v6517_v6 }
 0x545   : > { %v6703_v46 = vpop.f32.mrf.mxu0 }
 0x546   : > { %v16461_v33 = vpop.f32.mrf.mxu1  ;;  %v6742_v16 = vadd.f32 %v6703_v46, %v16419_v8  ;;  %v16500_v8 = vld [vmem:[%s17202_s2] ss:$0 sm:$0xff] }
 0x547   : > { %v12117_v50 = vpop.f32.mrf.mxu0 }
 0x548   : > { %v12147_v34 = vpop.f32.mrf.mxu1  ;;  %v6859_v41 = vadd.f32 %v16442_v35, %v6742_v16  ;;  %v16507_v35 = vld [vmem:[%s17203_s3] ss:$0 sm:$0xff] }
 0x549   : > { %v6706_v56 = vpop.f32.mrf.mxu0 }
 0x54a   : > { %v16463_v58 = vpop.f32.mrf.mxu1  ;;  %v6743_v43 = vadd.f32 %v6706_v56, %v16426_v40 }
 0x54b   : > { %v12118_v62 = vpop.f32.mrf.mxu0 }
 0x54c   : > { %v12148_v32 = vpop.f32.mrf.mxu1  ;;  %v6860_v40 = vadd.f32 %v16447_v26, %v6743_v43 }
 0x54d   : > { %v6711_v9 = vpop.f32.mrf.mxu0 }
 0x54e   : > { %v16465_v15 = vpop.f32.mrf.mxu1  ;;  %v6744_v50 = vadd.f32 %v6711_v9, %v16430_v38 }
 0x54f   : > { %v12121_v51 = vpop.f32.mrf.mxu0 }
 0x550   : > { %v12151_v36 = vpop.f32.mrf.mxu1  ;;  %v6861_v26 = vadd.f32 %v16452_v52, %v6744_v50  ;;  %v7182_v52 = vld [vmem:[#allocation2 + $0x190] sm:$0x3f] }
 0x551   : > { %v6714_v48 = vpop.f32.mrf.mxu0 }
 0x552   : > { %v16467_v14 = vpop.f32.mrf.mxu1  ;;  %v6745_v51 = vadd.f32 %v6714_v48, %v16433_v22 }
 0x553   : > { %v12122_v11 = vpop.f32.mrf.mxu0 }
 0x554   : > { %v12152_v57 = vpop.f32.mrf.mxu1 }
 0x555   : > { %v6719_v4 = vpop.f32.mrf.mxu0 }
 0x556   : > { %v16469_v54 = vpop.f32.mrf.mxu1 }
 0x557   : > { %v12125_v42 = vpop.f32.mrf.mxu0 }
 0x558   : > { %v12155_v1 = vpop.f32.mrf.mxu1 }
 0x559   : > { %v16471_v55 = vpop.f32.mrf.mxu0 }
 0x55a   : > { %v16473_v10 = vpop.f32.mrf.mxu1 }
 0x55b   : > { %v12126_v20 = vpop.f32.mrf.mxu0 }
 0x55c   : > { %v12156_v28 = vpop.f32.mrf.mxu1 }
 0x55d   : > { %v16475_v19 = vpop.f32.mrf.mxu0 }
 0x55e   : > { %v16477_v18 = vpop.f32.mrf.mxu1 }
 0x55f   : > { %v12129_v29 = vpop.f32.mrf.mxu0 }
 0x560   : > { %v12197_v23 = vpop.f32.mrf.mxu1 }
 0x561   : > { %v16479_v31 = vpop.f32.mrf.mxu0  ;;  %v7185_v23 = vld [vmem:[#allocation2 + $0x1a8] sm:$0x3f] }
 0x562   : > { %v16481_v59 = vpop.f32.mrf.mxu1 }
 0x563   : > { %v12130_v37 = vpop.f32.mrf.mxu0 }
 0x564   : > { %v12198_v27 = vpop.f32.mrf.mxu1  ;;  %v6746_v37 = vadd.f32 %v6719_v4, %v16436_v25 }
 0x565   : > { %v16483_v7 = vpop.f32.mrf.mxu0 }
 0x566   : > { %v16485_v24 = vpop.f32.mrf.mxu1 }
 0x567   : > { %v12133_v63 = vpop.f32.mrf.mxu0 }
 0x568   : > { %v12201_v2 = vpop.f32.mrf.mxu1  ;;  %v6862_v63 = vadd.f32 %v16457_v49, %v6745_v51  ;;  %v6863_v49 = vadd.f32 %v16461_v33, %v6746_v37 }
 0x569   : > { %v16488_v3 = vpop.f32.mrf.mxu0 }
 0x56a   : > { %v16490_v53 = vpop.f32.mrf.mxu1 }
 0x56b   : > { %v12134_v13 = vpop.f32.mrf.mxu0 }
 0x56c   : > { %v12202_v17 = vpop.f32.mrf.mxu1 }
 0x56d   : > { %v6937_v45 = vpop.f32.mrf.mxu0  ;;  %v7188_v17 = vmax.f32 %v7182_v52, %v7185_v23 }
 0x56e   : > { %v6976_v6 = vadd.f32 %v6937_v45, %v6859_v41  ;;  %v16494_v61 = vpop.f32.mrf.mxu1  ;;  %v6747_v45 = vadd.f32 %v16471_v55, %v16439_v21 }
 0x56f   : > { %v12161_v12 = vpop.f32.mrf.mxu0 }
 0x570   : > { %v6986_v46 = vadd.f32 %v16500_v8, %v6976_v6  ;;  %v12205_v34 = vpop.f32.mrf.mxu1  ;;  %v6864_v55 = vadd.f32 %v16463_v58, %v6747_v45 }
 0x571   : > { %v6940_v56 = vpop.f32.mrf.mxu0 }
 0x572   : > { %vm6996_vm3 = vcmp.gt.f32.partialorder %v6986_v46, 0.0  ;;  %v7006_v62 = vmul.f32 %v16507_v35, %v6986_v46  ;;  %v6977_v38 = vadd.f32 %v6940_v56, %v6860_v40  ;;  %v16510_v32 = vpop.f32.mrf.mxu1 }
 0x573   : > { %v12162_v9 = vpop.f32.mrf.mxu0 }
 0x574   : > { %v7016_v36 = vsel %vm6996_vm3, %v6986_v46, %v7006_v62  ;;  %v6987_v11 = vadd.f32 %v16500_v8, %v6977_v38  ;;  %v12206_v57 = vpop.f32.mrf.mxu1  ;;  %v6748_v62 = vadd.f32 %v16475_v19, %v16444_v5 }
 0x575   : > { %7026 = vst [vmem:[#allocation2 + $0x1c0] sm:$0xff] %v7016_v36  ;;  %v6945_v42 = vpop.f32.mrf.mxu0  ;;  %v7375_v36 = vld [vmem:[#allocation3 + $0xc0] ss:$2 sm:$0xff]  ;;  %v6749_v57 = vadd.f32 %v16479_v31, %v16449_v60 }
 0x576   : > { %vm6997_vm4 = vcmp.gt.f32.partialorder %v6987_v11, 0.0  ;;  %v7007_v1 = vmul.f32 %v16507_v35, %v6987_v11  ;;  %v6978_v20 = vadd.f32 %v6945_v42, %v6861_v26  ;;  %v16516_v28 = vpop.f32.mrf.mxu1 }
 0x577   : > { %v12165_v29 = vpop.f32.mrf.mxu0 }
 0x578   : > { %v7017_v27 = vsel %vm6997_vm4, %v6987_v11, %v7007_v1  ;;  %v6988_v22 = vadd.f32 %v16500_v8, %v6978_v20  ;;  %v12209_v48 = vpop.f32.mrf.mxu1  ;;  %v7379_v11 = vld [vmem:[#allocation3 + $0xc1] ss:$2 sm:$0xff]  ;;  %v6865_v1 = vadd.f32 %v16465_v15, %v6748_v62  ;;  %v6750_v15 = vadd.f32 %v16483_v7, %v16454_v39 }
 0x579   : > { %v6948_v16 = vpop.f32.mrf.mxu0  ;;  %v7204_v26 = vmax.f32 %v16284_v0, %v7017_v27  ;;  %v7386_v29 = vmax.f32 %v7375_v36, %v7379_v11  ;;  %v6866_v0 = vadd.f32 %v16467_v14, %v6749_v57  ;;  %v6751_v39 = vadd.f32 %v16488_v3, %v16459_v30 }
 0x57a   : > { %vm6998_vm5 = vcmp.gt.f32.partialorder %v6988_v22, 0.0  ;;  %v7008_v2 = vmul.f32 %v16507_v35, %v6988_v22  ;;  %v6979_v13 = vadd.f32 %v6948_v16, %v6862_v63  ;;  %v16522_v43 = vpop.f32.mrf.mxu1 }
 0x57b   : > { %v12166_v41 = vpop.f32.mrf.mxu0  ;;  %v6868_v3 = vadd.f32 %v16473_v10, %v6751_v39 }
 0x57c   : > { %v7191_v25 = vld [vmem:[#allocation2 + $0x1c0] sm:$0x3f]  ;;  %v7018_v4 = vsel %vm6998_vm5, %v6988_v22, %v7008_v2  ;;  %v6989_v6 = vadd.f32 %v16500_v8, %v6979_v13  ;;  %v12210_v12 = vpop.f32.mrf.mxu1  ;;  %v7440_v2 = vld [vmem:[#allocation4 + $0x50] sm:$0xff] }
 0x57d   : > { %v7194_v50 = vmax.f32 %v7188_v17, %v7191_v25  ;;  %v6953_v46 = vpop.f32.mrf.mxu0  ;;  %v7205_v63 = vmax.f32 %v16294_v44, %v7018_v4 }
 0x57e   : > { %vm6999_vm6 = vcmp.gt.f32.partialorder %v6989_v6, 0.0  ;;  %v7009_v34 = vmul.f32 %v16507_v35, %v6989_v6  ;;  %v6980_v40 = vadd.f32 %v6953_v46, %v6863_v49  ;;  %v6867_v49 = vadd.f32 %v16469_v54, %v6750_v15  ;;  %v7200_v54 = vld [vmem:[#allocation2 + $0x1c0] sm:$0x3f] }
 0x57f   : > { %7197 = vst [vmem:[#allocation3 + $0xd0] sm:$0x3f] %v7194_v50  ;;  %v12169_v56 = vpop.f32.mrf.mxu0  ;;  %v7961_v15 = vld [vmem:[#allocation4 + $0xb] sm:$0xff] }
 0x580   : > { %v7019_v38 = vsel %vm6999_vm6, %v6989_v6, %v7009_v34  ;;  %v6990_v21 = vadd.f32 %v16500_v8, %v6980_v40 }
 0x581   : > { %7029 = vst [vmem:[#allocation2 + $0x1d8] sm:$0xff] %v7019_v38  ;;  %v6956_v9 = vpop.f32.mrf.mxu0 }
 0x582   : > { %vm7000_vm7 = vcmp.gt.f32.partialorder %v6990_v21, 0.0  ;;  %v7010_v33 = vmul.f32 %v16507_v35, %v6990_v21  ;;  %v6981_v51 = vadd.f32 %v6956_v9, %v6864_v55 }
 0x583   : > { %v12170_v42 = vpop.f32.mrf.mxu0 }
 0x584   : > { %v7020_v5 = vsel %vm7000_vm7, %v6990_v21, %v7010_v33  ;;  %v6991_v19 = vadd.f32 %v16500_v8, %v6981_v51 }
 0x585   : > { %v7210_v58 = vmax.f32 %v7204_v26, %v7020_v5  ;;  %v6961_v20 = vpop.f32.mrf.mxu0 }
 0x586   : > { %vm7001_vm8 = vcmp.gt.f32.partialorder %v6991_v19, 0.0  ;;  %v7011_v23 = vmul.f32 %v16507_v35, %v6991_v19  ;;  %v6982_v37 = vadd.f32 %v6961_v20, %v6865_v1  ;;  %v7383_v22 = vld [vmem:[#allocation3 + $0xc2] ss:$2 sm:$0xff]  ;;  %v7381_v27 = vld [vmem:[#allocation3 + $0xd1] ss:$2 sm:$0x7] }
 0x587   : > { %v7377_v48 = vld [vmem:[#allocation3 + $0xd0] ss:$2 sm:$0x7]  ;;  %7213 = vst [vmem:[#allocation3 + $0xd8] sm:$0xff] %v7210_v58  ;;  %v12173_v60 = vpop.f32.mrf.mxu0  ;;  %v7388_v31 = vmax.f32 %v7386_v29, %v7383_v22 }
 0x588   : > { %v7021_v16 = vsel %vm7001_vm8, %v6991_v19, %v7011_v23  ;;  %v6992_v52 = vadd.f32 %v16500_v8, %v6982_v37  ;;  %v7387_v13 = vmax.f32 %v7377_v48, %v7381_v27  ;;  %v7385_v25 = vld [vmem:[#allocation3 + $0xd2] ss:$2 sm:$0x7]  ;;  %v7203_v56 = vld [vmem:[#allocation2 + $0x1d8] sm:$0x3f] }
 0x589   : > { %v7211_v17 = vmax.f32 %v7205_v63, %v7021_v16  ;;  %v6964_v41 = vpop.f32.mrf.mxu0  ;;  %7390 = vst [vmem:[#allocation4 + $0x58] sm:$0xff] %v7388_v31  ;;  %v7448_v45 = vpack.c.bf16 %v7388_v31, %v7440_v2  ;;  %v7206_v33 = vmax.f32 %v7200_v54, %v7203_v56  ;;  %v12706_v2 = vld [vmem:[%s17204_s4 + $0x178] sm:$0xff]  }
 0x58a   : > { %vm7002_vm9 = vcmp.gt.f32.partialorder %v6992_v52, 0.0  ;;  %v7012_v44 = vmul.f32 %v16507_v35, %v6992_v52  ;;  %v6983_v4 = vadd.f32 %v6964_v41, %v6866_v0  ;;  %v7389_v14 = vmax.f32 %v7387_v13, %v7385_v25  ;;  %v7775_v54 = vld [vmem:[#allocation4 + $0x2] sm:$0xff] }
 0x58b   : > { %7214 = vst [vmem:[#allocation3 + $0xe0] sm:$0xff] %v7211_v17  ;;  %v12174_v6 = vpop.f32.mrf.mxu0  ;;  %12260 = vmatmul.mubr.bf16.gmra.mxu0 %v7448_v45 }
 0x58c   : > { %v7022_v7 = vsel %vm7002_vm9, %v6992_v52, %v7012_v44  ;;  %v6993_v12 = vadd.f32 %v16500_v8, %v6983_v4  ;;  %7391 = vst [vmem:[#allocation4 + $0x60] sm:$0x7] %v7389_v14  ;;  %12263 = vmatprep.mubr.msk.bf16.mxu0 %vm12796_vm2, %v17230_v47 }
 0x58d   : > { %7032 = vst [vmem:[#allocation2 + $0x1f0] sm:$0xff] %v7022_v7  ;;  %v6969_v50 = vpop.f32.mrf.mxu0 }
 0x58e   : > { %vm7003_vm10 = vcmp.gt.f32.partialorder %v6993_v12, 0.0  ;;  %v7013_v46 = vmul.f32 %v16507_v35, %v6993_v12  ;;  %v6984_v34 = vadd.f32 %v6969_v50, %v6867_v49 }
 0x58f   : > { %v12177_v40 = vpop.f32.mrf.mxu0 }
 0x590   : > { %v7023_v62 = vsel %vm7003_vm10, %v6993_v12, %v7013_v46  ;;  %v6994_v30 = vadd.f32 %v16500_v8, %v6984_v34  ;;  %v7476_v11 = vld [vmem:[#allocation4 + $0x51] sm:$0xff]  ;;  %v7964_v40 = vld [vmem:[#allocation4 + $0x23] sm:$0xff] }
 0x591   : > { %v7222_v38 = vmax.f32 %v7020_v5, %v7023_v62  ;;  %v6972_v21 = vpop.f32.mrf.mxu0  ;;  %v7776_v34 = vld [vmem:[#allocation4 + $0xa] sm:$0xff] }
 0x592   : > { %vm7004_vm11 = vcmp.gt.f32.partialorder %v6994_v30, 0.0  ;;  %v7014_v55 = vmul.f32 %v16507_v35, %v6994_v30  ;;  %v6985_v9 = vadd.f32 %v6972_v21, %v6868_v3  ;;  %v7397_v31 = vld [vmem:[#allocation3 + $0xd9] ss:$2 sm:$0xff] }
 0x593   : > { %v7225_v51 = vmax.f32 %v7222_v38, %v7023_v62  ;;  %v12178_v36 = vpop.f32.mrf.mxu0  ;;  %v7477_v57 = vld [vmem:[#allocation4 + $0x59] sm:$0xff]  ;;  %v7478_v60 = vld [vmem:[#allocation4 + $0x61] sm:$0x1] }
 0x594   : > { %v7442_v26 = vld [vmem:[#allocation4 + $0x60] sm:$0x1]  ;;  %v7209_v42 = vld [vmem:[#allocation2 + $0x1f0] sm:$0x3f]  ;;  %v7024_v19 = vsel %vm7004_vm11, %v6994_v30, %v7014_v55  ;;  %v6995_v1 = vadd.f32 %v16500_v8, %v6985_v9  ;;  %v7484_v58 = vpack.c.bf16 %v7477_v57, %v7476_v11 }
 0x595   : > { %v7449_v20 = vpack.c.bf16 %v7442_v26, %v7442_v26  ;;  %v7212_v10 = vmax.f32 %v7206_v33, %v7209_v42  ;;  %7228 = vst [vmem:[#allocation3 + $0xf0] sm:$0xff] %v7225_v51  ;;  %v7223_v5 = vmax.f32 %v7021_v16, %v7024_v19  ;;  %v7721_v29 = vpop.f32.mrf.mxu0  ;;  %v7485_v16 = vpack.c.bf16 %v7478_v60, %v7478_v60  ;;  %v7218_v39 = vld [vmem:[#allocation2 + $0x1f0] sm:$0x3f]  ;;  %v12702_v55 = vld [vmem:[%s17204_s4 + $0x138] sm:$0xff]  }
 0x596   : > { %vm7005_vm12 = vcmp.gt.f32.partialorder %v6995_v1, 0.0  ;;  %v7015_v23 = vmul.f32 %v16507_v35, %v6995_v1  ;;  %12216 = vmatmul.mubr.bf16.gmra.mxu1 %v7484_v58  ;;  %v16559_v37 = vadd.f32 %v7721_v29, %v16477_v18  ;;  %v7962_v35 = vld [vmem:[#allocation4 + $0x13] sm:$0xff]  ;;  %v7963_v9 = vld [vmem:[#allocation4 + $0x1b] sm:$0xff]  ;;  %v7788_v33 = vpack.c.bf16 %v7776_v34, %v7775_v54 }
 0x597   : > { %12264 = vmatmul.mubr.bf16.gmra.mxu0 %v7449_v20  ;;  %7215 = vst [vmem:[#allocation3 + $0xe8] sm:$0x3f] %v7212_v10  ;;  %v7226_v22 = vmax.f32 %v7223_v5, %v7024_v19  ;;  %v12241_v48 = vpop.f32.mrf.mxu0  ;;  %12219 = vmatprep.mubr.msk.bf16.mxu1 %vm12796_vm2, %v17230_v47  ;;  %v7393_v18 = vld [vmem:[#allocation3 + $0xd8] ss:$2 sm:$0xff]  ;;  %v7974_v52 = vpack.c.bf16 %v7962_v35, %v7961_v15  ;;  %v12711_v20 = vld [vmem:[%s17204_s4 + $0x160] sm:$0xff]   ;;  %v12712_v15 = vld [vmem:[%s17204_s4 + $0x158] sm:$0xff]  }
 0x598   : > { %12327 = vmatprep.mubr.msk.bf16.mxu0 %vm12796_vm2, %v17230_v47  ;;  %v7025_v8 = vsel %vm7005_vm12, %v6995_v1, %v7015_v23  ;;  %v7404_v41 = vmax.f32 %v7393_v18, %v7397_v31  ;;  %v7975_v51 = vpack.c.bf16 %v7964_v40, %v7963_v9  ;;  %v12703_v26 = vld [vmem:[%s17204_s4 + $0x130] sm:$0xff]   ;;  %v7965_v23 = vld [vmem:[#allocation4 + $0x2b] sm:$0xff]  ;;  %vm9693_vm12 = vcmask 518144  }
 0x599   : > { %7229 = vst [vmem:[#allocation3 + $0xf8] sm:$0xff] %v7226_v22  ;;  %7035 = vst [vmem:[#allocation2 + $0x208] sm:$0x3f] %v7025_v8  ;;  %v7724_v63 = vpop.f32.mrf.mxu0  ;;  %v7778_v1 = vld [vmem:[#allocation4 + $0x1a] sm:$0xff]  ;;  %v7777_v29 = vld [vmem:[#allocation4 + $0x12] sm:$0xff] }
 0x59a   : > { %v16566_v0 = vadd.f32 %v7724_v63, %v16481_v59  ;;  %v7966_v58 = vld [vmem:[#allocation4 + $0x33] sm:$0xff]  ;;  %v7789_v8 = vpack.c.bf16 %v7778_v1, %v7777_v29 }
 0x59b   : > { %v12242_v27 = vpop.f32.mrf.mxu0  ;;  %v12704_v22 = vld [vmem:[%s17204_s4 + $0x128] sm:$0xff]   ;;  %v7976_v63 = vpack.c.bf16 %v7966_v58, %v7965_v23  ;;  %v12710_v40 = vld [vmem:[%s17204_s4 + $0x110] sm:$0xff]  }
 0x59c   : > { %v7781_v54 = vld [vmem:[#allocation4 + $0x32] sm:$0xff] }
 0x59d   : > { %v16571_v13 = vpop.f32.mrf.mxu1  ;;  %v7729_v17 = vpop.f32.mrf.mxu0  ;;  %v7785_v58 = vld [vmem:[#allocation4 + $0x52] sm:$0xff] }
 0x59e   : > { %12220 = vmatmul.mubr.bf16.gmra.mxu1 %v7485_v16  ;;  %v16574_v45 = vadd.f32 %v7729_v17, %v16485_v24  ;;  %v7401_v59 = vld [vmem:[#allocation3 + $0xda] ss:$2 sm:$0xff]  ;;  %v7399_v6 = vld [vmem:[#allocation3 + $0xe9] ss:$2 sm:$0x7] }
 0x59f   : > { %12328 = vmatmul.mubr.bf16.vlgmr.msra.gmra.mxu0 %v7974_v52  ;;  %v7395_v25 = vld [vmem:[#allocation3 + $0xe8] ss:$2 sm:$0x7]  ;;  %v12213_v44 = vpop.f32.mrf.mxu1  ;;  %v12245_v4 = vpop.f32.mrf.mxu0  ;;  %12283 = vmatprep.mubr.msk.bf16.mxu1 %vm12796_vm2, %v17230_v47  ;;  %v16580_v14 = vmax.f32 %v7404_v41, %v7401_v59  ;;  %v12707_v24 = vld [vmem:[%s17204_s4 + $0x170] sm:$0xff]   ;;  %v7780_v59 = vld [vmem:[#allocation4 + $0x2a] sm:$0xff] }
 0x5a0   : > { %12331 = vmatprep.mubr.msk.bf16.mxu0 %vm12796_vm2, %v17230_v47  ;;  %v7221_v7 = vld [vmem:[#allocation2 + $0x208] sm:$0x3f]  ;;  %12400 = vmatpush3.bf16.msra.mxu0 %v12706_v2  ;;  %v7405_v12 = vmax.f32 %v7395_v25, %v7399_v6  ;;  %v7403_v56 = vld [vmem:[#allocation3 + $0xea] ss:$2 sm:$0x7]  ;;  %v12705_v2 = vld [vmem:[%s17204_s4 + $0x120] sm:$0xff]  }
 0x5a1   : > { %v7224_v49 = vmax.f32 %v7218_v39, %v7221_v7  ;;  %v16585_v50 = vpop.f32.mrf.mxu1  ;;  %v7732_v46 = vpop.f32.mrf.mxu0  ;;  %12401 = vmatprep.subr.bf16.mxu0 %v17230_v47  ;;  %7408 = vst [vmem:[#allocation4 + $0x63] sm:$0xff] %v16580_v14  ;;  %v7411_v42 = vld [vmem:[#allocation3 + $0xf0] ss:$2 sm:$0xff]  ;;  %v7415_v19 = vld [vmem:[#allocation3 + $0xf1] ss:$2 sm:$0xff]  ;;  %v7967_v39 = vld [vmem:[#allocation4 + $0x3b] sm:$0xff] }
 0x5a2   : > { %v16590_v62 = vadd.f32 %v7732_v46, %v16490_v53  ;;  %v7407_v30 = vmax.f32 %v7405_v12, %v7403_v56  ;;  %v12709_v53 = vld [vmem:[%s17204_s4 + $0x168] sm:$0xff]   ;;  %v7422_v48 = vmax.f32 %v7411_v42, %v7415_v19  ;;  %v7968_v25 = vld [vmem:[#allocation4 + $0x43] sm:$0xff] }
 0x5a3   : > { %v7227_v3 = vmax.f32 %v7224_v49, %v7221_v7  ;;  %v12214_v38 = vpop.f32.mrf.mxu1  ;;  %v12246_v21 = vpop.f32.mrf.mxu0  ;;  %v7779_v6 = vld [vmem:[#allocation4 + $0x22] sm:$0xff]  ;;  %v7977_v12 = vpack.c.bf16 %v7968_v25, %v7967_v39  ;;  %v8334_v29 = vld [vmem:[#allocation4 + $0x15] sm:$0xff]  ;;  %v8333_v23 = vld [vmem:[#allocation4 + $0xd] sm:$0xff] }
 0x5a4   : > { %12402 = vmatpush3.bf16.msra.mxu0 %v12707_v24  ;;  %7409 = vst [vmem:[#allocation4 + $0x6b] sm:$0x7] %v7407_v30  ;;  %v12708_v7 = vld [vmem:[%s17204_s4 + $0x118] sm:$0xff]   ;;  %v7790_v24 = vpack.c.bf16 %v7780_v59, %v7779_v6  ;;  %v12727_v59 = vld [vmem:[%s17204_s4 + $0x1e0] sm:$0xff]   ;;  %v12720_v6 = vld [vmem:[%s17204_s4 + $0x1a8] sm:$0xff]  }
 0x5a5   : > { %7230 = vst [vmem:[#allocation3 + $0x100] sm:$0x3f] %v7227_v3  ;;  %v7737_v36 = vpop.f32.mrf.mxu0  ;;  %12403 = vmatprep.subr.bf16.mxu0 %v17230_v47  ;;  %v7782_v30 = vld [vmem:[#allocation4 + $0x3a] sm:$0xff]  ;;  %v12715_v3 = vld [vmem:[%s17204_s4 + $0x148] sm:$0xff]  }
 0x5a6   : > { %v16600_v11 = vadd.f32 %v7737_v36, %v16494_v61  ;;  %12284 = vmatmul.mubr.bf16.vlgmr.msra.gmra.mxu1 %v7788_v33  ;;  %v7791_v9 = vpack.c.bf16 %v7782_v30, %v7781_v54  ;;  %v12716_v36 = vld [vmem:[%s17204_s4 + $0x100] sm:$0xff]   ;;  %v8149_v25 = vld [vmem:[#allocation4 + $0x1c] sm:$0xff] }
 0x5a7   : > { %12332 = vmatmul.mubr.bf16.gmra.mxu0 %v7975_v51  ;;  %12356 = vmatpush3.bf16.msra.mxu1 %v12702_v55  ;;  %v12249_v57 = vpop.f32.mrf.mxu0  ;;  %v7969_v55 = vld [vmem:[#allocation4 + $0x4b] sm:$0xff] }
 0x5a8   : > { %12287 = vmatprep.mubr.msk.bf16.mxu1 %vm12796_vm2, %v17230_v47  ;;  %12357 = vmatprep.subr.bf16.mxu1 %v17230_v47  ;;  %v12713_v51 = vld [vmem:[%s17204_s4 + $0x108] sm:$0xff]   ;;  %v7783_v57 = vld [vmem:[#allocation4 + $0x42] sm:$0xff] }
 0x5a9   : > { %12335 = vmatprep.mubr.msk.bf16.mxu0 %vm12796_vm2, %v17230_v47  ;;  %v7740_v61 = vpop.f32.mrf.mxu0  ;;  %12404 = vmatpush3.bf16.msra.mxu0 %v12709_v53  ;;  %v7784_v53 = vld [vmem:[#allocation4 + $0x4a] sm:$0xff] }
 0x5aa   : > { %v16614_v10 = vadd.f32 %v7740_v61, %v16510_v32  ;;  %12405 = vmatprep.subr.bf16.mxu0 %v17230_v47  ;;  %v7792_v42 = vpack.c.bf16 %v7784_v53, %v7783_v57  ;;  %v7786_v61 = vld [vmem:[#allocation4 + $0x5a] sm:$0xff]  ;;  %v8154_v54 = vld [vmem:[#allocation4 + $0x44] sm:$0xff]  ;;  %v12729_v53 = vld [vmem:[%s17204_s4 + $0x188] sm:$0xff]  }
 0x5ab   : > { %v12250_v5 = vpop.f32.mrf.mxu0  ;;  %12358 = vmatpush3.bf16.msra.mxu1 %v12703_v26  ;;  %v7971_v26 = vld [vmem:[#allocation4 + $0x5b] sm:$0xff]  ;;  %v7973_v1 = vld [vmem:[#allocation4 + $0x6b] sm:$0x1] }
 0x5ac   : > { %12359 = vmatprep.subr.bf16.mxu1 %v17230_v47  ;;  %v7419_v60 = vld [vmem:[#allocation3 + $0xf2] ss:$2 sm:$0xff]  ;;  %v7417_v18 = vld [vmem:[#allocation3 + $0x101] ss:$2 sm:$0x7]  ;;  %v7979_v19 = vpack.c.bf16 %v16580_v14, %v7971_v26  ;;  %v7980_v5 = vpack.c.bf16 %v7973_v1, %v7973_v1 }
 0x5ad   : > { %v7745_v35 = vpop.f32.mrf.mxu0  ;;  %12406 = vmatpush3.bf16.msra.mxu0 %v12711_v20  ;;  %v7413_v32 = vld [vmem:[#allocation3 + $0x100] ss:$2 sm:$0x7]  ;;  %v16621_v31 = vmax.f32 %v7422_v48, %v7419_v60  ;;  %v7793_v20 = vpack.c.bf16 %v7786_v61, %v7785_v58  ;;  %v7787_v14 = vld [vmem:[#allocation4 + $0x62] sm:$0x1]  ;;  %v8346_v48 = vpack.c.bf16 %v8334_v29, %v8333_v23  ;;  %v12733_v57 = vld [vmem:[%s17204_s4 + $0x1c0] sm:$0xff]  }
 0x5ae   : > { %v16624_v27 = vadd.f32 %v7745_v35, %v16516_v28  ;;  %12288 = vmatmul.mubr.bf16.gmra.mxu1 %v7789_v8  ;;  %v7423_v16 = vmax.f32 %v7413_v32, %v7417_v18  ;;  %v7421_v17 = vld [vmem:[#allocation3 + $0x102] ss:$2 sm:$0x7]  ;;  %12407 = vmatprep.subr.bf16.mxu0 %v17230_v47  ;;  %v12722_v8 = vld [vmem:[%s17204_s4 + $0x1f8] sm:$0xff]   ;;  %v8147_v32 = vld [vmem:[#allocation4 + $0xc] sm:$0xff] }
 0x5af   : > { %12336 = vmatmul.mubr.bf16.gmra.mxu0 %v7976_v63  ;;  %v12253_v52 = vpop.f32.mrf.mxu0  ;;  %12360 = vmatpush3.bf16.msra.mxu1 %v12704_v22  ;;  %7426 = vst [vmem:[#allocation4 + $0x6e] sm:$0xff] %v16621_v31  ;;  %v7794_v22 = vpack.c.bf16 %v7787_v14, %v7787_v14  ;;  %v12723_v63 = vld [vmem:[%s17204_s4 + $0x1f0] sm:$0xff]   ;;  %v8336_v35 = vld [vmem:[#allocation4 + $0x25] sm:$0xff]  ;;  %v8345_v14 = vld [vmem:[#allocation4 + $0x6d] sm:$0x1] }
 0x5b0   : > { %12291 = vmatprep.mubr.msk.bf16.mxu1 %vm12796_vm2, %v17230_v47  ;;  %12361 = vmatprep.subr.bf16.mxu1 %v17230_v47  ;;  %v7425_v28 = vmax.f32 %v7423_v16, %v7421_v17  ;;  %v8148_v60 = vld [vmem:[#allocation4 + $0x14] sm:$0xff]  ;;  %v12718_v18 = vld [vmem:[%s17204_s4 + $0x1b8] sm:$0xff]   ;;  %v12732_v26 = vld [vmem:[%s17204_s4 + $0x180] sm:$0xff]  }
 0x5b1   : > { %12339 = vmatprep.mubr.msk.bf16.mxu0 %vm12796_vm2, %v17230_v47  ;;  %v7748_v41 = vpop.f32.mrf.mxu0  ;;  %12408 = vmatpush3.bf16.msra.mxu0 %v12712_v15  ;;  %v8335_v15 = vld [vmem:[#allocation4 + $0x1d] sm:$0xff]  ;;  %v8160_v16 = vpack.c.bf16 %v8148_v60, %v8147_v32  ;;  %v8155_v61 = vld [vmem:[#allocation4 + $0x4c] sm:$0xff] }
 0x5b2   : > { %v16640_v44 = vadd.f32 %v7748_v41, %v16522_v43  ;;  %7427 = vst [vmem:[#allocation4 + $0x76] sm:$0x7] %v7425_v28  ;;  %12409 = vmatprep.subr.bf16.mxu0 %v17230_v47  ;;  %v12714_v43 = vld [vmem:[%s17204_s4 + $0x150] sm:$0xff]   ;;  %v8347_v52 = vpack.c.bf16 %v8336_v35, %v8335_v15  ;;  %v8150_v28 = vld [vmem:[#allocation4 + $0x24] sm:$0xff] }
 0x5b3   : > { %v12254_v4 = vpop.f32.mrf.mxu0  ;;  %12362 = vmatpush3.bf16.msra.mxu1 %v12705_v2  ;;  %v12725_v2 = vld [vmem:[%s17204_s4 + $0x1e8] sm:$0xff]   ;;  %v12719_v17 = vld [vmem:[%s17204_s4 + $0x1b0] sm:$0xff]   ;;  %v8161_v39 = vpack.c.bf16 %v8150_v28, %v8149_v25  ;;  %v8521_v25 = vld [vmem:[#allocation4 + $0x26] sm:$0xff] }
 0x5b4   : > { %12363 = vmatprep.subr.bf16.mxu1 %v17230_v47  ;;  %v8338_v41 = vld [vmem:[#allocation4 + $0x35] sm:$0xff]  ;;  %v8337_v4 = vld [vmem:[#allocation4 + $0x2d] sm:$0xff]  ;;  %v8343_v1 = vld [vmem:[#allocation4 + $0x5d] sm:$0xff] }
 0x5b5   : > { %v7753_v49 = vpop.f32.mrf.mxu0  ;;  %12410 = vmatpush3.bf16.msra.mxu0 %v12714_v43  ;;  %v8340_v43 = vld [vmem:[#allocation4 + $0x45] sm:$0xff]  ;;  %v8157_v29 = vld [vmem:[#allocation4 + $0x5c] sm:$0xff] }
 0x5b6   : > { %v16651_v46 = vadd.f32 %v7753_v49, %v16571_v13  ;;  %12292 = vmatmul.mubr.bf16.gmra.mxu1 %v7790_v24  ;;  %v7970_v13 = vld [vmem:[#allocation4 + $0x53] sm:$0xff]  ;;  %12411 = vmatprep.subr.bf16.mxu0 %v17230_v47  ;;  %v12728_v24 = vld [vmem:[%s17204_s4 + $0x1d8] sm:$0xff]  }
 0x5b7   : > { %12340 = vmatmul.mubr.bf16.gmra.mxu0 %v7977_v12  ;;  %v12257_v34 = vpop.f32.mrf.mxu0  ;;  %12295 = vmatprep.mubr.msk.bf16.mxu1 %vm12796_vm2, %v17230_v47  ;;  %v7978_v33 = vpack.c.bf16 %v7970_v13, %v7969_v55  ;;  %v12721_v12 = vld [vmem:[%s17204_s4 + $0x1a0] sm:$0xff]   ;;  %v8152_v49 = vld [vmem:[#allocation4 + $0x34] sm:$0xff]  ;;  %v8520_v32 = vld [vmem:[#allocation4 + $0x1e] sm:$0xff] }
 0x5b8   : > { %12364 = vmatpush3.bf16.msra.mxu1 %v12708_v7  ;;  %12343 = vmatprep.mubr.msk.bf16.mxu0 %vm12796_vm2, %v17230_v47  ;;  %v8348_v7 = vpack.c.bf16 %v8338_v41, %v8337_v4  ;;  %v8151_v34 = vld [vmem:[#allocation4 + $0x2c] sm:$0xff]  ;;  %v8342_v55 = vld [vmem:[#allocation4 + $0x55] sm:$0xff] }
 0x5b9   : > { %12365 = vmatprep.subr.bf16.mxu1 %v17230_v47  ;;  %v7756_v56 = vpop.f32.mrf.mxu0  ;;  %12412 = vmatpush3.bf16.msra.mxu0 %v12715_v3  ;;  %v8162_v30 = vpack.c.bf16 %v8152_v49, %v8151_v34  ;;  %v12730_v3 = vld [vmem:[%s17204_s4 + $0x1d0] sm:$0xff]   ;;  %v8522_v41 = vld [vmem:[#allocation4 + $0x2e] sm:$0xff] }
 0x5ba   : > { %v16665_v38 = vadd.f32 %v7756_v56, %v16585_v50  ;;  %v12717_v50 = vld [vmem:[%s17204_s4 + $0x140] sm:$0xff]   ;;  %12413 = vmatprep.subr.bf16.mxu0 %v17230_v47  ;;  %v12724_v56 = vld [vmem:[%s17204_s4 + $0x198] sm:$0xff]   ;;  %v8519_v15 = vld [vmem:[#allocation4 + $0x16] sm:$0xff] }
 0x5bb   : > { %v12258_v21 = vpop.f32.mrf.mxu0  ;;  %v12735_v28 = vld [vmem:[%s17204_s4 + $0x230] sm:$0xff]   ;;  %v8712_v49 = vld [vmem:[#allocation4 + $0x4f] sm:$0xff]  ;;  %v8711_v34 = vld [vmem:[#allocation4 + $0x47] sm:$0xff] }
 0x5bc   : > { %12366 = vmatpush3.bf16.msra.mxu1 %v12710_v40  ;;  %v8339_v40 = vld [vmem:[#allocation4 + $0x3d] sm:$0xff] }
 0x5bd   : > { %12367 = vmatprep.subr.bf16.mxu1 %v17230_v47  ;;  %12414 = vmatpush3.bf16.msra.mxu0 %v12717_v50  ;;  %v8349_v13 = vpack.c.bf16 %v8340_v43, %v8339_v40  ;;  %v12726_v21 = vld [vmem:[%s17204_s4 + $0x190] sm:$0xff]   ;;  %v12738_v40 = vld [vmem:[%s17204_s4 + $0x218] sm:$0xff]  }
 0x5be   : > { %12296 = vmatmul.mubr.bf16.gmra.mxu1 %v7791_v9  ;;  %12487 = vmatprep.subr.bf16.mxu0 %v17230_v47  ;;  %v12731_v9 = vld [vmem:[%s17204_s4 + $0x1c8] sm:$0xff]  }
 0x5bf   : > { %12344 = vmatmul.mubr.bf16.gmra.mxu0 %v7978_v33  ;;  %12299 = vmatprep.mubr.msk.bf16.mxu1 %vm12796_vm2, %v17230_v47  ;;  %v8153_v33 = vld [vmem:[#allocation4 + $0x3c] sm:$0xff] }
 0x5c0   : > { %12347 = vmatprep.mubr.msk.bf16.mxu0 %vm12796_vm2, %v17230_v47  ;;  %12368 = vmatpush3.bf16.msra.mxu1 %v12713_v51  ;;  %v8341_v51 = vld [vmem:[#allocation4 + $0x4d] sm:$0xff]  ;;  %v8163_v50 = vpack.c.bf16 %v8154_v54, %v8153_v33  ;;  %v8709_v4 = vld [vmem:[#allocation4 + $0x37] sm:$0xff] }
 0x5c1   : > { %12369 = vmatprep.subr.bf16.mxu1 %v17230_v47  ;;  %v8523_v43 = vld [vmem:[#allocation4 + $0x36] sm:$0xff]  ;;  %v8525_v54 = vld [vmem:[#allocation4 + $0x46] sm:$0xff] }
 0x5c4   : > { %12370 = vmatpush3.bf16.msra.mxu1 %v12716_v36  ;;  %v8350_v36 = vpack.c.bf16 %v8342_v55, %v8341_v51  ;;  %v8713_v55 = vld [vmem:[#allocation4 + $0x57] sm:$0xff] }
 0x5c5   : > { %12443 = vmatprep.subr.bf16.mxu1 %v17230_v47  ;;  %v12740_v51 = vld [vmem:[%s17204_s4 + $0x208] sm:$0xff]  }
 0x5c6   : > { %12300 = vmatmul.mubr.bf16.gmra.mxu1 %v7792_v42  ;;  %v8156_v42 = vld [vmem:[#allocation4 + $0x54] sm:$0xff] }
 0x5c7   : > { %12348 = vmatmul.mubr.bf16.gmra.mxu0 %v7979_v19  ;;  %12303 = vmatprep.mubr.msk.bf16.mxu1 %vm12796_vm2, %v17230_v47  ;;  %v8344_v19 = vld [vmem:[#allocation4 + $0x65] sm:$0xff]  ;;  %v8164_v58 = vpack.c.bf16 %v8156_v42, %v8155_v61  ;;  %v8717_v61 = vld [vmem:[#allocation4 + $0x77] sm:$0x1] }
 0x5c8   : > { %12351 = vmatprep.mubr.msk.bf16.mxu0 %vm12796_vm2, %v17230_v47 }
 0x5ce   : > { %12304 = vmatmul.mubr.bf16.gmra.mxu1 %v7793_v20  ;;  %v8351_v20 = vpack.c.bf16 %v8344_v19, %v8343_v1  ;;  %v8529_v1 = vld [vmem:[#allocation4 + $0x66] sm:$0xff] }
 0x5cf   : > { %12352 = vmatmul.mubr.bf16.gmra.mxu0 %v7980_v5  ;;  %12307 = vmatprep.mubr.msk.bf16.mxu1 %vm12796_vm2, %v17230_v47  ;;  %v8158_v5 = vld [vmem:[#allocation4 + $0x64] sm:$0xff] }
 0x5d0   : > { %12415 = vmatprep.mubr.msk.bf16.mxu0 %vm12796_vm2, %v17230_v47  ;;  %v8165_v23 = vpack.c.bf16 %v8158_v5, %v8157_v29  ;;  %v8531_v5 = vld [vmem:[#allocation4 + $0x76] sm:$0x1]  ;;  %v8892_v29 = vld [vmem:[#allocation4 + $0x20] sm:$0xff] }
 0x5d6   : > { %12308 = vmatmul.mubr.bf16.gmra.mxu1 %v7794_v22  ;;  %v8352_v22 = vpack.c.bf16 %v8345_v14, %v8345_v14  ;;  %v8538_v14 = vpack.c.bf16 %v8531_v5, %v8531_v5 }
 0x5d7   : > { %12416 = vmatmul.mubr.bf16.vlgmr.msra.gmra.mxu0 %v8346_v48  ;;  %12371 = vmatprep.mubr.msk.bf16.mxu1 %vm12796_vm2, %v17230_v47  ;;  %v8159_v48 = vld [vmem:[#allocation4 + $0x6c] sm:$0x1] }
 0x5d8   : > { %12419 = vmatprep.mubr.msk.bf16.mxu0 %vm12796_vm2, %v17230_v47  ;;  %12488 = vmatpush3.bf16.msra.mxu0 %v12722_v8  ;;  %v8706_v8 = vld [vmem:[#allocation4 + $0x1f] sm:$0xff]  ;;  %v8166_v60 = vpack.c.bf16 %v8159_v48, %v8159_v48 }
 0x5d9   : > { %12489 = vmatprep.subr.bf16.mxu0 %v17230_v47 }
 0x5dc   : > { %12490 = vmatpush3.bf16.msra.mxu0 %v12723_v63  ;;  %v8705_v63 = vld [vmem:[#allocation4 + $0x17] sm:$0xff] }
 0x5dd   : > { %12491 = vmatprep.subr.bf16.mxu0 %v17230_v47  ;;  %v8718_v35 = vpack.c.bf16 %v8706_v8, %v8705_v63  ;;  %v8894_v63 = vld [vmem:[#allocation4 + $0x30] sm:$0xff] }
 0x5de   : > { %12372 = vmatmul.mubr.bf16.vlgmr.msra.gmra.mxu1 %v8160_v16  ;;  %v12734_v16 = vld [vmem:[%s17204_s4 + $0x238] sm:$0xff]  }
 0x5df   : > { %12420 = vmatmul.mubr.bf16.gmra.mxu0 %v8347_v52  ;;  %12444 = vmatpush3.bf16.msra.mxu1 %v12718_v18  ;;  %v8708_v18 = vld [vmem:[#allocation4 + $0x2f] sm:$0xff]  ;;  %v8707_v52 = vld [vmem:[#allocation4 + $0x27] sm:$0xff] }
 0x5e0   : > { %12375 = vmatprep.mubr.msk.bf16.mxu1 %vm12796_vm2, %v17230_v47  ;;  %12445 = vmatprep.subr.bf16.mxu1 %v17230_v47 }
 0x5e1   : > { %12423 = vmatprep.mubr.msk.bf16.mxu0 %vm12796_vm2, %v17230_v47  ;;  %12492 = vmatpush3.bf16.msra.mxu0 %v12725_v2  ;;  %v8532_v2 = vpack.c.bf16 %v8520_v32, %v8519_v15 }
 0x5e2   : > { %12493 = vmatprep.subr.bf16.mxu0 %v17230_v47 }
 0x5e3   : > { %12446 = vmatpush3.bf16.msra.mxu1 %v12719_v17  ;;  %v8719_v17 = vpack.c.bf16 %v8708_v18, %v8707_v52 }
 0x5e4   : > { %12447 = vmatprep.subr.bf16.mxu1 %v17230_v47 }
 0x5e5   : > { %12494 = vmatpush3.bf16.msra.mxu0 %v12727_v59  ;;  %v8710_v59 = vld [vmem:[#allocation4 + $0x3f] sm:$0xff] }
 0x5e6   : > { %12376 = vmatmul.mubr.bf16.gmra.mxu1 %v8161_v39  ;;  %12495 = vmatprep.subr.bf16.mxu0 %v17230_v47  ;;  %v8533_v39 = vpack.c.bf16 %v8522_v41, %v8521_v25  ;;  %v8895_v25 = vld [vmem:[#allocation4 + $0x38] sm:$0xff] }
 0x5e7   : > { %12424 = vmatmul.mubr.bf16.gmra.mxu0 %v8348_v7  ;;  %12448 = vmatpush3.bf16.msra.mxu1 %v12720_v6  ;;  %v12736_v6 = vld [vmem:[%s17204_s4 + $0x228] sm:$0xff]   ;;  %v8720_v7 = vpack.c.bf16 %v8710_v59, %v8709_v4 }
 0x5e8   : > { %12379 = vmatprep.mubr.msk.bf16.mxu1 %vm12796_vm2, %v17230_v47  ;;  %12449 = vmatprep.subr.bf16.mxu1 %v17230_v47 }
 0x5e9   : > { %12427 = vmatprep.mubr.msk.bf16.mxu0 %vm12796_vm2, %v17230_v47  ;;  %12496 = vmatpush3.bf16.msra.mxu0 %v12728_v24  ;;  %v12737_v24 = vld [vmem:[%s17204_s4 + $0x220] sm:$0xff]  }
 0x5ea   : > { %12497 = vmatprep.subr.bf16.mxu0 %v17230_v47 }
 0x5eb   : > { %12450 = vmatpush3.bf16.msra.mxu1 %v12721_v12  ;;  %v8524_v12 = vld [vmem:[#allocation4 + $0x3e] sm:$0xff] }
 0x5ec   : > { %12451 = vmatprep.subr.bf16.mxu1 %v17230_v47 }
 0x5ed   : > { %12498 = vmatpush3.bf16.msra.mxu0 %v12730_v3  ;;  %v8526_v3 = vld [vmem:[#allocation4 + $0x4e] sm:$0xff] }
 0x5ee   : > { %12380 = vmatmul.mubr.bf16.gmra.mxu1 %v8162_v30  ;;  %12499 = vmatprep.subr.bf16.mxu0 %v17230_v47  ;;  %v8721_v30 = vpack.c.bf16 %v8712_v49, %v8711_v34  ;;  %v8898_v34 = vld [vmem:[#allocation4 + $0x50] sm:$0xff] }
 0x5ef   : > { %12428 = vmatmul.mubr.bf16.gmra.mxu0 %v8349_v13  ;;  %12383 = vmatprep.mubr.msk.bf16.mxu1 %vm12796_vm2, %v17230_v47  ;;  %v12739_v13 = vld [vmem:[%s17204_s4 + $0x210] sm:$0xff]  }
 0x5f0   : > { %12452 = vmatpush3.bf16.msra.mxu1 %v12724_v56  ;;  %12431 = vmatprep.mubr.msk.bf16.mxu0 %vm12796_vm2, %v17230_v47  ;;  %v8534_v56 = vpack.c.bf16 %v8524_v12, %v8523_v43 }
 0x5f1   : > { %12453 = vmatprep.subr.bf16.mxu1 %v17230_v47  ;;  %12500 = vmatpush3.bf16.msra.mxu0 %v12731_v9  ;;  %v8535_v9 = vpack.c.bf16 %v8526_v3, %v8525_v54 }
 0x5f2   : > { %12501 = vmatprep.subr.bf16.mxu0 %v17230_v47 }
 0x5f4   : > { %12454 = vmatpush3.bf16.msra.mxu1 %v12726_v21  ;;  %v8714_v21 = vld [vmem:[#allocation4 + $0x5f] sm:$0xff] }
 0x5f5   : > { %12455 = vmatprep.subr.bf16.mxu1 %v17230_v47  ;;  %12502 = vmatpush3.bf16.msra.mxu0 %v12733_v57  ;;  %v8722_v33 = vpack.c.bf16 %v8714_v21, %v8713_v55  ;;  %v8527_v57 = vld [vmem:[#allocation4 + $0x56] sm:$0xff] }
 0x5f6   : > { %12384 = vmatmul.mubr.bf16.gmra.mxu1 %v8163_v50  ;;  %12575 = vmatprep.subr.bf16.mxu0 %v17230_v47  ;;  %v12741_v50 = vld [vmem:[%s17204_s4 + $0x200] sm:$0xff]  }
 0x5f7   : > { %12432 = vmatmul.mubr.bf16.gmra.mxu0 %v8350_v36  ;;  %12387 = vmatprep.mubr.msk.bf16.mxu1 %vm12796_vm2, %v17230_v47  ;;  %v8528_v36 = vld [vmem:[#allocation4 + $0x5e] sm:$0xff] }
 0x5f8   : > { %12435 = vmatprep.mubr.msk.bf16.mxu0 %vm12796_vm2, %v17230_v47  ;;  %12456 = vmatpush3.bf16.msra.mxu1 %v12729_v53  ;;  %v8716_v53 = vld [vmem:[#allocation4 + $0x6f] sm:$0xff]  ;;  %v8536_v42 = vpack.c.bf16 %v8528_v36, %v8527_v57 }
 0x5f9   : > { %12457 = vmatprep.subr.bf16.mxu1 %v17230_v47 }
 0x5fc   : > { %12458 = vmatpush3.bf16.msra.mxu1 %v12732_v26  ;;  %v8715_v26 = vld [vmem:[#allocation4 + $0x67] sm:$0xff] }
 0x5fd   : > { %12531 = vmatprep.subr.bf16.mxu1 %v17230_v47  ;;  %v8723_v19 = vpack.c.bf16 %v8716_v53, %v8715_v26 }
 0x5fe   : > { %12388 = vmatmul.mubr.bf16.gmra.mxu1 %v8164_v58  ;;  %v8537_v58 = vpack.c.bf16 %v16621_v31, %v8529_v1 }
 0x5ff   : > { %12436 = vmatmul.mubr.bf16.gmra.mxu0 %v8351_v20  ;;  %12391 = vmatprep.mubr.msk.bf16.mxu1 %vm12796_vm2, %v17230_v47  ;;  %v8724_v20 = vpack.c.bf16 %v8717_v61, %v8717_v61 }
 0x600   : > { %12439 = vmatprep.mubr.msk.bf16.mxu0 %vm12796_vm2, %v17230_v47 }
 0x606   : > { %12392 = vmatmul.mubr.bf16.gmra.mxu1 %v8165_v23  ;;  %v8891_v23 = vld [vmem:[#allocation4 + $0x18] sm:$0xff] }
 0x607   : > { %12440 = vmatmul.mubr.bf16.gmra.mxu0 %v8352_v22  ;;  %12395 = vmatprep.mubr.msk.bf16.mxu1 %vm12796_vm2, %v17230_v47  ;;  %v8904_v48 = vpack.c.bf16 %v8892_v29, %v8891_v23  ;;  %v8902_v23 = vld [vmem:[#allocation4 + $0x70] sm:$0xff] }
 0x608   : > { %12503 = vmatprep.mubr.msk.bf16.mxu0 %vm12796_vm2, %v17230_v47 }
 0x60e   : > { %12396 = vmatmul.mubr.bf16.gmra.mxu1 %v8166_v60 }
 0x60f   : > { %12504 = vmatmul.mubr.bf16.vlgmr.msra.gmra.mxu0 %v8718_v35  ;;  %12459 = vmatprep.mubr.msk.bf16.mxu1 %vm12796_vm2, %v17230_v47  ;;  %v8893_v35 = vld [vmem:[#allocation4 + $0x28] sm:$0xff] }
 0x610   : > { %12507 = vmatprep.mubr.msk.bf16.mxu0 %vm12796_vm2, %v17230_v47  ;;  %v8905_v32 = vpack.c.bf16 %v8894_v63, %v8893_v35 }
 0x616   : > { %12460 = vmatmul.mubr.bf16.vlgmr.msra.gmra.mxu1 %v8532_v2 }
 0x617   : > { %12508 = vmatmul.mubr.bf16.gmra.mxu0 %v8719_v17  ;;  %12532 = vmatpush3.bf16.msra.mxu1 %v12734_v16  ;;  %v8896_v17 = vld [vmem:[#allocation4 + $0x40] sm:$0xff] }
 0x618   : > { %12463 = vmatprep.mubr.msk.bf16.mxu1 %vm12796_vm2, %v17230_v47  ;;  %12533 = vmatprep.subr.bf16.mxu1 %v17230_v47 }
 0x619   : > { %12511 = vmatprep.mubr.msk.bf16.mxu0 %vm12796_vm2, %v17230_v47 }
 0x61b   : > { %12534 = vmatpush3.bf16.msra.mxu1 %v12735_v28 }
 0x61c   : > { %12535 = vmatprep.subr.bf16.mxu1 %v17230_v47 }
 0x61e   : > { %12464 = vmatmul.mubr.bf16.gmra.mxu1 %v8533_v39 }
 0x61f   : > { %12512 = vmatmul.mubr.bf16.gmra.mxu0 %v8720_v7  ;;  %12536 = vmatpush3.bf16.msra.mxu1 %v12736_v6  ;;  %v8906_v6 = vpack.c.bf16 %v8896_v17, %v8895_v25  ;;  %v8903_v17 = vld [vmem:[#allocation4 + $0x78] sm:$0x1] }
 0x620   : > { %12467 = vmatprep.mubr.msk.bf16.mxu1 %vm12796_vm2, %v17230_v47  ;;  %12537 = vmatprep.subr.bf16.mxu1 %v17230_v47 }
 0x621   : > { %12515 = vmatprep.mubr.msk.bf16.mxu0 %vm12796_vm2, %v17230_v47 }
 0x623   : > { %12538 = vmatpush3.bf16.msra.mxu1 %v12737_v24 }
 0x624   : > { %12539 = vmatprep.subr.bf16.mxu1 %v17230_v47 }
 0x626   : > { %12468 = vmatmul.mubr.bf16.gmra.mxu1 %v8534_v56 }
 0x627   : > { %12516 = vmatmul.mubr.bf16.gmra.mxu0 %v8721_v30  ;;  %12471 = vmatprep.mubr.msk.bf16.mxu1 %vm12796_vm2, %v17230_v47  ;;  %v8897_v30 = vld [vmem:[#allocation4 + $0x48] sm:$0xff] }
 0x628   : > { %12540 = vmatpush3.bf16.msra.mxu1 %v12738_v40  ;;  %12519 = vmatprep.mubr.msk.bf16.mxu0 %vm12796_vm2, %v17230_v47  ;;  %v8907_v3 = vpack.c.bf16 %v8898_v34, %v8897_v30 }
 0x629   : > { %12541 = vmatprep.subr.bf16.mxu1 %v17230_v47 }
 0x62c   : > { %12542 = vmatpush3.bf16.msra.mxu1 %v12739_v13 }
 0x62d   : > { %12543 = vmatprep.subr.bf16.mxu1 %v17230_v47 }
 0x62e   : > { %12472 = vmatmul.mubr.bf16.gmra.mxu1 %v8535_v9 }
 0x62f   : > { %12520 = vmatmul.mubr.bf16.gmra.mxu0 %v8722_v33  ;;  %12475 = vmatprep.mubr.msk.bf16.mxu1 %vm12796_vm2, %v17230_v47 }
 0x630   : > { %12523 = vmatprep.mubr.msk.bf16.mxu0 %vm12796_vm2, %v17230_v47  ;;  %12544 = vmatpush3.bf16.msra.mxu1 %v12740_v51 }
 0x631   : > { %12545 = vmatprep.subr.bf16.mxu1 %v17230_v47 }
 0x634   : > { %12546 = vmatpush3.bf16.msra.mxu1 %v12741_v50  ;;  %v8900_v50 = vld [vmem:[#allocation4 + $0x60] sm:$0xff] }
 0x635   : > { %12595 = vmatprep.subr.bf16.mxu1 %v17230_v47 }
 0x636   : > { %12476 = vmatmul.mubr.bf16.gmra.mxu1 %v8536_v42  ;;  %v8899_v42 = vld [vmem:[#allocation4 + $0x58] sm:$0xff] }
 0x637   : > { %12524 = vmatmul.mubr.bf16.gmra.mxu0 %v8723_v19  ;;  %12479 = vmatprep.mubr.msk.bf16.mxu1 %vm12796_vm2, %v17230_v47  ;;  %v8908_v61 = vpack.c.bf16 %v8900_v50, %v8899_v42 }
 0x638   : > { %12527 = vmatprep.mubr.msk.bf16.mxu0 %vm12796_vm2, %v17230_v47 }
 0x63e   : > { %12480 = vmatmul.mubr.bf16.gmra.mxu1 %v8537_v58 }
 0x63f   : > { %12528 = vmatmul.mubr.bf16.gmra.mxu0 %v8724_v20  ;;  %12483 = vmatprep.mubr.msk.bf16.mxu1 %vm12796_vm2, %v17230_v47 }
 0x640   : > { %12591 = vmatprep.mubr.msk.bf16.mxu0 %vm12796_vm2, %v17230_v47 }
 0x646   : > { %12484 = vmatmul.mubr.bf16.gmra.mxu1 %v8538_v14 }
 0x647   : > { %12547 = vmatprep.mubr.msk.bf16.mxu1 %vm12796_vm2, %v17230_v47 }
 0x64b   : > { %v7761_v22 = vpop.f32.mrf.mxu0 }
 0x64d   : > { %v12261_v31 = vpop.f32.mrf.mxu0 }
 0x64e   : > { %12548 = vmatmul.mubr.bf16.vlgmr.msra.gmra.mxu1 %v8904_v48 }
 0x64f   : > { %12551 = vmatprep.mubr.msk.bf16.mxu1 %vm12796_vm2, %v17230_v47  ;;  %v7764_v8 = vpop.f32.mrf.mxu0 }
 0x651   : > { %v12262_v60 = vpop.f32.mrf.mxu0 }
 0x656   : > { %v7625_v18 = vpop.f32.mrf.mxu1  ;;  %12552 = vmatmul.mubr.bf16.gmra.mxu1 %v8905_v32 }
 0x657   : > { %v7769_v15 = vpop.f32.mrf.mxu0  ;;  %v16852_v16 = vadd.f32 %v7761_v22, %v7625_v18  ;;  %12555 = vmatprep.mubr.msk.bf16.mxu1 %vm12796_vm2, %v17230_v47 }
 0x658   : > { %v12217_v52 = vpop.f32.mrf.mxu1 }
 0x659   : > { %v12265_v2 = vpop.f32.mrf.mxu0 }
 0x65a   : > { %v7628_v28 = vpop.f32.mrf.mxu1 }
 0x65b   : > { %v7772_v41 = vpop.f32.mrf.mxu0  ;;  %v16856_v59 = vadd.f32 %v7764_v8, %v7628_v28  ;;  %v8901_v8 = vld [vmem:[#allocation4 + $0x68] sm:$0xff] }
 0x65c   : > { %v12218_v4 = vpop.f32.mrf.mxu1  ;;  %v8909_v60 = vpack.c.bf16 %v8902_v23, %v8901_v8 }
 0x65d   : > { %v12266_v39 = vpop.f32.mrf.mxu0 }
 0x65e   : > { %v7633_v7 = vpop.f32.mrf.mxu1  ;;  %12556 = vmatmul.mubr.bf16.gmra.mxu1 %v8906_v6  ;;  %v8910_v6 = vpack.c.bf16 %v8903_v17, %v8903_v17 }
 0x65f   : > { %v8080_v24 = vpop.f32.mrf.mxu0  ;;  %v16858_v12 = vadd.f32 %v7769_v15, %v7633_v7  ;;  %12559 = vmatprep.mubr.msk.bf16.mxu1 %vm12796_vm2, %v17230_v47 }
 0x660   : > { %v12221_v49 = vpop.f32.mrf.mxu1 }
 0x661   : > { %v12329_v43 = vpop.f32.mrf.mxu0 }
 0x662   : > { %v7636_v40 = vpop.f32.mrf.mxu1 }
 0x663   : > { %v8083_v56 = vpop.f32.mrf.mxu0 }
 0x664   : > { %v12222_v13 = vpop.f32.mrf.mxu1 }
 0x665   : > { %v12330_v21 = vpop.f32.mrf.mxu0 }
 0x666   : > { %v7894_v54 = vpop.f32.mrf.mxu1  ;;  %12560 = vmatmul.mubr.bf16.gmra.mxu1 %v8907_v3 }
 0x667   : > { %v8088_v55 = vpop.f32.mrf.mxu0  ;;  %v7948_v9 = vadd.f32 %v7894_v54, %v16559_v37  ;;  %12563 = vmatprep.mubr.msk.bf16.mxu1 %vm12796_vm2, %v17230_v47 }
 0x668   : > { %v12285_v33 = vpop.f32.mrf.mxu1 }
 0x669   : > { %v12333_v51 = vpop.f32.mrf.mxu0  ;;  %v16865_v36 = vadd.f32 %v8080_v24, %v7948_v9 }
 0x66a   : > { %v7897_v53 = vpop.f32.mrf.mxu1 }
 0x66b   : > { %v8091_v57 = vpop.f32.mrf.mxu0  ;;  %v7949_v26 = vadd.f32 %v7897_v53, %v16566_v0 }
 0x66c   : > { %v12286_v19 = vpop.f32.mrf.mxu1 }
 0x66d   : > { %v12334_v1 = vpop.f32.mrf.mxu0  ;;  %v16868_v58 = vadd.f32 %v8083_v56, %v7949_v26 }
 0x66e   : > { %v7902_v20 = vpop.f32.mrf.mxu1  ;;  %12564 = vmatmul.mubr.bf16.gmra.mxu1 %v8908_v61 }
 0x66f   : > { %v8096_v37 = vpop.f32.mrf.mxu0  ;;  %v7950_v5 = vadd.f32 %v7902_v20, %v16574_v45  ;;  %12567 = vmatprep.mubr.msk.bf16.mxu1 %vm12796_vm2, %v17230_v47 }
 0x670   : > { %v12289_v14 = vpop.f32.mrf.mxu1 }
 0x671   : > { %v12337_v29 = vpop.f32.mrf.mxu0  ;;  %v16873_v22 = vadd.f32 %v8088_v55, %v7950_v5 }
 0x672   : > { %v7905_v0 = vpop.f32.mrf.mxu1 }
 0x673   : > { %v8099_v48 = vpop.f32.mrf.mxu0  ;;  %v7951_v31 = vadd.f32 %v7905_v0, %v16590_v62 }
 0x674   : > { %v12290_v63 = vpop.f32.mrf.mxu1 }
 0x675   : > { %v12338_v35 = vpop.f32.mrf.mxu0  ;;  %v16876_v32 = vadd.f32 %v8091_v57, %v7951_v31 }
 0x676   : > { %v7910_v18 = vpop.f32.mrf.mxu1  ;;  %12568 = vmatmul.mubr.bf16.gmra.mxu1 %v8909_v60 }
 0x677   : > { %v8104_v45 = vpop.f32.mrf.mxu0  ;;  %v7952_v15 = vadd.f32 %v7910_v18, %v16600_v11  ;;  %12571 = vmatprep.mubr.msk.bf16.mxu1 %vm12796_vm2, %v17230_v47 }
 0x678   : > { %v12293_v52 = vpop.f32.mrf.mxu1 }
 0x679   : > { %v12341_v2 = vpop.f32.mrf.mxu0  ;;  %v16881_v28 = vadd.f32 %v8096_v37, %v7952_v15 }
 0x67a   : > { %v7913_v62 = vpop.f32.mrf.mxu1 }
 0x67b   : > { %v8107_v41 = vpop.f32.mrf.mxu0  ;;  %v7953_v25 = vadd.f32 %v7913_v62, %v16614_v10 }
 0x67c   : > { %v12294_v4 = vpop.f32.mrf.mxu1 }
 0x67d   : > { %v12342_v39 = vpop.f32.mrf.mxu0  ;;  %v16884_v7 = vadd.f32 %v8099_v48, %v7953_v25 }
 0x67e   : > { %v7918_v24 = vpop.f32.mrf.mxu1  ;;  %12572 = vmatmul.mubr.bf16.gmra.mxu1 %v8910_v6 }
 0x67f   : > { %v8112_v11 = vpop.f32.mrf.mxu0  ;;  %v7954_v49 = vadd.f32 %v7918_v24, %v16624_v27  ;;  %12611 = vmatprep.mubr.msk.bf16.mxu1 %vm12796_vm2, %v17230_v47 }
 0x680   : > { %v12297_v43 = vpop.f32.mrf.mxu1 }
 0x681   : > { %v12345_v34 = vpop.f32.mrf.mxu0  ;;  %v16889_v40 = vadd.f32 %v8104_v45, %v7954_v49 }
 0x682   : > { %v7921_v56 = vpop.f32.mrf.mxu1 }
 0x683   : > { %v8115_v30 = vpop.f32.mrf.mxu0  ;;  %v7955_v10 = vadd.f32 %v7921_v56, %v16640_v44 }
 0x684   : > { %v12298_v13 = vpop.f32.mrf.mxu1 }
 0x685   : > { %v12346_v3 = vpop.f32.mrf.mxu0  ;;  %v16892_v21 = vadd.f32 %v8107_v41, %v7955_v10 }
 0x686   : > { %v7926_v54 = vpop.f32.mrf.mxu1 }
 0x687   : > { %v8120_v55 = vpop.f32.mrf.mxu0  ;;  %v7956_v9 = vadd.f32 %v7926_v54, %v16651_v46 }
 0x688   : > { %v12301_v27 = vpop.f32.mrf.mxu1 }
 0x689   : > { %v12349_v33 = vpop.f32.mrf.mxu0  ;;  %v16895_v51 = vadd.f32 %v8112_v11, %v7956_v9 }
 0x68a   : > { %v7929_v50 = vpop.f32.mrf.mxu1 }
 0x68b   : > { %v8123_v53 = vpop.f32.mrf.mxu0  ;;  %v7957_v57 = vadd.f32 %v7929_v50, %v16665_v38 }
 0x68c   : > { %v12302_v26 = vpop.f32.mrf.mxu1 }
 0x68d   : > { %v12350_v42 = vpop.f32.mrf.mxu0  ;;  %v16898_v19 = vadd.f32 %v8115_v30, %v7957_v57  ;;  %v12742_v26 = vld [vmem:[%s17207_s7 + $0x78] sm:$0xff]  }
 0x68e   : > { %v7934_v44 = vpop.f32.mrf.mxu1  ;;  %12576 = vmatpush3.bf16.msra.mxu0 %v12742_v26 }
 0x68f   : > { %v8128_v61 = vpop.f32.mrf.mxu0  ;;  %v7958_v1 = vadd.f32 %v7934_v44, %v16852_v16  ;;  %12577 = vmatprep.subr.bf16.mxu0 %v17230_v47 }
 0x690   : > { %v12305_v20 = vpop.f32.mrf.mxu1 }
 0x691   : > { %v12353_v37 = vpop.f32.mrf.mxu0  ;;  %v16901_v5 = vadd.f32 %v8120_v55, %v7958_v1 }
 0x692   : > { %v7937_v46 = vpop.f32.mrf.mxu1 }
 0x693   : > { %v8131_v14 = vpop.f32.mrf.mxu0  ;;  %v7959_v29 = vadd.f32 %v7937_v46, %v16856_v59 }
 0x694   : > { %v12306_v23 = vpop.f32.mrf.mxu1 }
 0x695   : > { %v12354_v0 = vpop.f32.mrf.mxu0  ;;  %v16904_v48 = vadd.f32 %v8123_v53, %v7959_v29 }
 0x696   : > { %v7942_v38 = vpop.f32.mrf.mxu1 }
 0x697   : > { %v8452_v31 = vpop.f32.mrf.mxu0  ;;  %v7960_v8 = vadd.f32 %v7942_v38, %v16858_v12  ;;  %v12745_v38 = vld [vmem:[%s17207_s7 + $0x30] sm:$0xff]  }
 0x698   : > { %v12309_v63 = vpop.f32.mrf.mxu1 }
 0x699   : > { %v12417_v60 = vpop.f32.mrf.mxu0  ;;  %v16907_v35 = vadd.f32 %v8128_v61, %v7960_v8 }
 0x69a   : > { %v7945_v16 = vpop.f32.mrf.mxu1 }
 0x69b   : > { %v8455_v18 = vpop.f32.mrf.mxu0 }
 0x69c   : > { %v12310_v45 = vpop.f32.mrf.mxu1 }
 0x69d   : > { %v12418_v15 = vpop.f32.mrf.mxu0 }
 0x69e   : > { %v8266_v52 = vpop.f32.mrf.mxu1 }
 0x69f   : > { %v8460_v2 = vpop.f32.mrf.mxu0  ;;  %v8320_v59 = vadd.f32 %v8266_v52, %v16865_v36 }
 0x6a0   : > { %v12373_v17 = vpop.f32.mrf.mxu1 }
 0x6a1   : > { %v12421_v62 = vpop.f32.mrf.mxu0  ;;  %v16910_v41 = vadd.f32 %v8452_v31, %v8320_v59  ;;  %v12746_v31 = vld [vmem:[%s17207_s7 + $0x68] sm:$0xff]  }
 0x6a2   : > { %v8269_v25 = vpop.f32.mrf.mxu1 }
 0x6a3   : > { %v8463_v4 = vpop.f32.mrf.mxu0  ;;  %v8321_v12 = vadd.f32 %v8269_v25, %v16868_v58 }
 0x6a4   : > { %v12374_v6 = vpop.f32.mrf.mxu1 }
 0x6a5   : > { %v12422_v39 = vpop.f32.mrf.mxu0  ;;  %v16913_v24 = vadd.f32 %v8455_v18, %v8321_v12 }
 0x6a6   : > { %v8274_v11 = vpop.f32.mrf.mxu1  ;;  %v12748_v39 = vld [vmem:[%s17207_s7 + $0x60] sm:$0xff]  }
 0x6a7   : > { %v8468_v49 = vpop.f32.mrf.mxu0  ;;  %v8322_v43 = vadd.f32 %v8274_v11, %v16873_v22  ;;  %v12749_v11 = vld [vmem:[%s17207_s7 + $0x20] sm:$0xff]  }
 0x6a8   : > { %v12377_v34 = vpop.f32.mrf.mxu1 }
 0x6a9   : > { %v12425_v56 = vpop.f32.mrf.mxu0  ;;  %v16916_v30 = vadd.f32 %v8460_v2, %v8322_v43 }
 0x6aa   : > { %v8277_v36 = vpop.f32.mrf.mxu1 }
 0x6ab   : > { %v8471_v10 = vpop.f32.mrf.mxu0  ;;  %v8323_v13 = vadd.f32 %v8277_v36, %v16876_v32  ;;  %v12743_v32 = vld [vmem:[%s17207_s7 + $0x38] sm:$0xff]  }
 0x6ac   : > { %v12378_v3 = vpop.f32.mrf.mxu1  ;;  %12596 = vmatpush3.bf16.msra.mxu1 %v12743_v32 }
 0x6ad   : > { %v12426_v54 = vpop.f32.mrf.mxu0  ;;  %v16919_v55 = vadd.f32 %v8463_v4, %v8323_v13  ;;  %12597 = vmatprep.subr.bf16.mxu1 %v17230_v47  ;;  %v12747_v4 = vld [vmem:[%s17207_s7 + $0x28] sm:$0xff]  }
 0x6ae   : > { %v8282_v58 = vpop.f32.mrf.mxu1 }
 0x6af   : > { %v8476_v9 = vpop.f32.mrf.mxu0  ;;  %v8324_v27 = vadd.f32 %v8282_v58, %v16881_v28  ;;  %v12751_v58 = vld [vmem:[%s17207_s7 + $0x18] sm:$0xff]  }
 0x6b0   : > { %v12381_v33 = vpop.f32.mrf.mxu1  ;;  %12598 = vmatpush3.bf16.msra.mxu1 %v12745_v38 }
 0x6b1   : > { %v12429_v50 = vpop.f32.mrf.mxu0  ;;  %v16922_v53 = vadd.f32 %v8468_v49, %v8324_v27  ;;  %12599 = vmatprep.subr.bf16.mxu1 %v17230_v47 }
 0x6b2   : > { %v8285_v22 = vpop.f32.mrf.mxu1 }
 0x6b3   : > { %v8479_v57 = vpop.f32.mrf.mxu0  ;;  %v8325_v42 = vadd.f32 %v8285_v22, %v16884_v7  ;;  %v12744_v7 = vld [vmem:[%s17207_s7 + $0x70] sm:$0xff]  }
 0x6b4   : > { %v12382_v44 = vpop.f32.mrf.mxu1  ;;  %12578 = vmatpush3.bf16.msra.mxu0 %v12744_v7  ;;  %12600 = vmatpush3.bf16.msra.mxu1 %v12747_v4  ;;  %v12752_v22 = vld [vmem:[%s17207_s7 + $0x50] sm:$0xff]   ;;  %v12757_v7 = vld [vmem:[%s17207_s7] sm:$0xff]  }
 0x6b5   : > { %v12430_v61 = vpop.f32.mrf.mxu0  ;;  %v16931_v28 = vadd.f32 %v8471_v10, %v8325_v42  ;;  %12579 = vmatprep.subr.bf16.mxu0 %v17230_v47  ;;  %12601 = vmatprep.subr.bf16.mxu1 %v17230_v47  ;;  %v12754_v42 = vld [vmem:[%s17207_s7 + $0x48] sm:$0xff]  }
 0x6b6   : > { %v8290_v1 = vpop.f32.mrf.mxu1  ;;  %v12755_v44 = vld [vmem:[%s17207_s7 + $0x8] sm:$0xff]  }
 0x6b7   : > { %v8484_v20 = vpop.f32.mrf.mxu0  ;;  %v8326_v37 = vadd.f32 %v8290_v1, %v16889_v40 }
 0x6b8   : > { %v12385_v46 = vpop.f32.mrf.mxu1  ;;  %12580 = vmatpush3.bf16.msra.mxu0 %v12746_v31  ;;  %12602 = vmatpush3.bf16.msra.mxu1 %v12749_v11 }
 0x6b9   : > { %v12433_v14 = vpop.f32.mrf.mxu0  ;;  %v16939_v29 = vadd.f32 %v8476_v9, %v8326_v37  ;;  %12581 = vmatprep.subr.bf16.mxu0 %v17230_v47  ;;  %12603 = vmatprep.subr.bf16.mxu1 %v17230_v47 }
 0x6ba   : > { %v8293_v23 = vpop.f32.mrf.mxu1  ;;  %v12756_v14 = vld [vmem:[%s17207_s7 + $0x40] sm:$0xff]  }
 0x6bb   : > { %v8487_v0 = vpop.f32.mrf.mxu0  ;;  %v8327_v40 = vadd.f32 %v8293_v23, %v16892_v21 }
 0x6bc   : > { %v12386_v8 = vpop.f32.mrf.mxu1  ;;  %12582 = vmatpush3.bf16.msra.mxu0 %v12748_v39  ;;  %12604 = vmatpush3.bf16.msra.mxu1 %v12751_v58 }
 0x6bd   : > { %v12434_v63 = vpop.f32.mrf.mxu0  ;;  %v16949_v60 = vadd.f32 %v8479_v57, %v8327_v40  ;;  %12583 = vmatprep.subr.bf16.mxu0 %v17230_v47  ;;  %12605 = vmatprep.subr.bf16.mxu1 %v17230_v47  ;;  %v12753_v57 = vld [vmem:[%s17207_s7 + $0x10] sm:$0xff]  }
 0x6be   : > { %v8298_v16 = vpop.f32.mrf.mxu1 }
 0x6bf   : > { %v8492_v18 = vpop.f32.mrf.mxu0  ;;  %v8328_v45 = vadd.f32 %v8298_v16, %v16895_v51 }
 0x6c0   : > { %v12389_v15 = vpop.f32.mrf.mxu1  ;;  %12606 = vmatpush3.bf16.msra.mxu1 %v12753_v57 }
 0x6c1   : > { %v12437_v52 = vpop.f32.mrf.mxu0  ;;  %v16954_v2 = vadd.f32 %v8484_v20, %v8328_v45  ;;  %12607 = vmatprep.subr.bf16.mxu1 %v17230_v47 }
 0x6c2   : > { %v8301_v21 = vpop.f32.mrf.mxu1 }
 0x6c3   : > { %v8495_v59 = vpop.f32.mrf.mxu0  ;;  %v8329_v17 = vadd.f32 %v8301_v21, %v16898_v19 }
 0x6c4   : > { %v12390_v62 = vpop.f32.mrf.mxu1  ;;  %12608 = vmatpush3.bf16.msra.mxu1 %v12755_v44 }
 0x6c5   : > { %v12438_v25 = vpop.f32.mrf.mxu0  ;;  %v16960_v12 = vadd.f32 %v8487_v0, %v8329_v17  ;;  %12609 = vmatprep.subr.bf16.mxu1 %v17230_v47 }
 0x6c6   : > { %v8306_v6 = vpop.f32.mrf.mxu1 }
 0x6c7   : > { %v8500_v51 = vpop.f32.mrf.mxu0  ;;  %v8330_v19 = vadd.f32 %v8306_v6, %v16901_v5  ;;  %v12750_v5 = vld [vmem:[%s17207_s7 + $0x58] sm:$0xff]  }
 0x6c8   : > { %v12393_v49 = vpop.f32.mrf.mxu1  ;;  %12584 = vmatpush3.bf16.msra.mxu0 %v12750_v5  ;;  %12610 = vmatpush3.bf16.msra.mxu1 %v12757_v7 }
 0x6c9   : > { %v12441_v43 = vpop.f32.mrf.mxu0  ;;  %v16970_v34 = vadd.f32 %v8492_v18, %v8330_v19  ;;  %12585 = vmatprep.subr.bf16.mxu0 %v17230_v47  ;;  %12635 = vmatprep.subr.bf16.mxu1 %v17230_v47 }
 0x6ca   : > { %v8309_v56 = vpop.f32.mrf.mxu1 }
 0x6cb   : > { %v8503_v36 = vpop.f32.mrf.mxu0  ;;  %v8331_v10 = vadd.f32 %v8309_v56, %v16904_v48 }
 0x6cc   : > { %v12394_v13 = vpop.f32.mrf.mxu1  ;;  %12586 = vmatpush3.bf16.msra.mxu0 %v12752_v22 }
 0x6cd   : > { %v12442_v3 = vpop.f32.mrf.mxu0  ;;  %v16975_v54 = vadd.f32 %v8495_v59, %v8331_v10  ;;  %12587 = vmatprep.subr.bf16.mxu0 %v17230_v47 }
 0x6ce   : > { %v8314_v9 = vpop.f32.mrf.mxu1 }
 0x6cf   : > { %v8824_v27 = vpop.f32.mrf.mxu0  ;;  %v8332_v33 = vadd.f32 %v8314_v9, %v16907_v35 }
 0x6d0   : > { %v12397_v48 = vpop.f32.mrf.mxu1  ;;  %12588 = vmatpush3.bf16.msra.mxu0 %v12754_v42 }
 0x6d1   : > { %v12505_v50 = vpop.f32.mrf.mxu0  ;;  %v16992_v26 = vadd.f32 %v8500_v51, %v8332_v33  ;;  %12589 = vmatprep.subr.bf16.mxu0 %v17230_v47 }
 0x6d2   : > { %v8317_v32 = vpop.f32.mrf.mxu1 }
 0x6d3   : > { %v16994_v35 = vpop.f32.mrf.mxu0 }
 0x6d4   : > { %v12398_v61 = vpop.f32.mrf.mxu1  ;;  %12590 = vmatpush3.bf16.msra.mxu0 %v12756_v14 }
 0x6d5   : > { %v12506_v1 = vpop.f32.mrf.mxu0  ;;  %12615 = vmatprep.subr.bf16.mxu0 %v17230_v47 }
 0x6d6   : > { %v8638_v20 = vpop.f32.mrf.mxu1 }
 0x6d7   : > { %v17004_v37 = vpop.f32.mrf.mxu0  ;;  %v8692_v46 = vadd.f32 %v8638_v20, %v16910_v41 }
 0x6d8   : > { %v12461_v23 = vpop.f32.mrf.mxu1 }
 0x6d9   : > { %v12509_v0 = vpop.f32.mrf.mxu0  ;;  %v17015_v38 = vadd.f32 %v8824_v27, %v8692_v46 }
 0x6da   : > { %v8641_v31 = vpop.f32.mrf.mxu1 }
 0x6db   : > { %v17017_v41 = vpop.f32.mrf.mxu0 }
 0x6dc   : > { %v12462_v40 = vpop.f32.mrf.mxu1 }
 0x6dd   : > { %v12510_v8 = vpop.f32.mrf.mxu0  ;;  %v8693_v40 = vadd.f32 %v8641_v31, %v16913_v24 }
 0x6de   : > { %v8646_v63 = vpop.f32.mrf.mxu1 }
 0x6df   : > { %v17021_v16 = vpop.f32.mrf.mxu0 }
 0x6e0   : > { %v12465_v18 = vpop.f32.mrf.mxu1 }
 0x6e1   : > { %v12513_v45 = vpop.f32.mrf.mxu0 }
 0x6e2   : > { %v8649_v15 = vpop.f32.mrf.mxu1  ;;  %v8694_v45 = vadd.f32 %v8646_v63, %v16916_v30  ;;  %v17067_v30 = vld [vmem:[%s17206_s6] ss:$0 sm:$0xff] }
 0x6e3   : > { %v17023_v52 = vpop.f32.mrf.mxu0 }
 0x6e4   : > { %v12466_v21 = vpop.f32.mrf.mxu1  ;;  %v8880_v24 = vadd.f32 %v17004_v37, %v8694_v45 }
 0x6e5   : > { %v12514_v59 = vpop.f32.mrf.mxu0  ;;  %v8879_v21 = vadd.f32 %v16994_v35, %v8693_v40 }
 0x6e6   : > { %v8654_v17 = vpop.f32.mrf.mxu1 }
 0x6e7   : > { %v17025_v62 = vpop.f32.mrf.mxu0 }
 0x6e8   : > { %v12469_v25 = vpop.f32.mrf.mxu1 }
 0x6e9   : > { %v12517_v4 = vpop.f32.mrf.mxu0 }
 0x6ea   : > { %v8657_v6 = vpop.f32.mrf.mxu1  ;;  %v17059_v4 = vld [vmem:[%s17205_s5] ss:$0 sm:$0xff] }
 0x6eb   : > { %v17027_v51 = vpop.f32.mrf.mxu0 }
 0x6ec   : > { %v12470_v39 = vpop.f32.mrf.mxu1 }
 0x6ed   : > { %v12518_v11 = vpop.f32.mrf.mxu0 }
 0x6ee   : > { %v17029_v19 = vpop.f32.mrf.mxu1  ;;  %v8695_v11 = vadd.f32 %v8649_v15, %v16919_v55 }
 0x6ef   : > { %v17031_v49 = vpop.f32.mrf.mxu0 }
 0x6f0   : > { %v12473_v43 = vpop.f32.mrf.mxu1  ;;  %v8881_v15 = vadd.f32 %v17017_v41, %v8695_v11 }
 0x6f1   : > { %v12521_v56 = vpop.f32.mrf.mxu0 }
 0x6f2   : > { %v17033_v36 = vpop.f32.mrf.mxu1 }
 0x6f3   : > { %v17035_v10 = vpop.f32.mrf.mxu0  ;;  %v8699_v45 = vadd.f32 %v17033_v36, %v16949_v60 }
 0x6f4   : > { %v12474_v13 = vpop.f32.mrf.mxu1 }
 0x6f5   : > { %v12522_v3 = vpop.f32.mrf.mxu0  ;;  %v8696_v13 = vadd.f32 %v8654_v17, %v16922_v53 }
 0x6f6   : > { %v17037_v5 = vpop.f32.mrf.mxu1 }
 0x6f7   : > { %v17039_v58 = vpop.f32.mrf.mxu0  ;;  %v8882_v53 = vadd.f32 %v17021_v16, %v8696_v13  ;;  %v8700_v60 = vadd.f32 %v17037_v5, %v16954_v2 }
 0x6f8   : > { %v12477_v9 = vpop.f32.mrf.mxu1 }
 0x6f9   : > { %v12525_v27 = vpop.f32.mrf.mxu0 }
 0x6fa   : > { %v17041_v33 = vpop.f32.mrf.mxu1 }
 0x6fb   : > { %v17043_v48 = vpop.f32.mrf.mxu0  ;;  %v8701_v2 = vadd.f32 %v17041_v33, %v16960_v12 }
 0x6fc   : > { %v12478_v50 = vpop.f32.mrf.mxu1 }
 0x6fd   : > { %v12526_v22 = vpop.f32.mrf.mxu0  ;;  %v8887_v33 = vadd.f32 %v17035_v10, %v8701_v2 }
 0x6fe   : > { %v17045_v57 = vpop.f32.mrf.mxu1 }
 0x6ff   : > { %v17047_v32 = vpop.f32.mrf.mxu0 }
 0x700   : > { %v12481_v42 = vpop.f32.mrf.mxu1 }
 0x701   : > { %v12529_v44 = vpop.f32.mrf.mxu0  ;;  %v8697_v42 = vadd.f32 %v8657_v6, %v16931_v28 }
 0x702   : > { %v17049_v61 = vpop.f32.mrf.mxu1 }
 0x703   : > { %v8875_v1 = vpop.f32.mrf.mxu0  ;;  %v8883_v6 = vadd.f32 %v17023_v52, %v8697_v42  ;;  %v8886_v42 = vadd.f32 %v17031_v49, %v8700_v60 }
 0x704   : > { %v12482_v20 = vpop.f32.mrf.mxu1 }
 0x705   : > { %v12530_v46 = vpop.f32.mrf.mxu0 }
 0x706   : > { %v17051_v14 = vpop.f32.mrf.mxu1 }
 0x708   : > { %v12485_v7 = vpop.f32.mrf.mxu1 }
 0x709   : > { %v8698_v7 = vadd.f32 %v17029_v19, %v16939_v29 }
 0x70a   : > { %v8689_v23 = vpop.f32.mrf.mxu1 }
 0x70b   : > { %v8884_v52 = vadd.f32 %v17025_v62, %v8698_v7  ;;  %v8885_v62 = vadd.f32 %v17027_v51, %v8699_v45 }
 0x70c   : > { %v12486_v0 = vpop.f32.mrf.mxu1 }
 0x70e   : > { %v9010_v8 = vpop.f32.mrf.mxu1 }
 0x70f   : > { %v9064_v9 = vadd.f32 %v9010_v8, %v17015_v38 }
 0x710   : > { %v12549_v18 = vpop.f32.mrf.mxu1 }
 0x711   : > { %v9083_v41 = vadd.f32 %v17059_v4, %v9064_v9 }
 0x712   : > { %v9013_v59 = vpop.f32.mrf.mxu1 }
 0x713   : > { %v9065_v25 = vadd.f32 %v9013_v59, %v8879_v21  ;;  %v9115_v16 = vmul.f32 %v17067_v30, %v9083_v41  ;;  %vm9096_vm1 = vcmp.gt.f32.partialorder %v9083_v41, 0.0 }
 0x714   : > { %v12550_v39 = vpop.f32.mrf.mxu1 }
 0x715   : > { %v9084_v43 = vadd.f32 %v17059_v4, %v9065_v25  ;;  %v9128_v39 = vsel %vm9096_vm1, %v9083_v41, %v9115_v16 }
 0x716   : > { %v9018_v35 = vpop.f32.mrf.mxu1 }
 0x717   : > { %vm9097_vm13 = vcmp.gt.f32.partialorder %v9084_v43, 0.0  ;;  %v9116_v31 = vmul.f32 %v17067_v30, %v9084_v43  ;;  %v9066_v63 = vadd.f32 %v9018_v35, %v8880_v24 }
 0x718   : > { %v12553_v56 = vpop.f32.mrf.mxu1 }
 0x719   : > { %v9129_v3 = vsel %vm9097_vm13, %v9084_v43, %v9116_v31  ;;  %v9085_v55 = vadd.f32 %v17059_v4, %v9066_v63 }
 0x71a   : > { %9142 = vst [vmem:[#allocation2 + $0x8] sm:$0xff] %v9129_v3  ;;  %v9021_v37 = vpop.f32.mrf.mxu1 }
 0x71b   : > { %vm9098_vm14 = vcmp.gt.f32.partialorder %v9085_v55, 0.0  ;;  %v9117_v27 = vmul.f32 %v17067_v30, %v9085_v55  ;;  %v9067_v50 = vadd.f32 %v9021_v37, %v8881_v15 }
 0x71c   : > { %v12554_v22 = vpop.f32.mrf.mxu1 }
 0x71d   : > { %v9130_v44 = vsel %vm9098_vm14, %v9085_v55, %v9117_v27  ;;  %v9086_v1 = vadd.f32 %v17059_v4, %v9067_v50 }
 0x71e   : > { %9143 = vst [vmem:[#allocation2 + $0x10] sm:$0xff] %v9130_v44  ;;  %v9026_v17 = vpop.f32.mrf.mxu1 }
 0x71f   : > { %vm9099_vm15 = vcmp.gt.f32.partialorder %v9086_v1, 0.0  ;;  %v9118_v20 = vmul.f32 %v17067_v30, %v9086_v1  ;;  %v9068_v38 = vadd.f32 %v9026_v17, %v8882_v53  ;;  %v8702_v53 = vadd.f32 %v17045_v57, %v16970_v34 }
 0x720   : > { %v12557_v46 = vpop.f32.mrf.mxu1 }
 0x721   : > { %v9131_v23 = vsel %vm9099_vm15, %v9086_v1, %v9118_v20  ;;  %v9087_v28 = vadd.f32 %v17059_v4, %v9068_v38  ;;  %v9155_v11 = vld [vmem:[#allocation2 + $0x8] sm:$0x1]  ;;  %v8888_v34 = vadd.f32 %v17039_v58, %v8702_v53 }
 0x722   : > { %9144 = vst [vmem:[#allocation2 + $0x18] sm:$0xff] %v9131_v23  ;;  %v9029_v0 = vpop.f32.mrf.mxu1 }
 0x723   : > { %vm9100_vm0 = vcmp.gt.f32.partialorder %v9087_v28, 0.0  ;;  %v9119_v40 = vmul.f32 %v17067_v30, %v9087_v28  ;;  %v9069_v8 = vadd.f32 %v9029_v0, %v8883_v6 }
 0x724   : > { %v12558_v18 = vpop.f32.mrf.mxu1 }
 0x725   : > { %v9156_v21 = vld [vmem:[#allocation2 + $0xb] sm:$0xff]  ;;  %v9157_v29 = vld [vmem:[#allocation2 + $0x13] sm:$0x1]  ;;  %v9132_v19 = vsel %vm9100_vm0, %v9087_v28, %v9119_v40  ;;  %v9088_v59 = vadd.f32 %v17059_v4, %v9069_v8  ;;  %v8703_v40 = vadd.f32 %v17049_v61, %v16975_v54  ;;  %v8704_v54 = vadd.f32 %v17051_v14, %v16992_v26 }
 0x726   : > { %9145 = vst [vmem:[#allocation2 + $0x20] sm:$0xff] %v9132_v19  ;;  %v9034_v25 = vpop.f32.mrf.mxu1  ;;  %v9158_v35 = vmax.f32 %v9128_v39, %v9156_v21  ;;  %v9159_v31 = vmax.f32 %v9155_v11, %v9157_v29 }
 0x727   : > { %vm9101_vm3 = vcmp.gt.f32.partialorder %v9088_v59, 0.0  ;;  %v9120_v43 = vmul.f32 %v17067_v30, %v9088_v59  ;;  %v9070_v24 = vadd.f32 %v9034_v25, %v8884_v52  ;;  %v8890_v26 = vadd.f32 %v17047_v32, %v8704_v54  ;;  %v12762_v54 = vld [vmem:[%s17207_s7 + $0xa8] sm:$0xff]  }
 0x728   : > { %v12561_v63 = vpop.f32.mrf.mxu1 }
 0x729   : > { %v9160_v36 = vld [vmem:[#allocation2 + $0x16] sm:$0xff]  ;;  %v9161_v56 = vld [vmem:[#allocation2 + $0x1e] sm:$0x1]  ;;  %v9133_v13 = vsel %vm9101_vm3, %v9088_v59, %v9120_v43  ;;  %v9089_v3 = vadd.f32 %v17059_v4, %v9070_v24  ;;  %v8889_v24 = vadd.f32 %v17043_v48, %v8703_v40 }
 0x72a   : > { %v9162_v55 = vmax.f32 %v9158_v35, %v9160_v36  ;;  %v9163_v15 = vmax.f32 %v9159_v31, %v9161_v56  ;;  %9146 = vst [vmem:[#allocation2 + $0x28] sm:$0xff] %v9133_v13  ;;  %v9037_v37 = vpop.f32.mrf.mxu1  ;;  %v9167_v49 = vld [vmem:[#allocation2 + $0x1e] sm:$0x1] }
 0x72b   : > { %vm9102_vm4 = vcmp.gt.f32.partialorder %v9089_v3, 0.0  ;;  %v9121_v9 = vmul.f32 %v17067_v30, %v9089_v3  ;;  %v9071_v27 = vadd.f32 %v9037_v37, %v8885_v62 }
 0x72c   : > { %9164 = vst [vmem:[#allocation3] sm:$0xff] %v9162_v55  ;;  %9165 = vst [vmem:[#allocation3 + $0x8] sm:$0x1] %v9163_v15  ;;  %v12562_v50 = vpop.f32.mrf.mxu1 }
 0x72d   : > { %v9134_v5 = vsel %vm9102_vm4, %v9089_v3, %v9121_v9  ;;  %v9090_v22 = vadd.f32 %v17059_v4, %v9071_v27 }
 0x72e   : > { %9147 = vst [vmem:[#allocation2 + $0x30] sm:$0xff] %v9134_v5  ;;  %v9042_v51 = vpop.f32.mrf.mxu1 }
 0x72f   : > { %vm9103_vm5 = vcmp.gt.f32.partialorder %v9090_v22, 0.0  ;;  %v9122_v44 = vmul.f32 %v17067_v30, %v9090_v22  ;;  %v9072_v1 = vadd.f32 %v9042_v51, %v8886_v42 }
 0x730   : > { %v12565_v17 = vpop.f32.mrf.mxu1 }
 0x731   : > { %v9168_v41 = vld [vmem:[#allocation2 + $0x21] sm:$0xff]  ;;  %v9169_v20 = vld [vmem:[#allocation2 + $0x29] sm:$0x1]  ;;  %v9135_v38 = vsel %vm9103_vm5, %v9090_v22, %v9122_v44  ;;  %v9091_v12 = vadd.f32 %v17059_v4, %v9072_v1 }
 0x732   : > { %9148 = vst [vmem:[#allocation2 + $0x38] sm:$0xff] %v9135_v38  ;;  %v9045_v46 = vpop.f32.mrf.mxu1  ;;  %v9170_v6 = vmax.f32 %v9160_v36, %v9168_v41  ;;  %v9171_v0 = vmax.f32 %v9167_v49, %v9169_v20 }
 0x733   : > { %vm9104_vm6 = vcmp.gt.f32.partialorder %v9091_v12, 0.0  ;;  %v9123_v7 = vmul.f32 %v17067_v30, %v9091_v12  ;;  %v9073_v23 = vadd.f32 %v9045_v46, %v8887_v33  ;;  %v9202_v28 = vld [vmem:[#allocation3] ss:$2 sm:$0xf] }
 0x734   : > { %v12566_v16 = vpop.f32.mrf.mxu1  ;;  %v9203_v57 = vld [vmem:[#allocation3 + $0x1] ss:$2 sm:$0xf]  ;;  %v9204_v52 = vld [vmem:[#allocation3 + $0x2] ss:$2 sm:$0xf] }
 0x735   : > { %v9172_v8 = vld [vmem:[#allocation2 + $0x2c] sm:$0xff]  ;;  %v9173_v18 = vld [vmem:[#allocation2 + $0x34] sm:$0x1]  ;;  %v9136_v10 = vsel %vm9104_vm6, %v9091_v12, %v9123_v7  ;;  %v9092_v45 = vadd.f32 %v17059_v4, %v9073_v23  ;;  %v9205_v21 = vmax.f32 %v9202_v28, %v9203_v57 }
 0x736   : > { %v9174_v29 = vmax.f32 %v9170_v6, %v9172_v8  ;;  %v9175_v19 = vmax.f32 %v9171_v0, %v9173_v18  ;;  %9149 = vst [vmem:[#allocation2 + $0x40] sm:$0xff] %v9136_v10  ;;  %v9050_v59 = vpop.f32.mrf.mxu1  ;;  %v9179_v62 = vld [vmem:[#allocation2 + $0x34] sm:$0x1]  ;;  %v12758_v18 = vld [vmem:[%s17207_s7 + $0xb8] sm:$0xff]  }
 0x737   : > { %vm9105_vm7 = vcmp.gt.f32.partialorder %v9092_v45, 0.0  ;;  %v9124_v25 = vmul.f32 %v17067_v30, %v9092_v45  ;;  %v9074_v39 = vadd.f32 %v9050_v59, %v8888_v34  ;;  %v9206_v58 = vmax.f32 %v9205_v21, %v9204_v52  ;;  %v12759_v10 = vld [vmem:[%s17207_s7 + $0xf8] sm:$0xff]  }
 0x738   : > { %9176 = vst [vmem:[#allocation3 + $0x10] sm:$0xff] %v9174_v29  ;;  %9177 = vst [vmem:[#allocation3 + $0x18] sm:$0x1] %v9175_v19  ;;  %v12569_v11 = vpop.f32.mrf.mxu1 }
 0x739   : > { %v9137_v61 = vsel %vm9105_vm7, %v9092_v45, %v9124_v25  ;;  %v9093_v43 = vadd.f32 %v17059_v4, %v9074_v39  ;;  %9207 = vst [vmem:[#allocation5] sm:$0xf] %v9206_v58  ;;  %v9180_v36 = vld [vmem:[#allocation2 + $0x37] sm:$0xff]  ;;  %v9181_v56 = vld [vmem:[#allocation2 + $0x3f] sm:$0x1] }
 0x73a   : > { %9150 = vst [vmem:[#allocation2 + $0x48] sm:$0xff] %v9137_v61  ;;  %v9053_v35 = vpop.f32.mrf.mxu1  ;;  %v9182_v37 = vmax.f32 %v9172_v8, %v9180_v36  ;;  %v9183_v9 = vmax.f32 %v9179_v62, %v9181_v56  ;;  %v12760_v58 = vld [vmem:[%s17207_s7 + $0xb0] sm:$0xff]   ;;  %v12763_v61 = vld [vmem:[%s17207_s7 + $0xe8] sm:$0xff]  }
 0x73b   : > { %vm9106_vm8 = vcmp.gt.f32.partialorder %v9093_v43, 0.0  ;;  %v9125_v31 = vmul.f32 %v17067_v30, %v9093_v43  ;;  %v9075_v63 = vadd.f32 %v9053_v35, %v8889_v24  ;;  %v12761_v11 = vld [vmem:[%s17207_s7 + $0xf0] sm:$0xff]   ;;  %v12765_v24 = vld [vmem:[%s17207_s7 + $0xe0] sm:$0xff]   ;;  %v12766_v35 = vld [vmem:[%s17207_s7 + $0x98] sm:$0xff]  }
 0x73c   : > { %v12570_v60 = vpop.f32.mrf.mxu1  ;;  %v12770_v36 = vld [vmem:[%s17207_s7 + $0x88] sm:$0xff]  }
 0x73d   : > { %v9138_v13 = vsel %vm9106_vm8, %v9093_v43, %v9125_v31  ;;  %v9094_v3 = vadd.f32 %v17059_v4, %v9075_v63  ;;  %v12764_v43 = vld [vmem:[%s17207_s7 + $0xa0] sm:$0xff]   ;;  %v12767_v31 = vld [vmem:[%s17207_s7 + $0xd8] sm:$0xff]   ;;  %v12768_v63 = vld [vmem:[%s17207_s7 + $0x90] sm:$0xff]  }
 0x73e   : > { %9151 = vst [vmem:[#allocation2 + $0x50] sm:$0xff] %v9138_v13  ;;  %v9058_v14 = vpop.f32.mrf.mxu1  ;;  %v12769_v60 = vld [vmem:[%s17207_s7 + $0xd0] sm:$0xff]   ;;  %v12771_v56 = vld [vmem:[%s17207_s7 + $0xc8] sm:$0xff]   ;;  %v12772_v13 = vld [vmem:[%s17207_s7 + $0x80] sm:$0xff]  }
 0x73f   : > { %vm9107_vm9 = vcmp.gt.f32.partialorder %v9094_v3, 0.0  ;;  %v9126_v48 = vmul.f32 %v17067_v30, %v9094_v3  ;;  %v9076_v55 = vadd.f32 %v9058_v14, %v8890_v26  ;;  %v9208_v15 = vld [vmem:[#allocation3 + $0x10] ss:$2 sm:$0xf] }
 0x740   : > { %v12573_v27 = vpop.f32.mrf.mxu1  ;;  %v9209_v50 = vld [vmem:[#allocation3 + $0x11] ss:$2 sm:$0xf]  ;;  %v9210_v53 = vld [vmem:[#allocation3 + $0x12] ss:$2 sm:$0xf] }
 0x741   : > { %v9184_v2 = vld [vmem:[#allocation2 + $0x42] sm:$0xff]  ;;  %v9185_v5 = vld [vmem:[#allocation2 + $0x4a] sm:$0x1]  ;;  %v9139_v22 = vsel %vm9107_vm9, %v9094_v3, %v9126_v48  ;;  %v9095_v42 = vadd.f32 %v17059_v4, %v9076_v55  ;;  %v9211_v51 = vmax.f32 %v9208_v15, %v9209_v50 }
 0x742   : > { %v9186_v44 = vmax.f32 %v9182_v37, %v9184_v2  ;;  %v9187_v32 = vmax.f32 %v9183_v9, %v9185_v5  ;;  %9152 = vst [vmem:[#allocation2 + $0x58] sm:$0xff] %v9139_v22  ;;  %v9061_v1 = vpop.f32.mrf.mxu1  ;;  %v9191_v49 = vld [vmem:[#allocation2 + $0x4a] sm:$0x1]  ;;  %v12773_v3 = vld [vmem:[%s17207_s7 + $0xc0] sm:$0xff]  }
 0x743   : > { %vm9108_vm10 = vcmp.gt.f32.partialorder %v9095_v42, 0.0  ;;  %v9127_v17 = vmul.f32 %v17067_v30, %v9095_v42  ;;  %v9212_v41 = vmax.f32 %v9211_v51, %v9210_v53  ;;  %v10383_v1 = vld [vmem:[%s17208_s8] ss:$0 sm:$0xff] }
 0x744   : > { %9188 = vst [vmem:[#allocation3 + $0x20] sm:$0xff] %v9186_v44  ;;  %9189 = vst [vmem:[#allocation3 + $0x28] sm:$0x1] %v9187_v32  ;;  %v12574_v20 = vpop.f32.mrf.mxu1 }
 0x745   : > { %v9192_v38 = vld [vmem:[#allocation2 + $0x4d] sm:$0xff]  ;;  %v9140_v12 = vsel %vm9108_vm10, %v9095_v42, %v9127_v17  ;;  %9213 = vst [vmem:[#allocation5 + $0x4] sm:$0xf] %v9212_v41  ;;  %v9193_v4 = vld [vmem:[#allocation2 + $0x55] sm:$0x1] }
 0x746   : > { %v9194_v33 = vmax.f32 %v9184_v2, %v9192_v38  ;;  %9153 = vst [vmem:[#allocation2 + $0x60] sm:$0x1] %v9140_v12  ;;  %v9195_v28 = vmax.f32 %v9191_v49, %v9193_v4  ;;  %v10384_v38 = vld [vmem:[%s17209_s9] ss:$0 sm:$0xff] }
 0x748   : > { %v9198_v46 = vmax.f32 %v9194_v33, %v9139_v22 }
 0x74a   : > { %9200 = vst [vmem:[#allocation3 + $0x30] sm:$0xff] %v9198_v46 }
 0x74b   : > { %v9215_v7 = vld [vmem:[#allocation3 + $0x20] ss:$2 sm:$0xf]  ;;  %v9217_v23 = vld [vmem:[#allocation3 + $0x21] ss:$2 sm:$0xf] }
 0x74c   : > { %v9220_v6 = vmax.f32 %v9215_v7, %v9217_v23  ;;  %v9219_v16 = vld [vmem:[#allocation3 + $0x22] ss:$2 sm:$0xf] }
 0x74d   : > { %v9197_v0 = vld [vmem:[#allocation2 + $0x60] sm:$0x1]  ;;  %v9231_v8 = vld [vmem:[#allocation5] sm:$0xff] }
 0x74e   : > { %v9199_v30 = vmax.f32 %v9195_v28, %v9197_v0  ;;  %v9221_v34 = vmax.f32 %v9220_v6, %v9219_v16 }
 0x750   : > { %9201 = vst [vmem:[#allocation3 + $0x38] sm:$0x1] %v9199_v30  ;;  %9222 = vst [vmem:[#allocation5 + $0x8] sm:$0xf] %v9221_v34 }
 0x751   : > { %v9223_v57 = vld [vmem:[#allocation3 + $0x30] ss:$2 sm:$0xf]  ;;  %v9224_v40 = vld [vmem:[#allocation3 + $0x31] ss:$2 sm:$0xf] }
 0x752   : > { %v9226_v19 = vmax.f32 %v9223_v57, %v9224_v40 }
 0x757   : > { %v9250_v45 = vld [vmem:[#allocation5 + $0x1] sm:$0xff]  ;;  %v9251_v21 = vld [vmem:[#allocation5 + $0x9] sm:$0x7] }
 0x758   : > { %v9232_v29 = vld [vmem:[#allocation5 + $0x8] sm:$0x7]  ;;  %v9252_v59 = vpack.c.bf16 %v9251_v21, %v9250_v45 }
 0x759   : > { %v9233_v52 = vpack.c.bf16 %v9232_v29, %v9231_v8  ;;  %v9225_v25 = vld [vmem:[#allocation3 + $0x32] ss:$2 sm:$0xf] }
 0x75a   : > { %v9227_v39 = vmax.f32 %v9226_v19, %v9225_v25  ;;  %12592 = vmatmul.mubr.bf16.vlgmr.msra.gmra.mxu0 %v9252_v59  ;;  %v9448_v48 = vld [vmem:[#allocation5 + $0x4] sm:$0xff] }
 0x75b   : > { %12612 = vmatmul.mubr.bf16.vlgmr.msra.gmra.mxu1 %v9233_v52  ;;  %12616 = vmatpush3.bf16.msra.mxu0 %v12758_v18 }
 0x75c   : > { %12636 = vmatpush3.bf16.msra.mxu1 %v12759_v10  ;;  %9228 = vst [vmem:[#allocation5 + $0xc] sm:$0xf] %v9227_v39  ;;  %12617 = vmatprep.subr.bf16.mxu0 %v17230_v47 }
 0x75d   : > { %12637 = vmatprep.subr.bf16.mxu1 %v17230_v47  ;;  %12631 = vmatprep.mubr.msk.bf16.mxu0 %vm12796_vm2, %v17230_v47 }
 0x75e   : > { %12651 = vmatprep.mubr.msk.bf16.mxu1 %vm12796_vm2, %v17230_v47 }
 0x75f   : > { %12618 = vmatpush3.bf16.msra.mxu0 %v12760_v58 }
 0x760   : > { %12638 = vmatpush3.bf16.msra.mxu1 %v12761_v11  ;;  %12619 = vmatprep.subr.bf16.mxu0 %v17230_v47 }
 0x761   : > { %12639 = vmatprep.subr.bf16.mxu1 %v17230_v47 }
 0x763   : > { %12620 = vmatpush3.bf16.msra.mxu0 %v12762_v54  ;;  %v9449_v26 = vld [vmem:[#allocation5 + $0xc] sm:$0x7] }
 0x764   : > { %12640 = vmatpush3.bf16.msra.mxu1 %v12763_v61  ;;  %12621 = vmatprep.subr.bf16.mxu0 %v17230_v47  ;;  %v9559_v14 = vld [vmem:[#allocation5 + $0x5] sm:$0xff]  ;;  %v9560_v62 = vld [vmem:[#allocation5 + $0xd] sm:$0x7]  ;;  %v9450_v55 = vpack.c.bf16 %v9449_v26, %v9448_v48 }
 0x765   : > { %12641 = vmatprep.subr.bf16.mxu1 %v17230_v47  ;;  %v9561_v15 = vpack.c.bf16 %v9560_v62, %v9559_v14 }
 0x767   : > { %12622 = vmatpush3.bf16.msra.mxu0 %v12764_v43 }
 0x768   : > { %12642 = vmatpush3.bf16.msra.mxu1 %v12765_v24  ;;  %12623 = vmatprep.subr.bf16.mxu0 %v17230_v47 }
 0x769   : > { %12643 = vmatprep.subr.bf16.mxu1 %v17230_v47 }
 0x76b   : > { %12624 = vmatpush3.bf16.msra.mxu0 %v12766_v35 }
 0x76c   : > { %12644 = vmatpush3.bf16.msra.mxu1 %v12767_v31  ;;  %12625 = vmatprep.subr.bf16.mxu0 %v17230_v47 }
 0x76d   : > { %12645 = vmatprep.subr.bf16.mxu1 %v17230_v47 }
 0x76f   : > { %12626 = vmatpush3.bf16.msra.mxu0 %v12768_v63 }
 0x770   : > { %12646 = vmatpush3.bf16.msra.mxu1 %v12769_v60  ;;  %12627 = vmatprep.subr.bf16.mxu0 %v17230_v47 }
 0x771   : > { %12647 = vmatprep.subr.bf16.mxu1 %v17230_v47 }
 0x773   : > { %12628 = vmatpush3.bf16.msra.mxu0 %v12770_v36 }
 0x774   : > { %12648 = vmatpush3.bf16.msra.mxu1 %v12771_v56  ;;  %12629 = vmatprep.subr.bf16.mxu0 %v17230_v47 }
 0x775   : > { %12649 = vmatprep.subr.bf16.mxu1 %v17230_v47 }
 0x777   : > { %12630 = vmatpush3.bf16.msra.mxu0 %v12772_v13 }
 0x778   : > { %12650 = vmatpush3.bf16.msra.mxu1 %v12773_v3 }
 0x77a   : > { %12632 = vmatmul.mubr.bf16.vlgmr.msra.gmra.mxu0 %v9450_v55 }
 0x77b   : > { %12652 = vmatmul.mubr.bf16.vlgmr.msra.gmra.mxu1 %v9561_v15 }
 0x81a   : > { %v9352_v37 = vpop.f32.mrf.mxu0 }
 0x81b   : > { %v9441_v9 = vpop.f32.mrf.mxu1 }
 0x81c   : > { %v12593_v27 = vpop.f32.mrf.mxu0  ;;  %v9442_v51 = vadd.f32 %v9441_v9, %v9352_v37 }
 0x81d   : > { %v12613_v50 = vpop.f32.mrf.mxu1 }
 0x81e   : > { %v9355_v2 = vpop.f32.mrf.mxu0 }
 0x81f   : > { %v9444_v5 = vpop.f32.mrf.mxu1 }
 0x820   : > { %v12594_v22 = vpop.f32.mrf.mxu0  ;;  %v9445_v41 = vadd.f32 %v9444_v5, %v9355_v2 }
 0x821   : > { %v12614_v42 = vpop.f32.mrf.mxu1 }
 0x83a   : > { %v9550_v47 = vpop.f32.mrf.mxu0 }
 0x83b   : > { %v9661_v44 = vpop.f32.mrf.mxu1  ;;  %v9557_v32 = vadd.f32 %v9550_v47, %v9442_v51 }
 0x83c   : > { %v12633_v53 = vpop.f32.mrf.mxu0 }
 0x83d   : > { %v12653_v17 = vpop.f32.mrf.mxu1  ;;  %v9668_v20 = vadd.f32 %v9661_v44, %v9557_v32 }
 0x83e   : > { %v9553_v12 = vpop.f32.mrf.mxu0 }
 0x83f   : > { %v9664_v33 = vpop.f32.mrf.mxu1  ;;  %v9676_v46 = vadd.f32 %v10383_v1, %v9668_v20  ;;  %v9558_v4 = vadd.f32 %v9553_v12, %v9445_v41 }
 0x840   : > { %v12634_v49 = vpop.f32.mrf.mxu0 }
 0x841   : > { %v12654_v7 = vpop.f32.mrf.mxu1  ;;  %vm9678_vm2 = vcmp.gt.f32.partialorder %v9676_v46, 0.0  ;;  %v9686_v23 = vmul.f32 %v10384_v38, %v9676_v46  ;;  %v9669_v28 = vadd.f32 %v9664_v33, %v9558_v4 }
 0x843   : > { %v9688_v6 = vsel %vm9678_vm2, %v9676_v46, %v9686_v23  ;;  %v9677_v0 = vadd.f32 %v10383_v1, %v9669_v28 }
 0x844   : > { %9690 = vst [vmem:[#allocation2] sm:$0xff] %v9688_v6 }
 0x845   : > { %vm9679_vm11 = vcmp.gt.f32.partialorder %v9677_v0, 0.0  ;;  %v9687_v16 = vmul.f32 %v10384_v38, %v9677_v0 }
 0x847   : > { %v9689_v30 = vsel %vm9679_vm11, %v9677_v0, %v9687_v16 }
 0x848   : > { %9691 = vst [vmem:[#allocation2 + $0x8] sm:$0x7] %v9689_v30 }
 0x84b   : > { %v9692_v34 = vld [vmem:[#allocation2] sm:$0x7]  ;;  %v9695_v57 = vld [vmem:[#allocation2 + $0x4] sm:$0x7] }
 0x84c   : > { %9694 = vst.msk [vmem:[%s359_s11] sm:$0x7] %vm9693_vm12, %v9692_v34  ;;  %9696 = vst.msk [vmem:[%s359_s11 + $0x3] sm:$0x7] %vm9693_vm12, %v9695_v57 }
 0x84f   : > { %v9697_v40 = vld [vmem:[#allocation2 + $0x8] sm:$0x7] }
 0x850   : > { %9698 = vst.msk [vmem:[%s359_s11 + $0x6] sm:$0x7] %vm9693_vm12, %v9697_v40 }
 0x851 PF: > { %s20_s13 = sadd.s32 1, %s12792_s13  }
 0x852   : > { %p17_p4 = scmp.ge.s32.totalorder %s20_s13, 4  }
 0x854   :  { %19 = sbr.rel (!%p17_p4) target bundleno = 1 (0x1), region = 177 }

</bundles_post_ra>
